<compile_context>
chip_gen: v7x
topology: tpu7x:2x2x1
jax: 0.10.0
libtpu: 0.0.40
codegen_flags: <defaults>
</compile_context>

<pallas_src>
import functools

import jax
import jax.numpy as jnp
from jax.experimental import pallas as pl
from jax.experimental.pallas import tpu as pltpu

# ---------------- model config (small but lane-dense) ----------------
BATCH = 2
SEQ = 128
HIDDEN = 256
NUM_HEADS = 2
HEAD_DIM = HIDDEN // NUM_HEADS        # 128 -> lane-dense attention matmuls
INTERMEDIATE = 1024
VOCAB = 256
MAX_POS = 128
NUM_LAYERS = 2
LN_EPS = 1e-12
B_TILE = 1                            # sequences per token tile (grid axis 0)
VEC_W = max(3 * HIDDEN, INTERMEDIATE)  # packed per-layer vector slab width


# ---------------- in-kernel helpers (f32 math) ----------------
def _layernorm(x, g, b):
    mu = jnp.mean(x, axis=-1, keepdims=True)
    var = jnp.mean((x - mu) ** 2, axis=-1, keepdims=True)
    return (x - mu) * jax.lax.rsqrt(var + LN_EPS) * g + b


def _gelu(x):
    # TODO(synk): HF BERT uses erf-based GELU; tanh approximation (~1e-3 diff).
    return 0.5 * x * (1.0 + jnp.tanh(0.7978845608028654 * (x + 0.044715 * x * x * x)))


# ---------------- fused encoder-stack kernel ----------------
def bert_stack_kernel(h0_ref, bias_ref, wqkv_ref, wo_ref, w1_ref, w2_ref,
                      vec_ref, o_ref, hs_ref, *, num_heads):
    R, H = hs_ref.shape                   # R = B_TILE * SEQ token rows
    NH = num_heads
    DH = H // NH
    Bt = bias_ref.shape[0]
    S = bias_ref.shape[2]
    I = w1_ref.shape[2]
    l = pl.program_id(1)
    nl = pl.num_programs(1)

    # Layer 0 of this token tile: load the (already LayerNorm'ed) embedding
    # hidden state into the resident VMEM scratch.
    @pl.when(l == 0)
    def _():
        hs_ref[...] = h0_ref[...]

    x = hs_ref[...]                       # [R, H] f32, resident across layers
    xb = x.astype(jnp.bfloat16)

    # Packed per-layer small vectors: one [8, VEC_W] slab, sliced in registers.
    vec = vec_ref[0]
    bqkv = vec[0:1, :3 * H]
    bo = vec[1:2, :H]
    b1 = vec[2:3, :I]
    b2 = vec[3:4, :H]
    ln1g, ln1b = vec[4:5, :H], vec[5:6, :H]
    ln2g, ln2b = vec[6:7, :H], vec[7:8, :H]

    # Fused QKV projection: one [R, H] @ [H, 3H] MXU pass, f32 accumulate.
    # (1/sqrt(DH) attention scale is pre-folded into Wq at init.)
    qkv = jnp.dot(xb, wqkv_ref[0], preferred_element_type=jnp.float32) + bqkv

    bias = bias_ref[...]                  # [Bt, 1, S] additive mask bias (f32)

    # Per-head attention entirely in registers: 128-aligned lane slices of the
    # QKV result, head-batched 3-D einsums, one lane-concat for the merge.
    ctx_heads = []
    for h in range(NH):
        qh = qkv[:, h * DH:(h + 1) * DH].reshape(Bt, S, DH).astype(jnp.bfloat16)
        kh = qkv[:, H + h * DH:H + (h + 1) * DH].reshape(Bt, S, DH).astype(jnp.bfloat16)
        vh = qkv[:, 2 * H + h * DH:2 * H + (h + 1) * DH].reshape(Bt, S, DH).astype(jnp.bfloat16)

        s = jnp.einsum('bqd,bkd->bqk', qh, kh,
                       preferred_element_type=jnp.float32)
        s = s + bias
        s = s - jnp.max(s, axis=-1, keepdims=True)
        p = jnp.exp(s)
        p = p * pl.reciprocal(jnp.sum(p, axis=-1, keepdims=True), approx=True)

        c = jnp.einsum('bqk,bkd->bqd', p.astype(jnp.bfloat16), vh,
                       preferred_element_type=jnp.float32)
        ctx_heads.append(c.reshape(R, DH))
    ctx = ctx_heads[0] if NH == 1 else jnp.concatenate(ctx_heads, axis=-1)

    attn = jnp.dot(ctx.astype(jnp.bfloat16), wo_ref[0],
                   preferred_element_type=jnp.float32) + bo
    h1 = _layernorm(x + attn, ln1g, ln1b)

    ff = _gelu(jnp.dot(h1.astype(jnp.bfloat16), w1_ref[0],
                       preferred_element_type=jnp.float32) + b1)
    ff = jnp.dot(ff.astype(jnp.bfloat16), w2_ref[0],
                 preferred_element_type=jnp.float32) + b2
    out = _layernorm(h1 + ff, ln2g, ln2b)

    hs_ref[...] = out                     # stays resident in VMEM

    @pl.when(l == nl - 1)
    def _():
        o_ref[...] = out.astype(o_ref.dtype)   # lane-dense [R, H] writeback


# ---------------- wrapper ----------------
def bert_forward(token_ids, segs, mask, params):
    """Returns top_vec = last hidden states [B, S, H] (pooler output unused)."""
    B, S = token_ids.shape
    H, I, NH, L = HIDDEN, INTERMEDIATE, NUM_HEADS, NUM_LAYERS
    TS = B_TILE * S                       # token rows per grid tile

    # Embedding gathers + embedding LayerNorm (glue, plain JAX).
    emb = (params['word_emb'][token_ids]
           + params['pos_emb'][jnp.arange(S)][None, :, :]
           + params['type_emb'][segs])
    mu = jnp.mean(emb, axis=-1, keepdims=True)
    var = jnp.mean((emb - mu) ** 2, axis=-1, keepdims=True)
    h0 = ((emb - mu) * jax.lax.rsqrt(var + LN_EPS)
          * params['emb_ln_g'] + params['emb_ln_b'])
    h0 = h0.reshape(B * S, H).astype(jnp.float32)

    # Additive attention-mask bias, [B, 1, S]; broadcast over heads/queries
    # happens in-kernel (no NH*B replication in HBM).
    bias = ((1.0 - mask.astype(jnp.float32)) * -10000.0)[:, None, :]

    def layer_spec(shape2d):
        return pl.BlockSpec((1,) + shape2d, lambda b, l: (l, 0, 0))

    in_specs = [
        pl.BlockSpec((TS, H), lambda b, l: (b, 0)),            # h0 (initial hidden)
        pl.BlockSpec((B_TILE, 1, S), lambda b, l: (b, 0, 0)),  # mask bias
        layer_spec((H, 3 * H)),                                # fused Wqkv (bf16)
        layer_spec((H, H)),                                    # Wo (bf16)
        layer_spec((H, I)),                                    # W1 (bf16)
        layer_spec((I, H)),                                    # W2 (bf16)
        layer_spec((8, VEC_W)),                                # packed per-layer vectors
    ]

    kernel = functools.partial(bert_stack_kernel, num_heads=NH)
    out2d = pl.pallas_call(
        kernel,
        out_shape=jax.ShapeDtypeStruct((B * S, H), jnp.float32),
        grid=(B // B_TILE, L),
        in_specs=in_specs,
        out_specs=pl.BlockSpec((TS, H), lambda b, l: (b, 0)),
        scratch_shapes=[pltpu.VMEM((TS, H), jnp.float32)],     # resident hidden state
        compiler_params=pltpu.CompilerParams(
            # token tiles shard across TensorCores; layer axis is the resident loop.
            # TODO(synk): at BERT-base scale raise vmem_limit_bytes (esp. v5e).
            dimension_semantics=("parallel", "arbitrary")),
    )(h0, bias, params['wqkv'], params['wo'], params['w1'], params['w2'],
      params['vec'])
    return out2d.reshape(B, S, H)


# ---------------- deterministic parameter init (fused / layer-stacked) ----------------
def init_params(key):
    def nrm(k, shape):
        return 0.02 * jax.random.normal(k, shape, jnp.float32)

    H, I, L, NH = HIDDEN, INTERMEDIATE, NUM_LAYERS, NUM_HEADS
    DH = H // NH
    ks = jax.random.split(key, 3 + L)
    params = {
        'word_emb': nrm(ks[0], (VOCAB, H)),
        'pos_emb': nrm(ks[1], (MAX_POS, H)),
        'type_emb': nrm(ks[2], (2, H)),
        'emb_ln_g': jnp.ones((H,), jnp.float32),
        'emb_ln_b': jnp.zeros((H,), jnp.float32),
    }
    wqkv, wo, w1, w2, vec = [], [], [], [], []
    for l in range(L):
        lk = jax.random.split(ks[3 + l], 6)
        wq = nrm(lk[0], (H, H)) * (1.0 / (DH ** 0.5))   # attention scale folded in
        wk, wv = nrm(lk[1], (H, H)), nrm(lk[2], (H, H))
        wqkv.append(jnp.concatenate([wq, wk, wv], axis=1))   # fused [H, 3H]
        wo.append(nrm(lk[3], (H, H)))
        w1.append(nrm(lk[4], (H, I)))
        w2.append(nrm(lk[5], (I, H)))
        # Packed per-layer vector slab [8, VEC_W]:
        #   row 0: bqkv[:3H], 1: bo[:H], 2: b1[:I], 3: b2[:H],
        #   4/5: LN1 gamma/beta, 6/7: LN2 gamma/beta.  Biases init to 0.
        slab = jnp.zeros((8, VEC_W), jnp.float32)
        slab = slab.at[4, :H].set(1.0)   # LN1 gamma
        slab = slab.at[6, :H].set(1.0)   # LN2 gamma
        vec.append(slab)
    params.update({
        # MXU operands stored bf16 (f32 accumulation in-kernel).
        # TODO(synk): fp8 weight storage is a further 2x on v7x only.
        'wqkv': jnp.stack(wqkv).astype(jnp.bfloat16),   # [L, H, 3H]
        'wo':   jnp.stack(wo).astype(jnp.bfloat16),     # [L, H, H]
        'w1':   jnp.stack(w1).astype(jnp.bfloat16),     # [L, H, I]
        'w2':   jnp.stack(w2).astype(jnp.bfloat16),     # [L, I, H]
        'vec':  jnp.stack(vec),                         # [L, 8, VEC_W] f32
    })
    return params


if __name__ == "__main__":
    key = jax.random.PRNGKey(0)
    k_tok, k_seg, k_par = jax.random.split(key, 3)

    token_ids = jax.random.randint(k_tok, (BATCH, SEQ), 0, VOCAB, dtype=jnp.int32)
    segs = jax.random.randint(k_seg, (BATCH, SEQ), 0, 2, dtype=jnp.int32)
    # attention mask: 1 = real token, last 16 positions of batch element 1 padded
    mask = jnp.ones((BATCH, SEQ), jnp.float32).at[1, -16:].set(0.0)

    params = init_params(k_par)

    # TODO(synk): pretrained checkpoint loading (_load_bertsum_weight) and
    # dropout/finetune switching are not reproducible here; eval semantics only.
    top_vec = bert_forward(token_ids, segs, mask, params)
    jax.block_until_ready(top_vec)
    assert top_vec.shape == (BATCH, SEQ, HIDDEN)
    print("KERNEL_OK")
</pallas_src>

<mosaic_0001>
module attributes {stable_mosaic.version = 11 : i64} {
  func.func @bert_stack_kernel(%arg0: i32, %arg1: i32, %arg2: memref<128x256xf32, #tpu.memory_space<vmem>>, %arg3: memref<1x1x128xf32, #tpu.memory_space<vmem>>, %arg4: memref<1x256x768xbf16, #tpu.memory_space<vmem>>, %arg5: memref<1x256x256xbf16, #tpu.memory_space<vmem>>, %arg6: memref<1x256x1024xbf16, #tpu.memory_space<vmem>>, %arg7: memref<1x1024x256xbf16, #tpu.memory_space<vmem>>, %arg8: memref<1x8x1024xf32, #tpu.memory_space<vmem>>, %arg9: memref<128x256xf32, #tpu.memory_space<vmem>>, %arg10: memref<128x256xf32, #tpu.memory_space<vmem>>) attributes {dimension_semantics = [#tpu.dimension_semantics<parallel>, #tpu.dimension_semantics<arbitrary>], iteration_bounds = array<i64: 2, 2>, scalar_prefetch = 0 : i64, scratch_operands = 1 : i64, tpu.core_type = #tpu.core_type<tc>, window_params = [{transform_indices = @transform_0, window_bounds = array<i64: 128, 256>}, {transform_indices = @transform_1, window_bounds = array<i64: 1, 1, 128>}, {transform_indices = @transform_2, window_bounds = array<i64: 1, 256, 768>}, {transform_indices = @transform_3, window_bounds = array<i64: 1, 256, 256>}, {transform_indices = @transform_4, window_bounds = array<i64: 1, 256, 1024>}, {transform_indices = @transform_5, window_bounds = array<i64: 1, 1024, 256>}, {transform_indices = @transform_6, window_bounds = array<i64: 1, 8, 1024>}, {transform_indices = @transform_7, window_bounds = array<i64: 128, 256>}]} {
    %c0_i32 = arith.constant 0 : i32
    %0 = arith.cmpi eq, %arg1, %c0_i32 : i32
    %1 = arith.extui %0 : i1 to i32
    %c0_i32_0 = arith.constant 0 : i32
    %2 = arith.cmpi ne, %1, %c0_i32_0 : i32
    scf.if %2 {
      %c0_48 = arith.constant 0 : index
      %c0_49 = arith.constant 0 : index
      %153 = vector.load %arg2[%c0_48, %c0_49] : memref<128x256xf32, #tpu.memory_space<vmem>>, vector<128x256xf32>
      %c0_50 = arith.constant 0 : index
      %c0_51 = arith.constant 0 : index
      %154 = vector.load %arg10[%c0_50, %c0_51] : memref<128x256xf32, #tpu.memory_space<vmem>>, vector<128x256xf32>
      tpu.vector_store %arg10[%c0_50, %c0_51], %153 {strides = array<i32>} : memref<128x256xf32, #tpu.memory_space<vmem>>, vector<128x256xf32>,
    } else {
    }
    %c0 = arith.constant 0 : index
    %c0_1 = arith.constant 0 : index
    %3 = vector.load %arg10[%c0, %c0_1] : memref<128x256xf32, #tpu.memory_space<vmem>>, vector<128x256xf32>
    %4 = arith.truncf %3 : vector<128x256xf32> to vector<128x256xbf16>
    %c0_2 = arith.constant 0 : index
    %c0_3 = arith.constant 0 : index
    %c0_4 = arith.constant 0 : index
    %5 = vector.load %arg8[%c0_2, %c0_3, %c0_4] : memref<1x8x1024xf32, #tpu.memory_space<vmem>>, vector<1x8x1024xf32>
    %6 = vector.shape_cast %5 : vector<1x8x1024xf32> to vector<8x1024xf32>
    %7 = vector.extract_strided_slice %6 {offsets = [0, 0], sizes = [1, 768], strides = [1, 1]} : vector<8x1024xf32> to vector<1x768xf32>
    %8 = vector.extract_strided_slice %6 {offsets = [1, 0], sizes = [1, 256], strides = [1, 1]} : vector<8x1024xf32> to vector<1x256xf32>
    %9 = vector.extract_strided_slice %6 {offsets = [2, 0], sizes = [1, 1024], strides = [1, 1]} : vector<8x1024xf32> to vector<1x1024xf32>
    %10 = vector.extract_strided_slice %6 {offsets = [3, 0], sizes = [1, 256], strides = [1, 1]} : vector<8x1024xf32> to vector<1x256xf32>
    %11 = vector.extract_strided_slice %6 {offsets = [4, 0], sizes = [1, 256], strides = [1, 1]} : vector<8x1024xf32> to vector<1x256xf32>
    %12 = vector.extract_strided_slice %6 {offsets = [5, 0], sizes = [1, 256], strides = [1, 1]} : vector<8x1024xf32> to vector<1x256xf32>
    %13 = vector.extract_strided_slice %6 {offsets = [6, 0], sizes = [1, 256], strides = [1, 1]} : vector<8x1024xf32> to vector<1x256xf32>
    %14 = vector.extract_strided_slice %6 {offsets = [7, 0], sizes = [1, 256], strides = [1, 1]} : vector<8x1024xf32> to vector<1x256xf32>
    %c0_5 = arith.constant 0 : index
    %c0_6 = arith.constant 0 : index
    %c0_7 = arith.constant 0 : index
    %15 = vector.load %arg4[%c0_5, %c0_6, %c0_7] : memref<1x256x768xbf16, #tpu.memory_space<vmem>>, vector<1x256x768xbf16>
    %16 = vector.shape_cast %15 : vector<1x256x768xbf16> to vector<256x768xbf16>
    %cst = arith.constant dense<0.000000e+00> : vector<128x768xf32>
    %17 = tpu.matmul %4, %16, %cst {dimension_numbers = #tpu.dot_dimension_numbers<[1], [0], [0], [1], [0, 0, 1, 1], [], []>} : vector<128x256xbf16>, vector<256x768xbf16>, vector<128x768xf32> -> vector<128x768xf32>
    %18 = vector.broadcast %7 : vector<1x768xf32> to vector<128x768xf32>
    %19 = arith.addf %17, %18 : vector<128x768xf32>
    %c0_8 = arith.constant 0 : index
    %c0_9 = arith.constant 0 : index
    %c0_10 = arith.constant 0 : index
    %20 = vector.load %arg3[%c0_8, %c0_9, %c0_10] : memref<1x1x128xf32, #tpu.memory_space<vmem>>, vector<1x1x128xf32>
    %21 = vector.extract_strided_slice %19 {offsets = [0, 0], sizes = [128, 128], strides = [1, 1]} : vector<128x768xf32> to vector<128x128xf32>
    %22 = vector.shape_cast %21 : vector<128x128xf32> to vector<1x128x128xf32>
    %23 = arith.truncf %22 : vector<1x128x128xf32> to vector<1x128x128xbf16>
    %24 = vector.extract_strided_slice %19 {offsets = [0, 256], sizes = [128, 128], strides = [1, 1]} : vector<128x768xf32> to vector<128x128xf32>
    %25 = vector.shape_cast %24 : vector<128x128xf32> to vector<1x128x128xf32>
    %26 = arith.truncf %25 : vector<1x128x128xf32> to vector<1x128x128xbf16>
    %27 = vector.extract_strided_slice %19 {offsets = [0, 512], sizes = [128, 128], strides = [1, 1]} : vector<128x768xf32> to vector<128x128xf32>
    %28 = vector.shape_cast %27 : vector<128x128xf32> to vector<1x128x128xf32>
    %29 = arith.truncf %28 : vector<1x128x128xf32> to vector<1x128x128xbf16>
    "tpu.trace_start"() <{level = 10 : i32, message = "bqd,bkd->bqk"}> : () -> ()
    %cst_11 = arith.constant dense<0.000000e+00> : vector<1x128x128xf32>
    %30 = tpu.matmul %23, %26, %cst_11 {dimension_numbers = #tpu.dot_dimension_numbers<[2], [2], [1], [1], [0, 0, 0, 1, 1, 1], [0], [0]>} : vector<1x128x128xbf16>, vector<1x128x128xbf16>, vector<1x128x128xf32> -> vector<1x128x128xf32>
    "tpu.trace_stop"() : () -> ()
    %31 = vector.broadcast %20 : vector<1x1x128xf32> to vector<1x128x128xf32>
    %32 = arith.addf %30, %31 : vector<1x128x128xf32>
    %cst_12 = arith.constant dense<0xFF800000> : vector<1x128xf32>
    %33 = vector.multi_reduction <maximumf>, %32, %cst_12 [2] : vector<1x128x128xf32> to vector<1x128xf32>
    %34 = vector.shape_cast %33 : vector<1x128xf32> to vector<1x128x1xf32>
    %35 = vector.broadcast %34 : vector<1x128x1xf32> to vector<1x128x128xf32>
    %36 = arith.subf %32, %35 : vector<1x128x128xf32>
    %37 = math.exp %36 : vector<1x128x128xf32>
    %cst_13 = arith.constant dense<0.000000e+00> : vector<1x128xf32>
    %38 = vector.multi_reduction <add>, %37, %cst_13 [2] : vector<1x128x128xf32> to vector<1x128xf32>
    %39 = vector.shape_cast %38 : vector<1x128xf32> to vector<1x128x1xf32>
    %40 = tpu.reciprocal %39 {approx = true} : vector<1x128x1xf32> -> vector<1x128x1xf32>
    %41 = vector.broadcast %40 : vector<1x128x1xf32> to vector<1x128x128xf32>
    %42 = arith.mulf %37, %41 : vector<1x128x128xf32>
    %43 = arith.truncf %42 : vector<1x128x128xf32> to vector<1x128x128xbf16>
    "tpu.trace_start"() <{level = 10 : i32, message = "bqk,bkd->bqd"}> : () -> ()
    %cst_14 = arith.constant dense<0.000000e+00> : vector<1x128x128xf32>
    %44 = tpu.matmul %43, %29, %cst_14 {dimension_numbers = #tpu.dot_dimension_numbers<[2], [1], [1], [2], [0, 0, 0, 1, 1, 2], [0], [0]>} : vector<1x128x128xbf16>, vector<1x128x128xbf16>, vector<1x128x128xf32> -> vector<1x128x128xf32>
    "tpu.trace_stop"() : () -> ()
    %45 = vector.shape_cast %44 : vector<1x128x128xf32> to vector<128x128xf32>
    %46 = vector.extract_strided_slice %19 {offsets = [0, 128], sizes = [128, 128], strides = [1, 1]} : vector<128x768xf32> to vector<128x128xf32>
    %47 = vector.shape_cast %46 : vector<128x128xf32> to vector<1x128x128xf32>
    %48 = arith.truncf %47 : vector<1x128x128xf32> to vector<1x128x128xbf16>
    %49 = vector.extract_strided_slice %19 {offsets = [0, 384], sizes = [128, 128], strides = [1, 1]} : vector<128x768xf32> to vector<128x128xf32>
    %50 = vector.shape_cast %49 : vector<128x128xf32> to vector<1x128x128xf32>
    %51 = arith.truncf %50 : vector<1x128x128xf32> to vector<1x128x128xbf16>
    %52 = vector.extract_strided_slice %19 {offsets = [0, 640], sizes = [128, 128], strides = [1, 1]} : vector<128x768xf32> to vector<128x128xf32>
    %53 = vector.shape_cast %52 : vector<128x128xf32> to vector<1x128x128xf32>
    %54 = arith.truncf %53 : vector<1x128x128xf32> to vector<1x128x128xbf16>
    "tpu.trace_start"() <{level = 10 : i32, message = "bqd,bkd->bqk"}> : () -> ()
    %cst_15 = arith.constant dense<0.000000e+00> : vector<1x128x128xf32>
    %55 = tpu.matmul %48, %51, %cst_15 {dimension_numbers = #tpu.dot_dimension_numbers<[2], [2], [1], [1], [0, 0, 0, 1, 1, 1], [0], [0]>} : vector<1x128x128xbf16>, vector<1x128x128xbf16>, vector<1x128x128xf32> -> vector<1x128x128xf32>
    "tpu.trace_stop"() : () -> ()
    %56 = vector.broadcast %20 : vector<1x1x128xf32> to vector<1x128x128xf32>
    %57 = arith.addf %55, %56 : vector<1x128x128xf32>
    %cst_16 = arith.constant dense<0xFF800000> : vector<1x128xf32>
    %58 = vector.multi_reduction <maximumf>, %57, %cst_16 [2] : vector<1x128x128xf32> to vector<1x128xf32>
    %59 = vector.shape_cast %58 : vector<1x128xf32> to vector<1x128x1xf32>
    %60 = vector.broadcast %59 : vector<1x128x1xf32> to vector<1x128x128xf32>
    %61 = arith.subf %57, %60 : vector<1x128x128xf32>
    %62 = math.exp %61 : vector<1x128x128xf32>
    %cst_17 = arith.constant dense<0.000000e+00> : vector<1x128xf32>
    %63 = vector.multi_reduction <add>, %62, %cst_17 [2] : vector<1x128x128xf32> to vector<1x128xf32>
    %64 = vector.shape_cast %63 : vector<1x128xf32> to vector<1x128x1xf32>
    %65 = tpu.reciprocal %64 {approx = true} : vector<1x128x1xf32> -> vector<1x128x1xf32>
    %66 = vector.broadcast %65 : vector<1x128x1xf32> to vector<1x128x128xf32>
    %67 = arith.mulf %62, %66 : vector<1x128x128xf32>
    %68 = arith.truncf %67 : vector<1x128x128xf32> to vector<1x128x128xbf16>
    "tpu.trace_start"() <{level = 10 : i32, message = "bqk,bkd->bqd"}> : () -> ()
    %cst_18 = arith.constant dense<0.000000e+00> : vector<1x128x128xf32>
    %69 = tpu.matmul %68, %54, %cst_18 {dimension_numbers = #tpu.dot_dimension_numbers<[2], [1], [1], [2], [0, 0, 0, 1, 1, 2], [0], [0]>} : vector<1x128x128xbf16>, vector<1x128x128xbf16>, vector<1x128x128xf32> -> vector<1x128x128xf32>
    "tpu.trace_stop"() : () -> ()
    %70 = vector.shape_cast %69 : vector<1x128x128xf32> to vector<128x128xf32>
    %71 = tpu.concatenate %45, %70 in 1 : vector<128x128xf32>, vector<128x128xf32> -> vector<128x256xf32>
    %72 = arith.truncf %71 : vector<128x256xf32> to vector<128x256xbf16>
    %c0_19 = arith.constant 0 : index
    %c0_20 = arith.constant 0 : index
    %c0_21 = arith.constant 0 : index
    %73 = vector.load %arg5[%c0_19, %c0_20, %c0_21] : memref<1x256x256xbf16, #tpu.memory_space<vmem>>, vector<1x256x256xbf16>
    %74 = vector.shape_cast %73 : vector<1x256x256xbf16> to vector<256x256xbf16>
    %cst_22 = arith.constant dense<0.000000e+00> : vector<128x256xf32>
    %75 = tpu.matmul %72, %74, %cst_22 {dimension_numbers = #tpu.dot_dimension_numbers<[1], [0], [0], [1], [0, 0, 1, 1], [], []>} : vector<128x256xbf16>, vector<256x256xbf16>, vector<128x256xf32> -> vector<128x256xf32>
    %76 = vector.broadcast %8 : vector<1x256xf32> to vector<128x256xf32>
    %77 = arith.addf %75, %76 : vector<128x256xf32>
    %78 = arith.addf %3, %77 : vector<128x256xf32>
    %cst_23 = arith.constant dense<0.000000e+00> : vector<128xf32>
    %79 = vector.multi_reduction <add>, %78, %cst_23 [1] : vector<128x256xf32> to vector<128xf32>
    %80 = vector.shape_cast %79 : vector<128xf32> to vector<128x1xf32>
    %cst_24 = arith.constant 2.560000e+02 : f32
    %81 = vector.broadcast %cst_24 : f32 to vector<128x1xf32>
    %82 = arith.divf %80, %81 : vector<128x1xf32>
    %83 = vector.broadcast %82 : vector<128x1xf32> to vector<128x256xf32>
    %84 = arith.subf %78, %83 : vector<128x256xf32>
    %85 = arith.mulf %84, %84 : vector<128x256xf32>
    %cst_25 = arith.constant dense<0.000000e+00> : vector<128xf32>
    %86 = vector.multi_reduction <add>, %85, %cst_25 [1] : vector<128x256xf32> to vector<128xf32>
    %87 = vector.shape_cast %86 : vector<128xf32> to vector<128x1xf32>
    %cst_26 = arith.constant 2.560000e+02 : f32
    %88 = vector.broadcast %cst_26 : f32 to vector<128x1xf32>
    %89 = arith.divf %87, %88 : vector<128x1xf32>
    %90 = vector.broadcast %82 : vector<128x1xf32> to vector<128x256xf32>
    %91 = arith.subf %78, %90 : vector<128x256xf32>
    %cst_27 = arith.constant 9.99999996E-13 : f32
    %92 = vector.broadcast %cst_27 : f32 to vector<128x1xf32>
    %93 = arith.addf %89, %92 : vector<128x1xf32>
    %94 = math.rsqrt %93 : vector<128x1xf32>
    %95 = vector.broadcast %94 : vector<128x1xf32> to vector<128x256xf32>
    %96 = arith.mulf %91, %95 : vector<128x256xf32>
    %97 = vector.broadcast %11 : vector<1x256xf32> to vector<128x256xf32>
    %98 = arith.mulf %96, %97 : vector<128x256xf32>
    %99 = vector.broadcast %12 : vector<1x256xf32> to vector<128x256xf32>
    %100 = arith.addf %98, %99 : vector<128x256xf32>
    %101 = arith.truncf %100 : vector<128x256xf32> to vector<128x256xbf16>
    %c0_28 = arith.constant 0 : index
    %c0_29 = arith.constant 0 : index
    %c0_30 = arith.constant 0 : index
    %102 = vector.load %arg6[%c0_28, %c0_29, %c0_30] : memref<1x256x1024xbf16, #tpu.memory_space<vmem>>, vector<1x256x1024xbf16>
    %103 = vector.shape_cast %102 : vector<1x256x1024xbf16> to vector<256x1024xbf16>
    %cst_31 = arith.constant dense<0.000000e+00> : vector<128x1024xf32>
    %104 = tpu.matmul %101, %103, %cst_31 {dimension_numbers = #tpu.dot_dimension_numbers<[1], [0], [0], [1], [0, 0, 1, 1], [], []>} : vector<128x256xbf16>, vector<256x1024xbf16>, vector<128x1024xf32> -> vector<128x1024xf32>
    %105 = vector.broadcast %9 : vector<1x1024xf32> to vector<128x1024xf32>
    %106 = arith.addf %104, %105 : vector<128x1024xf32>
    %cst_32 = arith.constant 5.000000e-01 : f32
    %107 = vector.broadcast %cst_32 : f32 to vector<128x1024xf32>
    %108 = arith.mulf %107, %106 : vector<128x1024xf32>
    %cst_33 = arith.constant 4.471500e-02 : f32
    %109 = vector.broadcast %cst_33 : f32 to vector<128x1024xf32>
    %110 = arith.mulf %109, %106 : vector<128x1024xf32>
    %111 = arith.mulf %110, %106 : vector<128x1024xf32>
    %112 = arith.mulf %111, %106 : vector<128x1024xf32>
    %113 = arith.addf %106, %112 : vector<128x1024xf32>
    %cst_34 = arith.constant 0.797884583 : f32
    %114 = vector.broadcast %cst_34 : f32 to vector<128x1024xf32>
    %115 = arith.mulf %114, %113 : vector<128x1024xf32>
    %116 = math.tanh %115 : vector<128x1024xf32>
    %cst_35 = arith.constant 1.000000e+00 : f32
    %117 = vector.broadcast %cst_35 : f32 to vector<128x1024xf32>
    %118 = arith.addf %117, %116 : vector<128x1024xf32>
    %119 = arith.mulf %108, %118 : vector<128x1024xf32>
    %120 = arith.truncf %119 : vector<128x1024xf32> to vector<128x1024xbf16>
    %c0_36 = arith.constant 0 : index
    %c0_37 = arith.constant 0 : index
    %c0_38 = arith.constant 0 : index
    %121 = vector.load %arg7[%c0_36, %c0_37, %c0_38] : memref<1x1024x256xbf16, #tpu.memory_space<vmem>>, vector<1x1024x256xbf16>
    %122 = vector.shape_cast %121 : vector<1x1024x256xbf16> to vector<1024x256xbf16>
    %cst_39 = arith.constant dense<0.000000e+00> : vector<128x256xf32>
    %123 = tpu.matmul %120, %122, %cst_39 {dimension_numbers = #tpu.dot_dimension_numbers<[1], [0], [0], [1], [0, 0, 1, 1], [], []>} : vector<128x1024xbf16>, vector<1024x256xbf16>, vector<128x256xf32> -> vector<128x256xf32>
    %124 = vector.broadcast %10 : vector<1x256xf32> to vector<128x256xf32>
    %125 = arith.addf %123, %124 : vector<128x256xf32>
    %126 = arith.addf %100, %125 : vector<128x256xf32>
    %cst_40 = arith.constant dense<0.000000e+00> : vector<128xf32>
    %127 = vector.multi_reduction <add>, %126, %cst_40 [1] : vector<128x256xf32> to vector<128xf32>
    %128 = vector.shape_cast %127 : vector<128xf32> to vector<128x1xf32>
    %cst_41 = arith.constant 2.560000e+02 : f32
    %129 = vector.broadcast %cst_41 : f32 to vector<128x1xf32>
    %130 = arith.divf %128, %129 : vector<128x1xf32>
    %131 = vector.broadcast %130 : vector<128x1xf32> to vector<128x256xf32>
    %132 = arith.subf %126, %131 : vector<128x256xf32>
    %133 = arith.mulf %132, %132 : vector<128x256xf32>
    %cst_42 = arith.constant dense<0.000000e+00> : vector<128xf32>
    %134 = vector.multi_reduction <add>, %133, %cst_42 [1] : vector<128x256xf32> to vector<128xf32>
    %135 = vector.shape_cast %134 : vector<128xf32> to vector<128x1xf32>
    %cst_43 = arith.constant 2.560000e+02 : f32
    %136 = vector.broadcast %cst_43 : f32 to vector<128x1xf32>
    %137 = arith.divf %135, %136 : vector<128x1xf32>
    %138 = vector.broadcast %130 : vector<128x1xf32> to vector<128x256xf32>
    %139 = arith.subf %126, %138 : vector<128x256xf32>
    %cst_44 = arith.constant 9.99999996E-13 : f32
    %140 = vector.broadcast %cst_44 : f32 to vector<128x1xf32>
    %141 = arith.addf %137, %140 : vector<128x1xf32>
    %142 = math.rsqrt %141 : vector<128x1xf32>
    %143 = vector.broadcast %142 : vector<128x1xf32> to vector<128x256xf32>
    %144 = arith.mulf %139, %143 : vector<128x256xf32>
    %145 = vector.broadcast %13 : vector<1x256xf32> to vector<128x256xf32>
    %146 = arith.mulf %144, %145 : vector<128x256xf32>
    %147 = vector.broadcast %14 : vector<1x256xf32> to vector<128x256xf32>
    %148 = arith.addf %146, %147 : vector<128x256xf32>
    %c0_45 = arith.constant 0 : index
    %c0_46 = arith.constant 0 : index
    %149 = vector.load %arg10[%c0_45, %c0_46] : memref<128x256xf32, #tpu.memory_space<vmem>>, vector<128x256xf32>
    tpu.vector_store %arg10[%c0_45, %c0_46], %148 {strides = array<i32>} : memref<128x256xf32, #tpu.memory_space<vmem>>, vector<128x256xf32>,
    %c1_i32 = arith.constant 1 : i32
    %150 = arith.cmpi eq, %arg1, %c1_i32 : i32
    %151 = arith.extui %150 : i1 to i32
    %c0_i32_47 = arith.constant 0 : i32
    %152 = arith.cmpi ne, %151, %c0_i32_47 : i32
    scf.if %152 {
      %c0_48 = arith.constant 0 : index
      %c0_49 = arith.constant 0 : index
      %153 = vector.load %arg9[%c0_48, %c0_49] : memref<128x256xf32, #tpu.memory_space<vmem>>, vector<128x256xf32>
      tpu.vector_store %arg9[%c0_48, %c0_49], %148 {strides = array<i32>} : memref<128x256xf32, #tpu.memory_space<vmem>>, vector<128x256xf32>,
    } else {
    }
    return
  }
  func.func @transform_0(%arg0: i32, %arg1: i32) -> (i32, i32) {
    %c0_i32 = arith.constant 0 : i32
    %c0_i32_0 = arith.constant 0 : i32
    return %arg0, %c0_i32 : i32, i32
  }
  func.func @transform_1(%arg0: i32, %arg1: i32) -> (i32, i32, i32) {
    %c0_i32 = arith.constant 0 : i32
    %c0_i32_0 = arith.constant 0 : i32
    %c0_i32_1 = arith.constant 0 : i32
    return %arg0, %c0_i32, %c0_i32_0 : i32, i32, i32
  }
  func.func @transform_2(%arg0: i32, %arg1: i32) -> (i32, i32, i32) {
    %c0_i32 = arith.constant 0 : i32
    %c0_i32_0 = arith.constant 0 : i32
    %c0_i32_1 = arith.constant 0 : i32
    return %arg1, %c0_i32, %c0_i32_0 : i32, i32, i32
  }
  func.func @transform_3(%arg0: i32, %arg1: i32) -> (i32, i32, i32) {
    %c0_i32 = arith.constant 0 : i32
    %c0_i32_0 = arith.constant 0 : i32
    %c0_i32_1 = arith.constant 0 : i32
    return %arg1, %c0_i32, %c0_i32_0 : i32, i32, i32
  }
  func.func @transform_4(%arg0: i32, %arg1: i32) -> (i32, i32, i32) {
    %c0_i32 = arith.constant 0 : i32
    %c0_i32_0 = arith.constant 0 : i32
    %c0_i32_1 = arith.constant 0 : i32
    return %arg1, %c0_i32, %c0_i32_0 : i32, i32, i32
  }
  func.func @transform_5(%arg0: i32, %arg1: i32) -> (i32, i32, i32) {
    %c0_i32 = arith.constant 0 : i32
    %c0_i32_0 = arith.constant 0 : i32
    %c0_i32_1 = arith.constant 0 : i32
    return %arg1, %c0_i32, %c0_i32_0 : i32, i32, i32
  }
  func.func @transform_6(%arg0: i32, %arg1: i32) -> (i32, i32, i32) {
    %c0_i32 = arith.constant 0 : i32
    %c0_i32_0 = arith.constant 0 : i32
    %c0_i32_1 = arith.constant 0 : i32
    return %arg1, %c0_i32, %c0_i32_0 : i32, i32, i32
  }
  func.func @transform_7(%arg0: i32, %arg1: i32) -> (i32, i32) {
    %c0_i32 = arith.constant 0 : i32
    %c0_i32_0 = arith.constant 0 : i32
    return %arg0, %c0_i32 : i32, i32
  }
}

</mosaic_0001>

<bundles_post_ra>
// kernel: tpu_custom_call.1
= control target key start
LH: loop header
LB: loop body
LE: loop exit
PB: predicated region body
PF: predicated region fallthrough
CT: control target
= control target key end

     0   :  { %s14292_s0 = inlined_call_operand.hbm [shape: f32[256,256], index: 0, kind: input, shape index: {}]   ;;  %s14293_s1 = inlined_call_operand.vmem [shape: f32[2,1,128], index: 1, kind: input, shape index: {}]   ;;  %s14294_s2 = inlined_call_operand.hbm [shape: bf16[2,256,768], index: 2, kind: input, shape index: {}]   ;;  %s14295_s3 = inlined_call_operand.hbm [shape: bf16[2,256,256], index: 3, kind: input, shape index: {}]   ;;  %s14296_s4 = inlined_call_operand.hbm [shape: bf16[2,256,1024], index: 4, kind: input, shape index: {}]   ;;  %s14297_s5 = inlined_call_operand.hbm [shape: bf16[2,1024,256], index: 5, kind: input, shape index: {}]   ;;  %s14298_s6 = inlined_call_operand.hbm [shape: f32[2,8,1024], index: 6, kind: input, shape index: {}]   ;;  %s14299_s7 = inlined_call_operand.hbm [shape: f32[256,256], index: 7, kind: output, shape index: {}]  }
   0x1   :  { %14540 = sst [smem:[#allocation198_spill]] %s14292_s0 }
   0x2   :  { %14541 = sst [smem:[#allocation199_spill]] %s14293_s1 }
   0x3   :  { %14542 = sst [smem:[#allocation200_spill]] %s14294_s2 }
   0x4   :  { %14543 = sst [smem:[#allocation201_spill]] %s14296_s4 }
   0x5   :  { %14544 = sst [smem:[#allocation202_spill]] %s14298_s6 }
   0x6   :  { %14545 = sst [smem:[#allocation203_spill]] %s14299_s7 }
   0x7   :  { %12 = vsyncpa [#allocation4], 0 }
   0x8   :  { %14 = vsyncpa [#allocation4 + $0x1], 0 }
   0x9   :  { %15 = vsyncpa [#allocation7], 0 }
   0xa   :  { %17 = vsyncpa [#allocation7 + $0x1], 0 }
   0xb   :  { %18 = vsyncpa [#allocation10], 0 }
   0xc   :  { %20 = vsyncpa [#allocation10 + $0x1], 0 }
   0xd   :  { %21 = vsyncpa [#allocation13], 0 }
   0xe   :  { %23 = vsyncpa [#allocation13 + $0x1], 0 }
   0xf   :  { %24 = vsyncpa [#allocation5], 0 }
  0x10   :  { %26 = vsyncpa [#allocation5 + $0x1], 0  ;;  %s9528_s24 = smov 0   ;;  %s9530_s25 = smov 0  }
  0x11   :  { %s9532_s26 = smov 0   ;;  %s9534_s27 = smov 0  }
  0x12   :  { %s9536_s28 = smov 0   ;;  %s9538_s29 = smov 0  }
  0x13   :  { %s9540_s30 = smov 0   ;;  %s9542_s8 = smov 0  }
  0x14   :  { %s9544_s9 = smov 0   ;;  %s9546_s10 = smov 0  }
  0x15   :  { %s9548_s11 = smov 0  }
  0x16 LB: > { %14546 = sst [smem:[#allocation20_spill]] %s9437_s26  ;;  %p14303_p0 = scmp.eq.s32.totalorder %s9469_s11, 0  ;;  %s9469_s11 = sphi %s9548_s11, %s32_s11   ;;  %s9465_s10 = sphi %s9546_s10, %s15124_s10   ;;  %s9461_s9 = sphi %s9544_s9, %s15130_s9   ;;  %s9457_s8 = sphi %s9542_s8, %s15122_s8   ;;  %s9453_s30 = sphi %s9540_s30, %s15129_s30   ;;  %s9449_s29 = sphi %s9538_s29, %s15121_s29   ;;  %s9445_s28 = sphi %s9536_s28, %s15128_s28   ;;  %s9441_s27 = sphi %s9534_s27, %s15127_s27   ;;  %s9437_s26 = sphi %s9532_s26, %s15119_s26   ;;  %s9433_s25 = sphi %s9530_s25, %s15126_s25   ;;  %s9429_s24 = sphi %s9528_s24, %s15125_s24  }
  0x17   : > { %14547 = sst [smem:[#allocation21_spill]] %s9449_s29  ;;  %p110_p1 = scmp.ne.s32.totalorder %s9437_s26, %s9433_s25 }
  0x18   : > { %14548 = sst [smem:[#allocation22_spill]] %s9453_s30  ;;  %p14302_p3 = scmp.lt.s32.totalorder %s9469_s11, 4 }
  0x19   : > { %14549 = sst [smem:[#allocation23_spill]] %s9457_s8  ;;  %p112_p4 = por %p110_p1, %p14303_p0 }
  0x1a   : > { %14550 = sst [smem:[#allocation24_spill]] %s9465_s10  ;;  %s14301_s13 = sand.u32 1, %s9469_s11  }
  0x1b   : > { %s9594_s14 = sand.u32 1, %s9437_s26   ;;  %p9599_p5 = pnand %p14302_p3, %p112_p4 }
  0x1c   : > { %s8141_s15 = smul.u32 768, %s9594_s14  ;;  %s14552_s2 = sld [smem:[#allocation200_spill]] }
  0x1d   : > { %s14551_s16 = scalar_select %p9599_p5, 1, 0 }
  0x1e   : > { %s8142_s17 = smul.u32 12288, %s9461_s9  ;;  %s302_s21 = scalar_lea.vmem [#allocation6], %s8141_s15 }
  0x1f   : > { %s309_s22 = sshll.u32 %s302_s21, 4  ;;  %s9613_s23 = scalar_lea.sflag [#allocation7], %s14301_s13  ;;  %s9609_s22 = int_to_ptr.vmem [resolvable:$true] %s309_s22 }
  0x20   : > { %p9619_p7 = pneg %p9599_p5 }
  0x22   : > { %s9607_s20 = scalar_lea.hbm %s14552_s2, %s8142_s17  ;;  %s9160_s15 = scalar_lea.hbm %s14552_s2, 24576 }
  0x23   : > { %s9155_s12 = scalar_lea.hbm %s9607_s20, 12288  ;;  %p9161_p10 = scmp.lt.u32.totalorder %s9607_s20, %s14552_s2 }
  0x24   : > { %p9156_p6 = scmp.ne.s32.totalorder %s9607_s20, %s9155_s12  ;;  %p9162_p11 = scmp.lt.u32.totalorder %s9160_s15, %s9155_s12 }
  0x25   : > { %p9164_p13 = scmp.lt.u32.totalorder %s9155_s12, %s9607_s20 }
  0x26   : > { %p9158_p8 = pnand %p9619_p7, %p9156_p6  ;;  %p9163_p12 = por %p9162_p11, %p9161_p10 }
  0x28   : > { %p9159_p9 = pneg %p9158_p8  ;;  %p9165_p1 = por %p9164_p13, %p9163_p12 }
  0x2a   : > { %p9166_p4 = pnand %p9165_p1, %p9159_p9 }
  0x2c   : > { %9169 = shalt.err (!%p9166_p4)
}
  0x2d   : > { %s9170_s13 = scalar_lea.vmem %s9609_s22, 12288  ;;  %s9471_s17 = smov [#allocation6]  }
  0x2e   : > { %p9171_p6 = scmp.ne.s32.totalorder %s9609_s22, %s9170_s13  ;;  %s9175_s18 = sshll.u32 %s9471_s17, 4  ;;  %s9176_s18 = int_to_ptr.vmem [resolvable:$false] %s9175_s18 }
  0x2f   : > { %s9177_s19 = scalar_lea.vmem %s9176_s18, 24576  ;;  %p9178_p2 = scmp.lt.s32.totalorder %s9609_s22, %s9176_s18 }
  0x30   : > { %p9173_p8 = pnand %p9171_p6, %p9619_p7  ;;  %p9179_p0 = scmp.lt.s32.totalorder %s9177_s19, %s9170_s13 }
  0x32   : > { %p9174_p3 = pneg %p9173_p8  ;;  %p9180_p10 = por %p9179_p0, %p9178_p2 }
  0x34   : > { %p9181_p11 = pnand %p9180_p10, %p9174_p3 }
  0x36   : > { %9184 = shalt.err (!%p9181_p11)
}
  0x37   : > { %s9472_s12 = smov 384   ;;  %s9473_s15 = smov 24  }
  0x38   : > { %8164 = dma.hbm_to_vmem [thread:$0]  (!%p9599_p5), %s9607_s20, 12288, %s9609_s22, %s9613_s23, %s9472_s12, %s9472_s12, %s9473_s15  }
  0x39   : > { %p7413_p9 = scmp.ge.s32.totalorder %s9469_s11, 1  ;;  %p399_p0 = scmp.lt.s32.totalorder %s9469_s11, 5 }
  0x3a   : > { %s14304_s13 = sshll.u32 %s9594_s14, 10  ;;  %s7816_s17 = sshll.u32 %s9461_s9, 14 }
  0x3b   : > { %p9646_p2 = pnand %p7413_p9, %p399_p0  ;;  %s344_s18 = scalar_lea.vmem [#allocation9], %s14304_s13 }
  0x3c   : > { %s351_s19 = sshll.u32 %s344_s18, 4  ;;  %s14556_s4 = sld [smem:[#allocation201_spill]]  ;;  %s9660_s19 = int_to_ptr.vmem [resolvable:$true] %s351_s19 }
  0x3d   : > { %s14554_s21 = scalar_select %p9646_p2, 1, 0 }
  0x3e   : > { %s14557_s20 = sand.u32 1, %s9469_s11  }
  0x3f   : > { %14555 = sst [smem:[#allocation25_spill]] %s14554_s21  ;;  %s9664_s22 = scalar_lea.sflag [#allocation10], %s14557_s20 }
  0x42   : > { %s9658_s1 = scalar_lea.hbm %s14556_s4, %s7816_s17  ;;  %s9190_s2 = scalar_lea.hbm %s14556_s4, 32768 }
  0x43   : > { %s9185_s12 = scalar_lea.hbm %s9658_s1, 16384  ;;  %p9191_p1 = scmp.lt.u32.totalorder %s9658_s1, %s14556_s4 }
  0x44   : > { %p9186_p3 = scmp.ne.s32.totalorder %s9658_s1, %s9185_s12  ;;  %p9192_p4 = scmp.lt.u32.totalorder %s9190_s2, %s9185_s12 }
  0x45   : > { %p9194_p8 = scmp.lt.u32.totalorder %s9185_s12, %s9658_s1 }
  0x46   : > { %p9188_p12 = pnand %p9186_p3, %p9619_p7  ;;  %p9193_p6 = por %p9192_p4, %p9191_p1 }
  0x48   : > { %p9189_p13 = pneg %p9188_p12  ;;  %p9195_p10 = por %p9194_p8, %p9193_p6 }
  0x4a   : > { %p9196_p11 = pnand %p9195_p10, %p9189_p13 }
  0x4c   : > { %9199 = shalt.err (!%p9196_p11)
}
  0x4d   : > { %s9200_s20 = scalar_lea.vmem %s9660_s19, 16384  ;;  %s9474_s15 = smov [#allocation9]  }
  0x4e   : > { %p9201_p9 = scmp.ne.s32.totalorder %s9660_s19, %s9200_s20  ;;  %s9205_s18 = sshll.u32 %s9474_s15, 4  ;;  %s9206_s18 = int_to_ptr.vmem [resolvable:$false] %s9205_s18 }
  0x4f   : > { %s9207_s13 = scalar_lea.vmem %s9206_s18, 32768  ;;  %p9208_p12 = scmp.lt.s32.totalorder %s9660_s19, %s9206_s18 }
  0x50   : > { %p9203_p0 = pnand %p9201_p9, %p9619_p7  ;;  %p9209_p2 = scmp.lt.s32.totalorder %s9207_s13, %s9200_s20 }
  0x52   : > { %p9204_p3 = pneg %p9203_p0  ;;  %p9210_p1 = por %p9209_p2, %p9208_p12 }
  0x54   : > { %p9211_p4 = pnand %p9210_p1, %p9204_p3 }
  0x56   : > { %9214 = shalt.err (!%p9211_p4)
}
  0x57   : > { %s9475_s12 = smov 512   ;;  %s9476_s2 = smov 32  }
  0x58   : > { %8170 = dma.hbm_to_vmem [thread:$0]  (!%p9599_p5), %s9658_s1, 16384, %s9660_s19, %s9664_s22, %s9475_s12, %s9475_s12, %s9476_s2  }
  0x59   : > { %s9693_s15 = scalar_lea.hbm %s14297_s5, %s7816_s17  ;;  %s14558_s18 = sshll.u32 %s9594_s14, 10 }
  0x5a   : > { %s365_s13 = scalar_lea.vmem [#allocation11], %s14558_s18  ;;  %s9700_s8 = sadd.s32 4294967295, %s9469_s11  }
  0x5b   : > { %s372_s4 = sshll.u32 %s365_s13, 4  ;;  %s7393_s21 = sadd.s32 4294967294, %s9469_s11   ;;  %s9697_s4 = int_to_ptr.vmem [resolvable:$true] %s372_s4 }
  0x5c   : > { %s41_s1 = sadd.s32 1, %s9461_s9  ;;  %s44_s19 = sadd.s32 1, %s9465_s10 }
  0x5d   : > { %p42_p2 = scmp.ge.s32.totalorder %s41_s1, 2  ;;  %s51_s17 = sadd.s32 1, %s9449_s29 }
  0x5e   : > { %p58_p13 = scmp.ne.s32.totalorder %s9449_s29, %s9445_s28  ;;  %p64_p6 = scmp.ne.s32.totalorder %s9445_s28, %s9441_s27 }
  0x5f   : > { %s15132_s1 = smov (%p42_p2, %s41_s1), 0  ;;  %s15134_s19 = smov (!%p42_p2, %s44_s19), %s9465_s10 }
  0x60   : > { %14559 = sst [smem:[#allocation26_spill]] %s15132_s1  ;;  %p14560_p8 = scmp.eq.s32.totalorder %s9469_s11, 0 }
  0x61   : > { %p65_p11 = scmp.eq.s32.totalorder %s9700_s8, 0  ;;  %p46_p9 = scmp.ge.s32.totalorder %s15134_s19, 2 }
  0x62   : > { %p9718_p10 = por %p14560_p8, %p58_p13  ;;  %s100_s2 = ssub.s32 %s9461_s9, %s15132_s1 }
  0x63   : > { %p9728_p0 = por %p65_p11, %p64_p6  ;;  %p101_p3 = scmp.eq.s32.totalorder %s100_s2, 0 }
  0x64   : > { %s15136_s19 = smov (%p46_p9, %s15134_s19), 0  ;;  %s14565_s20 = sadd.s32 1, %s9437_s26 }
  0x65   : > { %s14562_s30 = scalar_select %p9728_p0, 1, 0 }
  0x66   : > { %14564 = sst [smem:[#allocation28_spill]] %s15136_s19  ;;  %s48_s13 = ssub.s32 %s9465_s10, %s15136_s19 }
  0x67   : > { %14563 = sst [smem:[#allocation27_spill]] %s14562_s30  ;;  %p14567_p12 = scmp.ne.s32.totalorder %s9433_s25, %s9429_s24 }
  0x68   : > { %s9737_s18 = scalar_select %p101_p3, %s9437_s26, %s14565_s20  }
  0x69   : > { %p9744_p1 = por %p14567_p12, %p65_p11  ;;  %p49_p4 = scmp.eq.s32.totalorder %s48_s13, 0 }
  0x6a   : > { %14566 = sst [smem:[#allocation29_spill]] %s9737_s18  ;;  %p244_p2 = scmp.eq.s32.totalorder %s9700_s8, 3 }
  0x6b   : > { %s14568_s6 = scalar_select %p9744_p1, 1, 0 }
  0x6c   : > { %p250_p8 = scmp.eq.s32.totalorder %s7393_s21, 3  ;;  %s270_s1 = sand.u32 1, %s9449_s29  }
  0x6d   : > { %s9751_s2 = scalar_select %p49_p4, %s9449_s29, %s51_s17  }
  0x6e   : > { %p9756_p9 = por %p244_p2, %p58_p13  ;;  %p9763_p3 = por %p250_p8, %p64_p6 }
  0x6f   : > { %14569 = sst [smem:[#allocation30_spill]] %s9751_s2  ;;  %s7396_s24 = sshll.u32 %s270_s1, 8 }
  0x70   : > { %s14570_s30 = scalar_select %p9756_p9, 1, 0 }
  0x71   : > { %s14571_s20 = scalar_select %p9763_p3, 1, 0 }
  0x72   : > { %s7814_s19 = sshll.u32 %s9465_s10, 12  ;;  %s14573_s0 = sld [smem:[#allocation198_spill]] }
  0x73   : > { %14572 = sst [smem:[#allocation31_spill]] %s14571_s20  ;;  %s274_s21 = scalar_lea.vmem [#allocation3], %s7396_s24 }
  0x74   : > { %s282_s17 = sshll.u32 %s274_s21, 4  ;;  %p14574_p13 = scmp.lt.s32.totalorder %s9469_s11, 4  ;;  %s9773_s17 = int_to_ptr.vmem [resolvable:$true] %s282_s17 }
  0x75   : > { %s9784_s26 = scalar_lea.sflag [#allocation4], %s270_s1 }
  0x76   : > { %p9779_p6 = pnand %p14574_p13, %p9718_p10 }
  0x78   : > { %s9771_s13 = scalar_lea.hbm %s14573_s0, %s7814_s19  ;;  %p9217_p12 = pneg %p9779_p6 }
  0x79   : > { %s9215_s19 = scalar_lea.hbm %s9771_s13, 4096  ;;  %s9220_s24 = scalar_lea.hbm %s14573_s0, 8192 }
  0x7a   : > { %p9216_p11 = scmp.ne.s32.totalorder %s9771_s13, %s9215_s19  ;;  %p9221_p10 = scmp.lt.u32.totalorder %s9771_s13, %s14573_s0 }
  0x7b   : > { %p9222_p8 = scmp.lt.u32.totalorder %s9220_s24, %s9215_s19  ;;  %p9224_p3 = scmp.lt.u32.totalorder %s9215_s19, %s9771_s13 }
  0x7c   : > { %p9218_p4 = pnand %p9217_p12, %p9216_p11 }
  0x7d   : > { %p9223_p13 = por %p9222_p8, %p9221_p10 }
  0x7e   : > { %p9219_p2 = pneg %p9218_p4 }
  0x7f   : > { %p9225_p9 = por %p9224_p3, %p9223_p13 }
  0x81   : > { %p9226_p1 = pnand %p9225_p9, %p9219_p2 }
  0x83   : > { %9229 = shalt.err (!%p9226_p1)
}
  0x84   : > { %s9230_s1 = scalar_lea.vmem %s9773_s17, 4096  ;;  %s9477_s18 = smov [#allocation3]  }
  0x85   : > { %p9231_p11 = scmp.ne.s32.totalorder %s9773_s17, %s9230_s1  ;;  %s9235_s12 = sshll.u32 %s9477_s18, 4  ;;  %s9236_s12 = int_to_ptr.vmem [resolvable:$false] %s9235_s12 }
  0x86   : > { %s9237_s29 = scalar_lea.vmem %s9236_s12, 8192  ;;  %p9238_p5 = scmp.lt.s32.totalorder %s9773_s17, %s9236_s12 }
  0x87   : > { %p9233_p4 = pnand %p9231_p11, %p9217_p12  ;;  %p9239_p10 = scmp.lt.s32.totalorder %s9237_s29, %s9230_s1 }
  0x89   : > { %p9234_p0 = pneg %p9233_p4  ;;  %p9240_p8 = por %p9239_p10, %p9238_p5 }
  0x8b   : > { %p9241_p3 = pnand %p9240_p8, %p9234_p0 }
  0x8d   : > { %9244 = shalt.err (!%p9241_p3)
}
  0x8e   : > { %s9478_s19 = smov 256   ;;  %s9479_s24 = smov 16  }
  0x8f   : > { %8161 = dma.hbm_to_vmem [thread:$0]  (!%p9779_p6), %s9771_s13, 4096, %s9773_s17, %s9784_s26, %s9478_s19, %s9478_s19, %s9479_s24  }
  0x90   : > { %s7815_s21 = sshll.u32 %s9461_s9, 12  ;;  %s14576_s1 = sshll.u32 %s9594_s14, 8 }
  0x91   : > { %s9816_s12 = scalar_lea.hbm %s14295_s3, %s7815_s21  ;;  %s323_s29 = scalar_lea.vmem [#allocation8], %s14576_s1 }
  0x92   : > { %s330_s0 = sshll.u32 %s323_s29, 4  ;;  %s9245_s20 = scalar_lea.hbm %s9816_s12, 4096  ;;  %s9820_s0 = int_to_ptr.vmem [resolvable:$true] %s330_s0 }
  0x93   : > { %p9246_p5 = scmp.ne.s32.totalorder %s9816_s12, %s9245_s20  ;;  %s9250_s10 = scalar_lea.hbm %s14295_s3, 8192 }
  0x94   : > { %p9251_p9 = scmp.lt.u32.totalorder %s9816_s12, %s14295_s3  ;;  %p9252_p6 = scmp.lt.u32.totalorder %s9250_s10, %s9245_s20 }
  0x95   : > { %p9248_p0 = pnand %p9246_p5, %p9619_p7  ;;  %p9254_p2 = scmp.lt.u32.totalorder %s9245_s20, %s9816_s12 }
  0x96   : > { %p9253_p12 = por %p9252_p6, %p9251_p9 }
  0x97   : > { %p9249_p1 = pneg %p9248_p0 }
  0x98   : > { %p9255_p13 = por %p9254_p2, %p9253_p12 }
  0x9a   : > { %p9256_p11 = pnand %p9255_p13, %p9249_p1 }
  0x9c   : > { %9259 = shalt.err (!%p9256_p11)
}
  0x9d   : > { %s9260_s19 = scalar_lea.vmem %s9820_s0, 4096  ;;  %s9480_s24 = smov [#allocation8]  }
  0x9e   : > { %p9261_p4 = scmp.ne.s32.totalorder %s9820_s0, %s9260_s19  ;;  %s9265_s21 = sshll.u32 %s9480_s24, 4  ;;  %s9266_s21 = int_to_ptr.vmem [resolvable:$false] %s9265_s21 }
  0x9f   : > { %s9267_s18 = scalar_lea.vmem %s9266_s21, 8192  ;;  %p9268_p3 = scmp.lt.s32.totalorder %s9820_s0, %s9266_s21 }
  0xa0   : > { %p9263_p10 = pnand %p9261_p4, %p9619_p7  ;;  %p9269_p5 = scmp.lt.s32.totalorder %s9267_s18, %s9260_s19 }
  0xa2   : > { %p9264_p8 = pneg %p9263_p10  ;;  %p9270_p0 = por %p9269_p5, %p9268_p3 }
  0xa4   : > { %p9271_p9 = pnand %p9270_p0, %p9264_p8 }
  0xa6   : > { %9274 = shalt.err (!%p9271_p9)
}
  0xa7   : > { %s9481_s20 = smov 128   ;;  %s9482_s1 = smov 8  }
  0xa8   : > { %p14577_p1 = scmp.ne.s32.totalorder %s14551_s16, 0  ;;  %s9275_s29 = scalar_lea.hbm %s9693_s15, 16384 }
  0xa9   : > { %p9276_p6 = scmp.ne.s32.totalorder %s9693_s15, %s9275_s29  ;;  %s9280_s10 = scalar_lea.hbm %s14297_s5, 32768 }
  0xaa   : > { %8167 = dma.hbm_to_vmem [thread:$0]  (!%p14577_p1), %s9816_s12, 4096, %s9820_s0, %s9613_s23, %s9481_s20, %s9481_s20, %s9482_s1  }
  0xab   : > { %p9278_p12 = pnand %p9276_p6, %p9619_p7  ;;  %p9281_p13 = scmp.lt.u32.totalorder %s9693_s15, %s14297_s5 }
  0xac   : > { %p9282_p11 = scmp.lt.u32.totalorder %s9280_s10, %s9275_s29  ;;  %p9284_p10 = scmp.lt.u32.totalorder %s9275_s29, %s9693_s15 }
  0xad   : > { %p9279_p2 = pneg %p9278_p12 }
  0xae   : > { %p9283_p4 = por %p9282_p11, %p9281_p13 }
  0xb0   : > { %p9285_p8 = por %p9284_p10, %p9283_p4 }
  0xb2   : > { %p9286_p3 = pnand %p9285_p8, %p9279_p2 }
  0xb4   : > { %9289 = shalt.err (!%p9286_p3)
}
  0xb5   : > { %s9290_s0 = scalar_lea.vmem %s9697_s4, 16384  ;;  %s9483_s23 = smov [#allocation11]  }
  0xb6   : > { %p9291_p5 = scmp.ne.s32.totalorder %s9697_s4, %s9290_s0  ;;  %s9295_s12 = sshll.u32 %s9483_s23, 4  ;;  %s9296_s12 = int_to_ptr.vmem [resolvable:$false] %s9295_s12 }
  0xb7   : > { %s9297_s19 = scalar_lea.vmem %s9296_s12, 32768  ;;  %p9298_p6 = scmp.lt.s32.totalorder %s9697_s4, %s9296_s12 }
  0xb8   : > { %p9293_p0 = pnand %p9291_p5, %p9619_p7  ;;  %p9299_p12 = scmp.lt.s32.totalorder %s9297_s19, %s9290_s0 }
  0xba   : > { %p9294_p9 = pneg %p9293_p0  ;;  %p9300_p13 = por %p9299_p12, %p9298_p6 }
  0xbc   : > { %p9301_p11 = pnand %p9300_p13, %p9294_p9 }
  0xbe   : > { %9304 = shalt.err (!%p9301_p11)
}
  0xbf   : > { %8173 = dma.hbm_to_vmem [thread:$0]  (!%p14577_p1), %s9693_s15, 16384, %s9697_s4, %s9664_s22, %s9481_s20, %s9481_s20, %s9482_s1  }
  0xc0   : > { %s7410_s24 = sshll.u32 %s9594_s14, 6  ;;  %s7818_s21 = sshll.u32 %s9461_s9, 10 }
  0xc1   : > { %s14578_s2 = sld [smem:[#allocation202_spill]]  ;;  %s386_s10 = scalar_lea.vmem [#allocation12], %s7410_s24 }
  0xc2   : > { %s394_s17 = sshll.u32 %s386_s10, 4  ;;  %s383_s26 = scalar_lea.sflag [#allocation13], %s9594_s14  ;;  %s395_s17 = int_to_ptr.vmem [resolvable:$true] %s394_s17 }
  0xc7   : > { %s9877_s13 = scalar_lea.hbm %s14578_s2, %s7818_s21  ;;  %s9310_s15 = scalar_lea.hbm %s14578_s2, 2048 }
  0xc8   : > { %s9305_s0 = scalar_lea.hbm %s9877_s13, 1024  ;;  %p9311_p8 = scmp.lt.u32.totalorder %s9877_s13, %s14578_s2 }
  0xc9   : > { %p9306_p2 = scmp.ne.s32.totalorder %s9877_s13, %s9305_s0  ;;  %p9312_p3 = scmp.lt.u32.totalorder %s9310_s15, %s9305_s0 }
  0xca   : > { %p9314_p0 = scmp.lt.u32.totalorder %s9305_s0, %s9877_s13 }
  0xcb   : > { %p9308_p4 = pnand %p9306_p2, %p9619_p7  ;;  %p9313_p5 = por %p9312_p3, %p9311_p8 }
  0xcd   : > { %p9309_p10 = pneg %p9308_p4  ;;  %p9315_p9 = por %p9314_p0, %p9313_p5 }
  0xcf   : > { %p9316_p6 = pnand %p9315_p9, %p9309_p10 }
  0xd1   : > { %9319 = shalt.err (!%p9316_p6)
}
  0xd2   : > { %s9320_s14 = scalar_lea.vmem %s395_s17, 1024  ;;  %s9484_s23 = smov [#allocation12]  }
  0xd3   : > { %p9321_p12 = scmp.ne.s32.totalorder %s395_s17, %s9320_s14  ;;  %s9325_s12 = sshll.u32 %s9484_s23, 4  ;;  %s9326_s12 = int_to_ptr.vmem [resolvable:$false] %s9325_s12 }
  0xd4   : > { %s9327_s19 = scalar_lea.vmem %s9326_s12, 2048  ;;  %p9328_p2 = scmp.lt.s32.totalorder %s395_s17, %s9326_s12 }
  0xd5   : > { %p9323_p13 = pnand %p9321_p12, %p9619_p7  ;;  %p9329_p4 = scmp.lt.s32.totalorder %s9327_s19, %s9320_s14 }
  0xd7   : > { %p9324_p11 = pneg %p9323_p13  ;;  %p9330_p1 = por %p9329_p4, %p9328_p2 }
  0xd9   : > { %p9331_p3 = pnand %p9330_p1, %p9324_p11 }
  0xdb   : > { %9334 = shalt.err (!%p9331_p3)
}
  0xdc   : > { %p14579_p8 = scmp.ne.s32.totalorder %s14551_s16, 0  ;;  %s14580_s24 = sld [smem:[#allocation25_spill]] }
  0xde   : > { %8176 = dma.hbm_to_vmem [thread:$0]  (!%p14579_p8), %s9877_s13, 1024, %s395_s17, %s383_s26  }
  0xe2   : > { %p14581_p10 = scmp.ne.s32.totalorder %s14580_s24, 0 }
  0xe4   : > { %403 = sbr.rel (%p14581_p10) target bundleno = 3157 (0xc55), region = 48 }
  0xeb   : > { %s14582_s7 = sld [smem:[#allocation27_spill]]  ;;  %s9900_s21 = sand.u32 1, %s9445_s28  }
  0xec   : > { %s7414_s18 = sshll.u32 %s9900_s21, 8  ;;  %s406_s29 = scalar_lea.sflag [#allocation4], %s9900_s21 }
  0xed   : > { %s9904_s10 = scalar_lea.vmem [#allocation3], %s7414_s18 }
  0xf1   : > { %p14583_p7 = scmp.ne.s32.totalorder %s14582_s7, 0 }
  0xf3   : > { %9408 = dma.done.wait (%p14583_p7), %s406_s29, 4096  }
  0xf4   : > { %9410 = vsyncadd (%p14583_p7), %s406_s29, 4294963200  ;;  %s414_s16 = sand.u32 1, %s9700_s8   ;;  %s416_s13 = sand.u32 1, %s9433_s25  }
  0xf5   : > { %s8143_s17 = smul.u32 768, %s416_s13  ;;  %s415_s26 = scalar_lea.sflag [#allocation7], %s414_s16 }
  0xf6   : > { %p14584_p1 = scmp.ne.s32.totalorder %s14568_s6, 0 }
  0xf7   : > { %s9912_s0 = scalar_lea.vmem [#allocation6], %s8143_s17 }
  0xf8   : > { %9412 = dma.done.wait (%p14584_p1), %s415_s26, 16384  }
  0xf9   : > { %9414 = vsyncadd (%p14584_p1), %s415_s26, 4294950912  ;;  %s7415_s4 = sshll.u32 %s416_s13, 8  ;;  %s7416_s22 = sshll.u32 %s416_s13, 10 }
  0xfa   : > { %s9918_s15 = scalar_lea.vmem [#allocation8], %s7415_s4  ;;  %s433_s20 = scalar_lea.sflag [#allocation10], %s414_s16 }
  0xfb   : > { %s9920_s1 = scalar_lea.vmem [#allocation9], %s7416_s22 }
  0xfc   : > { %9416 = dma.done.wait (%p14584_p1), %s433_s20, 32768  }
  0xfd   : > { %9418 = vsyncadd (%p14584_p1), %s433_s20, 4294934528  ;;  %s7418_s8 = sshll.u32 %s416_s13, 6  ;;  %s9926_s14 = scalar_lea.vmem [#allocation11], %s7416_s22 }
  0xfe   : > { %s451_s23 = scalar_lea.sflag [#allocation13], %s416_s13  ;;  %s9928_s12 = scalar_lea.vmem [#allocation12], %s7418_s8 }
  0xff   : > { %9420 = dma.done.wait (%p14584_p1), %s451_s23, 1024  }
 0x100   : > { %9422 = vsyncadd (%p14584_p1), %s451_s23, 4294966272  ;;  %s14585_s19 = sld [smem:[#allocation23_spill]]  ;;  %s14586_s29 = sld [smem:[#allocation199_spill]] }
 0x101   : > { %s9942_s17 = scalar_lea.vmem [#allocation14], %s7414_s18  ;;  %s14587_s13 = sld [smem:[#allocation22_spill]] }
 0x106   : > { %p514_p5 = scmp.lt.s32.totalorder %s14585_s19, 1 }
 0x107   : > { %p7420_p0 = scmp.ne.s32.totalorder %s14587_s13, 0 }
 0x108   : > { %s15138_s19 = smov (!%p514_p5, %s14585_s19), 1  ;;  %v523_v0 = vld [vmem:[%s9904_s10] sm:$0xff] (!%p7420_p0)  ;;  %v524_v1 = vld [vmem:[%s9904_s10 + $0x8] sm:$0xff] (!%p7420_p0)  ;;  %v525_v2 = vld [vmem:[%s9904_s10 + $0x10] sm:$0xff] (!%p7420_p0) }
 0x109   : > { %s516_s16 = scalar_lea.vmem %s14586_s29, %s15138_s19  ;;  %522 = sbr.rel (%p7420_p0) target bundleno = 281 (0x119), region = 76  ;;  %555 = vst [vmem:[#allocation2] sm:$0xff] (!%p7420_p0), %v523_v0  ;;  %556 = vst [vmem:[#allocation2 + $0x8] sm:$0xff] (!%p7420_p0), %v524_v1  ;;  %v526_v3 = vld [vmem:[%s9904_s10 + $0x18] sm:$0xff] (!%p7420_p0)  ;;  %v527_v4 = vld [vmem:[%s9904_s10 + $0x20] sm:$0xff] (!%p7420_p0) }
 0x10a   : > { %557 = vst [vmem:[#allocation2 + $0x10] sm:$0xff] (!%p7420_p0), %v525_v2  ;;  %v528_v5 = vld [vmem:[%s9904_s10 + $0x28] sm:$0xff] (!%p7420_p0)  ;;  %558 = vst [vmem:[#allocation2 + $0x18] sm:$0xff] (!%p7420_p0), %v526_v3  ;;  %v529_v6 = vld [vmem:[%s9904_s10 + $0x30] sm:$0xff] (!%p7420_p0) }
 0x10b   : > { %559 = vst [vmem:[#allocation2 + $0x20] sm:$0xff] (!%p7420_p0), %v527_v4  ;;  %560 = vst [vmem:[#allocation2 + $0x28] sm:$0xff] (!%p7420_p0), %v528_v5  ;;  %v530_v7 = vld [vmem:[%s9904_s10 + $0x38] sm:$0xff] (!%p7420_p0)  ;;  %v531_v8 = vld [vmem:[%s9904_s10 + $0x40] sm:$0xff] (!%p7420_p0) }
 0x10c   : > { %561 = vst [vmem:[#allocation2 + $0x30] sm:$0xff] (!%p7420_p0), %v529_v6  ;;  %562 = vst [vmem:[#allocation2 + $0x38] sm:$0xff] (!%p7420_p0), %v530_v7  ;;  %v532_v9 = vld [vmem:[%s9904_s10 + $0x48] sm:$0xff] (!%p7420_p0)  ;;  %v533_v10 = vld [vmem:[%s9904_s10 + $0x50] sm:$0xff] (!%p7420_p0) }
 0x10d   : > { %563 = vst [vmem:[#allocation2 + $0x40] sm:$0xff] (!%p7420_p0), %v531_v8  ;;  %v534_v11 = vld [vmem:[%s9904_s10 + $0x58] sm:$0xff] (!%p7420_p0)  ;;  %564 = vst [vmem:[#allocation2 + $0x48] sm:$0xff] (!%p7420_p0), %v532_v9  ;;  %v535_v12 = vld [vmem:[%s9904_s10 + $0x60] sm:$0xff] (!%p7420_p0) }
 0x10e   : > { %565 = vst [vmem:[#allocation2 + $0x50] sm:$0xff] (!%p7420_p0), %v533_v10  ;;  %566 = vst [vmem:[#allocation2 + $0x58] sm:$0xff] (!%p7420_p0), %v534_v11  ;;  %v536_v13 = vld [vmem:[%s9904_s10 + $0x68] sm:$0xff] (!%p7420_p0)  ;;  %v537_v14 = vld [vmem:[%s9904_s10 + $0x70] sm:$0xff] (!%p7420_p0) }
 0x10f   : > { %567 = vst [vmem:[#allocation2 + $0x60] sm:$0xff] (!%p7420_p0), %v535_v12  ;;  %568 = vst [vmem:[#allocation2 + $0x68] sm:$0xff] (!%p7420_p0), %v536_v13  ;;  %v538_v15 = vld [vmem:[%s9904_s10 + $0x78] sm:$0xff] (!%p7420_p0)  ;;  %v539_v16 = vld [vmem:[%s9904_s10 + $0x80] sm:$0xff] (!%p7420_p0) }
 0x110   : > { %569 = vst [vmem:[#allocation2 + $0x70] sm:$0xff] %v537_v14  ;;  %v540_v17 = vld [vmem:[%s9904_s10 + $0x88] sm:$0xff]  ;;  %570 = vst [vmem:[#allocation2 + $0x78] sm:$0xff] %v538_v15  ;;  %v541_v18 = vld [vmem:[%s9904_s10 + $0x90] sm:$0xff] }
 0x111   : > { %571 = vst [vmem:[#allocation2 + $0x80] sm:$0xff] %v539_v16  ;;  %572 = vst [vmem:[#allocation2 + $0x88] sm:$0xff] %v540_v17  ;;  %v542_v19 = vld [vmem:[%s9904_s10 + $0x98] sm:$0xff]  ;;  %v543_v20 = vld [vmem:[%s9904_s10 + $0xa0] sm:$0xff] }
 0x112   : > { %573 = vst [vmem:[#allocation2 + $0x90] sm:$0xff] %v541_v18  ;;  %574 = vst [vmem:[#allocation2 + $0x98] sm:$0xff] %v542_v19  ;;  %v544_v21 = vld [vmem:[%s9904_s10 + $0xa8] sm:$0xff]  ;;  %v545_v22 = vld [vmem:[%s9904_s10 + $0xb0] sm:$0xff] }
 0x113   : > { %575 = vst [vmem:[#allocation2 + $0xa0] sm:$0xff] %v543_v20  ;;  %v546_v23 = vld [vmem:[%s9904_s10 + $0xb8] sm:$0xff]  ;;  %576 = vst [vmem:[#allocation2 + $0xa8] sm:$0xff] %v544_v21  ;;  %v547_v24 = vld [vmem:[%s9904_s10 + $0xc0] sm:$0xff] }
 0x114   : > { %577 = vst [vmem:[#allocation2 + $0xb0] sm:$0xff] %v545_v22  ;;  %578 = vst [vmem:[#allocation2 + $0xb8] sm:$0xff] %v546_v23  ;;  %v548_v25 = vld [vmem:[%s9904_s10 + $0xc8] sm:$0xff]  ;;  %v549_v26 = vld [vmem:[%s9904_s10 + $0xd0] sm:$0xff] }
 0x115   : > { %579 = vst [vmem:[#allocation2 + $0xc0] sm:$0xff] %v547_v24  ;;  %580 = vst [vmem:[#allocation2 + $0xc8] sm:$0xff] %v548_v25  ;;  %v550_v27 = vld [vmem:[%s9904_s10 + $0xd8] sm:$0xff]  ;;  %v551_v28 = vld [vmem:[%s9904_s10 + $0xe0] sm:$0xff] }
 0x116   : > { %581 = vst [vmem:[#allocation2 + $0xd0] sm:$0xff] %v549_v26  ;;  %v552_v29 = vld [vmem:[%s9904_s10 + $0xe8] sm:$0xff]  ;;  %582 = vst [vmem:[#allocation2 + $0xd8] sm:$0xff] %v550_v27  ;;  %v553_v30 = vld [vmem:[%s9904_s10 + $0xf0] sm:$0xff] }
 0x117   : > { %583 = vst [vmem:[#allocation2 + $0xe0] sm:$0xff] %v551_v28  ;;  %584 = vst [vmem:[#allocation2 + $0xe8] sm:$0xff] %v552_v29  ;;  %v554_v31 = vld [vmem:[%s9904_s10 + $0xf8] sm:$0xff] }
 0x118   : > { %585 = vst [vmem:[#allocation2 + $0xf0] sm:$0xff] %v553_v30  ;;  %586 = vst [vmem:[#allocation2 + $0xf8] sm:$0xff] %v554_v31 }
 0x119 PF: > { %v8281_v32 = vld [vmem:[%s9912_s0 + $0x4] ss:$24 sps:$4 sm:$0xff]   ;;  %v8283_v33 = vld [vmem:[%s9912_s0] ss:$24 sps:$4 sm:$0xff]   ;;  %v8284_v34 = vld [vmem:[%s9912_s0 + $0x34] ss:$24 sps:$4 sm:$0xff]  }
 0x11a   : > { %1243 = vmatprep.subr.bf16.mxu0 %v8281_v32  ;;  %v8286_v35 = vld [vmem:[%s9912_s0 + $0x30] ss:$24 sps:$4 sm:$0xff]   ;;  %v8287_v36 = vld [vmem:[%s9912_s0 + $0x64] ss:$24 sps:$4 sm:$0xff]   ;;  %v8289_v37 = vld [vmem:[%s9912_s0 + $0x60] ss:$24 sps:$4 sm:$0xff]  }
 0x11b   : > { %1244 = vmatpush1.bf16.msra.mxu0 %v8283_v33  ;;  %v8290_v38 = vld [vmem:[%s9912_s0 + $0x94] ss:$24 sps:$4 sm:$0xff]   ;;  %v8292_v39 = vld [vmem:[%s9912_s0 + $0x90] ss:$24 sps:$4 sm:$0xff]   ;;  %v8293_v40 = vld [vmem:[%s9912_s0 + $0xc4] ss:$24 sps:$4 sm:$0xff]  }
 0x11c   : > { %1245 = vmatprep.subr.bf16.mxu0 %v8284_v34  ;;  %v8295_v41 = vld [vmem:[%s9912_s0 + $0xc0] ss:$24 sps:$4 sm:$0xff]   ;;  %v8296_v42 = vld [vmem:[%s9912_s0 + $0xf4] ss:$24 sps:$4 sm:$0xff]   ;;  %v8298_v43 = vld [vmem:[%s9912_s0 + $0xf0] ss:$24 sps:$4 sm:$0xff]  }
 0x11d   : > { %v8299_v44 = vld [vmem:[%s9912_s0 + $0x124] ss:$24 sps:$4 sm:$0xff]   ;;  %v588_v45 = vld [vmem:[#allocation2 + $0x8] sm:$0xff]  ;;  %v8301_v48 = vld [vmem:[%s9912_s0 + $0x120] ss:$24 sps:$4 sm:$0xff]   ;;  %s15112_s26 = sld [smem:[#allocation22_spill]] }
 0x11e   : > { %v590_v46 = vld [vmem:[#allocation2 + $0x18] sm:$0xff]  ;;  %v8302_v49 = vld [vmem:[%s9912_s0 + $0x154] ss:$24 sps:$4 sm:$0xff]   ;;  %v8304_v50 = vld [vmem:[%s9912_s0 + $0x150] ss:$24 sps:$4 sm:$0xff]  }
 0x11f   : > { %1246 = vmatpush1.bf16.msra.mxu0 %v8286_v35  ;;  %v9990_v47 = vpack.c.bf16 %v590_v46, %v588_v45  ;;  %v8305_v51 = vld [vmem:[%s9912_s0 + $0x184] ss:$24 sps:$4 sm:$0xff]   ;;  %v8307_v52 = vld [vmem:[%s9912_s0 + $0x180] ss:$24 sps:$4 sm:$0xff]   ;;  %v8308_v53 = vld [vmem:[%s9912_s0 + $0x1b4] ss:$24 sps:$4 sm:$0xff]  }
 0x120   : > { %1247 = vmatprep.subr.bf16.mxu0 %v8287_v36  ;;  %v8310_v54 = vld [vmem:[%s9912_s0 + $0x1b0] ss:$24 sps:$4 sm:$0xff]   ;;  %v8311_v55 = vld [vmem:[%s9912_s0 + $0x1e4] ss:$24 sps:$4 sm:$0xff]   ;;  %v8313_v56 = vld [vmem:[%s9912_s0 + $0x1e0] ss:$24 sps:$4 sm:$0xff]  }
 0x121   : > { %1275 = vmatprep.mubr.bf16.mxu0 %v9990_v47  ;;  %v8314_v57 = vld [vmem:[%s9912_s0 + $0x214] ss:$24 sps:$4 sm:$0xff]   ;;  %v8316_v58 = vld [vmem:[%s9912_s0 + $0x210] ss:$24 sps:$4 sm:$0xff]   ;;  %v8317_v59 = vld [vmem:[%s9912_s0 + $0x244] ss:$24 sps:$4 sm:$0xff]  }
 0x122   : > { %v8319_v60 = vld [vmem:[%s9912_s0 + $0x240] ss:$24 sps:$4 sm:$0xff]   ;;  %v8320_v61 = vld [vmem:[%s9912_s0 + $0x274] ss:$24 sps:$4 sm:$0xff]   ;;  %v8322_v62 = vld [vmem:[%s9912_s0 + $0x270] ss:$24 sps:$4 sm:$0xff]  }
 0x123   : > { %1248 = vmatpush1.bf16.msra.mxu0 %v8289_v37  ;;  %v8323_v63 = vld [vmem:[%s9912_s0 + $0x2a4] ss:$24 sps:$4 sm:$0xff]   ;;  %v8325_v0 = vld [vmem:[%s9912_s0 + $0x2a0] ss:$24 sps:$4 sm:$0xff]   ;;  %v8326_v1 = vld [vmem:[%s9912_s0 + $0x2d4] ss:$24 sps:$4 sm:$0xff]  }
 0x124   : > { %1249 = vmatprep.subr.bf16.mxu0 %v8290_v38  ;;  %v8328_v2 = vld [vmem:[%s9912_s0 + $0x2d0] ss:$24 sps:$4 sm:$0xff]   ;;  %v587_v3 = vld [vmem:[#allocation2] sm:$0xff]  ;;  %v594_v7 = vld [vmem:[#allocation2 + $0x38] sm:$0xff]  ;;  %p7806_p9 = scmp.ne.s32.totalorder %s15112_s26, 1 }
 0x125   : > { %v589_v4 = vld [vmem:[#allocation2 + $0x10] sm:$0xff]  ;;  %v8331_v5 = vld [vmem:[%s9912_s0 + $0xc] ss:$24 sps:$4 sm:$0xff]   ;;  %v8329_v9 = vld [vmem:[%s9912_s0 + $0x8] ss:$24 sps:$4 sm:$0xff]  }
 0x126   : > { %v592_v6 = vld [vmem:[#allocation2 + $0x28] sm:$0xff]  ;;  %v10013_v8 = vpack.c.bf16 %v589_v4, %v587_v3  ;;  %v8334_v11 = vld [vmem:[%s9912_s0 + $0x3c] ss:$24 sps:$4 sm:$0xff]   ;;  %v8332_v12 = vld [vmem:[%s9912_s0 + $0x38] ss:$24 sps:$4 sm:$0xff]  }
 0x127   : > { %1250 = vmatpush1.bf16.msra.mxu0 %v8292_v39  ;;  %v10016_v10 = vpack.c.bf16 %v594_v7, %v592_v6  ;;  %v591_v13 = vld [vmem:[#allocation2 + $0x20] sm:$0xff]  ;;  %v593_v14 = vld [vmem:[#allocation2 + $0x30] sm:$0xff]  ;;  %v596_v16 = vld [vmem:[#allocation2 + $0x48] sm:$0xff] }
 0x128   : > { %1251 = vmatprep.subr.bf16.mxu0 %v8293_v40  ;;  %v8337_v15 = vld [vmem:[%s9912_s0 + $0x6c] ss:$24 sps:$4 sm:$0xff]   ;;  %v598_v17 = vld [vmem:[#allocation2 + $0x58] sm:$0xff]  ;;  %v10023_v18 = vpack.c.bf16 %v593_v14, %v591_v13  ;;  %v8335_v19 = vld [vmem:[%s9912_s0 + $0x68] ss:$24 sps:$4 sm:$0xff]  }
 0x129   : > { %v10026_v20 = vpack.c.bf16 %v598_v17, %v596_v16  ;;  %v8340_v21 = vld [vmem:[%s9912_s0 + $0x9c] ss:$24 sps:$4 sm:$0xff]   ;;  %v8338_v22 = vld [vmem:[%s9912_s0 + $0x98] ss:$24 sps:$4 sm:$0xff]   ;;  %v595_v23 = vld [vmem:[#allocation2 + $0x40] sm:$0xff] }
 0x12a   : > { %v597_v24 = vld [vmem:[#allocation2 + $0x50] sm:$0xff]  ;;  %v8343_v25 = vld [vmem:[%s9912_s0 + $0xcc] ss:$24 sps:$4 sm:$0xff]   ;;  %v602_v27 = vld [vmem:[#allocation2 + $0x78] sm:$0xff] }
 0x12b   : > { %1252 = vmatpush1.bf16.msra.mxu0 %v8295_v41  ;;  %v600_v26 = vld [vmem:[#allocation2 + $0x68] sm:$0xff]  ;;  %v10034_v29 = vpack.c.bf16 %v597_v24, %v595_v23  ;;  %v8346_v30 = vld [vmem:[%s9912_s0 + $0xfc] ss:$24 sps:$4 sm:$0xff]   ;;  %v8344_v32 = vld [vmem:[%s9912_s0 + $0xf8] ss:$24 sps:$4 sm:$0xff]  }
 0x12c   : > { %1253 = vmatprep.subr.bf16.mxu0 %v8296_v42  ;;  %v8341_v28 = vld [vmem:[%s9912_s0 + $0xc8] ss:$24 sps:$4 sm:$0xff]   ;;  %v10037_v31 = vpack.c.bf16 %v602_v27, %v600_v26  ;;  %v601_v34 = vld [vmem:[#allocation2 + $0x70] sm:$0xff]  ;;  %v8349_v35 = vld [vmem:[%s9912_s0 + $0x12c] ss:$24 sps:$4 sm:$0xff]  }
 0x12d   : > { %v599_v33 = vld [vmem:[#allocation2 + $0x60] sm:$0xff]  ;;  %v604_v36 = vld [vmem:[#allocation2 + $0x88] sm:$0xff]  ;;  %v606_v37 = vld [vmem:[#allocation2 + $0x98] sm:$0xff] }
 0x12e   : > { %v8347_v38 = vld [vmem:[%s9912_s0 + $0x128] ss:$24 sps:$4 sm:$0xff]   ;;  %v10044_v39 = vpack.c.bf16 %v601_v34, %v599_v33  ;;  %v8352_v40 = vld [vmem:[%s9912_s0 + $0x15c] ss:$24 sps:$4 sm:$0xff]   ;;  %v10047_v41 = vpack.c.bf16 %v606_v37, %v604_v36  ;;  %v8350_v42 = vld [vmem:[%s9912_s0 + $0x158] ss:$24 sps:$4 sm:$0xff]  }
 0x12f   : > { %1254 = vmatpush1.bf16.msra.mxu0 %v8298_v43  ;;  %v603_v43 = vld [vmem:[#allocation2 + $0x80] sm:$0xff]  ;;  %v608_v46 = vld [vmem:[#allocation2 + $0xa8] sm:$0xff]  ;;  %v618_v4 = vld [vmem:[#allocation2 + $0xf8] sm:$0xff] }
 0x130   : > { %1255 = vmatprep.subr.bf16.mxu0 %v8299_v44  ;;  %v605_v44 = vld [vmem:[#allocation2 + $0x90] sm:$0xff]  ;;  %v8355_v45 = vld [vmem:[%s9912_s0 + $0x18c] ss:$24 sps:$4 sm:$0xff]   ;;  %v8380_v24 = vld [vmem:[%s9912_s0 + $0x40] ss:$24 sps:$4 sm:$0xff]  }
 0x131   : > { %v616_v3 = vld [vmem:[#allocation2 + $0xe8] sm:$0xff]  ;;  %v8370_v7 = vld [vmem:[%s9912_s0 + $0x27c] ss:$24 sps:$4 sm:$0xff]   ;;  %v8392_v34 = vld [vmem:[%s9912_s0 + $0x100] ss:$24 sps:$4 sm:$0xff]  }
 0x132   : > { %v617_v13 = vld [vmem:[#allocation2 + $0xf0] sm:$0xff]  ;;  %v8373_v14 = vld [vmem:[%s9912_s0 + $0x2ac] ss:$24 sps:$4 sm:$0xff]  }
 0x133   : > { %1256 = vmatpush1.bf16.msra.mxu0 %v8301_v48  ;;  %v610_v48 = vld [vmem:[#allocation2 + $0xb8] sm:$0xff]  ;;  %v8383_v26 = vld [vmem:[%s9912_s0 + $0x70] ss:$24 sps:$4 sm:$0xff]  }
 0x134   : > { %1257 = vmatprep.subr.bf16.mxu0 %v8302_v49  ;;  %v8353_v49 = vld [vmem:[%s9912_s0 + $0x188] ss:$24 sps:$4 sm:$0xff]   ;;  %v8376_v17 = vld [vmem:[%s9912_s0 + $0x2dc] ss:$24 sps:$4 sm:$0xff]  }
 0x135   : > { %v8382_v23 = vld [vmem:[%s9912_s0 + $0x44] ss:$24 sps:$4 sm:$0xff]   ;;  %v8395_v36 = vld [vmem:[%s9912_s0 + $0x130] ss:$24 sps:$4 sm:$0xff]  }
 0x136   : > { %v8388_v27 = vld [vmem:[%s9912_s0 + $0xa4] ss:$24 sps:$4 sm:$0xff]  }
 0x137   : > { %1258 = vmatpush1.bf16.msra.mxu0 %v8304_v50  ;;  %v10054_v50 = vpack.c.bf16 %v605_v44, %v603_v43  ;;  %v8394_v33 = vld [vmem:[%s9912_s0 + $0x104] ss:$24 sps:$4 sm:$0xff]   ;;  %v8404_v44 = vld [vmem:[%s9912_s0 + $0x1c0] ss:$24 sps:$4 sm:$0xff]  }
 0x138   : > { %1259 = vmatprep.subr.bf16.mxu0 %v8305_v51  ;;  %v8358_v51 = vld [vmem:[%s9912_s0 + $0x1bc] ss:$24 sps:$4 sm:$0xff]  }
 0x139   : > { %v8400_v37 = vld [vmem:[%s9912_s0 + $0x164] ss:$24 sps:$4 sm:$0xff]  }
 0x13a   : > { %v8406_v43 = vld [vmem:[%s9912_s0 + $0x1c4] ss:$24 sps:$4 sm:$0xff]  }
 0x13b   : > { %1260 = vmatpush1.bf16.msra.mxu0 %v8307_v52  ;;  %v10057_v52 = vpack.c.bf16 %v610_v48, %v608_v46  ;;  %v8407_v46 = vld [vmem:[%s9912_s0 + $0x1f0] ss:$24 sps:$4 sm:$0xff]   ;;  %v8412_v48 = vld [vmem:[%s9912_s0 + $0x224] ss:$24 sps:$4 sm:$0xff]  }
 0x13c   : > { %1261 = vmatprep.subr.bf16.mxu0 %v8308_v53  ;;  %v8356_v53 = vld [vmem:[%s9912_s0 + $0x1b8] ss:$24 sps:$4 sm:$0xff]  }
 0x13f   : > { %1262 = vmatpush1.bf16.msra.mxu0 %v8310_v54  ;;  %v607_v54 = vld [vmem:[#allocation2 + $0xa0] sm:$0xff] }
 0x140   : > { %1263 = vmatprep.subr.bf16.mxu0 %v8311_v55  ;;  %v609_v55 = vld [vmem:[#allocation2 + $0xb0] sm:$0xff] }
 0x143   : > { %1264 = vmatpush1.bf16.msra.mxu0 %v8313_v56  ;;  %v8361_v56 = vld [vmem:[%s9912_s0 + $0x1ec] ss:$24 sps:$4 sm:$0xff]  }
 0x144   : > { %1265 = vmatprep.subr.bf16.mxu0 %v8314_v57  ;;  %v612_v57 = vld [vmem:[#allocation2 + $0xc8] sm:$0xff] }
 0x147   : > { %1266 = vmatpush1.bf16.msra.mxu0 %v8316_v58  ;;  %v614_v58 = vld [vmem:[#allocation2 + $0xd8] sm:$0xff] }
 0x148   : > { %1267 = vmatprep.subr.bf16.mxu0 %v8317_v59  ;;  %v8359_v59 = vld [vmem:[%s9912_s0 + $0x1e8] ss:$24 sps:$4 sm:$0xff]  }
 0x14b   : > { %1268 = vmatpush1.bf16.msra.mxu0 %v8319_v60  ;;  %v10064_v60 = vpack.c.bf16 %v609_v55, %v607_v54  ;;  %v8418_v54 = vld [vmem:[%s9912_s0 + $0x284] ss:$24 sps:$4 sm:$0xff]   ;;  %v8416_v55 = vld [vmem:[%s9912_s0 + $0x280] ss:$24 sps:$4 sm:$0xff]  }
 0x14c   : > { %1269 = vmatprep.subr.bf16.mxu0 %v8320_v61  ;;  %v8364_v61 = vld [vmem:[%s9912_s0 + $0x21c] ss:$24 sps:$4 sm:$0xff]  }
 0x14f   : > { %1270 = vmatpush1.bf16.msra.mxu0 %v8322_v62  ;;  %v10067_v62 = vpack.c.bf16 %v614_v58, %v612_v57  ;;  %v8419_v57 = vld [vmem:[%s9912_s0 + $0x2b0] ss:$24 sps:$4 sm:$0xff]   ;;  %v8424_v58 = vld [vmem:[%s9912_s0 + $0x2e4] ss:$24 sps:$4 sm:$0xff]  }
 0x150   : > { %1271 = vmatprep.subr.bf16.mxu0 %v8323_v63  ;;  %v8362_v63 = vld [vmem:[%s9912_s0 + $0x218] ss:$24 sps:$4 sm:$0xff]  }
 0x153   : > { %1272 = vmatpush1.bf16.msra.mxu0 %v8325_v0  ;;  %v611_v0 = vld [vmem:[#allocation2 + $0xc0] sm:$0xff] }
 0x154   : > { %1273 = vmatprep.subr.bf16.mxu0 %v8326_v1  ;;  %v613_v1 = vld [vmem:[#allocation2 + $0xd0] sm:$0xff] }
 0x155   : > { %v10074_v6 = vpack.c.bf16 %v613_v1, %v611_v0 }
 0x157   : > { %1274 = vmatpush1.bf16.msra.mxu0 %v8328_v2  ;;  %v8367_v2 = vld [vmem:[%s9912_s0 + $0x24c] ss:$24 sps:$4 sm:$0xff]  }
 0x158   : > { %1356 = vmatprep.subr.bf16.mxu0 %v8331_v5  ;;  %v8365_v5 = vld [vmem:[%s9912_s0 + $0x248] ss:$24 sps:$4 sm:$0xff]  }
 0x15a   : > { %1276 = vmatmul.mubr.bf16.vlgmr.msra.gmra.mrb[0].mxu0 %v10013_v8 }
 0x15b   : > { %1357 = vmatpush1.bf16.msra.mxu0 %v8329_v9  ;;  %1285 = vmatprep.mubr.bf16.mxu0 %v10016_v10  ;;  %v10077_v9 = vpack.c.bf16 %v618_v4, %v616_v3 }
 0x15c   : > { %1358 = vmatprep.subr.bf16.mxu0 %v8334_v11  ;;  %v8368_v11 = vld [vmem:[%s9912_s0 + $0x278] ss:$24 sps:$4 sm:$0xff]  }
 0x15f   : > { %1359 = vmatpush1.bf16.msra.mxu0 %v8332_v12  ;;  %v615_v12 = vld [vmem:[#allocation2 + $0xe0] sm:$0xff] }
 0x160   : > { %1360 = vmatprep.subr.bf16.mxu0 %v8337_v15  ;;  %v8371_v15 = vld [vmem:[%s9912_s0 + $0x2a8] ss:$24 sps:$4 sm:$0xff]   ;;  %v10084_v16 = vpack.c.bf16 %v617_v13, %v615_v12 }
 0x162   : > { %1286 = vmatmul.mubr.bf16.gmra.mrb[4].mxu0 %v10023_v18 }
 0x163   : > { %1361 = vmatpush1.bf16.msra.mxu0 %v8335_v19  ;;  %1295 = vmatprep.mubr.bf16.mxu0 %v10026_v20  ;;  %v8374_v19 = vld [vmem:[%s9912_s0 + $0x2d8] ss:$24 sps:$4 sm:$0xff]  }
 0x164   : > { %1362 = vmatprep.subr.bf16.mxu0 %v8340_v21  ;;  %v8379_v21 = vld [vmem:[%s9912_s0 + $0x14] ss:$24 sps:$4 sm:$0xff]  }
 0x167   : > { %1363 = vmatpush1.bf16.msra.mxu0 %v8338_v22  ;;  %v8377_v22 = vld [vmem:[%s9912_s0 + $0x10] ss:$24 sps:$4 sm:$0xff]  }
 0x168   : > { %1364 = vmatprep.subr.bf16.mxu0 %v8343_v25  ;;  %v8385_v25 = vld [vmem:[%s9912_s0 + $0x74] ss:$24 sps:$4 sm:$0xff]  }
 0x16a   : > { %1296 = vmatmul.mubr.bf16.gmra.mrb[8].mxu0 %v10034_v29 }
 0x16b   : > { %1365 = vmatpush1.bf16.msra.mxu0 %v8341_v28  ;;  %1305 = vmatprep.mubr.bf16.mxu0 %v10037_v31  ;;  %v8386_v28 = vld [vmem:[%s9912_s0 + $0xa0] ss:$24 sps:$4 sm:$0xff]  }
 0x16c   : > { %1366 = vmatprep.subr.bf16.mxu0 %v8346_v30  ;;  %v8391_v30 = vld [vmem:[%s9912_s0 + $0xd4] ss:$24 sps:$4 sm:$0xff]  }
 0x16f   : > { %1367 = vmatpush1.bf16.msra.mxu0 %v8344_v32  ;;  %v8389_v32 = vld [vmem:[%s9912_s0 + $0xd0] ss:$24 sps:$4 sm:$0xff]  }
 0x170   : > { %1368 = vmatprep.subr.bf16.mxu0 %v8349_v35  ;;  %v8397_v35 = vld [vmem:[%s9912_s0 + $0x134] ss:$24 sps:$4 sm:$0xff]  }
 0x172   : > { %1306 = vmatmul.mubr.bf16.gmra.mrb[12].mxu0 %v10044_v39 }
 0x173   : > { %1369 = vmatpush1.bf16.msra.mxu0 %v8347_v38  ;;  %1315 = vmatprep.mubr.bf16.mxu0 %v10047_v41  ;;  %v8398_v38 = vld [vmem:[%s9912_s0 + $0x160] ss:$24 sps:$4 sm:$0xff]  }
 0x174   : > { %1370 = vmatprep.subr.bf16.mxu0 %v8352_v40  ;;  %v8403_v40 = vld [vmem:[%s9912_s0 + $0x194] ss:$24 sps:$4 sm:$0xff]  }
 0x177   : > { %1371 = vmatpush1.bf16.msra.mxu0 %v8350_v42  ;;  %v8401_v42 = vld [vmem:[%s9912_s0 + $0x190] ss:$24 sps:$4 sm:$0xff]  }
 0x178   : > { %1372 = vmatprep.subr.bf16.mxu0 %v8355_v45  ;;  %v8409_v45 = vld [vmem:[%s9912_s0 + $0x1f4] ss:$24 sps:$4 sm:$0xff]  }
 0x17a   : > { %1316 = vmatmul.mubr.bf16.gmra.mrb[16].mxu0 %v10054_v50 }
 0x17b   : > { %1373 = vmatpush1.bf16.msra.mxu0 %v8353_v49  ;;  %1325 = vmatprep.mubr.bf16.mxu0 %v10057_v52  ;;  %v8410_v49 = vld [vmem:[%s9912_s0 + $0x220] ss:$24 sps:$4 sm:$0xff]  }
 0x17c   : > { %1374 = vmatprep.subr.bf16.mxu0 %v8358_v51  ;;  %v8415_v51 = vld [vmem:[%s9912_s0 + $0x254] ss:$24 sps:$4 sm:$0xff]  }
 0x17f   : > { %1375 = vmatpush1.bf16.msra.mxu0 %v8356_v53  ;;  %v8413_v53 = vld [vmem:[%s9912_s0 + $0x250] ss:$24 sps:$4 sm:$0xff]  }
 0x180   : > { %1376 = vmatprep.subr.bf16.mxu0 %v8361_v56  ;;  %v8421_v56 = vld [vmem:[%s9912_s0 + $0x2b4] ss:$24 sps:$4 sm:$0xff]  }
 0x182   : > { %1326 = vmatmul.mubr.bf16.gmra.mrb[20].mxu0 %v10064_v60 }
 0x183   : > { %1377 = vmatpush1.bf16.msra.mxu0 %v8359_v59  ;;  %1335 = vmatprep.mubr.bf16.mxu0 %v10067_v62  ;;  %v8422_v59 = vld [vmem:[%s9912_s0 + $0x2e0] ss:$24 sps:$4 sm:$0xff]  }
 0x184   : > { %1378 = vmatprep.subr.bf16.mxu0 %v8364_v61 }
 0x187   : > { %1379 = vmatpush1.bf16.msra.mxu0 %v8362_v63 }
 0x188   : > { %1380 = vmatprep.subr.bf16.mxu0 %v8367_v2 }
 0x18a   : > { %1336 = vmatmul.mubr.bf16.gmra.mrb[24].mxu0 %v10074_v6 }
 0x18b   : > { %1381 = vmatpush1.bf16.msra.mxu0 %v8365_v5  ;;  %1345 = vmatprep.mubr.bf16.mxu0 %v10077_v9 }
 0x18c   : > { %1382 = vmatprep.subr.bf16.mxu0 %v8370_v7 }
 0x18f   : > { %1383 = vmatpush1.bf16.msra.mxu0 %v8368_v11 }
 0x190   : > { %1384 = vmatprep.subr.bf16.mxu0 %v8373_v14 }
 0x192   : > { %1346 = vmatmul.mubr.bf16.gmra.mrb[28].mxu0 %v10084_v16 }
 0x193   : > { %1385 = vmatpush1.bf16.msra.mxu0 %v8371_v15  ;;  %1388 = vmatprep.mubr.bf16.mxu0 %v9990_v47 }
 0x194   : > { %1386 = vmatprep.subr.bf16.mxu0 %v8376_v17 }
 0x197   : > { %1387 = vmatpush1.bf16.msra.mxu0 %v8374_v19 }
 0x198   : > { %1469 = vmatprep.subr.bf16.mxu0 %v8379_v21 }
 0x19a   : > { %1389 = vmatmul.mubr.bf16.vlgmr.msra.gmra.mrb[32].mxu0 %v10013_v8 }
 0x19b   : > { %1398 = vmatprep.mubr.bf16.mxu0 %v10016_v10  ;;  %1470 = vmatpush1.bf16.msra.mxu0 %v8377_v22 }
 0x19c   : > { %1471 = vmatprep.subr.bf16.mxu0 %v8382_v23 }
 0x19f   : > { %1472 = vmatpush1.bf16.msra.mxu0 %v8380_v24 }
 0x1a0   : > { %1473 = vmatprep.subr.bf16.mxu0 %v8385_v25 }
 0x1a2   : > { %1399 = vmatmul.mubr.bf16.gmra.mrb[36].mxu0 %v10023_v18 }
 0x1a3   : > { %1408 = vmatprep.mubr.bf16.mxu0 %v10026_v20  ;;  %1474 = vmatpush1.bf16.msra.mxu0 %v8383_v26 }
 0x1a4   : > { %1475 = vmatprep.subr.bf16.mxu0 %v8388_v27 }
 0x1a7   : > { %1476 = vmatpush1.bf16.msra.mxu0 %v8386_v28 }
 0x1a8   : > { %1477 = vmatprep.subr.bf16.mxu0 %v8391_v30 }
 0x1aa   : > { %1409 = vmatmul.mubr.bf16.gmra.mrb[40].mxu0 %v10034_v29 }
 0x1ab   : > { %1418 = vmatprep.mubr.bf16.mxu0 %v10037_v31  ;;  %1478 = vmatpush1.bf16.msra.mxu0 %v8389_v32 }
 0x1ac   : > { %1479 = vmatprep.subr.bf16.mxu0 %v8394_v33 }
 0x1af   : > { %1480 = vmatpush1.bf16.msra.mxu0 %v8392_v34 }
 0x1b0   : > { %1481 = vmatprep.subr.bf16.mxu0 %v8397_v35 }
 0x1b2   : > { %1419 = vmatmul.mubr.bf16.gmra.mrb[44].mxu0 %v10044_v39 }
 0x1b3   : > { %1428 = vmatprep.mubr.bf16.mxu0 %v10047_v41  ;;  %1482 = vmatpush1.bf16.msra.mxu0 %v8395_v36 }
 0x1b4   : > { %1483 = vmatprep.subr.bf16.mxu0 %v8400_v37 }
 0x1b7   : > { %1484 = vmatpush1.bf16.msra.mxu0 %v8398_v38 }
 0x1b8   : > { %1485 = vmatprep.subr.bf16.mxu0 %v8403_v40 }
 0x1ba   : > { %1429 = vmatmul.mubr.bf16.gmra.mrb[48].mxu0 %v10054_v50 }
 0x1bb   : > { %1438 = vmatprep.mubr.bf16.mxu0 %v10057_v52  ;;  %1486 = vmatpush1.bf16.msra.mxu0 %v8401_v42 }
 0x1bc   : > { %1487 = vmatprep.subr.bf16.mxu0 %v8406_v43 }
 0x1bf   : > { %1488 = vmatpush1.bf16.msra.mxu0 %v8404_v44 }
 0x1c0   : > { %1489 = vmatprep.subr.bf16.mxu0 %v8409_v45 }
 0x1c2   : > { %1439 = vmatmul.mubr.bf16.gmra.mrb[52].mxu0 %v10064_v60 }
 0x1c3   : > { %1448 = vmatprep.mubr.bf16.mxu0 %v10067_v62  ;;  %1490 = vmatpush1.bf16.msra.mxu0 %v8407_v46 }
 0x1c4   : > { %1491 = vmatprep.subr.bf16.mxu0 %v8412_v48 }
 0x1c7   : > { %1492 = vmatpush1.bf16.msra.mxu0 %v8410_v49 }
 0x1c8   : > { %1493 = vmatprep.subr.bf16.mxu0 %v8415_v51 }
 0x1ca   : > { %1449 = vmatmul.mubr.bf16.gmra.mrb[56].mxu0 %v10074_v6 }
 0x1cb   : > { %1458 = vmatprep.mubr.bf16.mxu0 %v10077_v9  ;;  %1494 = vmatpush1.bf16.msra.mxu0 %v8413_v53 }
 0x1cc   : > { %1495 = vmatprep.subr.bf16.mxu0 %v8418_v54 }
 0x1cf   : > { %1496 = vmatpush1.bf16.msra.mxu0 %v8416_v55 }
 0x1d0   : > { %1497 = vmatprep.subr.bf16.mxu0 %v8421_v56 }
 0x1d2   : > { %1459 = vmatmul.mubr.bf16.gmra.mrb[60].mxu0 %v10084_v16 }
 0x1d3   : > { %1498 = vmatpush1.bf16.msra.mxu0 %v8419_v57  ;;  %1501 = vmatprep.mubr.bf16.mxu0 %v9990_v47  ;;  %v739_v47 = vlaneseq }
 0x1d4   : > { %1499 = vmatprep.subr.bf16.mxu0 %v8424_v58 }
 0x1d7   : > { %1500 = vmatpush1.bf16.msra.mxu0 %v8422_v59 }
 0x1da   : > { %1502 = vmatmul.mubr.bf16.vlgmr.msra.gmra.mrb[64].mxu0 %v10013_v8  ;;  %v10153_v8 = vshrl.u32 %v739_v47, 7 }
 0x1db   : > { %1511 = vmatprep.mubr.bf16.mxu0 %v10016_v10 }
 0x1dc   : > { %14588 = vst [vmem:[#allocation32_spill] sm:$0xff] %v10153_v8  ;;  %v10156_v10 = vsub.s32 0, %v10153_v8 }
 0x1e2   : > { %1512 = vmatmul.mubr.bf16.gmra.mrb[68].mxu0 %v10023_v18  ;;  %v635_v18 = vld [vmem:[%s9928_s12] sm:$0xff] }
 0x1e3   : > { %1521 = vmatprep.mubr.bf16.mxu0 %v10026_v20  ;;  %v636_v20 = vld [vmem:[%s9928_s12 + $0x8] sm:$0xff] }
 0x1ea   : > { %1522 = vmatmul.mubr.bf16.gmra.mrb[72].mxu0 %v10034_v29  ;;  %v10161_v29 = vrot.slane %v635_v18, %v10156_v10 }
 0x1eb   : > { %1531 = vmatprep.mubr.bf16.mxu0 %v10037_v31 }
 0x1f2   : > { %1532 = vmatmul.mubr.bf16.gmra.mrb[76].mxu0 %v10044_v39  ;;  %v10164_v39 = vrot.slane %v636_v20, %v10156_v10 }
 0x1f3   : > { %1541 = vmatprep.mubr.bf16.mxu0 %v10047_v41 }
 0x1fa   : > { %1542 = vmatmul.mubr.bf16.gmra.mrb[80].mxu0 %v10054_v50 }
 0x1fb   : > { %1551 = vmatprep.mubr.bf16.mxu0 %v10057_v52 }
 0x202   : > { %1552 = vmatmul.mubr.bf16.gmra.mrb[84].mxu0 %v10064_v60 }
 0x203   : > { %1561 = vmatprep.mubr.bf16.mxu0 %v10067_v62 }
 0x20a   : > { %1562 = vmatmul.mubr.bf16.gmra.mrb[88].mxu0 %v10074_v6 }
 0x20b   : > { %1571 = vmatprep.mubr.bf16.mxu0 %v10077_v9 }
 0x212   : > { %1572 = vmatmul.mubr.bf16.gmra.mrb[92].mxu0 %v10084_v16 }
 0x22d   : > { %v1277_v31 = vpop.f32.mrb[0].mxu0 }
 0x22e   : > { %v1279_v41 = vpop.f32.mrb[1].mxu0  ;;  %v1278_v52 = vadd.f32 %v1277_v31, %v10161_v29 }
 0x22f   : > { %v1281_v50 = vpop.f32.mrb[2].mxu0  ;;  %v1280_v62 = vadd.f32 %v1279_v41, %v10164_v39 }
 0x230   : > { %v1282_v60 = vadd.f32 %v1281_v50, %v10161_v29  ;;  %v1283_v61 = vpop.f32.mrb[3].mxu0 }
 0x231   : > { %v1284_v63 = vadd.f32 %v1283_v61, %v10164_v39 }
 0x232   : > { %v1583_v0 = vpack.c.bf16 %v1282_v60, %v1278_v52 }
 0x233   : > { %v1959_v1 = vpack.c.bf16 %v1284_v63, %v1280_v62 }
 0x234   : > { %7901 = vmatprep.mubr.bf16.mxu1 %v1583_v0 }
 0x235   : > { %v1287_v2 = vpop.f32.mrb[4].mxu0  ;;  %7965 = vmatprep.mubr.bf16.mxu0 %v1959_v1 }
 0x236   : > { %v10171_v3 = vadd.f32 %v1287_v2, %v10161_v29  ;;  %v1289_v4 = vpop.f32.mrb[5].mxu0 }
 0x237   : > { %v10174_v5 = vadd.f32 %v1289_v4, %v10164_v39  ;;  %v1291_v6 = vpop.f32.mrb[6].mxu0 }
 0x238   : > { %v10177_v7 = vadd.f32 %v1291_v6, %v10161_v29  ;;  %v1293_v9 = vpop.f32.mrb[7].mxu0 }
 0x239   : > { %v10180_v11 = vadd.f32 %v1293_v9, %v10164_v39 }
 0x23a   : > { %v1584_v12 = vpack.c.bf16 %v10177_v7, %v10171_v3 }
 0x23b   : > { %v1960_v13 = vpack.c.bf16 %v10180_v11, %v10174_v5 }
 0x23d   : > { %v1297_v14 = vpop.f32.mrb[8].mxu0 }
 0x23e   : > { %v10187_v15 = vadd.f32 %v1297_v14, %v10161_v29  ;;  %v1299_v16 = vpop.f32.mrb[9].mxu0 }
 0x23f   : > { %v10190_v17 = vadd.f32 %v1299_v16, %v10164_v39  ;;  %v1301_v19 = vpop.f32.mrb[10].mxu0 }
 0x240   : > { %v10193_v21 = vadd.f32 %v1301_v19, %v10161_v29  ;;  %v1303_v22 = vpop.f32.mrb[11].mxu0 }
 0x241   : > { %v10196_v23 = vadd.f32 %v1303_v22, %v10164_v39 }
 0x242   : > { %v1585_v24 = vpack.c.bf16 %v10193_v21, %v10187_v15 }
 0x243   : > { %v1961_v25 = vpack.c.bf16 %v10196_v23, %v10190_v17 }
 0x245   : > { %v1307_v26 = vpop.f32.mrb[12].mxu0 }
 0x246   : > { %v10203_v27 = vadd.f32 %v1307_v26, %v10161_v29  ;;  %v1309_v28 = vpop.f32.mrb[13].mxu0  ;;  %v637_v26 = vld [vmem:[%s9928_s12 + $0x10] sm:$0xff] }
 0x247   : > { %v10206_v30 = vadd.f32 %v1309_v28, %v10164_v39  ;;  %v1311_v32 = vpop.f32.mrb[14].mxu0 }
 0x248   : > { %v10209_v33 = vadd.f32 %v1311_v32, %v10161_v29  ;;  %v1313_v34 = vpop.f32.mrb[15].mxu0  ;;  %v638_v32 = vld [vmem:[%s9928_s12 + $0x18] sm:$0xff] }
 0x249   : > { %v10212_v35 = vadd.f32 %v1313_v34, %v10164_v39 }
 0x24a   : > { %v1586_v36 = vpack.c.bf16 %v10209_v33, %v10203_v27 }
 0x24b   : > { %v1962_v37 = vpack.c.bf16 %v10212_v35, %v10206_v30 }
 0x24d   : > { %v1317_v38 = vpop.f32.mrb[16].mxu0 }
 0x24e   : > { %v10219_v40 = vadd.f32 %v1317_v38, %v10161_v29  ;;  %v1319_v42 = vpop.f32.mrb[17].mxu0  ;;  %v10285_v38 = vrot.slane %v637_v26, %v10156_v10 }
 0x24f   : > { %v10222_v43 = vadd.f32 %v1319_v42, %v10164_v39  ;;  %v1321_v44 = vpop.f32.mrb[18].mxu0 }
 0x250   : > { %v10225_v45 = vadd.f32 %v1321_v44, %v10161_v29  ;;  %v1323_v46 = vpop.f32.mrb[19].mxu0  ;;  %v10288_v44 = vrot.slane %v638_v32, %v10156_v10 }
 0x251   : > { %v10228_v48 = vadd.f32 %v1323_v46, %v10164_v39 }
 0x252   : > { %v1587_v49 = vpack.c.bf16 %v10225_v45, %v10219_v40 }
 0x253   : > { %v1963_v51 = vpack.c.bf16 %v10228_v48, %v10222_v43 }
 0x255   : > { %v1327_v53 = vpop.f32.mrb[20].mxu0 }
 0x256   : > { %v10235_v54 = vadd.f32 %v1327_v53, %v10161_v29  ;;  %v1329_v55 = vpop.f32.mrb[21].mxu0 }
 0x257   : > { %v10238_v56 = vadd.f32 %v1329_v55, %v10164_v39  ;;  %v1331_v57 = vpop.f32.mrb[22].mxu0 }
 0x258   : > { %v10241_v58 = vadd.f32 %v1331_v57, %v10161_v29  ;;  %v1333_v59 = vpop.f32.mrb[23].mxu0 }
 0x259   : > { %v10244_v47 = vadd.f32 %v1333_v59, %v10164_v39 }
 0x25a   : > { %v1588_v18 = vpack.c.bf16 %v10241_v58, %v10235_v54 }
 0x25b   : > { %v1964_v20 = vpack.c.bf16 %v10244_v47, %v10238_v56 }
 0x25d   : > { %v1337_v31 = vpop.f32.mrb[24].mxu0 }
 0x25e   : > { %v10251_v41 = vadd.f32 %v1337_v31, %v10161_v29  ;;  %v1339_v50 = vpop.f32.mrb[25].mxu0 }
 0x25f   : > { %v10254_v52 = vadd.f32 %v1339_v50, %v10164_v39  ;;  %v1341_v60 = vpop.f32.mrb[26].mxu0 }
 0x260   : > { %v10257_v61 = vadd.f32 %v1341_v60, %v10161_v29  ;;  %v1343_v62 = vpop.f32.mrb[27].mxu0 }
 0x261   : > { %v10260_v63 = vadd.f32 %v1343_v62, %v10164_v39 }
 0x262   : > { %v1589_v0 = vpack.c.bf16 %v10257_v61, %v10251_v41 }
 0x263   : > { %v1965_v1 = vpack.c.bf16 %v10260_v63, %v10254_v52 }
 0x265   : > { %v1347_v2 = vpop.f32.mrb[28].mxu0 }
 0x266   : > { %v10267_v4 = vadd.f32 %v1347_v2, %v10161_v29  ;;  %v1349_v6 = vpop.f32.mrb[29].mxu0 }
 0x267   : > { %v10270_v9 = vadd.f32 %v1349_v6, %v10164_v39  ;;  %v1351_v14 = vpop.f32.mrb[30].mxu0 }
 0x268   : > { %v10273_v16 = vadd.f32 %v1351_v14, %v10161_v29  ;;  %v1353_v19 = vpop.f32.mrb[31].mxu0 }
 0x269   : > { %v10276_v22 = vadd.f32 %v1353_v19, %v10164_v39 }
 0x26a   : > { %v1590_v28 = vpack.c.bf16 %v10273_v16, %v10267_v4 }
 0x26b   : > { %v1966_v34 = vpack.c.bf16 %v10276_v22, %v10270_v9 }
 0x26d   : > { %v1390_v42 = vpop.f32.mrb[32].mxu0 }
 0x26e   : > { %v1392_v29 = vpop.f32.mrb[33].mxu0  ;;  %v1391_v39 = vadd.f32 %v1390_v42, %v10285_v38 }
 0x26f   : > { %v1394_v46 = vpop.f32.mrb[34].mxu0  ;;  %v1393_v57 = vadd.f32 %v1392_v29, %v10288_v44 }
 0x270   : > { %v1395_v53 = vadd.f32 %v1394_v46, %v10285_v38  ;;  %v1396_v55 = vpop.f32.mrb[35].mxu0 }
 0x271   : > { %v1397_v59 = vadd.f32 %v1396_v55, %v10288_v44 }
 0x272   : > { %v1591_v31 = vpack.c.bf16 %v1395_v53, %v1391_v39 }
 0x273   : > { %v1967_v50 = vpack.c.bf16 %v1397_v59, %v1393_v57 }
 0x274   : > { %7885 = vmatprep.subr.bf16.mxu1 %v1591_v31 }
 0x275   : > { %v1400_v60 = vpop.f32.mrb[36].mxu0  ;;  %7886 = vmatpush3.bf16.xpose.msra.mxu1 %v1591_v31  ;;  %7949 = vmatprep.subr.bf16.mxu0 %v1967_v50 }
 0x276   : > { %v1402_v62 = vpop.f32.mrb[37].mxu0  ;;  %7950 = vmatpush3.bf16.xpose.msra.mxu0 %v1967_v50  ;;  %v1401_v6 = vadd.f32 %v1400_v60, %v10285_v38 }
 0x277   : > { %v1404_v2 = vpop.f32.mrb[38].mxu0  ;;  %v1403_v26 = vadd.f32 %v1402_v62, %v10288_v44 }
 0x278   : > { %v1405_v14 = vadd.f32 %v1404_v2, %v10285_v38  ;;  %v1406_v19 = vpop.f32.mrb[39].mxu0 }
 0x279   : > { %v1407_v32 = vadd.f32 %v1406_v19, %v10288_v44 }
 0x27a   : > { %v1592_v42 = vpack.c.bf16 %v1405_v14, %v1401_v6 }
 0x27b   : > { %v1968_v29 = vpack.c.bf16 %v1407_v32, %v1403_v26 }
 0x27c   : > { %7887 = vmatprep.subr.bf16.mxu1 %v1592_v42 }
 0x27d   : > { %v1410_v46 = vpop.f32.mrb[40].mxu0  ;;  %7888 = vmatpush3.bf16.xpose.msra.mxu1 %v1592_v42  ;;  %7951 = vmatprep.subr.bf16.mxu0 %v1968_v29 }
 0x27e   : > { %v1412_v39 = vpop.f32.mrb[41].mxu0  ;;  %7952 = vmatpush3.bf16.xpose.msra.mxu0 %v1968_v29  ;;  %v1411_v55 = vadd.f32 %v1410_v46, %v10285_v38 }
 0x27f   : > { %v1414_v53 = vpop.f32.mrb[42].mxu0  ;;  %v1413_v31 = vadd.f32 %v1412_v39, %v10288_v44 }
 0x280   : > { %v1415_v57 = vadd.f32 %v1414_v53, %v10285_v38  ;;  %v1416_v59 = vpop.f32.mrb[43].mxu0 }
 0x281   : > { %v1417_v50 = vadd.f32 %v1416_v59, %v10288_v44 }
 0x282   : > { %v1593_v60 = vpack.c.bf16 %v1415_v57, %v1411_v55 }
 0x283   : > { %v1969_v62 = vpack.c.bf16 %v1417_v50, %v1413_v31 }
 0x284   : > { %7889 = vmatprep.subr.bf16.mxu1 %v1593_v60 }
 0x285   : > { %v1420_v2 = vpop.f32.mrb[44].mxu0  ;;  %7890 = vmatpush3.bf16.xpose.msra.mxu1 %v1593_v60  ;;  %7953 = vmatprep.subr.bf16.mxu0 %v1969_v62 }
 0x286   : > { %v1422_v6 = vpop.f32.mrb[45].mxu0  ;;  %7954 = vmatpush3.bf16.xpose.msra.mxu0 %v1969_v62  ;;  %v1421_v19 = vadd.f32 %v1420_v2, %v10285_v38 }
 0x287   : > { %v1424_v14 = vpop.f32.mrb[46].mxu0  ;;  %v1423_v42 = vadd.f32 %v1422_v6, %v10288_v44 }
 0x288   : > { %v1425_v26 = vadd.f32 %v1424_v14, %v10285_v38  ;;  %v1426_v32 = vpop.f32.mrb[47].mxu0 }
 0x289   : > { %v1427_v29 = vadd.f32 %v1426_v32, %v10288_v44 }
 0x28a   : > { %v1594_v46 = vpack.c.bf16 %v1425_v26, %v1421_v19 }
 0x28b   : > { %v1970_v39 = vpack.c.bf16 %v1427_v29, %v1423_v42 }
 0x28c   : > { %7891 = vmatprep.subr.bf16.mxu1 %v1594_v46 }
 0x28d   : > { %v1430_v53 = vpop.f32.mrb[48].mxu0  ;;  %7892 = vmatpush3.bf16.xpose.msra.mxu1 %v1594_v46  ;;  %7955 = vmatprep.subr.bf16.mxu0 %v1970_v39 }
 0x28e   : > { %v1432_v55 = vpop.f32.mrb[49].mxu0  ;;  %7956 = vmatpush3.bf16.xpose.msra.mxu0 %v1970_v39  ;;  %v1431_v59 = vadd.f32 %v1430_v53, %v10285_v38 }
 0x28f   : > { %v1434_v57 = vpop.f32.mrb[50].mxu0  ;;  %v1433_v60 = vadd.f32 %v1432_v55, %v10288_v44 }
 0x290   : > { %v1435_v31 = vadd.f32 %v1434_v57, %v10285_v38  ;;  %v1436_v50 = vpop.f32.mrb[51].mxu0 }
 0x291   : > { %v1437_v62 = vadd.f32 %v1436_v50, %v10288_v44 }
 0x292   : > { %v1595_v2 = vpack.c.bf16 %v1435_v31, %v1431_v59 }
 0x293   : > { %v1971_v6 = vpack.c.bf16 %v1437_v62, %v1433_v60 }
 0x294   : > { %7893 = vmatprep.subr.bf16.mxu1 %v1595_v2 }
 0x295   : > { %v1440_v14 = vpop.f32.mrb[52].mxu0  ;;  %7894 = vmatpush3.bf16.xpose.msra.mxu1 %v1595_v2  ;;  %7957 = vmatprep.subr.bf16.mxu0 %v1971_v6 }
 0x296   : > { %v1442_v19 = vpop.f32.mrb[53].mxu0  ;;  %7958 = vmatpush3.bf16.xpose.msra.mxu0 %v1971_v6  ;;  %v1441_v32 = vadd.f32 %v1440_v14, %v10285_v38 }
 0x297   : > { %v1444_v26 = vpop.f32.mrb[54].mxu0  ;;  %v1443_v46 = vadd.f32 %v1442_v19, %v10288_v44 }
 0x298   : > { %v1445_v42 = vadd.f32 %v1444_v26, %v10285_v38  ;;  %v1446_v29 = vpop.f32.mrb[55].mxu0 }
 0x299   : > { %v1447_v39 = vadd.f32 %v1446_v29, %v10288_v44  ;;  %v639_v29 = vld [vmem:[%s9928_s12 + $0x20] sm:$0xff] }
 0x29a   : > { %v1596_v53 = vpack.c.bf16 %v1445_v42, %v1441_v32 }
 0x29b   : > { %v1972_v55 = vpack.c.bf16 %v1447_v39, %v1443_v46 }
 0x29c   : > { %7895 = vmatprep.subr.bf16.mxu1 %v1596_v53 }
 0x29d   : > { %v1450_v57 = vpop.f32.mrb[56].mxu0  ;;  %7896 = vmatpush3.bf16.xpose.msra.mxu1 %v1596_v53  ;;  %7959 = vmatprep.subr.bf16.mxu0 %v1972_v55 }
 0x29e   : > { %v1452_v59 = vpop.f32.mrb[57].mxu0  ;;  %7960 = vmatpush3.bf16.xpose.msra.mxu0 %v1972_v55  ;;  %v1451_v50 = vadd.f32 %v1450_v57, %v10285_v38  ;;  %v640_v55 = vld [vmem:[%s9928_s12 + $0x28] sm:$0xff] }
 0x29f   : > { %v1454_v31 = vpop.f32.mrb[58].mxu0  ;;  %v1453_v2 = vadd.f32 %v1452_v59, %v10288_v44 }
 0x2a0   : > { %v1455_v60 = vadd.f32 %v1454_v31, %v10285_v38  ;;  %v1456_v62 = vpop.f32.mrb[59].mxu0 }
 0x2a1   : > { %v1457_v6 = vadd.f32 %v1456_v62, %v10288_v44  ;;  %v10328_v62 = vrot.slane %v640_v55, %v10156_v10 }
 0x2a2   : > { %v1597_v14 = vpack.c.bf16 %v1455_v60, %v1451_v50  ;;  %v10325_v50 = vrot.slane %v639_v29, %v10156_v10 }
 0x2a3   : > { %v1973_v19 = vpack.c.bf16 %v1457_v6, %v1453_v2 }
 0x2a4   : > { %7897 = vmatprep.subr.bf16.mxu1 %v1597_v14 }
 0x2a5   : > { %v1460_v26 = vpop.f32.mrb[60].mxu0  ;;  %7898 = vmatpush3.bf16.xpose.msra.mxu1 %v1597_v14  ;;  %7961 = vmatprep.subr.bf16.mxu0 %v1973_v19 }
 0x2a6   : > { %v1462_v32 = vpop.f32.mrb[61].mxu0  ;;  %7962 = vmatpush3.bf16.xpose.msra.mxu0 %v1973_v19  ;;  %v1461_v46 = vadd.f32 %v1460_v26, %v10285_v38 }
 0x2a7   : > { %v1464_v42 = vpop.f32.mrb[62].mxu0  ;;  %v1463_v57 = vadd.f32 %v1462_v32, %v10288_v44 }
 0x2a8   : > { %v1465_v39 = vadd.f32 %v1464_v42, %v10285_v38  ;;  %v1466_v53 = vpop.f32.mrb[63].mxu0 }
 0x2a9   : > { %v1467_v59 = vadd.f32 %v1466_v53, %v10288_v44 }
 0x2aa   : > { %v1598_v31 = vpack.c.bf16 %v1465_v39, %v1461_v46 }
 0x2ab   : > { %v1974_v60 = vpack.c.bf16 %v1467_v59, %v1463_v57 }
 0x2ac   : > { %7899 = vmatprep.subr.bf16.mxu1 %v1598_v31 }
 0x2ad   : > { %7900 = vmatpush3.bf16.xpose.msra.mxu1 %v1598_v31  ;;  %7963 = vmatprep.subr.bf16.mxu0 %v1974_v60  ;;  %v1503_v2 = vpop.f32.mrb[64].mxu0 }
 0x2ae   : > { %7964 = vmatpush3.bf16.xpose.msra.mxu0 %v1974_v60  ;;  %v1504_v38 = vadd.f32 %v1503_v2, %v10325_v50  ;;  %v1505_v6 = vpop.f32.mrb[65].mxu0 }
 0x2af   : > { %v1506_v14 = vadd.f32 %v1505_v6, %v10328_v62  ;;  %v1507_v19 = vpop.f32.mrb[66].mxu0 }
 0x2b0   : > { %v1508_v44 = vadd.f32 %v1507_v19, %v10325_v50  ;;  %v1509_v26 = vpop.f32.mrb[67].mxu0 }
 0x2b1   : > { %v1510_v32 = vadd.f32 %v1509_v26, %v10328_v62 }
 0x2b2   : > { %v1599_v42 = vpack.c.bf16 %v1508_v44, %v1504_v38 }
 0x2b3   : > { %v1975_v29 = vpack.c.bf16 %v1510_v32, %v1506_v14 }
 0x2b4   : > { %7902 = vmatmul.mubr.bf16.vlgmr.msra.gmra.mrb[0].mxu1 %v1584_v12  ;;  %7917 = vmatprep.subr.bf16.mxu1 %v1599_v42 }
 0x2b5   : > { %7905 = vmatprep.mubr.bf16.mxu1 %v1585_v24  ;;  %7966 = vmatmul.mubr.bf16.vlgmr.msra.gmra.mrb[96].mxu0 %v1960_v13  ;;  %v1513_v10 = vpop.f32.mrb[68].mxu0 }
 0x2b6   : > { %7969 = vmatprep.mubr.bf16.mxu0 %v1961_v25  ;;  %v1514_v46 = vadd.f32 %v1513_v10, %v10325_v50  ;;  %7981 = vmatprep.subr.bf16.mxu0 %v1975_v29  ;;  %v1515_v39 = vpop.f32.mrb[69].mxu0 }
 0x2b7   : > { %v1516_v3 = vadd.f32 %v1515_v39, %v10328_v62  ;;  %7918 = vmatpush3.bf16.msra.mxu1 %v1599_v42  ;;  %7982 = vmatpush3.bf16.msra.mxu0 %v1975_v29  ;;  %v1517_v7 = vpop.f32.mrb[70].mxu0 }
 0x2b8   : > { %v1518_v12 = vadd.f32 %v1517_v7, %v10325_v50  ;;  %v1519_v15 = vpop.f32.mrb[71].mxu0 }
 0x2b9   : > { %v1520_v5 = vadd.f32 %v1519_v15, %v10328_v62 }
 0x2ba   : > { %v1600_v11 = vpack.c.bf16 %v1518_v12, %v1514_v46 }
 0x2bb   : > { %v1976_v13 = vpack.c.bf16 %v1520_v5, %v1516_v3 }
 0x2bc   : > { %7906 = vmatmul.mubr.bf16.gmra.mrb[4].mxu1 %v1586_v36  ;;  %7919 = vmatprep.subr.bf16.mxu1 %v1600_v11 }
 0x2bd   : > { %7909 = vmatprep.mubr.bf16.mxu1 %v1587_v49  ;;  %7970 = vmatmul.mubr.bf16.gmra.mrb[100].mxu0 %v1962_v37  ;;  %v1523_v17 = vpop.f32.mrb[72].mxu0 }
 0x2be   : > { %7973 = vmatprep.mubr.bf16.mxu0 %v1963_v51  ;;  %v1524_v21 = vadd.f32 %v1523_v17, %v10325_v50  ;;  %7983 = vmatprep.subr.bf16.mxu0 %v1976_v13  ;;  %v1525_v23 = vpop.f32.mrb[73].mxu0 }
 0x2bf   : > { %v1526_v24 = vadd.f32 %v1525_v23, %v10328_v62  ;;  %7920 = vmatpush3.bf16.msra.mxu1 %v1600_v11  ;;  %7984 = vmatpush3.bf16.msra.mxu0 %v1976_v13  ;;  %v1527_v25 = vpop.f32.mrb[74].mxu0  ;;  %v10409_v13 = vld [vmem:[%s516_s16] ss:$0 sm:$0xff] }
 0x2c0   : > { %v1528_v27 = vadd.f32 %v1527_v25, %v10325_v50  ;;  %v1529_v33 = vpop.f32.mrb[75].mxu0 }
 0x2c1   : > { %v1530_v30 = vadd.f32 %v1529_v33, %v10328_v62 }
 0x2c2   : > { %v1601_v35 = vpack.c.bf16 %v1528_v27, %v1524_v21 }
 0x2c3   : > { %v1977_v36 = vpack.c.bf16 %v1530_v30, %v1526_v24 }
 0x2c4   : > { %7910 = vmatmul.mubr.bf16.gmra.mrb[8].mxu1 %v1588_v18  ;;  %7921 = vmatprep.subr.bf16.mxu1 %v1601_v35 }
 0x2c5   : > { %7913 = vmatprep.mubr.bf16.mxu1 %v1589_v0  ;;  %7974 = vmatmul.mubr.bf16.gmra.mrb[104].mxu0 %v1964_v20  ;;  %v1533_v37 = vpop.f32.mrb[76].mxu0 }
 0x2c6   : > { %7977 = vmatprep.mubr.bf16.mxu0 %v1965_v1  ;;  %v1534_v40 = vadd.f32 %v1533_v37, %v10325_v50  ;;  %7985 = vmatprep.subr.bf16.mxu0 %v1977_v36  ;;  %v1535_v43 = vpop.f32.mrb[77].mxu0 }
 0x2c7   : > { %v1536_v45 = vadd.f32 %v1535_v43, %v10328_v62  ;;  %7922 = vmatpush3.bf16.msra.mxu1 %v1601_v35  ;;  %7986 = vmatpush3.bf16.msra.mxu0 %v1977_v36  ;;  %v1537_v48 = vpop.f32.mrb[78].mxu0 }
 0x2c8   : > { %v1538_v49 = vadd.f32 %v1537_v48, %v10325_v50  ;;  %v1539_v51 = vpop.f32.mrb[79].mxu0 }
 0x2c9   : > { %v1540_v54 = vadd.f32 %v1539_v51, %v10328_v62 }
 0x2ca   : > { %v1602_v56 = vpack.c.bf16 %v1538_v49, %v1534_v40 }
 0x2cb   : > { %v1978_v58 = vpack.c.bf16 %v1540_v54, %v1536_v45 }
 0x2cc   : > { %7914 = vmatmul.mubr.bf16.gmra.mrb[12].mxu1 %v1590_v28  ;;  %7923 = vmatprep.subr.bf16.mxu1 %v1602_v56 }
 0x2cd   : > { %7978 = vmatmul.mubr.bf16.gmra.mrb[108].mxu0 %v1966_v34  ;;  %v1543_v47 = vpop.f32.mrb[80].mxu0  ;;  %7987 = vmatprep.subr.bf16.mxu0 %v1978_v58 }
 0x2ce   : > { %v1544_v18 = vadd.f32 %v1543_v47, %v10325_v50  ;;  %v1545_v20 = vpop.f32.mrb[81].mxu0  ;;  %7924 = vmatpush3.bf16.msra.mxu1 %v1602_v56  ;;  %7988 = vmatpush3.bf16.msra.mxu0 %v1978_v58 }
 0x2cf   : > { %v1546_v41 = vadd.f32 %v1545_v20, %v10328_v62  ;;  %v1547_v52 = vpop.f32.mrb[82].mxu0 }
 0x2d0   : > { %v1548_v61 = vadd.f32 %v1547_v52, %v10325_v50  ;;  %v1549_v63 = vpop.f32.mrb[83].mxu0 }
 0x2d1   : > { %v1550_v0 = vadd.f32 %v1549_v63, %v10328_v62 }
 0x2d2   : > { %v1603_v1 = vpack.c.bf16 %v1548_v61, %v1544_v18 }
 0x2d3   : > { %v1979_v4 = vpack.c.bf16 %v1550_v0, %v1546_v41 }
 0x2d4   : > { %7925 = vmatprep.subr.bf16.mxu1 %v1603_v1 }
 0x2d5   : > { %v1553_v9 = vpop.f32.mrb[84].mxu0  ;;  %7989 = vmatprep.subr.bf16.mxu0 %v1979_v4  ;;  %7926 = vmatpush3.bf16.msra.mxu1 %v1603_v1 }
 0x2d6   : > { %v1554_v16 = vadd.f32 %v1553_v9, %v10325_v50  ;;  %v1555_v22 = vpop.f32.mrb[85].mxu0  ;;  %7990 = vmatpush3.bf16.msra.mxu0 %v1979_v4 }
 0x2d7   : > { %v1556_v28 = vadd.f32 %v1555_v22, %v10328_v62  ;;  %v1557_v34 = vpop.f32.mrb[86].mxu0 }
 0x2d8   : > { %v1558_v53 = vadd.f32 %v1557_v34, %v10325_v50  ;;  %v1559_v55 = vpop.f32.mrb[87].mxu0 }
 0x2d9   : > { %v1560_v57 = vadd.f32 %v1559_v55, %v10328_v62 }
 0x2da   : > { %v1604_v59 = vpack.c.bf16 %v1558_v53, %v1554_v16 }
 0x2db   : > { %v1980_v31 = vpack.c.bf16 %v1560_v57, %v1556_v28 }
 0x2dc   : > { %7927 = vmatprep.subr.bf16.mxu1 %v1604_v59 }
 0x2dd   : > { %v1563_v60 = vpop.f32.mrb[88].mxu0  ;;  %7991 = vmatprep.subr.bf16.mxu0 %v1980_v31  ;;  %7928 = vmatpush3.bf16.msra.mxu1 %v1604_v59 }
 0x2de   : > { %v1564_v2 = vadd.f32 %v1563_v60, %v10325_v50  ;;  %v1565_v38 = vpop.f32.mrb[89].mxu0  ;;  %7992 = vmatpush3.bf16.msra.mxu0 %v1980_v31 }
 0x2df   : > { %v1566_v6 = vadd.f32 %v1565_v38, %v10328_v62  ;;  %v1567_v14 = vpop.f32.mrb[90].mxu0 }
 0x2e0   : > { %v1568_v19 = vadd.f32 %v1567_v14, %v10325_v50  ;;  %v1569_v44 = vpop.f32.mrb[91].mxu0 }
 0x2e1   : > { %v1570_v26 = vadd.f32 %v1569_v44, %v10328_v62 }
 0x2e2   : > { %v1605_v32 = vpack.c.bf16 %v1568_v19, %v1564_v2 }
 0x2e3   : > { %v1981_v42 = vpack.c.bf16 %v1570_v26, %v1566_v6 }
 0x2e4   : > { %7929 = vmatprep.subr.bf16.mxu1 %v1605_v32 }
 0x2e5   : > { %v1573_v29 = vpop.f32.mrb[92].mxu0  ;;  %7993 = vmatprep.subr.bf16.mxu0 %v1981_v42  ;;  %7930 = vmatpush3.bf16.msra.mxu1 %v1605_v32 }
 0x2e6   : > { %v1574_v10 = vadd.f32 %v1573_v29, %v10325_v50  ;;  %v1575_v46 = vpop.f32.mrb[93].mxu0  ;;  %7994 = vmatpush3.bf16.msra.mxu0 %v1981_v42 }
 0x2e7   : > { %v1576_v39 = vadd.f32 %v1575_v46, %v10328_v62  ;;  %v1577_v3 = vpop.f32.mrb[94].mxu0 }
 0x2e8   : > { %v1578_v7 = vadd.f32 %v1577_v3, %v10325_v50  ;;  %v1579_v12 = vpop.f32.mrb[95].mxu0 }
 0x2e9   : > { %v1580_v15 = vadd.f32 %v1579_v12, %v10328_v62 }
 0x2ea   : > { %v1606_v5 = vpack.c.bf16 %v1578_v7, %v1574_v10 }
 0x2eb   : > { %v1982_v11 = vpack.c.bf16 %v1580_v15, %v1576_v39 }
 0x2ec   : > { %7931 = vmatprep.subr.bf16.mxu1 %v1606_v5 }
 0x2ed   : > { %7995 = vmatprep.subr.bf16.mxu0 %v1982_v11  ;;  %7932 = vmatpush3.bf16.msra.mxu1 %v1606_v5 }
 0x2ee   : > { %7996 = vmatpush3.bf16.msra.mxu0 %v1982_v11 }
 0x387   : > { %v7903_v17 = vpop.f32.mrb[0].mxu1 }
 0x388   : > { %v1647_v21 = vpop.f32.mrb[1].mxu1  ;;  %v7967_v23 = vpop.f32.mrb[96].mxu0  ;;  %v10436_v47 = vadd.f32 %v7903_v17, %v10409_v13 }
 0x389   : > { %v10412_v50 = vadd.f32 %v10409_v13, %v1647_v21  ;;  %v10415_v62 = vadd.f32 %v7967_v23, %v10409_v13  ;;  %v7904_v24 = vpop.f32.mrb[2].mxu1  ;;  %v2017_v25 = vpop.f32.mrb[97].mxu0 }
 0x38a   : > { %v1650_v27 = vpop.f32.mrb[3].mxu1  ;;  %v7968_v33 = vpop.f32.mrb[98].mxu0  ;;  %v10420_v35 = vadd.f32 %v10409_v13, %v2017_v25  ;;  %v10439_v18 = vadd.f32 %v7904_v24, %v10409_v13 }
 0x38b   : > { %2084 = vmax.xlane.f32.xlu0 %v10415_v62  ;;  %v2020_v30 = vpop.f32.mrb[99].mxu0  ;;  %1710 = vmax.xlane.f32.xlu1 %v10412_v50  ;;  %v10423_v36 = vadd.f32 %v10409_v13, %v1650_v27  ;;  %v10428_v45 = vadd.f32 %v7968_v33, %v10409_v13 }
 0x38c   : > { %v10431_v48 = vadd.f32 %v10409_v13, %v2020_v30 }
 0x38f   : > { %2080 = vmax.xlane.f32.xlu0 %v10420_v35  ;;  %v7907_v37 = vpop.f32.mrb[4].mxu1  ;;  %1712 = vmax.xlane.f32.xlu1 %v10423_v36 }
 0x390   : > { %v1663_v40 = vpop.f32.mrb[5].mxu1  ;;  %v7971_v43 = vpop.f32.mrb[100].mxu0  ;;  %v10468_v14 = vadd.f32 %v7907_v37, %v10409_v13 }
 0x391   : > { %v7908_v49 = vpop.f32.mrb[6].mxu1  ;;  %v2033_v51 = vpop.f32.mrb[101].mxu0  ;;  %v10444_v61 = vadd.f32 %v10409_v13, %v1663_v40  ;;  %v10452_v22 = vadd.f32 %v7971_v43, %v10409_v13 }
 0x392   : > { %v1666_v54 = vpop.f32.mrb[7].mxu1  ;;  %v7972_v56 = vpop.f32.mrb[102].mxu0  ;;  %v10460_v57 = vadd.f32 %v10409_v13, %v2033_v51  ;;  %v10471_v19 = vadd.f32 %v7908_v49, %v10409_v13 }
 0x393   : > { %v2036_v58 = vpop.f32.mrb[103].mxu0  ;;  %2082 = vmax.xlane.f32.xlu0 %v10431_v48  ;;  %2086 = vmax.xlane.f32.xlu1 %v10428_v45  ;;  %v10447_v63 = vadd.f32 %v10409_v13, %v1666_v54  ;;  %v10455_v28 = vadd.f32 %v7972_v56, %v10409_v13 }
 0x394   : > { %v10463_v59 = vadd.f32 %v10409_v13, %v2036_v58 }
 0x397   : > { %1714 = vmax.xlane.f32.xlu0 %v10436_v47  ;;  %v7911_v20 = vpop.f32.mrb[8].mxu1  ;;  %1716 = vmax.xlane.f32.xlu1 %v10439_v18 }
 0x398   : > { %v1679_v41 = vpop.f32.mrb[9].mxu1  ;;  %v7975_v52 = vpop.f32.mrb[104].mxu0  ;;  %v10500_v46 = vadd.f32 %v7911_v20, %v10409_v13 }
 0x399   : > { %v7912_v0 = vpop.f32.mrb[10].mxu1  ;;  %v2049_v1 = vpop.f32.mrb[105].mxu0  ;;  %v10476_v44 = vadd.f32 %v10409_v13, %v1679_v41  ;;  %v10484_v32 = vadd.f32 %v7975_v52, %v10409_v13 }
 0x39a   : > { %v1682_v4 = vpop.f32.mrb[11].mxu1  ;;  %v7976_v9 = vpop.f32.mrb[106].mxu0  ;;  %v10492_v29 = vadd.f32 %v10409_v13, %v2049_v1  ;;  %v10503_v39 = vadd.f32 %v7912_v0, %v10409_v13 }
 0x39b   : > { %v2052_v16 = vpop.f32.mrb[107].mxu0  ;;  %1718 = vmax.xlane.f32.xlu0 %v10444_v61  ;;  %1720 = vmax.xlane.f32.xlu1 %v10447_v63  ;;  %v10479_v26 = vadd.f32 %v10409_v13, %v1682_v4  ;;  %v10487_v42 = vadd.f32 %v7976_v9, %v10409_v13 }
 0x39c   : > { %v10495_v10 = vadd.f32 %v10409_v13, %v2052_v16 }
 0x39f   : > { %v7915_v34 = vpop.f32.mrb[12].mxu1  ;;  %2092 = vmax.xlane.f32.xlu0 %v10452_v22  ;;  %2094 = vmax.xlane.f32.xlu1 %v10455_v28 }
 0x3a0   : > { %v1695_v53 = vpop.f32.mrb[13].mxu1  ;;  %v7979_v55 = vpop.f32.mrb[108].mxu0  ;;  %v10532_v17 = vadd.f32 %v7915_v34, %v10409_v13 }
 0x3a1   : > { %v7916_v31 = vpop.f32.mrb[14].mxu1  ;;  %v2065_v60 = vpop.f32.mrb[109].mxu0  ;;  %v10508_v3 = vadd.f32 %v10409_v13, %v1695_v53  ;;  %v10516_v12 = vadd.f32 %v7979_v55, %v10409_v13 }
 0x3a2   : > { %v1698_v2 = vpop.f32.mrb[15].mxu1  ;;  %v7980_v38 = vpop.f32.mrb[110].mxu0  ;;  %v10524_v5 = vadd.f32 %v10409_v13, %v2065_v60  ;;  %v10535_v21 = vadd.f32 %v7916_v31, %v10409_v13 }
 0x3a3   : > { %v2068_v6 = vpop.f32.mrb[111].mxu0  ;;  %2088 = vmax.xlane.f32.xlu0 %v10460_v57  ;;  %2090 = vmax.xlane.f32.xlu1 %v10463_v59  ;;  %v10511_v7 = vadd.f32 %v10409_v13, %v1698_v2  ;;  %v10519_v15 = vadd.f32 %v7980_v38, %v10409_v13 }
 0x3a4   : > { %v10527_v11 = vadd.f32 %v10409_v13, %v2068_v6 }
 0x3a7   : > { %1722 = vmax.xlane.f32.xlu0 %v10468_v14  ;;  %1724 = vmax.xlane.f32.xlu1 %v10471_v19 }
 0x3ab   : > { %1726 = vmax.xlane.f32.xlu0 %v10476_v44  ;;  %1728 = vmax.xlane.f32.xlu1 %v10479_v26 }
 0x3af   : > { %2100 = vmax.xlane.f32.xlu0 %v10484_v32  ;;  %2102 = vmax.xlane.f32.xlu1 %v10487_v42 }
 0x3b3   : > { %2096 = vmax.xlane.f32.xlu0 %v10492_v29  ;;  %2098 = vmax.xlane.f32.xlu1 %v10495_v10 }
 0x3b7   : > { %1730 = vmax.xlane.f32.xlu0 %v10500_v46  ;;  %1732 = vmax.xlane.f32.xlu1 %v10503_v39 }
 0x3bb   : > { %1734 = vmax.xlane.f32.xlu0 %v10508_v3  ;;  %1736 = vmax.xlane.f32.xlu1 %v10511_v7 }
 0x3bf   : > { %2108 = vmax.xlane.f32.xlu0 %v10516_v12  ;;  %2110 = vmax.xlane.f32.xlu1 %v10519_v15 }
 0x3c3   : > { %2104 = vmax.xlane.f32.xlu0 %v10524_v5  ;;  %2106 = vmax.xlane.f32.xlu1 %v10527_v11 }
 0x3c7   : > { %1738 = vmax.xlane.f32.xlu0 %v10532_v17  ;;  %1740 = vmax.xlane.f32.xlu1 %v10535_v21 }
 0x418   : > { %v2085_v23 = vpop.xlane.xlu0 %2084  ;;  %v1711_v24 = vpop.xlane.xlu1 %1710 }
 0x419   : > { %v2114_v25 = vsub.f32 %v10415_v62, %v2085_v23  ;;  %v1742_v27 = vsub.f32 %v10412_v50, %v1711_v24 }
 0x41b   : > { %v1758_v33 = vmul.f32 1.442695, %v1742_v27  ;;  %v2132_v40 = vmul.f32 1.442695, %v2114_v25 }
 0x41c   : > { %v2081_v30 = vpop.xlane.xlu0 %2080  ;;  %v1713_v37 = vpop.xlane.xlu1 %1712 }
 0x41d   : > { %v2112_v43 = vsub.f32 %v10420_v35, %v2081_v30  ;;  %v1743_v49 = vsub.f32 %v10423_v36, %v1713_v37  ;;  %8665 = vpow2.f32 %v1758_v33 }
 0x41e   : > { %8667 = vpow2.f32 %v2132_v40 }
 0x41f   : > { %v1760_v13 = vmul.f32 1.442695, %v1743_v49  ;;  %v2128_v56 = vmul.f32 1.442695, %v2112_v43 }
 0x420   : > { %v2083_v51 = vpop.xlane.xlu0 %2082  ;;  %v2087_v54 = vpop.xlane.xlu1 %2086 }
 0x421   : > { %v2115_v58 = vsub.f32 %v10428_v45, %v2087_v54  ;;  %8669 = vpow2.f32 %v1760_v13  ;;  %v2113_v62 = vsub.f32 %v10431_v48, %v2083_v51 }
 0x422   : > { %8671 = vpow2.f32 %v2128_v56 }
 0x423   : > { %v2134_v50 = vmul.f32 1.442695, %v2115_v58  ;;  %v2130_v35 = vmul.f32 1.442695, %v2113_v62 }
 0x424   : > { %v1715_v20 = vpop.xlane.xlu0 %1714  ;;  %v1717_v41 = vpop.xlane.xlu1 %1716 }
 0x425   : > { %v1744_v52 = vsub.f32 %v10436_v47, %v1715_v20  ;;  %8673 = vpow2.f32 %v2134_v50  ;;  %v1745_v36 = vsub.f32 %v10439_v18, %v1717_v41 }
 0x427   : > { %v1762_v0 = vmul.f32 1.442695, %v1744_v52  ;;  %v10547_v1 = vpop.eup %8665  ;;  %v1764_v48 = vmul.f32 1.442695, %v1745_v36 }
 0x428   : > { %v1719_v4 = vpop.xlane.xlu0 %1718  ;;  %v1721_v9 = vpop.xlane.xlu1 %1720  ;;  %1790 = vadd.xlane.f32.xlu0 %v10547_v1 }
 0x429   : > { %8675 = vpow2.f32 %v1762_v0  ;;  %v1746_v45 = vsub.f32 %v10444_v61, %v1719_v4  ;;  %v1747_v16 = vsub.f32 %v10447_v63, %v1721_v9  ;;  %v10552_v34 = vpop.eup %8667 }
 0x42a   : > { %8677 = vpow2.f32 %v2130_v35 }
 0x42b   : > { %v1766_v47 = vmul.f32 1.442695, %v1746_v45  ;;  %v10554_v53 = vpop.eup %8669  ;;  %v1768_v61 = vmul.f32 1.442695, %v1747_v16 }
 0x42c   : > { %v2093_v18 = vpop.xlane.xlu0 %2092  ;;  %v2095_v55 = vpop.xlane.xlu1 %2094  ;;  %2164 = vadd.xlane.f32.xlu0 %v10552_v34  ;;  %1792 = vadd.xlane.f32.xlu1 %v10554_v53 }
 0x42d   : > { %8679 = vpow2.f32 %v1766_v47  ;;  %v2118_v31 = vsub.f32 %v10452_v22, %v2093_v18  ;;  %v2119_v60 = vsub.f32 %v10455_v28, %v2095_v55  ;;  %v10560_v2 = vpop.eup %8671 }
 0x42e   : > { %8681 = vpow2.f32 %v1764_v48 }
 0x42f   : > { %v2140_v63 = vmul.f32 1.442695, %v2118_v31  ;;  %v10562_v38 = vpop.eup %8673  ;;  %v2142_v22 = vmul.f32 1.442695, %v2119_v60 }
 0x430   : > { %v2089_v6 = vpop.xlane.xlu0 %2088  ;;  %v2091_v23 = vpop.xlane.xlu1 %2090  ;;  %2160 = vadd.xlane.f32.xlu0 %v10560_v2  ;;  %2166 = vadd.xlane.f32.xlu1 %v10562_v38 }
 0x431   : > { %8683 = vpow2.f32 %v2140_v63  ;;  %v2116_v24 = vsub.f32 %v10460_v57, %v2089_v6  ;;  %v2117_v25 = vsub.f32 %v10463_v59, %v2091_v23 }
 0x432   : > { %8685 = vpow2.f32 %v1768_v61 }
 0x433   : > { %v10568_v27 = vpop.eup %8675  ;;  %v2136_v28 = vmul.f32 1.442695, %v2116_v24  ;;  %v2138_v57 = vmul.f32 1.442695, %v2117_v25 }
 0x434   : > { %v10570_v33 = vpop.eup %8677  ;;  %v1723_v30 = vpop.xlane.xlu0 %1722  ;;  %1794 = vadd.xlane.f32.xlu0 %v10568_v27 }
 0x435   : > { %v1725_v37 = vpop.xlane.xlu1 %1724  ;;  %8687 = vpow2.f32 %v2136_v28  ;;  %v1748_v40 = vsub.f32 %v10468_v14, %v1723_v30  ;;  %2162 = vadd.xlane.f32.xlu1 %v10570_v33 }
 0x436   : > { %8689 = vpow2.f32 %v2142_v22  ;;  %v1749_v43 = vsub.f32 %v10471_v19, %v1725_v37 }
 0x437   : > { %v10576_v49 = vpop.eup %8679  ;;  %v1770_v59 = vmul.f32 1.442695, %v1748_v40 }
 0x438   : > { %v10578_v13 = vpop.eup %8681  ;;  %v1727_v51 = vpop.xlane.xlu0 %1726  ;;  %1798 = vadd.xlane.f32.xlu0 %v10576_v49  ;;  %v1772_v14 = vmul.f32 1.442695, %v1749_v43 }
 0x439   : > { %v1729_v54 = vpop.xlane.xlu1 %1728  ;;  %8691 = vpow2.f32 %v1770_v59  ;;  %v1750_v56 = vsub.f32 %v10476_v44, %v1727_v51  ;;  %1796 = vadd.xlane.f32.xlu1 %v10578_v13 }
 0x43a   : > { %8693 = vpow2.f32 %v2138_v57  ;;  %v1751_v58 = vsub.f32 %v10479_v26, %v1729_v54 }
 0x43b   : > { %v10584_v62 = vpop.eup %8683  ;;  %v1774_v19 = vmul.f32 1.442695, %v1750_v56 }
 0x43c   : > { %v10586_v50 = vpop.eup %8685  ;;  %v2101_v20 = vpop.xlane.xlu0 %2100  ;;  %2172 = vadd.xlane.f32.xlu0 %v10584_v62  ;;  %v1776_v44 = vmul.f32 1.442695, %v1751_v58 }
 0x43d   : > { %v2103_v41 = vpop.xlane.xlu1 %2102  ;;  %8695 = vpow2.f32 %v1774_v19  ;;  %v2122_v52 = vsub.f32 %v10484_v32, %v2101_v20  ;;  %1800 = vadd.xlane.f32.xlu1 %v10586_v50 }
 0x43e   : > { %8697 = vpow2.f32 %v1772_v14  ;;  %v2123_v35 = vsub.f32 %v10487_v42, %v2103_v41 }
 0x43f   : > { %v10592_v36 = vpop.eup %8687  ;;  %v2148_v26 = vmul.f32 1.442695, %v2122_v52 }
 0x440   : > { %v10594_v0 = vpop.eup %8689  ;;  %v2097_v4 = vpop.xlane.xlu0 %2096  ;;  %2168 = vadd.xlane.f32.xlu0 %v10592_v36  ;;  %v2150_v32 = vmul.f32 1.442695, %v2123_v35 }
 0x441   : > { %v2099_v9 = vpop.xlane.xlu1 %2098  ;;  %8699 = vpow2.f32 %v2148_v26  ;;  %v2120_v45 = vsub.f32 %v10492_v29, %v2097_v4  ;;  %2174 = vadd.xlane.f32.xlu1 %v10594_v0 }
 0x442   : > { %8701 = vpow2.f32 %v1776_v44  ;;  %v2121_v48 = vsub.f32 %v10495_v10, %v2099_v9 }
 0x443   : > { %v10600_v16 = vpop.eup %8691  ;;  %v2144_v42 = vmul.f32 1.442695, %v2120_v45 }
 0x444   : > { %v10602_v47 = vpop.eup %8693  ;;  %v1731_v18 = vpop.xlane.xlu0 %1730  ;;  %1802 = vadd.xlane.f32.xlu0 %v10600_v16  ;;  %v2146_v29 = vmul.f32 1.442695, %v2121_v48 }
 0x445   : > { %v1733_v55 = vpop.xlane.xlu1 %1732  ;;  %8703 = vpow2.f32 %v2144_v42  ;;  %v1752_v31 = vsub.f32 %v10500_v46, %v1731_v18  ;;  %2170 = vadd.xlane.f32.xlu1 %v10602_v47  ;;  %v8427_v18 = vld [vmem:[%s9918_s15 + $0x4] ss:$8 sps:$4 sm:$0xff]  }
 0x446   : > { %8705 = vpow2.f32 %v2150_v32  ;;  %v1753_v61 = vsub.f32 %v10503_v39, %v1733_v55  ;;  %2545 = vmatprep.subr.bf16.mxu0 %v8427_v18 }
 0x447   : > { %v10608_v60 = vpop.eup %8695  ;;  %v1778_v10 = vmul.f32 1.442695, %v1752_v31 }
 0x448   : > { %v10610_v63 = vpop.eup %8697  ;;  %v1735_v6 = vpop.xlane.xlu0 %1734  ;;  %1806 = vadd.xlane.f32.xlu0 %v10608_v60  ;;  %v1780_v46 = vmul.f32 1.442695, %v1753_v61 }
 0x449   : > { %v1737_v23 = vpop.xlane.xlu1 %1736  ;;  %8707 = vpow2.f32 %v1778_v10  ;;  %v1754_v24 = vsub.f32 %v10508_v3, %v1735_v6  ;;  %1804 = vadd.xlane.f32.xlu1 %v10610_v63 }
 0x44a   : > { %8709 = vpow2.f32 %v2146_v29  ;;  %v1755_v22 = vsub.f32 %v10511_v7, %v1737_v23 }
 0x44b   : > { %v10616_v25 = vpop.eup %8699  ;;  %v1782_v39 = vmul.f32 1.442695, %v1754_v24 }
 0x44c   : > { %v10618_v28 = vpop.eup %8701  ;;  %v2109_v30 = vpop.xlane.xlu0 %2108  ;;  %2180 = vadd.xlane.f32.xlu0 %v10616_v25  ;;  %v1784_v3 = vmul.f32 1.442695, %v1755_v22 }
 0x44d   : > { %v2111_v37 = vpop.xlane.xlu1 %2110  ;;  %8711 = vpow2.f32 %v1782_v39  ;;  %v2126_v40 = vsub.f32 %v10516_v12, %v2109_v30  ;;  %1808 = vadd.xlane.f32.xlu1 %v10618_v28 }
 0x44e   : > { %8713 = vpow2.f32 %v1780_v46  ;;  %v2127_v57 = vsub.f32 %v10519_v15, %v2111_v37 }
 0x44f   : > { %v10624_v43 = vpop.eup %8703  ;;  %v2156_v7 = vmul.f32 1.442695, %v2126_v40 }
 0x450   : > { %v10626_v59 = vpop.eup %8705  ;;  %v2105_v51 = vpop.xlane.xlu0 %2104  ;;  %2176 = vadd.xlane.f32.xlu0 %v10624_v43  ;;  %v2158_v12 = vmul.f32 1.442695, %v2127_v57 }
 0x451   : > { %v2107_v54 = vpop.xlane.xlu1 %2106  ;;  %8715 = vpow2.f32 %v2156_v7  ;;  %v2124_v56 = vsub.f32 %v10524_v5, %v2105_v51  ;;  %2182 = vadd.xlane.f32.xlu1 %v10626_v59 }
 0x452   : > { %8717 = vpow2.f32 %v1784_v3  ;;  %v2125_v14 = vsub.f32 %v10527_v11, %v2107_v54 }
 0x453   : > { %v10632_v58 = vpop.eup %8707  ;;  %v2152_v15 = vmul.f32 1.442695, %v2124_v56 }
 0x454   : > { %v10634_v19 = vpop.eup %8709  ;;  %v1739_v20 = vpop.xlane.xlu0 %1738  ;;  %1810 = vadd.xlane.f32.xlu0 %v10632_v58  ;;  %v2154_v5 = vmul.f32 1.442695, %v2125_v14 }
 0x455   : > { %v1741_v41 = vpop.xlane.xlu1 %1740  ;;  %8719 = vpow2.f32 %v2152_v15  ;;  %v1756_v52 = vsub.f32 %v10532_v17, %v1739_v20  ;;  %2178 = vadd.xlane.f32.xlu1 %v10634_v19 }
 0x456   : > { %8721 = vpow2.f32 %v2158_v12  ;;  %v1757_v44 = vsub.f32 %v10535_v21, %v1741_v41 }
 0x457   : > { %v10640_v35 = vpop.eup %8711  ;;  %v1786_v11 = vmul.f32 1.442695, %v1756_v52 }
 0x458   : > { %v10642_v26 = vpop.eup %8713  ;;  %1814 = vadd.xlane.f32.xlu0 %v10640_v35  ;;  %v1788_v17 = vmul.f32 1.442695, %v1757_v44 }
 0x459   : > { %8723 = vpow2.f32 %v1786_v11  ;;  %1812 = vadd.xlane.f32.xlu1 %v10642_v26 }
 0x45a   : > { %8725 = vpow2.f32 %v2154_v5  ;;  %v8425_v5 = vld [vmem:[%s9918_s15] ss:$8 sps:$4 sm:$0xff]  }
 0x45b   : > { %v10646_v4 = vpop.eup %8715  ;;  %8727 = vpow2.f32 %v1788_v17 }
 0x45c   : > { %v10648_v9 = vpop.eup %8717  ;;  %2188 = vadd.xlane.f32.xlu0 %v10646_v4 }
 0x45d   : > { %1816 = vadd.xlane.f32.xlu1 %v10648_v9 }
 0x45f   : > { %v10652_v21 = vpop.eup %8719 }
 0x460   : > { %v10654_v45 = vpop.eup %8721  ;;  %2184 = vadd.xlane.f32.xlu0 %v10652_v21 }
 0x461   : > { %2190 = vadd.xlane.f32.xlu1 %v10654_v45 }
 0x463   : > { %v10658_v32 = vpop.eup %8723 }
 0x464   : > { %v10660_v48 = vpop.eup %8725  ;;  %1818 = vadd.xlane.f32.xlu0 %v10658_v32 }
 0x465   : > { %2186 = vadd.xlane.f32.xlu1 %v10660_v48  ;;  %v10664_v42 = vpop.eup %8727 }
 0x469   : > { %1820 = vadd.xlane.f32.xlu1 %v10664_v42 }
 0x4b5   : > { %v1791_v55 = vpop.xlane.xlu0 %1790 }
 0x4b6   : > { %8729 = vrcp.f32 %v1791_v55  ;;  %v8430_v55 = vld [vmem:[%s9918_s15 + $0x14] ss:$8 sps:$4 sm:$0xff]  }
 0x4b9   : > { %v2165_v31 = vpop.xlane.xlu0 %2164  ;;  %v1793_v29 = vpop.xlane.xlu1 %1792 }
 0x4ba   : > { %8731 = vrcp.f32 %v1793_v29 }
 0x4bd   : > { %v2161_v61 = vpop.xlane.xlu0 %2160  ;;  %v2167_v10 = vpop.xlane.xlu1 %2166 }
 0x4be   : > { %8733 = vrcp.f32 %v2167_v10 }
 0x4bf   : > { %8735 = vrcp.f32 %v2161_v61 }
 0x4c0   : > { %8737 = vrcp.f32 %v2165_v31  ;;  %v8730_v24 = vpop.eup %8729  ;;  %v8428_v31 = vld [vmem:[%s9918_s15 + $0x10] ss:$8 sps:$4 sm:$0xff]  }
 0x4c1   : > { %v1795_v6 = vpop.xlane.xlu0 %1794  ;;  %v1838_v30 = vmul.f32 %v8730_v24, %v10547_v1  ;;  %v8431_v24 = vld [vmem:[%s9918_s15 + $0x20] ss:$8 sps:$4 sm:$0xff]  }
 0x4c2   : > { %v2163_v23 = vpop.xlane.xlu1 %2162 }
 0x4c3   : > { %8739 = vrcp.f32 %v2163_v23 }
 0x4c4   : > { %v8732_v46 = vpop.eup %8731  ;;  %8741 = vrcp.f32 %v1795_v6  ;;  %v8433_v6 = vld [vmem:[%s9918_s15 + $0x24] ss:$8 sps:$4 sm:$0xff]  }
 0x4c5   : > { %v1799_v22 = vpop.xlane.xlu0 %1798  ;;  %v1839_v37 = vmul.f32 %v8732_v46, %v10554_v53 }
 0x4c6   : > { %v1797_v39 = vpop.xlane.xlu1 %1796 }
 0x4c7   : > { %8743 = vrcp.f32 %v1797_v39  ;;  %v1854_v40 = vpack.c.bf16 %v1839_v37, %v1838_v30  ;;  %v8436_v39 = vld [vmem:[%s9918_s15 + $0x34] ss:$8 sps:$4 sm:$0xff]  }
 0x4c8   : > { %8745 = vrcp.f32 %v1799_v22  ;;  %v8734_v7 = vpop.eup %8733 }
 0x4c9   : > { %v2173_v3 = vpop.xlane.xlu0 %2172  ;;  %7933 = vmatprep.mubr.bf16.mxu1 %v1854_v40  ;;  %v8736_v51 = vpop.eup %8735  ;;  %v2211_v12 = vmul.f32 %v8734_v7, %v10562_v38 }
 0x4ca   : > { %v1801_v57 = vpop.xlane.xlu1 %1800  ;;  %v8738_v54 = vpop.eup %8737  ;;  %v2208_v1 = vmul.f32 %v8736_v51, %v10560_v2  ;;  %v8439_v51 = vld [vmem:[%s9918_s15 + $0x44] ss:$8 sps:$4 sm:$0xff]  }
 0x4cb   : > { %8747 = vrcp.f32 %v1801_v57  ;;  %v2210_v41 = vmul.f32 %v8738_v54, %v10552_v34 }
 0x4cd   : > { %v8740_v56 = vpop.eup %8739  ;;  %v2169_v14 = vpop.xlane.xlu0 %2168  ;;  %v2225_v18 = vpack.c.bf16 %v2211_v12, %v2210_v41 }
 0x4ce   : > { %v2175_v15 = vpop.xlane.xlu1 %2174  ;;  %v2209_v53 = vmul.f32 %v8740_v56, %v10570_v33  ;;  %v8742_v20 = vpop.eup %8741 }
 0x4cf   : > { %8749 = vrcp.f32 %v2175_v15  ;;  %v1840_v38 = vmul.f32 %v8742_v20, %v10568_v27 }
 0x4d0   : > { %v2224_v52 = vpack.c.bf16 %v2209_v53, %v2208_v1  ;;  %8751 = vrcp.f32 %v2169_v14  ;;  %v8437_v1 = vld [vmem:[%s9918_s15 + $0x40] ss:$8 sps:$4 sm:$0xff]  }
 0x4d1   : > { %v8744_v44 = vpop.eup %8743  ;;  %v1803_v11 = vpop.xlane.xlu0 %1802  ;;  %8753 = vrcp.f32 %v2173_v3 }
 0x4d2   : > { %v2171_v17 = vpop.xlane.xlu1 %2170  ;;  %v1841_v2 = vmul.f32 %v8744_v44, %v10578_v13  ;;  %7997 = vmatprep.mubr.bf16.mxu0 %v2224_v52  ;;  %v8746_v33 = vpop.eup %8745  ;;  %v8442_v52 = vld [vmem:[%s9918_s15 + $0x54] ss:$8 sps:$4 sm:$0xff]   ;;  %v8440_v44 = vld [vmem:[%s9918_s15 + $0x50] ss:$8 sps:$4 sm:$0xff]  }
 0x4d3   : > { %8755 = vrcp.f32 %v2171_v17  ;;  %7998 = vmatmul.mubr.bf16.vlgmr.msra.gmra.mrb[112].mxu0 %v2225_v18  ;;  %v1842_v27 = vmul.f32 %v8746_v33, %v10576_v49  ;;  %v8434_v49 = vld [vmem:[%s9918_s15 + $0x30] ss:$8 sps:$4 sm:$0xff]  }
 0x4d4   : > { %v1855_v34 = vpack.c.bf16 %v1841_v2, %v1840_v38  ;;  %2546 = vmatpush1.bf16.msra.mxu0 %v8425_v5  ;;  %8757 = vrcp.f32 %v1803_v11  ;;  %v8443_v2 = vld [vmem:[%s9918_s15 + $0x60] ss:$8 sps:$4 sm:$0xff]  }
 0x4d5   : > { %v8748_v29 = vpop.eup %8747  ;;  %v1807_v61 = vpop.xlane.xlu0 %1806  ;;  %2547 = vmatprep.subr.bf16.mxu0 %v8430_v55  ;;  %v8445_v55 = vld [vmem:[%s9918_s15 + $0x64] ss:$8 sps:$4 sm:$0xff]  }
 0x4d6   : > { %v1805_v10 = vpop.xlane.xlu1 %1804  ;;  %7934 = vmatmul.mubr.bf16.vlgmr.msra.gmra.mrb[16].mxu1 %v1855_v34  ;;  %v1843_v13 = vmul.f32 %v8748_v29, %v10586_v50 }
 0x4d7   : > { %8759 = vrcp.f32 %v1805_v10 }
 0x4d8   : > { %v1856_v23 = vpack.c.bf16 %v1843_v13, %v1842_v27  ;;  %2548 = vmatpush1.bf16.msra.mxu0 %v8428_v31  ;;  %8761 = vrcp.f32 %v1807_v61  ;;  %v8448_v31 = vld [vmem:[%s9918_s15 + $0x74] ss:$8 sps:$4 sm:$0xff]  }
 0x4d9   : > { %v2181_v46 = vpop.xlane.xlu0 %2180  ;;  %2549 = vmatprep.subr.bf16.mxu0 %v8433_v6  ;;  %v8750_v30 = vpop.eup %8749 }
 0x4da   : > { %v1809_v22 = vpop.xlane.xlu1 %1808  ;;  %7937 = vmatprep.mubr.bf16.mxu1 %v1856_v23  ;;  %v8752_v37 = vpop.eup %8751  ;;  %v2215_v7 = vmul.f32 %v8750_v30, %v10594_v0  ;;  %v8451_v23 = vld [vmem:[%s9918_s15 + $0x84] ss:$8 sps:$4 sm:$0xff]  }
 0x4db   : > { %8763 = vrcp.f32 %v1809_v22  ;;  %v8754_v40 = vpop.eup %8753  ;;  %v2212_v54 = vmul.f32 %v8752_v37, %v10592_v36  ;;  %v8449_v37 = vld [vmem:[%s9918_s15 + $0x80] ss:$8 sps:$4 sm:$0xff]  }
 0x4dc   : > { %2550 = vmatpush1.bf16.msra.mxu0 %v8431_v24  ;;  %v2214_v14 = vmul.f32 %v8754_v40, %v10584_v62 }
 0x4dd   : > { %v8756_v50 = vpop.eup %8755  ;;  %v2177_v3 = vpop.xlane.xlu0 %2176  ;;  %2551 = vmatprep.subr.bf16.mxu0 %v8436_v39 }
 0x4de   : > { %v2183_v57 = vpop.xlane.xlu1 %2182  ;;  %v2213_v56 = vmul.f32 %v8756_v50, %v10602_v47  ;;  %v8758_v12 = vpop.eup %8757  ;;  %v2227_v0 = vpack.c.bf16 %v2215_v7, %v2214_v14  ;;  %v8452_v7 = vld [vmem:[%s9918_s15 + $0x90] ss:$8 sps:$4 sm:$0xff]   ;;  %v8455_v14 = vld [vmem:[%s9918_s15 + $0xa0] ss:$8 sps:$4 sm:$0xff]  }
 0x4df   : > { %8765 = vrcp.f32 %v2183_v57  ;;  %v1844_v36 = vmul.f32 %v8758_v12, %v10600_v16 }
 0x4e0   : > { %v2226_v15 = vpack.c.bf16 %v2213_v56, %v2212_v54  ;;  %2552 = vmatpush1.bf16.msra.mxu0 %v8434_v49  ;;  %8767 = vrcp.f32 %v2177_v3  ;;  %v8454_v3 = vld [vmem:[%s9918_s15 + $0x94] ss:$8 sps:$4 sm:$0xff]   ;;  %v8457_v56 = vld [vmem:[%s9918_s15 + $0xa4] ss:$8 sps:$4 sm:$0xff]  }
 0x4e1   : > { %v8760_v53 = vpop.eup %8759  ;;  %v1811_v20 = vpop.xlane.xlu0 %1810  ;;  %2553 = vmatprep.subr.bf16.mxu0 %v8439_v51  ;;  %8769 = vrcp.f32 %v2181_v46 }
 0x4e2   : > { %v2179_v41 = vpop.xlane.xlu1 %2178  ;;  %8001 = vmatprep.mubr.bf16.mxu0 %v2226_v15  ;;  %v1845_v47 = vmul.f32 %v8760_v53, %v10610_v63  ;;  %v8762_v62 = vpop.eup %8761  ;;  %v8460_v15 = vld [vmem:[%s9918_s15 + $0xb4] ss:$8 sps:$4 sm:$0xff]  }
 0x4e3   : > { %8771 = vrcp.f32 %v2179_v41  ;;  %8002 = vmatmul.mubr.bf16.gmra.mrb[116].mxu0 %v2227_v0  ;;  %v1846_v38 = vmul.f32 %v8762_v62, %v10608_v60  ;;  %v8446_v60 = vld [vmem:[%s9918_s15 + $0x70] ss:$8 sps:$4 sm:$0xff]  }
 0x4e4   : > { %v1857_v5 = vpack.c.bf16 %v1845_v47, %v1844_v36  ;;  %2554 = vmatpush1.bf16.msra.mxu0 %v8437_v1  ;;  %8773 = vrcp.f32 %v1811_v20  ;;  %v8458_v41 = vld [vmem:[%s9918_s15 + $0xb0] ss:$8 sps:$4 sm:$0xff]  }
 0x4e5   : > { %v8764_v11 = vpop.eup %8763  ;;  %v1815_v17 = vpop.xlane.xlu0 %1814  ;;  %2555 = vmatprep.subr.bf16.mxu0 %v8442_v52 }
 0x4e6   : > { %v1813_v18 = vpop.xlane.xlu1 %1812  ;;  %7938 = vmatmul.mubr.bf16.gmra.mrb[20].mxu1 %v1857_v5  ;;  %v1847_v16 = vmul.f32 %v8764_v11, %v10618_v28  ;;  %v8461_v11 = vld [vmem:[%s9918_s15 + $0xc0] ss:$8 sps:$4 sm:$0xff]  }
 0x4e7   : > { %8775 = vrcp.f32 %v1813_v18 }
 0x4e8   : > { %v1858_v63 = vpack.c.bf16 %v1847_v16, %v1846_v38  ;;  %2556 = vmatpush1.bf16.msra.mxu0 %v8440_v44  ;;  %8777 = vrcp.f32 %v1815_v17  ;;  %v8467_v38 = vld [vmem:[%s9918_s15 + $0xe0] ss:$8 sps:$4 sm:$0xff]   ;;  %v8472_v16 = vld [vmem:[%s9918_s15 + $0xf4] ss:$8 sps:$4 sm:$0xff]  }
 0x4e9   : > { %v2189_v33 = vpop.xlane.xlu0 %2188  ;;  %2557 = vmatprep.subr.bf16.mxu0 %v8445_v55  ;;  %v8766_v29 = vpop.eup %8765  ;;  %v8469_v55 = vld [vmem:[%s9918_s15 + $0xe4] ss:$8 sps:$4 sm:$0xff]  }
 0x4ea   : > { %v1817_v34 = vpop.xlane.xlu1 %1816  ;;  %7941 = vmatprep.mubr.bf16.mxu1 %v1858_v63  ;;  %v8768_v61 = vpop.eup %8767  ;;  %v2219_v13 = vmul.f32 %v8766_v29, %v10626_v59 }
 0x4eb   : > { %8779 = vrcp.f32 %v1817_v34  ;;  %v8770_v10 = vpop.eup %8769  ;;  %v2216_v24 = vmul.f32 %v8768_v61, %v10624_v43 }
 0x4ec   : > { %2558 = vmatpush1.bf16.msra.mxu0 %v8443_v2  ;;  %v2218_v39 = vmul.f32 %v8770_v10, %v10616_v25 }
 0x4ed   : > { %v8772_v28 = vpop.eup %8771  ;;  %v2185_v6 = vpop.xlane.xlu0 %2184  ;;  %2559 = vmatprep.subr.bf16.mxu0 %v8448_v31 }
 0x4ee   : > { %v2191_v27 = vpop.xlane.xlu1 %2190  ;;  %v2217_v46 = vmul.f32 %v8772_v28, %v10634_v19  ;;  %v8774_v22 = vpop.eup %8773  ;;  %v2229_v59 = vpack.c.bf16 %v2219_v13, %v2218_v39 }
 0x4ef   : > { %8781 = vrcp.f32 %v2191_v27  ;;  %v1848_v43 = vmul.f32 %v8774_v22, %v10632_v58 }
 0x4f0   : > { %v2228_v30 = vpack.c.bf16 %v2217_v46, %v2216_v24  ;;  %2560 = vmatpush1.bf16.msra.mxu0 %v8446_v60  ;;  %8783 = vrcp.f32 %v2185_v6 }
 0x4f1   : > { %v8776_v40 = vpop.eup %8775  ;;  %v1819_v49 = vpop.xlane.xlu0 %1818  ;;  %2561 = vmatprep.subr.bf16.mxu0 %v8451_v23  ;;  %8785 = vrcp.f32 %v2189_v33 }
 0x4f2   : > { %v2187_v50 = vpop.xlane.xlu1 %2186  ;;  %8005 = vmatprep.mubr.bf16.mxu0 %v2228_v30  ;;  %v1849_v19 = vmul.f32 %v8776_v40, %v10642_v26  ;;  %v8778_v25 = vpop.eup %8777 }
 0x4f3   : > { %8787 = vrcp.f32 %v2187_v50  ;;  %8006 = vmatmul.mubr.bf16.gmra.mrb[120].mxu0 %v2229_v59  ;;  %v1850_v58 = vmul.f32 %v8778_v25, %v10640_v35  ;;  %v8463_v35 = vld [vmem:[%s9918_s15 + $0xc4] ss:$8 sps:$4 sm:$0xff]  }
 0x4f4   : > { %8789 = vrcp.f32 %v1819_v49  ;;  %v1859_v57 = vpack.c.bf16 %v1849_v19, %v1848_v43  ;;  %2562 = vmatpush1.bf16.msra.mxu0 %v8449_v37 }
 0x4f5   : > { %v8780_v51 = vpop.eup %8779  ;;  %2563 = vmatprep.subr.bf16.mxu0 %v8454_v3 }
 0x4f6   : > { %v1821_v54 = vpop.xlane.xlu1 %1820  ;;  %7942 = vmatmul.mubr.bf16.gmra.mrb[24].mxu1 %v1859_v57  ;;  %v1851_v26 = vmul.f32 %v8780_v51, %v10648_v9 }
 0x4f7   : > { %8791 = vrcp.f32 %v1821_v54 }
 0x4f8   : > { %v1860_v12 = vpack.c.bf16 %v1851_v26, %v1850_v58  ;;  %2564 = vmatpush1.bf16.msra.mxu0 %v8452_v7 }
 0x4f9   : > { %2565 = vmatprep.subr.bf16.mxu0 %v8457_v56  ;;  %v8782_v1 = vpop.eup %8781 }
 0x4fa   : > { %7945 = vmatprep.mubr.bf16.mxu1 %v1860_v12  ;;  %v8784_v53 = vpop.eup %8783  ;;  %v2223_v52 = vmul.f32 %v8782_v1, %v10654_v45 }
 0x4fb   : > { %v8786_v20 = vpop.eup %8785  ;;  %v2220_v9 = vmul.f32 %v8784_v53, %v10652_v21  ;;  %v8466_v21 = vld [vmem:[%s9918_s15 + $0xd4] ss:$8 sps:$4 sm:$0xff]  }
 0x4fc   : > { %2566 = vmatpush1.bf16.msra.mxu0 %v8455_v14  ;;  %v2222_v62 = vmul.f32 %v8786_v20, %v10646_v4  ;;  %v8464_v4 = vld [vmem:[%s9918_s15 + $0xd0] ss:$8 sps:$4 sm:$0xff]  }
 0x4fd   : > { %v8788_v0 = vpop.eup %8787  ;;  %2567 = vmatprep.subr.bf16.mxu0 %v8460_v15 }
 0x4fe   : > { %v8790_v36 = vpop.eup %8789  ;;  %v2221_v47 = vmul.f32 %v8788_v0, %v10660_v48  ;;  %v2231_v17 = vpack.c.bf16 %v2223_v52, %v2222_v62  ;;  %v10733_v62 = vld [vmem:[%s9928_s12] sm:$0xff] }
 0x4ff   : > { %v1852_v18 = vmul.f32 %v8790_v36, %v10658_v32  ;;  %v8470_v32 = vld [vmem:[%s9918_s15 + $0xf0] ss:$8 sps:$4 sm:$0xff]  }
 0x500   : > { %v2230_v44 = vpack.c.bf16 %v2221_v47, %v2220_v9  ;;  %2568 = vmatpush1.bf16.msra.mxu0 %v8458_v41  ;;  %v2379_v47 = vsub.s32 1, %v10153_v8 }
 0x501   : > { %v8792_v5 = vpop.eup %8791  ;;  %2569 = vmatprep.subr.bf16.mxu0 %v8463_v35 }
 0x502   : > { %v1853_v45 = vmul.f32 %v8792_v5, %v10664_v42  ;;  %8009 = vmatprep.mubr.bf16.mxu0 %v2230_v44  ;;  %v10736_v5 = vrot.slane %v10733_v62, %v2379_v47  ;;  %v10739_v44 = vld [vmem:[%s9928_s12 + $0x8] sm:$0xff] }
 0x503   : > { %8010 = vmatmul.mubr.bf16.gmra.mrb[124].mxu0 %v2231_v17 }
 0x504   : > { %v1861_v48 = vpack.c.bf16 %v1853_v45, %v1852_v18  ;;  %2570 = vmatpush1.bf16.msra.mxu0 %v8461_v11  ;;  %v10742_v11 = vrot.slane %v10739_v44, %v2379_v47 }
 0x505   : > { %2571 = vmatprep.subr.bf16.mxu0 %v8466_v21 }
 0x506   : > { %7946 = vmatmul.mubr.bf16.gmra.mrb[28].mxu1 %v1861_v48 }
 0x508   : > { %2572 = vmatpush1.bf16.msra.mxu0 %v8464_v4  ;;  %v9115_v4 = vld [vmem:[#allocation2] sm:$0xff] }
 0x509   : > { %2573 = vmatprep.subr.bf16.mxu0 %v8469_v55 }
 0x50c   : > { %2574 = vmatpush1.bf16.msra.mxu0 %v8467_v38 }
 0x50d   : > { %2575 = vmatprep.subr.bf16.mxu0 %v8472_v16 }
 0x510   : > { %2576 = vmatpush1.bf16.msra.mxu0 %v8470_v32  ;;  %v9116_v32 = vld [vmem:[#allocation2 + $0x8] sm:$0xff] }
 0x5a6   : > { %v7999_v42 = vpop.f32.mrb[112].mxu0 }
 0x5a7   : > { %v2266_v63 = vpop.f32.mrb[113].mxu0 }
 0x5a8   : > { %v8000_v2 = vpop.f32.mrb[114].mxu0 }
 0x5a9   : > { %v2332_v33 = vpack.c.bf16 %v8000_v2, %v7999_v42  ;;  %v7935_v34 = vpop.f32.mrb[16].mxu1  ;;  %v2269_v31 = vpop.f32.mrb[115].mxu0  ;;  %v9117_v2 = vld [vmem:[#allocation2 + $0x10] sm:$0xff] }
 0x5aa   : > { %v2330_v29 = vpack.c.bf16 %v2269_v31, %v2266_v63  ;;  %v1896_v61 = vpop.f32.mrb[17].mxu1 }
 0x5ab   : > { %v7936_v10 = vpop.f32.mrb[18].mxu1 }
 0x5ac   : > { %v2331_v60 = vpack.c.bf16 %v7936_v10, %v7935_v34  ;;  %v1899_v28 = vpop.f32.mrb[19].mxu1  ;;  %2577 = vmatprep.mubr.bf16.mxu0 %v2330_v29  ;;  %v9118_v34 = vld [vmem:[#allocation2 + $0x18] sm:$0xff] }
 0x5ad   : > { %v2329_v6 = vpack.c.bf16 %v1899_v28, %v1896_v61 }
 0x5af   : > { %2578 = vmatmul.mubr.bf16.vlgmr.msra.gmra.mrb[128].mxu0 %v2329_v6 }
 0x5b0   : > { %2587 = vmatprep.mubr.bf16.mxu0 %v2332_v33 }
 0x5b6   : > { %v8003_v27 = vpop.f32.mrb[116].mxu0 }
 0x5b7   : > { %v2282_v13 = vpop.f32.mrb[117].mxu0  ;;  %2588 = vmatmul.mubr.bf16.gmra.mrb[132].mxu0 %v2331_v60 }
 0x5b8   : > { %v8004_v23 = vpop.f32.mrb[118].mxu0 }
 0x5b9   : > { %v2336_v24 = vpack.c.bf16 %v8004_v23, %v8003_v27  ;;  %v7939_v46 = vpop.f32.mrb[20].mxu1  ;;  %v2285_v22 = vpop.f32.mrb[119].mxu0 }
 0x5ba   : > { %v2334_v39 = vpack.c.bf16 %v2285_v22, %v2282_v13  ;;  %v1912_v30 = vpop.f32.mrb[21].mxu1  ;;  %v9119_v13 = vld [vmem:[#allocation2 + $0x20] sm:$0xff]  ;;  %v9120_v22 = vld [vmem:[#allocation2 + $0x28] sm:$0xff] }
 0x5bb   : > { %v7940_v37 = vpop.f32.mrb[22].mxu1 }
 0x5bc   : > { %v2335_v40 = vpack.c.bf16 %v7940_v37, %v7939_v46  ;;  %v1915_v49 = vpop.f32.mrb[23].mxu1  ;;  %2597 = vmatprep.mubr.bf16.mxu0 %v2334_v39  ;;  %v9121_v37 = vld [vmem:[#allocation2 + $0x30] sm:$0xff] }
 0x5bd   : > { %v2333_v50 = vpack.c.bf16 %v1915_v49, %v1912_v30  ;;  %v9122_v49 = vld [vmem:[#allocation2 + $0x38] sm:$0xff] }
 0x5bf   : > { %2598 = vmatmul.mubr.bf16.gmra.mrb[136].mxu0 %v2333_v50 }
 0x5c0   : > { %2607 = vmatprep.mubr.bf16.mxu0 %v2336_v24 }
 0x5c6   : > { %v8007_v59 = vpop.f32.mrb[120].mxu0 }
 0x5c7   : > { %v2298_v3 = vpop.f32.mrb[121].mxu0  ;;  %2608 = vmatmul.mubr.bf16.gmra.mrb[140].mxu0 %v2335_v40 }
 0x5c8   : > { %v8008_v43 = vpop.f32.mrb[122].mxu0 }
 0x5c9   : > { %v2340_v19 = vpack.c.bf16 %v8008_v43, %v8007_v59  ;;  %v7943_v25 = vpop.f32.mrb[24].mxu1  ;;  %v2301_v57 = vpop.f32.mrb[123].mxu0 }
 0x5ca   : > { %v2338_v7 = vpack.c.bf16 %v2301_v57, %v2298_v3  ;;  %v1928_v51 = vpop.f32.mrb[25].mxu1 }
 0x5cb   : > { %v7944_v54 = vpop.f32.mrb[26].mxu1 }
 0x5cc   : > { %v2339_v56 = vpack.c.bf16 %v7944_v54, %v7943_v25  ;;  %v1931_v58 = vpop.f32.mrb[27].mxu1  ;;  %2617 = vmatprep.mubr.bf16.mxu0 %v2338_v7 }
 0x5cd   : > { %v2337_v26 = vpack.c.bf16 %v1931_v58, %v1928_v51  ;;  %v9123_v51 = vld [vmem:[#allocation2 + $0x40] sm:$0xff] }
 0x5cf   : > { %2618 = vmatmul.mubr.bf16.gmra.mrb[144].mxu0 %v2337_v26  ;;  %v9124_v26 = vld [vmem:[#allocation2 + $0x48] sm:$0xff] }
 0x5d0   : > { %2627 = vmatprep.mubr.bf16.mxu0 %v2340_v19 }
 0x5d6   : > { %v8011_v12 = vpop.f32.mrb[124].mxu0 }
 0x5d7   : > { %v2314_v14 = vpop.f32.mrb[125].mxu0  ;;  %2628 = vmatmul.mubr.bf16.gmra.mrb[148].mxu0 %v2339_v56 }
 0x5d8   : > { %v8012_v15 = vpop.f32.mrb[126].mxu0 }
 0x5d9   : > { %v7947_v1 = vpop.f32.mrb[28].mxu1  ;;  %v2344_v53 = vpack.c.bf16 %v8012_v15, %v8011_v12  ;;  %v2317_v20 = vpop.f32.mrb[127].mxu0  ;;  %v9125_v15 = vld [vmem:[#allocation2 + $0x50] sm:$0xff] }
 0x5da   : > { %v1944_v41 = vpop.f32.mrb[29].mxu1  ;;  %v2342_v0 = vpack.c.bf16 %v2317_v20, %v2314_v14 }
 0x5db   : > { %v7948_v52 = vpop.f32.mrb[30].mxu1 }
 0x5dc   : > { %v2343_v35 = vpack.c.bf16 %v7948_v52, %v7947_v1  ;;  %v1947_v36 = vpop.f32.mrb[31].mxu1  ;;  %2637 = vmatprep.mubr.bf16.mxu0 %v2342_v0 }
 0x5dd   : > { %v2341_v9 = vpack.c.bf16 %v1947_v36, %v1944_v41 }
 0x5df   : > { %2638 = vmatmul.mubr.bf16.gmra.mrb[152].mxu0 %v2341_v9 }
 0x5e0   : > { %2647 = vmatprep.mubr.bf16.mxu0 %v2344_v53  ;;  %v9126_v53 = vld [vmem:[#allocation2 + $0x58] sm:$0xff] }
 0x5e7   : > { %2648 = vmatmul.mubr.bf16.gmra.mrb[156].mxu0 %v2343_v35 }
 0x682   : > { %v2579_v17 = vpop.f32.mrb[128].mxu0 }
 0x683   : > { %v2580_v18 = vadd.f32 %v2579_v17, %v10736_v5  ;;  %v2581_v45 = vpop.f32.mrb[129].mxu0  ;;  %v9127_v17 = vld [vmem:[#allocation2 + $0x60] sm:$0xff] }
 0x684   : > { %v2582_v21 = vadd.f32 %v2581_v45, %v10742_v11  ;;  %v2583_v48 = vpop.f32.mrb[130].mxu0 }
 0x685   : > { %v10746_v55 = vadd.f32 %v9115_v4, %v2580_v18  ;;  %v2584_v38 = vadd.f32 %v2583_v48, %v10736_v5  ;;  %v2585_v16 = vpop.f32.mrb[131].mxu0  ;;  %v9128_v48 = vld [vmem:[#allocation2 + $0x68] sm:$0xff] }
 0x686   : > { %v10749_v42 = vadd.f32 %v9116_v32, %v2582_v21  ;;  %v2586_v63 = vadd.f32 %v2585_v16, %v10742_v11  ;;  %v9129_v16 = vld [vmem:[#allocation2 + $0x70] sm:$0xff] }
 0x687   : > { %v10752_v33 = vadd.f32 %v9117_v2, %v2584_v38 }
 0x688   : > { %v10754_v31 = vadd.f32 %v9118_v34, %v2586_v63  ;;  %v2690_v29 = vadd.f32 %v10749_v42, %v10746_v55  ;;  %v9130_v63 = vld [vmem:[#allocation2 + $0x78] sm:$0xff] }
 0x68a   : > { %v2589_v61 = vpop.f32.mrb[132].mxu0  ;;  %2691 = vadd.xlane.f32.xlu0 %v2690_v29  ;;  %v2693_v10 = vadd.f32 %v10754_v31, %v10752_v33 }
 0x68b   : > { %v2590_v60 = vadd.f32 %v2589_v61, %v10736_v5  ;;  %v2591_v28 = vpop.f32.mrb[133].mxu0 }
 0x68c   : > { %v2592_v6 = vadd.f32 %v2591_v28, %v10742_v11  ;;  %v2593_v27 = vpop.f32.mrb[134].mxu0  ;;  %2694 = vadd.xlane.f32.xlu1 %v2693_v10 }
 0x68d   : > { %v10762_v23 = vadd.f32 %v9119_v13, %v2590_v60  ;;  %v2594_v24 = vadd.f32 %v2593_v27, %v10736_v5  ;;  %v2595_v46 = vpop.f32.mrb[135].mxu0  ;;  %v9131_v27 = vld [vmem:[#allocation2 + $0x80] sm:$0xff] }
 0x68e   : > { %v10765_v39 = vadd.f32 %v9120_v22, %v2592_v6  ;;  %v2596_v30 = vadd.f32 %v2595_v46, %v10742_v11  ;;  %v9132_v22 = vld [vmem:[#allocation2 + $0x88] sm:$0xff] }
 0x68f   : > { %v10768_v40 = vadd.f32 %v9121_v37, %v2594_v24 }
 0x690   : > { %v10770_v50 = vadd.f32 %v9122_v49, %v2596_v30  ;;  %v2696_v59 = vadd.f32 %v10765_v39, %v10762_v23  ;;  %v9133_v49 = vld [vmem:[#allocation2 + $0x90] sm:$0xff] }
 0x692   : > { %v2599_v3 = vpop.f32.mrb[136].mxu0  ;;  %2697 = vadd.xlane.f32.xlu0 %v2696_v59  ;;  %v2699_v43 = vadd.f32 %v10770_v50, %v10768_v40 }
 0x693   : > { %v2600_v19 = vadd.f32 %v2599_v3, %v10736_v5  ;;  %v2601_v25 = vpop.f32.mrb[137].mxu0  ;;  %v9134_v3 = vld [vmem:[#allocation2 + $0x98] sm:$0xff] }
 0x694   : > { %v2602_v57 = vadd.f32 %v2601_v25, %v10742_v11  ;;  %v2603_v7 = vpop.f32.mrb[138].mxu0  ;;  %2700 = vadd.xlane.f32.xlu1 %v2699_v43 }
 0x695   : > { %v10778_v54 = vadd.f32 %v9123_v51, %v2600_v19  ;;  %v2604_v56 = vadd.f32 %v2603_v7, %v10736_v5  ;;  %v2605_v58 = vpop.f32.mrb[139].mxu0 }
 0x696   : > { %v10781_v12 = vadd.f32 %v9124_v26, %v2602_v57  ;;  %v2606_v14 = vadd.f32 %v2605_v58, %v10742_v11  ;;  %v9135_v26 = vld [vmem:[#allocation2 + $0xa0] sm:$0xff] }
 0x697   : > { %v10784_v1 = vadd.f32 %v9125_v15, %v2604_v56 }
 0x698   : > { %v10786_v20 = vadd.f32 %v9126_v53, %v2606_v14  ;;  %v2702_v41 = vadd.f32 %v10781_v12, %v10778_v54 }
 0x69a   : > { %v2609_v0 = vpop.f32.mrb[140].mxu0  ;;  %2703 = vadd.xlane.f32.xlu0 %v2702_v41  ;;  %v2705_v52 = vadd.f32 %v10786_v20, %v10784_v1  ;;  %v9136_v41 = vld [vmem:[#allocation2 + $0xa8] sm:$0xff] }
 0x69b   : > { %v2610_v35 = vadd.f32 %v2609_v0, %v10736_v5  ;;  %v2611_v36 = vpop.f32.mrb[141].mxu0 }
 0x69c   : > { %v2612_v9 = vadd.f32 %v2611_v36, %v10742_v11  ;;  %v2613_v47 = vpop.f32.mrb[142].mxu0  ;;  %2706 = vadd.xlane.f32.xlu1 %v2705_v52 }
 0x69d   : > { %v10794_v18 = vadd.f32 %v9127_v17, %v2610_v35  ;;  %v2614_v45 = vadd.f32 %v2613_v47, %v10736_v5  ;;  %v2615_v21 = vpop.f32.mrb[143].mxu0  ;;  %v9137_v35 = vld [vmem:[#allocation2 + $0xb0] sm:$0xff] }
 0x69e   : > { %v10797_v4 = vadd.f32 %v9128_v48, %v2612_v9  ;;  %v2616_v38 = vadd.f32 %v2615_v21, %v10742_v11  ;;  %v9138_v9 = vld [vmem:[#allocation2 + $0xb8] sm:$0xff] }
 0x69f   : > { %v10800_v32 = vadd.f32 %v9129_v16, %v2614_v45 }
 0x6a0   : > { %v10802_v2 = vadd.f32 %v9130_v63, %v2616_v38  ;;  %v2708_v34 = vadd.f32 %v10797_v4, %v10794_v18 }
 0x6a2   : > { %v2619_v29 = vpop.f32.mrb[144].mxu0  ;;  %2709 = vadd.xlane.f32.xlu0 %v2708_v34  ;;  %v2711_v61 = vadd.f32 %v10802_v2, %v10800_v32  ;;  %v9139_v34 = vld [vmem:[#allocation2 + $0xc0] sm:$0xff] }
 0x6a3   : > { %v2620_v10 = vadd.f32 %v2619_v29, %v10736_v5  ;;  %v2621_v60 = vpop.f32.mrb[145].mxu0 }
 0x6a4   : > { %v2622_v28 = vadd.f32 %v2621_v60, %v10742_v11  ;;  %v2623_v6 = vpop.f32.mrb[146].mxu0  ;;  %2712 = vadd.xlane.f32.xlu1 %v2711_v61  ;;  %v9140_v60 = vld [vmem:[#allocation2 + $0xc8] sm:$0xff] }
 0x6a5   : > { %v10810_v13 = vadd.f32 %v9131_v27, %v2620_v10  ;;  %v2624_v24 = vadd.f32 %v2623_v6, %v10736_v5  ;;  %v2625_v46 = vpop.f32.mrb[147].mxu0  ;;  %v9141_v27 = vld [vmem:[#allocation2 + $0xd0] sm:$0xff] }
 0x6a6   : > { %v10813_v30 = vadd.f32 %v9132_v22, %v2622_v28  ;;  %v2626_v37 = vadd.f32 %v2625_v46, %v10742_v11  ;;  %v9142_v46 = vld [vmem:[#allocation2 + $0xd8] sm:$0xff] }
 0x6a7   : > { %v10816_v59 = vadd.f32 %v9133_v49, %v2624_v24 }
 0x6a8   : > { %v10818_v43 = vadd.f32 %v9134_v3, %v2626_v37  ;;  %v2714_v19 = vadd.f32 %v10813_v30, %v10810_v13 }
 0x6aa   : > { %v2629_v25 = vpop.f32.mrb[148].mxu0  ;;  %2715 = vadd.xlane.f32.xlu0 %v2714_v19  ;;  %v2717_v57 = vadd.f32 %v10818_v43, %v10816_v59 }
 0x6ab   : > { %v2630_v7 = vadd.f32 %v2629_v25, %v10736_v5  ;;  %v2631_v51 = vpop.f32.mrb[149].mxu0 }
 0x6ac   : > { %v2632_v56 = vadd.f32 %v2631_v51, %v10742_v11  ;;  %v2633_v58 = vpop.f32.mrb[150].mxu0  ;;  %2718 = vadd.xlane.f32.xlu1 %v2717_v57  ;;  %v9143_v51 = vld [vmem:[#allocation2 + $0xe0] sm:$0xff] }
 0x6ad   : > { %v10826_v14 = vadd.f32 %v9135_v26, %v2630_v7  ;;  %v2634_v15 = vadd.f32 %v2633_v58, %v10736_v5  ;;  %v2635_v53 = vpop.f32.mrb[151].mxu0 }
 0x6ae   : > { %v10829_v0 = vadd.f32 %v9136_v41, %v2632_v56  ;;  %v2636_v52 = vadd.f32 %v2635_v53, %v10742_v11 }
 0x6af   : > { %v10832_v36 = vadd.f32 %v9137_v35, %v2634_v15  ;;  %v9144_v15 = vld [vmem:[#allocation2 + $0xe8] sm:$0xff] }
 0x6b0   : > { %v10834_v47 = vadd.f32 %v9138_v9, %v2636_v52  ;;  %v2720_v17 = vadd.f32 %v10829_v0, %v10826_v14  ;;  %v9145_v52 = vld [vmem:[#allocation2 + $0xf0] sm:$0xff]  ;;  %v9146_v9 = vld [vmem:[#allocation2 + $0xf8] sm:$0xff] }
 0x6b2   : > { %2721 = vadd.xlane.f32.xlu0 %v2720_v17  ;;  %v2639_v45 = vpop.f32.mrb[152].mxu0  ;;  %v2723_v21 = vadd.f32 %v10834_v47, %v10832_v36 }
 0x6b3   : > { %v2640_v48 = vadd.f32 %v2639_v45, %v10736_v5  ;;  %v2641_v38 = vpop.f32.mrb[153].mxu0 }
 0x6b4   : > { %v2642_v16 = vadd.f32 %v2641_v38, %v10742_v11  ;;  %2724 = vadd.xlane.f32.xlu1 %v2723_v21  ;;  %v2643_v63 = vpop.f32.mrb[154].mxu0  ;;  %v3043_v21 = vld [vmem:[%s9920_s1] sm:$0xff] }
 0x6b5   : > { %v10842_v29 = vadd.f32 %v9139_v34, %v2640_v48  ;;  %v2644_v61 = vadd.f32 %v2643_v63, %v10736_v5  ;;  %v2645_v10 = vpop.f32.mrb[155].mxu0  ;;  %v3044_v48 = vld [vmem:[%s9920_s1 + $0x8] sm:$0xff]  ;;  %v3051_v34 = vld [vmem:[%s9920_s1 + $0x40] sm:$0xff] }
 0x6b6   : > { %v10845_v28 = vadd.f32 %v9140_v60, %v2642_v16  ;;  %v2646_v6 = vadd.f32 %v2645_v10, %v10742_v11  ;;  %v3048_v63 = vld [vmem:[%s9920_s1 + $0x28] sm:$0xff] }
 0x6b7   : > { %v10848_v24 = vadd.f32 %v9141_v27, %v2644_v61  ;;  %v3055_v61 = vld [vmem:[%s9920_s1 + $0x60] sm:$0xff]  ;;  %v7552_v10 = vcombine.low %v3044_v48, %v3048_v63  ;;  %v7553_v60 = vcombine.high %v3044_v48, %v3048_v63  ;;  %v3052_v27 = vld [vmem:[%s9920_s1 + $0x48] sm:$0xff] }
 0x6b8   : > { %v10850_v22 = vadd.f32 %v9142_v46, %v2646_v6  ;;  %v2726_v37 = vadd.f32 %v10845_v28, %v10842_v29  ;;  %v7559_v6 = vcombine.high %v3051_v34, %v3055_v61  ;;  %v3056_v46 = vld [vmem:[%s9920_s1 + $0x68] sm:$0xff]  ;;  %v3079_v48 = vld [vmem:[%s9920_s1 + $0x120] sm:$0xff] }
 0x6b9   : > { %3956 = vmatprep.subr.bf16.mxu0 %v7553_v60  ;;  %v3083_v60 = vld [vmem:[%s9920_s1 + $0x140] sm:$0xff] }
 0x6ba   : > { %v2649_v49 = vpop.f32.mrb[156].mxu0  ;;  %2727 = vadd.xlane.f32.xlu0 %v2726_v37  ;;  %v2729_v3 = vadd.f32 %v10850_v22, %v10848_v24  ;;  %v3059_v37 = vld [vmem:[%s9920_s1 + $0x80] sm:$0xff]  ;;  %3957 = vmatpush1.bf16.msra.mxu0 %v7552_v10 }
 0x6bb   : > { %v2650_v19 = vadd.f32 %v2649_v49, %v10736_v5  ;;  %v2651_v25 = vpop.f32.mrb[157].mxu0  ;;  %v7561_v49 = vcombine.high %v3052_v27, %v3056_v46 }
 0x6bc   : > { %v2652_v57 = vadd.f32 %v2651_v25, %v10742_v11  ;;  %v2653_v7 = vpop.f32.mrb[158].mxu0  ;;  %2730 = vadd.xlane.f32.xlu1 %v2729_v3  ;;  %v3063_v3 = vld [vmem:[%s9920_s1 + $0xa0] sm:$0xff]  ;;  %v3064_v25 = vld [vmem:[%s9920_s1 + $0xa8] sm:$0xff] }
 0x6bd   : > { %v10858_v56 = vadd.f32 %v9143_v51, %v2650_v19  ;;  %v2654_v58 = vadd.f32 %v2653_v7, %v10736_v5  ;;  %v2655_v26 = vpop.f32.mrb[159].mxu0  ;;  %v3060_v19 = vld [vmem:[%s9920_s1 + $0x88] sm:$0xff]  ;;  %v7560_v7 = vcombine.low %v3052_v27, %v3056_v46  ;;  %v7567_v51 = vcombine.high %v3059_v37, %v3063_v3  ;;  %3958 = vmatprep.subr.bf16.mxu0 %v7561_v49 }
 0x6be   : > { %v10861_v53 = vadd.f32 %v9144_v15, %v2652_v57  ;;  %v2656_v41 = vadd.f32 %v2655_v26, %v10742_v11  ;;  %v3047_v11 = vld [vmem:[%s9920_s1 + $0x20] sm:$0xff]  ;;  %v7558_v57 = vcombine.low %v3051_v34, %v3055_v61  ;;  %v3084_v27 = vld [vmem:[%s9920_s1 + $0x148] sm:$0xff] }
 0x6bf   : > { %v10864_v35 = vadd.f32 %v9145_v52, %v2654_v58  ;;  %v7550_v38 = vcombine.low %v3043_v21, %v3047_v11  ;;  %v7551_v16 = vcombine.high %v3043_v21, %v3047_v11  ;;  %v7569_v58 = vcombine.high %v3060_v19, %v3064_v25  ;;  %v3067_v26 = vld [vmem:[%s9920_s1 + $0xc0] sm:$0xff]  ;;  %v3072_v52 = vld [vmem:[%s9920_s1 + $0xe8] sm:$0xff]  ;;  %3959 = vmatpush1.bf16.msra.mxu0 %v7560_v7 }
 0x6c0   : > { %v10866_v17 = vadd.f32 %v9146_v9, %v2656_v41  ;;  %v2732_v45 = vadd.f32 %v10861_v53, %v10858_v56  ;;  %v3071_v15 = vld [vmem:[%s9920_s1 + $0xe0] sm:$0xff]  ;;  %v3068_v41 = vld [vmem:[%s9920_s1 + $0xc8] sm:$0xff]  ;;  %v7566_v9 = vcombine.low %v3059_v37, %v3063_v3 }
 0x6c1   : > { %3843 = vmatprep.subr.bf16.mxu1 %v7551_v16  ;;  %3960 = vmatprep.subr.bf16.mxu0 %v7569_v58  ;;  %v7577_v21 = vcombine.high %v3068_v41, %v3072_v52  ;;  %v3075_v11 = vld [vmem:[%s9920_s1 + $0x100] sm:$0xff]  ;;  %v3080_v16 = vld [vmem:[%s9920_s1 + $0x128] sm:$0xff]  ;;  %v7574_v63 = vcombine.low %v3067_v26, %v3071_v15  ;;  %v7576_v34 = vcombine.low %v3068_v41, %v3072_v52 }
 0x6c2   : > { %2733 = vadd.xlane.f32.xlu0 %v2732_v45  ;;  %v2735_v5 = vadd.f32 %v10866_v17, %v10864_v35  ;;  %3844 = vmatpush1.bf16.msra.mxu1 %v7550_v38  ;;  %v7568_v45 = vcombine.low %v3060_v19, %v3064_v25  ;;  %v3076_v38 = vld [vmem:[%s9920_s1 + $0x108] sm:$0xff]  ;;  %v7583_v61 = vcombine.high %v3075_v11, %v3079_v48  ;;  %v3091_v25 = vld [vmem:[%s9920_s1 + $0x180] sm:$0xff] }
 0x6c3   : > { %3845 = vmatprep.subr.bf16.mxu1 %v7559_v6  ;;  %v7585_v10 = vcombine.high %v3076_v38, %v3080_v16  ;;  %v3087_v6 = vld [vmem:[%s9920_s1 + $0x160] sm:$0xff]  ;;  %v3088_v46 = vld [vmem:[%s9920_s1 + $0x168] sm:$0xff]  ;;  %v7582_v37 = vcombine.low %v3075_v11, %v3079_v48  ;;  %v7584_v49 = vcombine.low %v3076_v38, %v3080_v16 }
 0x6c4   : > { %2736 = vadd.xlane.f32.xlu1 %v2735_v5  ;;  %v7575_v5 = vcombine.high %v3067_v26, %v3071_v15  ;;  %3961 = vmatpush1.bf16.msra.mxu0 %v7568_v45  ;;  %v7591_v3 = vcombine.high %v3083_v60, %v3087_v6  ;;  %v7593_v19 = vcombine.high %v3084_v27, %v3088_v46  ;;  %v3092_v7 = vld [vmem:[%s9920_s1 + $0x188] sm:$0xff]  ;;  %v3099_v52 = vld [vmem:[%s9920_s1 + $0x1c0] sm:$0xff] }
 0x6c5   : > { %3962 = vmatprep.subr.bf16.mxu0 %v7577_v21  ;;  %v7590_v58 = vcombine.low %v3083_v60, %v3087_v6  ;;  %v7592_v26 = vcombine.low %v3084_v27, %v3088_v46  ;;  %v3100_v45 = vld [vmem:[%s9920_s1 + $0x1c8] sm:$0xff]  ;;  %v3107_v16 = vld [vmem:[%s9920_s1 + $0x200] sm:$0xff] }
 0x6c6   : > { %3846 = vmatpush1.bf16.msra.mxu1 %v7558_v57  ;;  %v3095_v57 = vld [vmem:[%s9920_s1 + $0x1a0] sm:$0xff] }
 0x6c7   : > { %3847 = vmatprep.subr.bf16.mxu1 %v7567_v51  ;;  %v3096_v51 = vld [vmem:[%s9920_s1 + $0x1a8] sm:$0xff]  ;;  %v7599_v15 = vcombine.high %v3091_v25, %v3095_v57  ;;  %v7598_v21 = vcombine.low %v3091_v25, %v3095_v57  ;;  %v3115_v46 = vld [vmem:[%s9920_s1 + $0x240] sm:$0xff] }
 0x6c8   : > { %3963 = vmatpush1.bf16.msra.mxu0 %v7576_v34  ;;  %v7601_v41 = vcombine.high %v3092_v7, %v3096_v51  ;;  %v7600_v11 = vcombine.low %v3092_v7, %v3096_v51  ;;  %v3108_v34 = vld [vmem:[%s9920_s1 + $0x208] sm:$0xff] }
 0x6c9   : > { %3964 = vmatprep.subr.bf16.mxu0 %v7585_v10 }
 0x6ca   : > { %3848 = vmatpush1.bf16.msra.mxu1 %v7566_v9  ;;  %v3103_v9 = vld [vmem:[%s9920_s1 + $0x1e0] sm:$0xff] }
 0x6cb   : > { %3849 = vmatprep.subr.bf16.mxu1 %v7575_v5  ;;  %v3104_v5 = vld [vmem:[%s9920_s1 + $0x1e8] sm:$0xff]  ;;  %v7607_v48 = vcombine.high %v3099_v52, %v3103_v9  ;;  %v7606_v10 = vcombine.low %v3099_v52, %v3103_v9 }
 0x6cc   : > { %3965 = vmatpush1.bf16.msra.mxu0 %v7584_v49  ;;  %v7609_v38 = vcombine.high %v3100_v45, %v3104_v5  ;;  %v7608_v60 = vcombine.low %v3100_v45, %v3104_v5  ;;  %v3116_v49 = vld [vmem:[%s9920_s1 + $0x248] sm:$0xff] }
 0x6cd   : > { %3966 = vmatprep.subr.bf16.mxu0 %v7593_v19 }
 0x6ce   : > { %3850 = vmatpush1.bf16.msra.mxu1 %v7574_v63  ;;  %v3111_v63 = vld [vmem:[%s9920_s1 + $0x220] sm:$0xff] }
 0x6cf   : > { %3851 = vmatprep.subr.bf16.mxu1 %v7583_v61  ;;  %v3112_v61 = vld [vmem:[%s9920_s1 + $0x228] sm:$0xff]  ;;  %v7615_v6 = vcombine.high %v3107_v16, %v3111_v63  ;;  %v7614_v19 = vcombine.low %v3107_v16, %v3111_v63 }
 0x6d0   : > { %3967 = vmatpush1.bf16.msra.mxu0 %v7592_v26  ;;  %v7617_v27 = vcombine.high %v3108_v34, %v3112_v61  ;;  %v7616_v25 = vcombine.low %v3108_v34, %v3112_v61 }
 0x6d1   : > { %3968 = vmatprep.subr.bf16.mxu0 %v7601_v41 }
 0x6d2   : > { %3852 = vmatpush1.bf16.msra.mxu1 %v7582_v37  ;;  %v3119_v37 = vld [vmem:[%s9920_s1 + $0x260] sm:$0xff] }
 0x6d3   : > { %3853 = vmatprep.subr.bf16.mxu1 %v7591_v3  ;;  %v3120_v3 = vld [vmem:[%s9920_s1 + $0x268] sm:$0xff]  ;;  %v7623_v57 = vcombine.high %v3115_v46, %v3119_v37  ;;  %v7622_v51 = vcombine.low %v3115_v46, %v3119_v37 }
 0x6d4   : > { %3969 = vmatpush1.bf16.msra.mxu0 %v7600_v11  ;;  %v7625_v7 = vcombine.high %v3116_v49, %v3120_v3 }
 0x6d5   : > { %3970 = vmatprep.subr.bf16.mxu0 %v7609_v38 }
 0x6d6   : > { %3854 = vmatpush1.bf16.msra.mxu1 %v7590_v58  ;;  %v7624_v58 = vcombine.low %v3116_v49, %v3120_v3 }
 0x6d7   : > { %3855 = vmatprep.subr.bf16.mxu1 %v7599_v15 }
 0x6d8   : > { %3971 = vmatpush1.bf16.msra.mxu0 %v7608_v60 }
 0x6d9   : > { %3972 = vmatprep.subr.bf16.mxu0 %v7617_v27 }
 0x6da   : > { %3856 = vmatpush1.bf16.msra.mxu1 %v7598_v21 }
 0x6db   : > { %3857 = vmatprep.subr.bf16.mxu1 %v7607_v48 }
 0x6dc   : > { %3973 = vmatpush1.bf16.msra.mxu0 %v7616_v25 }
 0x6dd   : > { %3974 = vmatprep.subr.bf16.mxu0 %v7625_v7 }
 0x6de   : > { %3858 = vmatpush1.bf16.msra.mxu1 %v7606_v10 }
 0x6df   : > { %3859 = vmatprep.subr.bf16.mxu1 %v7615_v6 }
 0x6e0   : > { %3975 = vmatpush1.bf16.msra.mxu0 %v7624_v58 }
 0x6e2   : > { %3860 = vmatpush1.bf16.msra.mxu1 %v7614_v19 }
 0x6e3   : > { %3861 = vmatprep.subr.bf16.mxu1 %v7623_v57 }
 0x6e6   : > { %3862 = vmatpush1.bf16.msra.mxu1 %v7622_v51 }
 0x717   : > { %v2692_v26 = vpop.xlane.xlu0 %2691 }
 0x718   : > { %v2739_v15 = vmul.f32 0.00390625, %v2692_v26 }
 0x719   : > { %v2695_v41 = vpop.xlane.xlu1 %2694 }
 0x71a   : > { %v10913_v52 = vsub.f32 %v10746_v55, %v2739_v15  ;;  %v10916_v9 = vsub.f32 %v10749_v42, %v2739_v15  ;;  %v2740_v45 = vmul.f32 0.00390625, %v2695_v41  ;;  %v3123_v15 = vld [vmem:[%s9920_s1 + $0x280] sm:$0xff]  ;;  %v3124_v41 = vld [vmem:[%s9920_s1 + $0x288] sm:$0xff] }
 0x71c   : > { %v10919_v5 = vsub.f32 %v10752_v33, %v2740_v45  ;;  %v10922_v21 = vsub.f32 %v10754_v31, %v2740_v45  ;;  %v2787_v11 = vmul.f32 %v10913_v52, %v10913_v52  ;;  %v2788_v48 = vmul.f32 %v10916_v9, %v10916_v9 }
 0x71e   : > { %v2819_v38 = vadd.f32 %v2788_v48, %v2787_v11  ;;  %v2789_v55 = vmul.f32 %v10919_v5, %v10919_v5  ;;  %v2790_v42 = vmul.f32 %v10922_v21, %v10922_v21  ;;  %v3128_v11 = vld [vmem:[%s9920_s1 + $0x2a8] sm:$0xff] }
 0x71f   : > { %v2698_v16 = vpop.xlane.xlu0 %2697 }
 0x720   : > { %v2741_v63 = vmul.f32 0.00390625, %v2698_v16  ;;  %2820 = vadd.xlane.f32.xlu0 %v2819_v38  ;;  %v2822_v33 = vadd.f32 %v2790_v42, %v2789_v55  ;;  %v7632_v55 = vcombine.low %v3124_v41, %v3128_v11  ;;  %v7633_v42 = vcombine.high %v3124_v41, %v3128_v11 }
 0x721   : > { %v2701_v34 = vpop.xlane.xlu1 %2700 }
 0x722   : > { %v10933_v31 = vsub.f32 %v10762_v23, %v2741_v63  ;;  %v10936_v61 = vsub.f32 %v10765_v39, %v2741_v63  ;;  %v2742_v10 = vmul.f32 0.00390625, %v2701_v34  ;;  %2823 = vadd.xlane.f32.xlu1 %v2822_v33  ;;  %3976 = vmatprep.subr.bf16.mxu0 %v7633_v42  ;;  %v3131_v34 = vld [vmem:[%s9920_s1 + $0x2c0] sm:$0xff] }
 0x723   : > { %3977 = vmatpush1.bf16.msra.mxu0 %v7632_v55 }
 0x724   : > { %v10939_v60 = vsub.f32 %v10768_v40, %v2742_v10  ;;  %v10942_v6 = vsub.f32 %v10770_v50, %v2742_v10  ;;  %v2791_v27 = vmul.f32 %v10933_v31, %v10933_v31  ;;  %v2792_v46 = vmul.f32 %v10936_v61, %v10936_v61  ;;  %v3135_v10 = vld [vmem:[%s9920_s1 + $0x2e0] sm:$0xff] }
 0x726   : > { %v2825_v37 = vadd.f32 %v2792_v46, %v2791_v27  ;;  %v2793_v23 = vmul.f32 %v10939_v60, %v10939_v60  ;;  %v2794_v39 = vmul.f32 %v10942_v6, %v10942_v6  ;;  %v3132_v27 = vld [vmem:[%s9920_s1 + $0x2c8] sm:$0xff] }
 0x727   : > { %v2704_v40 = vpop.xlane.xlu0 %2703 }
 0x728   : > { %v2743_v49 = vmul.f32 0.00390625, %v2704_v40  ;;  %2826 = vadd.xlane.f32.xlu0 %v2825_v37  ;;  %v2828_v50 = vadd.f32 %v2794_v39, %v2793_v23  ;;  %v7639_v39 = vcombine.high %v3131_v34, %v3135_v10  ;;  %v3136_v40 = vld [vmem:[%s9920_s1 + $0x2e8] sm:$0xff] }
 0x729   : > { %v2707_v3 = vpop.xlane.xlu1 %2706 }
 0x72a   : > { %v10953_v19 = vsub.f32 %v10778_v54, %v2743_v49  ;;  %v10956_v25 = vsub.f32 %v10781_v12, %v2743_v49  ;;  %v2744_v57 = vmul.f32 0.00390625, %v2707_v3  ;;  %2829 = vadd.xlane.f32.xlu1 %v2828_v50  ;;  %v3127_v54 = vld [vmem:[%s9920_s1 + $0x2a0] sm:$0xff]  ;;  %v7638_v49 = vcombine.low %v3131_v34, %v3135_v10 }
 0x72b   : > { %v7630_v38 = vcombine.low %v3123_v15, %v3127_v54  ;;  %v7640_v50 = vcombine.low %v3132_v27, %v3136_v40  ;;  %v7641_v3 = vcombine.high %v3132_v27, %v3136_v40 }
 0x72c   : > { %v10959_v7 = vsub.f32 %v10784_v1, %v2744_v57  ;;  %v10962_v51 = vsub.f32 %v10786_v20, %v2744_v57  ;;  %v2795_v58 = vmul.f32 %v10953_v19, %v10953_v19  ;;  %v2796_v26 = vmul.f32 %v10956_v25, %v10956_v25 }
 0x72d   : > { %v7631_v20 = vcombine.high %v3123_v15, %v3127_v54  ;;  %3978 = vmatprep.subr.bf16.mxu0 %v7641_v3  ;;  %v3143_v15 = vld [vmem:[%s9920_s1 + $0x320] sm:$0xff]  ;;  %v3140_v54 = vld [vmem:[%s9920_s1 + $0x308] sm:$0xff] }
 0x72e   : > { %v2831_v45 = vadd.f32 %v2796_v26, %v2795_v58  ;;  %v2797_v12 = vmul.f32 %v10959_v7, %v10959_v7  ;;  %v2798_v1 = vmul.f32 %v10962_v51, %v10962_v51  ;;  %v3139_v26 = vld [vmem:[%s9920_s1 + $0x300] sm:$0xff]  ;;  %3979 = vmatpush1.bf16.msra.mxu0 %v7640_v50 }
 0x72f   : > { %v2710_v48 = vpop.xlane.xlu0 %2709  ;;  %3863 = vmatprep.subr.bf16.mxu1 %v7631_v20  ;;  %v7646_v20 = vcombine.low %v3139_v26, %v3143_v15 }
 0x730   : > { %v2745_v16 = vmul.f32 0.00390625, %v2710_v48  ;;  %2832 = vadd.xlane.f32.xlu0 %v2831_v45  ;;  %v2834_v63 = vadd.f32 %v2798_v1, %v2797_v12  ;;  %3864 = vmatpush1.bf16.msra.mxu1 %v7630_v38  ;;  %v7647_v45 = vcombine.high %v3139_v26, %v3143_v15  ;;  %v3144_v12 = vld [vmem:[%s9920_s1 + $0x328] sm:$0xff]  ;;  %v3159_v26 = vld [vmem:[%s9920_s1 + $0x3a0] sm:$0xff] }
 0x731   : > { %v2713_v33 = vpop.xlane.xlu1 %2712  ;;  %3865 = vmatprep.subr.bf16.mxu1 %v7639_v39  ;;  %v7648_v11 = vcombine.low %v3140_v54, %v3144_v12  ;;  %v7649_v48 = vcombine.high %v3140_v54, %v3144_v12  ;;  %v3152_v39 = vld [vmem:[%s9920_s1 + $0x368] sm:$0xff] }
 0x732   : > { %v10980_v46 = vsub.f32 %v10794_v18, %v2745_v16  ;;  %v10983_v37 = vsub.f32 %v10797_v4, %v2745_v16  ;;  %v2746_v23 = vmul.f32 0.00390625, %v2713_v33  ;;  %2835 = vadd.xlane.f32.xlu1 %v2834_v63  ;;  %v3147_v16 = vld [vmem:[%s9920_s1 + $0x340] sm:$0xff]  ;;  %v3148_v33 = vld [vmem:[%s9920_s1 + $0x348] sm:$0xff] }
 0x733   : > { %3980 = vmatprep.subr.bf16.mxu0 %v7649_v48  ;;  %v3151_v63 = vld [vmem:[%s9920_s1 + $0x360] sm:$0xff]  ;;  %v7657_v50 = vcombine.high %v3148_v33, %v3152_v39  ;;  %v3156_v15 = vld [vmem:[%s9920_s1 + $0x388] sm:$0xff] }
 0x734   : > { %v10987_v57 = vsub.f32 %v10800_v32, %v2746_v23  ;;  %v10990_v18 = vsub.f32 %v10802_v2, %v2746_v23  ;;  %v2799_v4 = vmul.f32 %v10980_v46, %v10980_v46  ;;  %v2800_v58 = vmul.f32 %v10983_v37, %v10983_v37  ;;  %3866 = vmatpush1.bf16.msra.mxu1 %v7638_v49 }
 0x735   : > { %3867 = vmatprep.subr.bf16.mxu1 %v7647_v45  ;;  %3981 = vmatpush1.bf16.msra.mxu0 %v7648_v11  ;;  %v7655_v23 = vcombine.high %v3147_v16, %v3151_v63  ;;  %v7654_v40 = vcombine.low %v3147_v16, %v3151_v63  ;;  %v7656_v49 = vcombine.low %v3148_v33, %v3152_v39 }
 0x736   : > { %v2837_v41 = vadd.f32 %v2800_v58, %v2799_v4  ;;  %v2801_v32 = vmul.f32 %v10987_v57, %v10987_v57  ;;  %v2802_v2 = vmul.f32 %v10990_v18, %v10990_v18  ;;  %3982 = vmatprep.subr.bf16.mxu0 %v7657_v50  ;;  %v3155_v58 = vld [vmem:[%s9920_s1 + $0x380] sm:$0xff] }
 0x737   : > { %v2716_v1 = vpop.xlane.xlu0 %2715  ;;  %v7662_v45 = vcombine.low %v3155_v58, %v3159_v26 }
 0x738   : > { %v2747_v38 = vmul.f32 0.00390625, %v2716_v1  ;;  %2838 = vadd.xlane.f32.xlu0 %v2837_v41  ;;  %v2840_v55 = vadd.f32 %v2802_v2, %v2801_v32  ;;  %3868 = vmatpush1.bf16.msra.mxu1 %v7646_v20  ;;  %v7663_v41 = vcombine.high %v3155_v58, %v3159_v26  ;;  %v3160_v32 = vld [vmem:[%s9920_s1 + $0x3a8] sm:$0xff]  ;;  %v11056_v58 = vld [vmem:[%s9920_s1 + $0x30] sm:$0xff]  ;;  %v11059_v26 = vld [vmem:[%s9920_s1 + $0x18] sm:$0xff] }
 0x739   : > { %v2719_v42 = vpop.xlane.xlu1 %2718  ;;  %3869 = vmatprep.subr.bf16.mxu1 %v7655_v23  ;;  %3983 = vmatpush1.bf16.msra.mxu0 %v7656_v49  ;;  %v7664_v12 = vcombine.low %v3156_v15, %v3160_v32  ;;  %v7665_v1 = vcombine.high %v3156_v15, %v3160_v32  ;;  %v3168_v23 = vld [vmem:[%s9920_s1 + $0x3e8] sm:$0xff] }
 0x73a   : > { %v11008_v34 = vsub.f32 %v10810_v13, %v2747_v38  ;;  %v11011_v10 = vsub.f32 %v10813_v30, %v2747_v38  ;;  %v2748_v27 = vmul.f32 0.00390625, %v2719_v42  ;;  %2841 = vadd.xlane.f32.xlu1 %v2840_v55  ;;  %v3163_v38 = vld [vmem:[%s9920_s1 + $0x3c0] sm:$0xff]  ;;  %v3164_v42 = vld [vmem:[%s9920_s1 + $0x3c8] sm:$0xff] }
 0x73b   : > { %3984 = vmatprep.subr.bf16.mxu0 %v7665_v1  ;;  %v3167_v55 = vld [vmem:[%s9920_s1 + $0x3e0] sm:$0xff]  ;;  %v7673_v49 = vcombine.high %v3164_v42, %v3168_v23 }
 0x73c   : > { %v11015_v3 = vsub.f32 %v10816_v59, %v2748_v27  ;;  %v11018_v13 = vsub.f32 %v10818_v43, %v2748_v27  ;;  %v2803_v30 = vmul.f32 %v11008_v34, %v11008_v34  ;;  %v2804_v4 = vmul.f32 %v11011_v10, %v11011_v10  ;;  %3870 = vmatpush1.bf16.msra.mxu1 %v7654_v40 }
 0x73d   : > { %3871 = vmatprep.subr.bf16.mxu1 %v7663_v41  ;;  %3985 = vmatpush1.bf16.msra.mxu0 %v7664_v12  ;;  %v7671_v27 = vcombine.high %v3163_v38, %v3167_v55  ;;  %v7670_v39 = vcombine.low %v3163_v38, %v3167_v55  ;;  %v7672_v40 = vcombine.low %v3164_v42, %v3168_v23 }
 0x73e   : > { %v2843_v54 = vadd.f32 %v2804_v4, %v2803_v30  ;;  %v2805_v59 = vmul.f32 %v11015_v3, %v11015_v3  ;;  %v2806_v43 = vmul.f32 %v11018_v13, %v11018_v13  ;;  %3986 = vmatprep.subr.bf16.mxu0 %v7673_v49  ;;  %v11053_v4 = vld [vmem:[%s9920_s1 + $0x10] sm:$0xff] }
 0x73f   : > { %v2722_v2 = vpop.xlane.xlu0 %2721  ;;  %v7554_v41 = vcombine.low %v11053_v4, %v11056_v58 }
 0x740   : > { %v2749_v20 = vmul.f32 0.00390625, %v2722_v2  ;;  %2844 = vadd.xlane.f32.xlu0 %v2843_v54  ;;  %v2846_v11 = vadd.f32 %v2806_v43, %v2805_v59  ;;  %3872 = vmatpush1.bf16.msra.mxu1 %v7662_v45  ;;  %v7555_v54 = vcombine.high %v11053_v4, %v11056_v58  ;;  %v11068_v59 = vld [vmem:[%s9920_s1 + $0x38] sm:$0xff]  ;;  %v11188_v58 = vld [vmem:[%s9920_s1 + $0xd0] sm:$0xff] }
 0x741   : > { %v2725_v48 = vpop.xlane.xlu1 %2724  ;;  %3873 = vmatprep.subr.bf16.mxu1 %v7671_v27  ;;  %3987 = vmatpush1.bf16.msra.mxu0 %v7672_v40  ;;  %v7556_v32 = vcombine.low %v11059_v26, %v11068_v59  ;;  %v7557_v2 = vcombine.high %v11059_v26, %v11068_v59 }
 0x742   : > { %v11036_v16 = vsub.f32 %v10826_v14, %v2749_v20  ;;  %v11039_v63 = vsub.f32 %v10829_v0, %v2749_v20  ;;  %v2750_v33 = vmul.f32 0.00390625, %v2725_v48  ;;  %2847 = vadd.xlane.f32.xlu1 %v2846_v11 }
 0x743   : > { %4182 = vmatprep.subr.bf16.mxu0 %v7557_v2 }
 0x744   : > { %v11043_v50 = vsub.f32 %v10832_v36, %v2750_v33  ;;  %v11046_v14 = vsub.f32 %v10834_v47, %v2750_v33  ;;  %v2807_v0 = vmul.f32 %v11036_v16, %v11036_v16  ;;  %v2808_v30 = vmul.f32 %v11039_v63, %v11039_v63  ;;  %3874 = vmatpush1.bf16.msra.mxu1 %v7670_v39 }
 0x745   : > { %4069 = vmatprep.subr.bf16.mxu1 %v7555_v54 }
 0x746   : > { %v2849_v36 = vadd.f32 %v2808_v30, %v2807_v0  ;;  %v2809_v47 = vmul.f32 %v11043_v50, %v11043_v50  ;;  %v2810_v15 = vmul.f32 %v11046_v14, %v11046_v14 }
 0x747   : > { %v2728_v43 = vpop.xlane.xlu0 %2727 }
 0x748   : > { %v2751_v45 = vmul.f32 0.00390625, %v2728_v43  ;;  %2850 = vadd.xlane.f32.xlu0 %v2849_v36  ;;  %v2852_v12 = vadd.f32 %v2810_v15, %v2809_v47 }
 0x749   : > { %v2731_v1 = vpop.xlane.xlu1 %2730 }
 0x74a   : > { %v11077_v20 = vsub.f32 %v10842_v29, %v2751_v45  ;;  %v11080_v11 = vsub.f32 %v10845_v28, %v2751_v45  ;;  %v2752_v48 = vmul.f32 0.00390625, %v2731_v1  ;;  %2853 = vadd.xlane.f32.xlu1 %v2852_v12 }
 0x74c   : > { %v11083_v38 = vsub.f32 %v10848_v24, %v2752_v48  ;;  %v11086_v55 = vsub.f32 %v10850_v22, %v2752_v48  ;;  %v2811_v42 = vmul.f32 %v11077_v20, %v11077_v20  ;;  %v2812_v33 = vmul.f32 %v11080_v11, %v11080_v11 }
 0x74e   : > { %v2855_v27 = vadd.f32 %v2812_v33, %v2811_v42  ;;  %v2813_v29 = vmul.f32 %v11083_v38, %v11083_v38  ;;  %v2814_v28 = vmul.f32 %v11086_v55, %v11086_v55  ;;  %v2949_v33 = vsub.s32 4, %v10153_v8 }
 0x74f   : > { %v2734_v23 = vpop.xlane.xlu0 %2733 }
 0x750   : > { %v2753_v39 = vmul.f32 0.00390625, %v2734_v23  ;;  %2856 = vadd.xlane.f32.xlu0 %v2855_v27  ;;  %v2858_v24 = vadd.f32 %v2814_v28, %v2813_v29 }
 0x751   : > { %v2737_v40 = vpop.xlane.xlu1 %2736 }
 0x752   : > { %v11097_v22 = vsub.f32 %v10858_v56, %v2753_v39  ;;  %v11100_v49 = vsub.f32 %v10861_v53, %v2753_v39  ;;  %v2754_v0 = vmul.f32 0.00390625, %v2737_v40  ;;  %2859 = vadd.xlane.f32.xlu1 %v2858_v24  ;;  %v2989_v39 = vsub.s32 5, %v10153_v8 }
 0x753   : > { %v11119_v24 = vrot.slane %v10733_v62, %v2949_v33  ;;  %v11122_v40 = vrot.slane %v10739_v44, %v2949_v33 }
 0x754   : > { %v11103_v30 = vsub.f32 %v10864_v35, %v2754_v0  ;;  %v11106_v36 = vsub.f32 %v10866_v17, %v2754_v0  ;;  %v2815_v47 = vmul.f32 %v11097_v22, %v11097_v22  ;;  %v2816_v15 = vmul.f32 %v11100_v49, %v11100_v49 }
 0x756   : > { %v2861_v54 = vadd.f32 %v2816_v15, %v2815_v47  ;;  %v2817_v56 = vmul.f32 %v11103_v30, %v11103_v30  ;;  %v2818_v53 = vmul.f32 %v11106_v36, %v11106_v36 }
 0x758   : > { %2862 = vadd.xlane.f32.xlu0 %v2861_v54  ;;  %v2864_v43 = vadd.f32 %v2818_v53, %v2817_v56 }
 0x75a   : > { %2865 = vadd.xlane.f32.xlu1 %v2864_v43  ;;  %v11127_v43 = vrot.slane %v10733_v62, %v2989_v39 }
 0x7ad   : > { %v2821_v35 = vpop.xlane.xlu0 %2820 }
 0x7ae   : > { %v2867_v2 = vmul.f32 0.00390625, %v2821_v35  ;;  %v11130_v35 = vrot.slane %v10739_v44, %v2989_v39 }
 0x7af   : > { %v2824_v17 = vpop.xlane.xlu1 %2823 }
 0x7b0   : > { %v2883_v45 = vadd.f32 1e-12, %v2867_v2  ;;  %v2868_v12 = vmul.f32 0.00390625, %v2824_v17 }
 0x7b2   : > { %8793 = vrsqrt.f32 %v2883_v45  ;;  %v2884_v1 = vadd.f32 1e-12, %v2868_v12 }
 0x7b4   : > { %8795 = vrsqrt.f32 %v2884_v1 }
 0x7b5   : > { %v2827_v48 = vpop.xlane.xlu0 %2826 }
 0x7b6   : > { %v2869_v42 = vmul.f32 0.00390625, %v2827_v48 }
 0x7b7   : > { %v2830_v27 = vpop.xlane.xlu1 %2829 }
 0x7b8   : > { %v2885_v29 = vadd.f32 1e-12, %v2869_v42  ;;  %v2870_v28 = vmul.f32 0.00390625, %v2830_v27  ;;  %v3053_v42 = vld [vmem:[%s9920_s1 + $0x50] sm:$0xff] }
 0x7ba   : > { %8797 = vrsqrt.f32 %v2885_v29  ;;  %v2886_v23 = vadd.f32 1e-12, %v2870_v28  ;;  %v3057_v29 = vld [vmem:[%s9920_s1 + $0x70] sm:$0xff]  ;;  %v3054_v28 = vld [vmem:[%s9920_s1 + $0x58] sm:$0xff] }
 0x7bc   : > { %v8794_v0 = vpop.eup %8793  ;;  %8799 = vrsqrt.f32 %v2886_v23  ;;  %v3058_v23 = vld [vmem:[%s9920_s1 + $0x78] sm:$0xff] }
 0x7bd   : > { %v2915_v47 = vmul.f32 %v8794_v0, %v10913_v52  ;;  %v2916_v15 = vmul.f32 %v8794_v0, %v10916_v9  ;;  %v2833_v54 = vpop.xlane.xlu0 %2832 }
 0x7be   : > { %v8796_v56 = vpop.eup %8795  ;;  %v2871_v53 = vmul.f32 0.00390625, %v2833_v54 }
 0x7bf   : > { %v2955_v2 = vmul.f32 %v11119_v24, %v2915_v47  ;;  %v2917_v17 = vmul.f32 %v8796_v56, %v10919_v5  ;;  %v2918_v52 = vmul.f32 %v8796_v56, %v10922_v21  ;;  %v2836_v9 = vpop.xlane.xlu1 %2835  ;;  %v2956_v45 = vmul.f32 %v11122_v40, %v2916_v15 }
 0x7c0   : > { %v2887_v12 = vadd.f32 1e-12, %v2871_v53  ;;  %v2872_v1 = vmul.f32 0.00390625, %v2836_v9  ;;  %v11165_v9 = vld [vmem:[%s9920_s1 + $0x90] sm:$0xff] }
 0x7c1   : > { %v2957_v62 = vmul.f32 %v11119_v24, %v2917_v17  ;;  %v2958_v48 = vmul.f32 %v11122_v40, %v2918_v52  ;;  %v11140_v33 = vadd.f32 %v11130_v35, %v2956_v45  ;;  %v11146_v21 = vadd.f32 %v11127_v43, %v2955_v2 }
 0x7c2   : > { %8801 = vrsqrt.f32 %v2887_v12  ;;  %v2888_v44 = vadd.f32 1e-12, %v2872_v1  ;;  %v7563_v17 = vcombine.high %v3053_v42, %v3057_v29  ;;  %v7565_v52 = vcombine.high %v3054_v28, %v3058_v23  ;;  %v3065_v1 = vld [vmem:[%s9920_s1 + $0xb0] sm:$0xff] }
 0x7c3   : > { %14590 = vst [vmem:[#allocation33_spill] sm:$0xff] %v11140_v33  ;;  %v11143_v5 = vadd.f32 %v11130_v35, %v2958_v48  ;;  %14592 = vst [vmem:[#allocation35_spill] sm:$0xff] %v11146_v21  ;;  %v11149_v27 = vadd.f32 %v11127_v43, %v2957_v62  ;;  %v3062_v62 = vld [vmem:[%s9920_s1 + $0x98] sm:$0xff] }
 0x7c4   : > { %v8798_v39 = vpop.eup %8797  ;;  %8803 = vrsqrt.f32 %v2888_v44  ;;  %v3066_v48 = vld [vmem:[%s9920_s1 + $0xb8] sm:$0xff] }
 0x7c5   : > { %14591 = vst [vmem:[#allocation34_spill] sm:$0xff] %v11143_v5  ;;  %14593 = vst [vmem:[#allocation36_spill] sm:$0xff] %v11149_v27  ;;  %v2919_v0 = vmul.f32 %v8798_v39, %v10933_v31  ;;  %v2920_v47 = vmul.f32 %v8798_v39, %v10936_v61  ;;  %v2839_v15 = vpop.xlane.xlu0 %2838  ;;  %v11158_v54 = vpack.c.bf16 %v11143_v5, %v11140_v33 }
 0x7c6   : > { %v11162_v56 = vpack.c.bf16 %v11149_v27, %v11146_v21  ;;  %v8800_v53 = vpop.eup %8799  ;;  %v2873_v2 = vmul.f32 0.00390625, %v2839_v15  ;;  %v7573_v4 = vcombine.high %v3062_v62, %v3066_v48 }
 0x7c7   : > { %v2921_v31 = vmul.f32 %v8800_v53, %v10939_v60  ;;  %v2922_v61 = vmul.f32 %v8800_v53, %v10942_v6  ;;  %3875 = vmatprep.mubr.bf16.mxu1 %v11158_v54  ;;  %3988 = vmatprep.mubr.bf16.mxu0 %v11158_v54  ;;  %v2842_v45 = vpop.xlane.xlu1 %2841  ;;  %v2960_v12 = vmul.f32 %v11122_v40, %v2920_v47 }
 0x7c8   : > { %v2889_v44 = vadd.f32 1e-12, %v2873_v2  ;;  %v2874_v39 = vmul.f32 0.00390625, %v2842_v45  ;;  %3876 = vmatmul.mubr.bf16.vlgmr.msra.gmra.mrb[32].mxu1 %v11162_v56  ;;  %3989 = vmatmul.mubr.bf16.vlgmr.msra.gmra.mrb[160].mxu0 %v11162_v56  ;;  %v7562_v60 = vcombine.low %v3053_v42, %v3057_v29  ;;  %v2959_v6 = vmul.f32 %v11119_v24, %v2919_v0 }
 0x7c9   : > { %4070 = vmatpush1.bf16.msra.mxu1 %v7554_v41  ;;  %4183 = vmatpush1.bf16.msra.mxu0 %v7556_v32  ;;  %v7564_v47 = vcombine.low %v3054_v28, %v3058_v23  ;;  %v2962_v15 = vmul.f32 %v11122_v40, %v2922_v61  ;;  %v2961_v53 = vmul.f32 %v11119_v24, %v2921_v31  ;;  %v11200_v32 = vld [vmem:[%s9920_s1 + $0xf0] sm:$0xff]  ;;  %v11203_v28 = vld [vmem:[%s9920_s1 + $0xd8] sm:$0xff] }
 0x7ca   : > { %8805 = vrsqrt.f32 %v2889_v44  ;;  %v2890_v42 = vadd.f32 1e-12, %v2874_v39  ;;  %4071 = vmatprep.subr.bf16.mxu1 %v7563_v17  ;;  %4184 = vmatprep.subr.bf16.mxu0 %v7565_v52  ;;  %v7571_v29 = vcombine.high %v11165_v9, %v3065_v1  ;;  %v11191_v41 = vadd.f32 %v11130_v35, %v2960_v12  ;;  %v3074_v23 = vld [vmem:[%s9920_s1 + $0xf8] sm:$0xff] }
 0x7cb   : > { %v11194_v26 = vadd.f32 %v11130_v35, %v2962_v15  ;;  %v11197_v59 = vadd.f32 %v11127_v43, %v2961_v53  ;;  %v11207_v2 = vadd.f32 %v11127_v43, %v2959_v6  ;;  %v7570_v17 = vcombine.low %v11165_v9, %v3065_v1  ;;  %v11224_v1 = vld [vmem:[%s9920_s1 + $0x110] sm:$0xff]  ;;  %v3078_v15 = vld [vmem:[%s9920_s1 + $0x118] sm:$0xff] }
 0x7cc   : > { %14594 = vst [vmem:[#allocation37_spill] sm:$0xff] %v11191_v41  ;;  %v8802_v0 = vpop.eup %8801  ;;  %8807 = vrsqrt.f32 %v2890_v42  ;;  %v7572_v52 = vcombine.low %v3062_v62, %v3066_v48  ;;  %v3082_v53 = vld [vmem:[%s9920_s1 + $0x138] sm:$0xff] }
 0x7cd   : > { %14595 = vst [vmem:[#allocation38_spill] sm:$0xff] %v11194_v26  ;;  %14596 = vst [vmem:[#allocation39_spill] sm:$0xff] %v11197_v59  ;;  %v2923_v31 = vmul.f32 %v8802_v0, %v10953_v19  ;;  %v2924_v61 = vmul.f32 %v8802_v0, %v10956_v25  ;;  %v2845_v45 = vpop.xlane.xlu0 %2844  ;;  %4072 = vmatpush1.bf16.msra.mxu1 %v7562_v60  ;;  %4185 = vmatpush1.bf16.msra.mxu0 %v7564_v47  ;;  %v3081_v47 = vld [vmem:[%s9920_s1 + $0x130] sm:$0xff] }
 0x7ce   : > { %14597 = vst [vmem:[#allocation40_spill] sm:$0xff] %v11207_v2  ;;  %v11214_v12 = vpack.c.bf16 %v11194_v26, %v11191_v41  ;;  %v8804_v44 = vpop.eup %8803  ;;  %v2875_v39 = vmul.f32 0.00390625, %v2845_v45  ;;  %v11218_v9 = vpack.c.bf16 %v11197_v59, %v11207_v2  ;;  %4073 = vmatprep.subr.bf16.mxu1 %v7571_v29  ;;  %4186 = vmatprep.subr.bf16.mxu0 %v7573_v4 }
 0x7cf   : > { %v7579_v19 = vcombine.high %v11188_v58, %v11200_v32  ;;  %v7581_v25 = vcombine.high %v11203_v28, %v3074_v23  ;;  %v2925_v62 = vmul.f32 %v8804_v44, %v10959_v7  ;;  %v2926_v48 = vmul.f32 %v8804_v44, %v10962_v51  ;;  %v2848_v60 = vpop.xlane.xlu1 %2847 }
 0x7d0   : > { %3885 = vmatprep.mubr.bf16.mxu1 %v11214_v12  ;;  %3998 = vmatprep.mubr.bf16.mxu0 %v11214_v12  ;;  %v2964_v6 = vmul.f32 %v11122_v40, %v2924_v61  ;;  %v2891_v42 = vadd.f32 1e-12, %v2875_v39  ;;  %v2876_v29 = vmul.f32 0.00390625, %v2848_v60  ;;  %v7578_v7 = vcombine.low %v11188_v58, %v11200_v32  ;;  %v11244_v32 = vld [vmem:[%s9920_s1 + $0x150] sm:$0xff]  ;;  %v3090_v39 = vld [vmem:[%s9920_s1 + $0x178] sm:$0xff] }
 0x7d1   : > { %3886 = vmatmul.mubr.bf16.gmra.mrb[36].mxu1 %v11218_v9  ;;  %3999 = vmatmul.mubr.bf16.gmra.mrb[164].mxu0 %v11218_v9  ;;  %v2963_v51 = vmul.f32 %v11119_v24, %v2923_v31  ;;  %v7580_v4 = vcombine.low %v11203_v28, %v3074_v23  ;;  %v2966_v0 = vmul.f32 %v11122_v40, %v2926_v48  ;;  %v11256_v23 = vld [vmem:[%s9920_s1 + $0x170] sm:$0xff]  ;;  %v11259_v31 = vld [vmem:[%s9920_s1 + $0x158] sm:$0xff] }
 0x7d2   : > { %4074 = vmatpush1.bf16.msra.mxu1 %v7570_v17  ;;  %4187 = vmatpush1.bf16.msra.mxu0 %v7572_v52  ;;  %v2965_v61 = vmul.f32 %v11119_v24, %v2925_v62  ;;  %8809 = vrsqrt.f32 %v2891_v42  ;;  %v2892_v45 = vadd.f32 1e-12, %v2876_v29  ;;  %v7587_v44 = vcombine.high %v11224_v1, %v3081_v47 }
 0x7d3   : > { %4075 = vmatprep.subr.bf16.mxu1 %v7579_v19  ;;  %4188 = vmatprep.subr.bf16.mxu0 %v7581_v25  ;;  %v7589_v58 = vcombine.high %v3078_v15, %v3082_v53  ;;  %v11247_v17 = vadd.f32 %v11130_v35, %v2964_v6  ;;  %v11250_v52 = vadd.f32 %v11130_v35, %v2966_v0 }
 0x7d4   : > { %v11253_v28 = vadd.f32 %v11127_v43, %v2965_v61  ;;  %v8806_v19 = vpop.eup %8805  ;;  %8811 = vrsqrt.f32 %v2892_v45  ;;  %v11263_v25 = vadd.f32 %v11127_v43, %v2963_v51  ;;  %v7586_v62 = vcombine.low %v11224_v1, %v3081_v47  ;;  %v11280_v47 = vld [vmem:[%s9920_s1 + $0x190] sm:$0xff]  ;;  %v3094_v45 = vld [vmem:[%s9920_s1 + $0x198] sm:$0xff] }
 0x7d5   : > { %14598 = vst [vmem:[#allocation41_spill] sm:$0xff] %v11247_v17  ;;  %14599 = vst [vmem:[#allocation42_spill] sm:$0xff] %v11250_v52  ;;  %v7588_v48 = vcombine.low %v3078_v15, %v3082_v53  ;;  %v2927_v60 = vmul.f32 %v8806_v19, %v10980_v46  ;;  %v2928_v6 = vmul.f32 %v8806_v19, %v10983_v37  ;;  %v2851_v42 = vpop.xlane.xlu0 %2850  ;;  %v3097_v61 = vld [vmem:[%s9920_s1 + $0x1b0] sm:$0xff] }
 0x7d6   : > { %14600 = vst [vmem:[#allocation43_spill] sm:$0xff] %v11253_v28  ;;  %14601 = vst [vmem:[#allocation44_spill] sm:$0xff] %v11263_v25  ;;  %4076 = vmatpush1.bf16.msra.mxu1 %v7578_v7  ;;  %4189 = vmatpush1.bf16.msra.mxu0 %v7580_v4  ;;  %v11270_v29 = vpack.c.bf16 %v11250_v52, %v11247_v17  ;;  %v8808_v0 = vpop.eup %8807  ;;  %v2877_v51 = vmul.f32 0.00390625, %v2851_v42  ;;  %v11274_v1 = vpack.c.bf16 %v11253_v28, %v11263_v25 }
 0x7d7   : > { %4077 = vmatprep.subr.bf16.mxu1 %v7587_v44  ;;  %4190 = vmatprep.subr.bf16.mxu0 %v7589_v58  ;;  %v7595_v46 = vcombine.high %v11244_v32, %v11256_v23  ;;  %v7597_v37 = vcombine.high %v11259_v31, %v3090_v39  ;;  %v2929_v15 = vmul.f32 %v8808_v0, %v10987_v57  ;;  %v2854_v7 = vpop.xlane.xlu1 %2853  ;;  %v3098_v44 = vld [vmem:[%s9920_s1 + $0x1b8] sm:$0xff] }
 0x7d8   : > { %v2930_v53 = vmul.f32 %v8808_v0, %v10990_v18  ;;  %3895 = vmatprep.mubr.bf16.mxu1 %v11270_v29  ;;  %4008 = vmatprep.mubr.bf16.mxu0 %v11270_v29  ;;  %v2968_v4 = vmul.f32 %v11122_v40, %v2928_v6  ;;  %v2893_v58 = vadd.f32 1e-12, %v2877_v51  ;;  %v2878_v19 = vmul.f32 0.00390625, %v2854_v7 }
 0x7d9   : > { %3896 = vmatmul.mubr.bf16.gmra.mrb[40].mxu1 %v11274_v1  ;;  %4009 = vmatmul.mubr.bf16.gmra.mrb[168].mxu0 %v11274_v1  ;;  %v7594_v57 = vcombine.low %v11244_v32, %v11256_v23  ;;  %v2967_v18 = vmul.f32 %v11119_v24, %v2927_v60  ;;  %v7596_v6 = vcombine.low %v11259_v31, %v3090_v39  ;;  %v11300_v23 = vld [vmem:[%s9920_s1 + $0x1d0] sm:$0xff]  ;;  %v11315_v60 = vld [vmem:[%s9920_s1 + $0x1d8] sm:$0xff] }
 0x7da   : > { %4078 = vmatpush1.bf16.msra.mxu1 %v7586_v62  ;;  %4191 = vmatpush1.bf16.msra.mxu0 %v7588_v48  ;;  %v2970_v42 = vmul.f32 %v11122_v40, %v2930_v53  ;;  %v2969_v0 = vmul.f32 %v11119_v24, %v2929_v15  ;;  %8813 = vrsqrt.f32 %v2893_v58  ;;  %v2894_v51 = vadd.f32 1e-12, %v2878_v19  ;;  %v11312_v39 = vld [vmem:[%s9920_s1 + $0x1f0] sm:$0xff] }
 0x7db   : > { %4079 = vmatprep.subr.bf16.mxu1 %v7595_v46  ;;  %4192 = vmatprep.subr.bf16.mxu0 %v7597_v37  ;;  %v7603_v7 = vcombine.high %v11280_v47, %v3097_v61  ;;  %v7605_v32 = vcombine.high %v3094_v45, %v3098_v44  ;;  %v11303_v62 = vadd.f32 %v11130_v35, %v2968_v4  ;;  %v3106_v46 = vld [vmem:[%s9920_s1 + $0x1f8] sm:$0xff] }
 0x7dc   : > { %v11306_v48 = vadd.f32 %v11130_v35, %v2970_v42  ;;  %v11309_v31 = vadd.f32 %v11127_v43, %v2969_v0  ;;  %v8810_v37 = vpop.eup %8809  ;;  %8815 = vrsqrt.f32 %v2894_v51  ;;  %v11319_v15 = vadd.f32 %v11127_v43, %v2967_v18 }
 0x7dd   : > { %14602 = vst [vmem:[#allocation45_spill] sm:$0xff] %v11303_v62  ;;  %v7602_v53 = vcombine.low %v11280_v47, %v3097_v61  ;;  %v7604_v4 = vcombine.low %v3094_v45, %v3098_v44  ;;  %v2931_v58 = vmul.f32 %v8810_v37, %v11008_v34  ;;  %v2932_v19 = vmul.f32 %v8810_v37, %v11011_v10  ;;  %v2857_v42 = vpop.xlane.xlu0 %2856  ;;  %v11336_v61 = vld [vmem:[%s9920_s1 + $0x210] sm:$0xff]  ;;  %v3114_v37 = vld [vmem:[%s9920_s1 + $0x238] sm:$0xff] }
 0x7de   : > { %14603 = vst [vmem:[#allocation46_spill] sm:$0xff] %v11306_v48  ;;  %14604 = vst [vmem:[#allocation47_spill] sm:$0xff] %v11309_v31  ;;  %4080 = vmatpush1.bf16.msra.mxu1 %v7594_v57  ;;  %4193 = vmatpush1.bf16.msra.mxu0 %v7596_v6  ;;  %v11326_v0 = vpack.c.bf16 %v11306_v48, %v11303_v62  ;;  %v8812_v51 = vpop.eup %8811  ;;  %v2879_v18 = vmul.f32 0.00390625, %v2857_v42  ;;  %v11330_v47 = vpack.c.bf16 %v11309_v31, %v11319_v15 }
 0x7df   : > { %14605 = vst [vmem:[#allocation48_spill] sm:$0xff] %v11319_v15  ;;  %4081 = vmatprep.subr.bf16.mxu1 %v7603_v7  ;;  %4194 = vmatprep.subr.bf16.mxu0 %v7605_v32  ;;  %v7611_v34 = vcombine.high %v11300_v23, %v11312_v39  ;;  %v7613_v10 = vcombine.high %v11315_v60, %v3106_v46  ;;  %v2860_v57 = vpop.xlane.xlu1 %2859  ;;  %v3113_v7 = vld [vmem:[%s9920_s1 + $0x230] sm:$0xff]  ;;  %v3110_v32 = vld [vmem:[%s9920_s1 + $0x218] sm:$0xff] }
 0x7e0   : > { %v2933_v45 = vmul.f32 %v8812_v51, %v11015_v3  ;;  %v2934_v44 = vmul.f32 %v8812_v51, %v11018_v13  ;;  %3905 = vmatprep.mubr.bf16.mxu1 %v11326_v0  ;;  %4018 = vmatprep.mubr.bf16.mxu0 %v11326_v0  ;;  %v2972_v6 = vmul.f32 %v11122_v40, %v2932_v19  ;;  %v2895_v42 = vadd.f32 1e-12, %v2879_v18 }
 0x7e1   : > { %v2880_v48 = vmul.f32 0.00390625, %v2860_v57  ;;  %3906 = vmatmul.mubr.bf16.gmra.mrb[44].mxu1 %v11330_v47  ;;  %4019 = vmatmul.mubr.bf16.gmra.mrb[172].mxu0 %v11330_v47  ;;  %v7610_v3 = vcombine.low %v11300_v23, %v11312_v39  ;;  %v2971_v13 = vmul.f32 %v11119_v24, %v2931_v58  ;;  %v7612_v19 = vcombine.low %v11315_v60, %v3106_v46  ;;  %v11356_v39 = vld [vmem:[%s9920_s1 + $0x250] sm:$0xff]  ;;  %v3118_v58 = vld [vmem:[%s9920_s1 + $0x258] sm:$0xff] }
 0x7e2   : > { %4082 = vmatpush1.bf16.msra.mxu1 %v7602_v53  ;;  %4195 = vmatpush1.bf16.msra.mxu0 %v7604_v4  ;;  %v2974_v51 = vmul.f32 %v11122_v40, %v2934_v44  ;;  %v2973_v18 = vmul.f32 %v11119_v24, %v2933_v45  ;;  %8817 = vrsqrt.f32 %v2895_v42  ;;  %v7619_v31 = vcombine.high %v11336_v61, %v3113_v7  ;;  %v3121_v46 = vld [vmem:[%s9920_s1 + $0x270] sm:$0xff]  ;;  %v3122_v45 = vld [vmem:[%s9920_s1 + $0x278] sm:$0xff] }
 0x7e3   : > { %v2896_v57 = vadd.f32 1e-12, %v2880_v48  ;;  %4083 = vmatprep.subr.bf16.mxu1 %v7611_v34  ;;  %4196 = vmatprep.subr.bf16.mxu0 %v7613_v10  ;;  %v7621_v23 = vcombine.high %v3110_v32, %v3114_v37  ;;  %v11359_v53 = vadd.f32 %v11130_v35, %v2972_v6  ;;  %v11371_v34 = vadd.f32 %v11127_v43, %v2971_v13 }
 0x7e4   : > { %v11362_v4 = vadd.f32 %v11130_v35, %v2974_v51  ;;  %v11365_v60 = vadd.f32 %v11127_v43, %v2973_v18  ;;  %v8814_v48 = vpop.eup %8813  ;;  %v7618_v10 = vcombine.low %v11336_v61, %v3113_v7  ;;  %v7620_v44 = vcombine.low %v3110_v32, %v3114_v37  ;;  %v11386_v7 = vld [vmem:[%s9920_s1 + $0x290] sm:$0xff] }
 0x7e5   : > { %14606 = vst [vmem:[#allocation49_spill] sm:$0xff] %v11359_v53  ;;  %8819 = vrsqrt.f32 %v2896_v57  ;;  %14609 = vst [vmem:[#allocation52_spill] sm:$0xff] %v11371_v34  ;;  %v2935_v6 = vmul.f32 %v8814_v48, %v11036_v16  ;;  %v2936_v42 = vmul.f32 %v8814_v48, %v11039_v63  ;;  %v2863_v51 = vpop.xlane.xlu0 %2862  ;;  %v7627_v16 = vcombine.high %v11356_v39, %v3121_v46  ;;  %v3129_v48 = vld [vmem:[%s9920_s1 + $0x2b0] sm:$0xff] }
 0x7e6   : > { %14607 = vst [vmem:[#allocation50_spill] sm:$0xff] %v11362_v4  ;;  %14608 = vst [vmem:[#allocation51_spill] sm:$0xff] %v11365_v60  ;;  %4084 = vmatpush1.bf16.msra.mxu1 %v7610_v3  ;;  %4197 = vmatpush1.bf16.msra.mxu0 %v7612_v19  ;;  %v11378_v18 = vpack.c.bf16 %v11362_v4, %v11359_v53  ;;  %v8816_v57 = vpop.eup %8815  ;;  %v2881_v13 = vmul.f32 0.00390625, %v2863_v51  ;;  %v11382_v61 = vpack.c.bf16 %v11365_v60, %v11371_v34  ;;  %v3126_v51 = vld [vmem:[%s9920_s1 + $0x298] sm:$0xff] }
 0x7e7   : > { %4085 = vmatprep.subr.bf16.mxu1 %v7619_v31  ;;  %4198 = vmatprep.subr.bf16.mxu0 %v7621_v23  ;;  %v7629_v63 = vcombine.high %v3118_v58, %v3122_v45  ;;  %v2937_v32 = vmul.f32 %v8816_v57, %v11043_v50  ;;  %v2938_v37 = vmul.f32 %v8816_v57, %v11046_v14  ;;  %v2866_v3 = vpop.xlane.xlu1 %2865  ;;  %v3130_v31 = vld [vmem:[%s9920_s1 + $0x2b8] sm:$0xff] }
 0x7e8   : > { %3915 = vmatprep.mubr.bf16.mxu1 %v11378_v18  ;;  %4028 = vmatprep.mubr.bf16.mxu0 %v11378_v18  ;;  %v2976_v19 = vmul.f32 %v11122_v40, %v2936_v42  ;;  %v2897_v23 = vadd.f32 1e-12, %v2881_v13  ;;  %v2882_v4 = vmul.f32 0.00390625, %v2866_v3  ;;  %v7626_v50 = vcombine.low %v11356_v39, %v3121_v46  ;;  %v3133_v39 = vld [vmem:[%s9920_s1 + $0x2d0] sm:$0xff] }
 0x7e9   : > { %3916 = vmatmul.mubr.bf16.gmra.mrb[48].mxu1 %v11382_v61  ;;  %4029 = vmatmul.mubr.bf16.gmra.mrb[176].mxu0 %v11382_v61  ;;  %v2975_v14 = vmul.f32 %v11119_v24, %v2935_v6  ;;  %v7628_v42 = vcombine.low %v3118_v58, %v3122_v45  ;;  %v2978_v57 = vmul.f32 %v11122_v40, %v2938_v37  ;;  %v3137_v45 = vld [vmem:[%s9920_s1 + $0x2f0] sm:$0xff]  ;;  %v3138_v6 = vld [vmem:[%s9920_s1 + $0x2f8] sm:$0xff] }
 0x7ea   : > { %4086 = vmatpush1.bf16.msra.mxu1 %v7618_v10  ;;  %4199 = vmatpush1.bf16.msra.mxu0 %v7620_v44  ;;  %v2977_v13 = vmul.f32 %v11119_v24, %v2937_v32  ;;  %8821 = vrsqrt.f32 %v2897_v23  ;;  %v2898_v3 = vadd.f32 1e-12, %v2882_v4  ;;  %v7635_v60 = vcombine.high %v11386_v7, %v3129_v48  ;;  %v3134_v44 = vld [vmem:[%s9920_s1 + $0x2d8] sm:$0xff] }
 0x7eb   : > { %4087 = vmatprep.subr.bf16.mxu1 %v7627_v16  ;;  %4200 = vmatprep.subr.bf16.mxu0 %v7629_v63  ;;  %v7637_v53 = vcombine.high %v3126_v51, %v3130_v31  ;;  %v11405_v46 = vadd.f32 %v11130_v35, %v2976_v19  ;;  %v11408_v10 = vadd.f32 %v11130_v35, %v2978_v57 }
 0x7ec   : > { %v11411_v58 = vadd.f32 %v11127_v43, %v2977_v13  ;;  %v8818_v32 = vpop.eup %8817  ;;  %8823 = vrsqrt.f32 %v2898_v3  ;;  %v11417_v4 = vadd.f32 %v11127_v43, %v2975_v14  ;;  %v7634_v16 = vcombine.low %v11386_v7, %v3129_v48  ;;  %v3141_v48 = vld [vmem:[%s9920_s1 + $0x310] sm:$0xff]  ;;  %v3146_v13 = vld [vmem:[%s9920_s1 + $0x338] sm:$0xff] }
 0x7ed   : > { %14610 = vst [vmem:[#allocation53_spill] sm:$0xff] %v11405_v46  ;;  %14611 = vst [vmem:[#allocation54_spill] sm:$0xff] %v11408_v10  ;;  %v7636_v63 = vcombine.low %v3126_v51, %v3130_v31  ;;  %v2939_v37 = vmul.f32 %v8818_v32, %v11077_v20  ;;  %v2940_v19 = vmul.f32 %v8818_v32, %v11080_v11 }
 0x7ee   : > { %14612 = vst [vmem:[#allocation55_spill] sm:$0xff] %v11411_v58  ;;  %14613 = vst [vmem:[#allocation56_spill] sm:$0xff] %v11417_v4  ;;  %4088 = vmatpush1.bf16.msra.mxu1 %v7626_v50  ;;  %4201 = vmatpush1.bf16.msra.mxu0 %v7628_v42  ;;  %v11424_v23 = vpack.c.bf16 %v11408_v10, %v11405_v46  ;;  %v11428_v14 = vpack.c.bf16 %v11411_v58, %v11417_v4  ;;  %v3145_v50 = vld [vmem:[%s9920_s1 + $0x330] sm:$0xff]  ;;  %v3142_v42 = vld [vmem:[%s9920_s1 + $0x318] sm:$0xff] }
 0x7ef   : > { %v8820_v57 = vpop.eup %8819  ;;  %4089 = vmatprep.subr.bf16.mxu1 %v7635_v60  ;;  %4202 = vmatprep.subr.bf16.mxu0 %v7637_v53  ;;  %v7643_v7 = vcombine.high %v3133_v39, %v3137_v45  ;;  %v7645_v20 = vcombine.high %v3134_v44, %v3138_v6  ;;  %v2980_v31 = vmul.f32 %v11122_v40, %v2940_v19 }
 0x7f0   : > { %v2941_v11 = vmul.f32 %v8820_v57, %v11083_v38  ;;  %v2942_v51 = vmul.f32 %v8820_v57, %v11086_v55  ;;  %3925 = vmatprep.mubr.bf16.mxu1 %v11424_v23  ;;  %4038 = vmatprep.mubr.bf16.mxu0 %v11424_v23  ;;  %v7642_v53 = vcombine.low %v3133_v39, %v3137_v45  ;;  %v3149_v57 = vld [vmem:[%s9920_s1 + $0x350] sm:$0xff] }
 0x7f1   : > { %3926 = vmatmul.mubr.bf16.gmra.mrb[52].mxu1 %v11428_v14  ;;  %4039 = vmatmul.mubr.bf16.gmra.mrb[180].mxu0 %v11428_v14  ;;  %v2979_v38 = vmul.f32 %v11119_v24, %v2939_v37  ;;  %v7644_v55 = vcombine.low %v3134_v44, %v3138_v6  ;;  %v7651_v32 = vcombine.high %v3141_v48, %v3145_v50  ;;  %v3150_v44 = vld [vmem:[%s9920_s1 + $0x358] sm:$0xff] }
 0x7f2   : > { %4090 = vmatpush1.bf16.msra.mxu1 %v7634_v16  ;;  %4203 = vmatpush1.bf16.msra.mxu0 %v7636_v63  ;;  %v2982_v60 = vmul.f32 %v11122_v40, %v2942_v51  ;;  %v2981_v3 = vmul.f32 %v11119_v24, %v2941_v11  ;;  %v7653_v19 = vcombine.high %v3142_v42, %v3146_v13  ;;  %v3153_v16 = vld [vmem:[%s9920_s1 + $0x370] sm:$0xff]  ;;  %v3154_v6 = vld [vmem:[%s9920_s1 + $0x378] sm:$0xff] }
 0x7f3   : > { %4091 = vmatprep.subr.bf16.mxu1 %v7643_v7  ;;  %4204 = vmatprep.subr.bf16.mxu0 %v7645_v20  ;;  %v11446_v10 = vadd.f32 %v11130_v35, %v2980_v31  ;;  %v11458_v37 = vadd.f32 %v11127_v43, %v2979_v38  ;;  %v7650_v7 = vcombine.low %v3141_v48, %v3145_v50  ;;  %v3157_v50 = vld [vmem:[%s9920_s1 + $0x390] sm:$0xff] }
 0x7f4   : > { %v11449_v39 = vadd.f32 %v11130_v35, %v2982_v60  ;;  %v11452_v45 = vadd.f32 %v11127_v43, %v2981_v3  ;;  %v8822_v63 = vpop.eup %8821  ;;  %v7652_v20 = vcombine.low %v3142_v42, %v3146_v13  ;;  %v7659_v48 = vcombine.high %v3149_v57, %v3153_v16  ;;  %v3162_v3 = vld [vmem:[%s9920_s1 + $0x3b8] sm:$0xff] }
 0x7f5   : > { %14614 = vst [vmem:[#allocation57_spill] sm:$0xff] %v11446_v10  ;;  %14617 = vst [vmem:[#allocation60_spill] sm:$0xff] %v11458_v37  ;;  %v2943_v11 = vmul.f32 %v8822_v63, %v11097_v22  ;;  %v2944_v51 = vmul.f32 %v8822_v63, %v11100_v49  ;;  %v7661_v22 = vcombine.high %v3150_v44, %v3154_v6 }
 0x7f6   : > { %14615 = vst [vmem:[#allocation58_spill] sm:$0xff] %v11449_v39  ;;  %14616 = vst [vmem:[#allocation59_spill] sm:$0xff] %v11452_v45  ;;  %4092 = vmatpush1.bf16.msra.mxu1 %v7642_v53  ;;  %4205 = vmatpush1.bf16.msra.mxu0 %v7644_v55  ;;  %v11464_v31 = vpack.c.bf16 %v11449_v39, %v11446_v10  ;;  %v8824_v60 = vpop.eup %8823  ;;  %v11468_v38 = vpack.c.bf16 %v11452_v45, %v11458_v37  ;;  %v3161_v53 = vld [vmem:[%s9920_s1 + $0x3b0] sm:$0xff]  ;;  %v3158_v55 = vld [vmem:[%s9920_s1 + $0x398] sm:$0xff] }
 0x7f7   : > { %4093 = vmatprep.subr.bf16.mxu1 %v7651_v32  ;;  %4206 = vmatprep.subr.bf16.mxu0 %v7653_v19  ;;  %v2945_v49 = vmul.f32 %v8824_v60, %v11103_v30  ;;  %v2946_v42 = vmul.f32 %v8824_v60, %v11106_v36  ;;  %v2984_v13 = vmul.f32 %v11122_v40, %v2944_v51 }
 0x7f8   : > { %3935 = vmatprep.mubr.bf16.mxu1 %v11464_v31  ;;  %4048 = vmatprep.mubr.bf16.mxu0 %v11464_v31  ;;  %v7658_v32 = vcombine.low %v3149_v57, %v3153_v16  ;;  %v2983_v30 = vmul.f32 %v11119_v24, %v2943_v11  ;;  %v7660_v36 = vcombine.low %v3150_v44, %v3154_v6  ;;  %v3165_v44 = vld [vmem:[%s9920_s1 + $0x3d0] sm:$0xff]  ;;  %v3166_v6 = vld [vmem:[%s9920_s1 + $0x3d8] sm:$0xff] }
 0x7f9   : > { %3936 = vmatmul.mubr.bf16.gmra.mrb[56].mxu1 %v11468_v38  ;;  %4049 = vmatmul.mubr.bf16.gmra.mrb[184].mxu0 %v11468_v38  ;;  %v2986_v19 = vmul.f32 %v11122_v40, %v2946_v42  ;;  %v2985_v63 = vmul.f32 %v11119_v24, %v2945_v49  ;;  %v7667_v51 = vcombine.high %v3157_v50, %v3161_v53  ;;  %v3169_v40 = vld [vmem:[%s9920_s1 + $0x3f0] sm:$0xff]  ;;  %v3170_v24 = vld [vmem:[%s9920_s1 + $0x3f8] sm:$0xff]  ;;  %v8475_v42 = vld [vmem:[%s9926_s14 + $0x4] ss:$8 sps:$4 sm:$0xff]  }
 0x7fa   : > { %4094 = vmatpush1.bf16.msra.mxu1 %v7650_v7  ;;  %4207 = vmatpush1.bf16.msra.mxu0 %v7652_v20  ;;  %v7669_v60 = vcombine.high %v3158_v55, %v3162_v3  ;;  %v11485_v39 = vadd.f32 %v11130_v35, %v2984_v13  ;;  %v11491_v16 = vadd.f32 %v11127_v43, %v2983_v30  ;;  %v8473_v13 = vld [vmem:[%s9926_s14] ss:$8 sps:$4 sm:$0xff]  }
 0x7fb   : > { %4095 = vmatprep.subr.bf16.mxu1 %v7659_v48  ;;  %4208 = vmatprep.subr.bf16.mxu0 %v7661_v22  ;;  %v11488_v57 = vadd.f32 %v11130_v35, %v2986_v19  ;;  %v11494_v7 = vadd.f32 %v11127_v43, %v2985_v63  ;;  %v7666_v11 = vcombine.low %v3157_v50, %v3161_v53  ;;  %v8478_v53 = vld [vmem:[%s9926_s14 + $0x14] ss:$8 sps:$4 sm:$0xff]   ;;  %v8485_v30 = vld [vmem:[%s9926_s14 + $0x40] ss:$8 sps:$4 sm:$0xff]  }
 0x7fc   : > { %14618 = vst [vmem:[#allocation61_spill] sm:$0xff] %v11485_v39  ;;  %14620 = vst [vmem:[#allocation63_spill] sm:$0xff] %v11491_v16  ;;  %v7668_v48 = vcombine.low %v3158_v55, %v3162_v3  ;;  %v7675_v43 = vcombine.high %v3165_v44, %v3169_v40  ;;  %v7677_v22 = vcombine.high %v3166_v6, %v3170_v24  ;;  %v8481_v55 = vld [vmem:[%s9926_s14 + $0x24] ss:$8 sps:$4 sm:$0xff]   ;;  %v8479_v3 = vld [vmem:[%s9926_s14 + $0x20] ss:$8 sps:$4 sm:$0xff]  }
 0x7fd   : > { %14619 = vst [vmem:[#allocation62_spill] sm:$0xff] %v11488_v57  ;;  %14621 = vst [vmem:[#allocation64_spill] sm:$0xff] %v11494_v7  ;;  %v11502_v20 = vpack.c.bf16 %v11488_v57, %v11485_v39  ;;  %v11506_v35 = vpack.c.bf16 %v11494_v7, %v11491_v16  ;;  %v7674_v50 = vcombine.low %v3165_v44, %v3169_v40  ;;  %v8491_v19 = vld [vmem:[%s9926_s14 + $0x60] ss:$8 sps:$4 sm:$0xff]   ;;  %v8496_v63 = vld [vmem:[%s9926_s14 + $0x74] ss:$8 sps:$4 sm:$0xff]  }
 0x7fe   : > { %4096 = vmatpush1.bf16.msra.mxu1 %v7658_v32  ;;  %4209 = vmatpush1.bf16.msra.mxu0 %v7660_v36  ;;  %v7676_v49 = vcombine.low %v3166_v6, %v3170_v24  ;;  %v8484_v32 = vld [vmem:[%s9926_s14 + $0x34] ss:$8 sps:$4 sm:$0xff]   ;;  %v8503_v44 = vld [vmem:[%s9926_s14 + $0xa0] ss:$8 sps:$4 sm:$0xff]  }
 0x7ff   : > { %4097 = vmatprep.subr.bf16.mxu1 %v7667_v51  ;;  %4210 = vmatprep.subr.bf16.mxu0 %v7669_v60  ;;  %v8490_v36 = vld [vmem:[%s9926_s14 + $0x54] ss:$8 sps:$4 sm:$0xff]   ;;  %v8497_v51 = vld [vmem:[%s9926_s14 + $0x80] ss:$8 sps:$4 sm:$0xff]  }
 0x800   : > { %3945 = vmatprep.mubr.bf16.mxu1 %v11502_v20  ;;  %4058 = vmatprep.mubr.bf16.mxu0 %v11502_v20  ;;  %v8502_v60 = vld [vmem:[%s9926_s14 + $0x94] ss:$8 sps:$4 sm:$0xff]   ;;  %v8509_v6 = vld [vmem:[%s9926_s14 + $0xc0] ss:$8 sps:$4 sm:$0xff]  }
 0x801   : > { %3946 = vmatmul.mubr.bf16.gmra.mrb[60].mxu1 %v11506_v35  ;;  %4059 = vmatmul.mubr.bf16.gmra.mrb[188].mxu0 %v11506_v35  ;;  %v8508_v40 = vld [vmem:[%s9926_s14 + $0xb4] ss:$8 sps:$4 sm:$0xff]  }
 0x802   : > { %4098 = vmatpush1.bf16.msra.mxu1 %v7666_v11  ;;  %4101 = vmatprep.mubr.bf16.mxu1 %v11158_v54  ;;  %v8514_v24 = vld [vmem:[%s9926_s14 + $0xd4] ss:$8 sps:$4 sm:$0xff]   ;;  %v8515_v11 = vld [vmem:[%s9926_s14 + $0xe0] ss:$8 sps:$4 sm:$0xff]  }
 0x803   : > { %4211 = vmatpush1.bf16.msra.mxu0 %v7668_v48  ;;  %4214 = vmatprep.mubr.bf16.mxu0 %v11158_v54  ;;  %v8476_v54 = vld [vmem:[%s9926_s14 + $0x10] ss:$8 sps:$4 sm:$0xff]   ;;  %v8520_v48 = vld [vmem:[%s9926_s14 + $0xf4] ss:$8 sps:$4 sm:$0xff]  }
 0x804   : > { %4099 = vmatprep.subr.bf16.mxu1 %v7675_v43  ;;  %4212 = vmatprep.subr.bf16.mxu0 %v7677_v22  ;;  %v3173_v43 = vsub.s32 2, %v10153_v8  ;;  %v9147_v22 = vld [vmem:[%s9928_s12] sm:$0xff] }
 0x806   : > { %4100 = vmatpush1.bf16.msra.mxu1 %v7674_v50  ;;  %v11579_v50 = vrot.slane %v9147_v22, %v3173_v43 }
 0x807   : > { %4213 = vmatpush1.bf16.msra.mxu0 %v7676_v49  ;;  %6287 = vmatprep.subr.bf16.mxu1 %v8475_v42  ;;  %v9148_v49 = vld [vmem:[%s9928_s12 + $0x10] sm:$0xff] }
 0x808   : > { %v11582_v42 = vrot.slane %v9148_v49, %v3173_v43 }
 0x809   : > { %4102 = vmatmul.mubr.bf16.vlgmr.msra.gmra.mrb[64].mxu1 %v11162_v56 }
 0x80a   : > { %4215 = vmatmul.mubr.bf16.vlgmr.msra.gmra.mrb[192].mxu0 %v11162_v56  ;;  %4111 = vmatprep.mubr.bf16.mxu1 %v11214_v12  ;;  %v8482_v56 = vld [vmem:[%s9926_s14 + $0x30] ss:$8 sps:$4 sm:$0xff]  }
 0x80b   : > { %4224 = vmatprep.mubr.bf16.mxu0 %v11214_v12  ;;  %6288 = vmatpush1.bf16.msra.mxu1 %v8473_v13  ;;  %v8487_v12 = vld [vmem:[%s9926_s14 + $0x44] ss:$8 sps:$4 sm:$0xff]  }
 0x80c   : > { %6289 = vmatprep.subr.bf16.mxu1 %v8478_v53  ;;  %v9149_v13 = vld [vmem:[%s9928_s12 + $0x8] sm:$0xff] }
 0x80d   : > { %v11585_v53 = vrot.slane %v9149_v13, %v3173_v43 }
 0x80f   : > { %6290 = vmatpush1.bf16.msra.mxu1 %v8476_v54  ;;  %v9150_v54 = vld [vmem:[%s9928_s12 + $0x18] sm:$0xff] }
 0x810   : > { %6291 = vmatprep.subr.bf16.mxu1 %v8481_v55  ;;  %v11588_v55 = vrot.slane %v9150_v54, %v3173_v43 }
 0x811   : > { %4112 = vmatmul.mubr.bf16.gmra.mrb[68].mxu1 %v11218_v9 }
 0x812   : > { %4225 = vmatmul.mubr.bf16.gmra.mrb[196].mxu0 %v11218_v9  ;;  %4121 = vmatprep.mubr.bf16.mxu1 %v11270_v29  ;;  %v8488_v9 = vld [vmem:[%s9926_s14 + $0x50] ss:$8 sps:$4 sm:$0xff]  }
 0x813   : > { %4234 = vmatprep.mubr.bf16.mxu0 %v11270_v29  ;;  %6292 = vmatpush1.bf16.msra.mxu1 %v8479_v3  ;;  %v8493_v29 = vld [vmem:[%s9926_s14 + $0x64] ss:$8 sps:$4 sm:$0xff]  }
 0x814   : > { %6293 = vmatprep.subr.bf16.mxu1 %v8484_v32 }
 0x817   : > { %6294 = vmatpush1.bf16.msra.mxu1 %v8482_v56 }
 0x818   : > { %6295 = vmatprep.subr.bf16.mxu1 %v8487_v12 }
 0x819   : > { %4122 = vmatmul.mubr.bf16.gmra.mrb[72].mxu1 %v11274_v1 }
 0x81a   : > { %4235 = vmatmul.mubr.bf16.gmra.mrb[200].mxu0 %v11274_v1  ;;  %4131 = vmatprep.mubr.bf16.mxu1 %v11326_v0  ;;  %v8494_v1 = vld [vmem:[%s9926_s14 + $0x70] ss:$8 sps:$4 sm:$0xff]  }
 0x81b   : > { %4244 = vmatprep.mubr.bf16.mxu0 %v11326_v0  ;;  %6296 = vmatpush1.bf16.msra.mxu1 %v8485_v30  ;;  %v8499_v0 = vld [vmem:[%s9926_s14 + $0x84] ss:$8 sps:$4 sm:$0xff]  }
 0x81c   : > { %6297 = vmatprep.subr.bf16.mxu1 %v8490_v36 }
 0x81f   : > { %6298 = vmatpush1.bf16.msra.mxu1 %v8488_v9 }
 0x820   : > { %6299 = vmatprep.subr.bf16.mxu1 %v8493_v29 }
 0x821   : > { %4132 = vmatmul.mubr.bf16.gmra.mrb[76].mxu1 %v11330_v47 }
 0x822   : > { %4245 = vmatmul.mubr.bf16.gmra.mrb[204].mxu0 %v11330_v47  ;;  %4141 = vmatprep.mubr.bf16.mxu1 %v11378_v18  ;;  %v8500_v47 = vld [vmem:[%s9926_s14 + $0x90] ss:$8 sps:$4 sm:$0xff]  }
 0x823   : > { %4254 = vmatprep.mubr.bf16.mxu0 %v11378_v18  ;;  %6300 = vmatpush1.bf16.msra.mxu1 %v8491_v19  ;;  %v8505_v18 = vld [vmem:[%s9926_s14 + $0xa4] ss:$8 sps:$4 sm:$0xff]  }
 0x824   : > { %6301 = vmatprep.subr.bf16.mxu1 %v8496_v63 }
 0x827   : > { %6302 = vmatpush1.bf16.msra.mxu1 %v8494_v1 }
 0x828   : > { %6303 = vmatprep.subr.bf16.mxu1 %v8499_v0 }
 0x829   : > { %4142 = vmatmul.mubr.bf16.gmra.mrb[80].mxu1 %v11382_v61 }
 0x82a   : > { %4255 = vmatmul.mubr.bf16.gmra.mrb[208].mxu0 %v11382_v61  ;;  %4151 = vmatprep.mubr.bf16.mxu1 %v11424_v23  ;;  %v8506_v61 = vld [vmem:[%s9926_s14 + $0xb0] ss:$8 sps:$4 sm:$0xff]  }
 0x82b   : > { %4264 = vmatprep.mubr.bf16.mxu0 %v11424_v23  ;;  %6304 = vmatpush1.bf16.msra.mxu1 %v8497_v51  ;;  %v8511_v23 = vld [vmem:[%s9926_s14 + $0xc4] ss:$8 sps:$4 sm:$0xff]  }
 0x82c   : > { %6305 = vmatprep.subr.bf16.mxu1 %v8502_v60 }
 0x82f   : > { %6306 = vmatpush1.bf16.msra.mxu1 %v8500_v47 }
 0x830   : > { %6307 = vmatprep.subr.bf16.mxu1 %v8505_v18 }
 0x831   : > { %4152 = vmatmul.mubr.bf16.gmra.mrb[84].mxu1 %v11428_v14 }
 0x832   : > { %4265 = vmatmul.mubr.bf16.gmra.mrb[212].mxu0 %v11428_v14  ;;  %4161 = vmatprep.mubr.bf16.mxu1 %v11464_v31  ;;  %v8512_v14 = vld [vmem:[%s9926_s14 + $0xd0] ss:$8 sps:$4 sm:$0xff]  }
 0x833   : > { %4274 = vmatprep.mubr.bf16.mxu0 %v11464_v31  ;;  %6308 = vmatpush1.bf16.msra.mxu1 %v8503_v44  ;;  %v8517_v31 = vld [vmem:[%s9926_s14 + $0xe4] ss:$8 sps:$4 sm:$0xff]  }
 0x834   : > { %6309 = vmatprep.subr.bf16.mxu1 %v8508_v40 }
 0x837   : > { %6310 = vmatpush1.bf16.msra.mxu1 %v8506_v61 }
 0x838   : > { %6311 = vmatprep.subr.bf16.mxu1 %v8511_v23 }
 0x839   : > { %4162 = vmatmul.mubr.bf16.gmra.mrb[88].mxu1 %v11468_v38 }
 0x83a   : > { %4275 = vmatmul.mubr.bf16.gmra.mrb[216].mxu0 %v11468_v38  ;;  %4171 = vmatprep.mubr.bf16.mxu1 %v11502_v20  ;;  %v8518_v38 = vld [vmem:[%s9926_s14 + $0xf0] ss:$8 sps:$4 sm:$0xff]  }
 0x83b   : > { %4284 = vmatprep.mubr.bf16.mxu0 %v11502_v20  ;;  %6312 = vmatpush1.bf16.msra.mxu1 %v8509_v6  ;;  %v8523_v20 = vld [vmem:[%s9926_s14 + $0x104] ss:$8 sps:$4 sm:$0xff]  }
 0x83c   : > { %6313 = vmatprep.subr.bf16.mxu1 %v8514_v24  ;;  %v641_v24 = vld [vmem:[%s9928_s12 + $0x30] sm:$0xff] }
 0x83f   : > { %6314 = vmatpush1.bf16.msra.mxu1 %v8512_v14  ;;  %v642_v14 = vld [vmem:[%s9928_s12 + $0x38] sm:$0xff] }
 0x840   : > { %6315 = vmatprep.subr.bf16.mxu1 %v8517_v31 }
 0x841   : > { %4172 = vmatmul.mubr.bf16.gmra.mrb[92].mxu1 %v11506_v35 }
 0x842   : > { %4285 = vmatmul.mubr.bf16.gmra.mrb[220].mxu0 %v11506_v35 }
 0x843   : > { %6316 = vmatpush1.bf16.msra.mxu1 %v8515_v11 }
 0x844   : > { %6317 = vmatprep.subr.bf16.mxu1 %v8520_v48 }
 0x847   : > { %6318 = vmatpush1.bf16.msra.mxu1 %v8518_v38  ;;  %v9151_v38 = vld [vmem:[%s9928_s12 + $0x20] sm:$0xff] }
 0x848   : > { %6400 = vmatprep.subr.bf16.mxu1 %v8523_v20  ;;  %v11608_v20 = vrot.slane %v9151_v38, %v3173_v43 }
 0x84a   : > { %14623 = vst [vmem:[#allocation66_spill] sm:$0xff] %v11608_v20 }
 0x89b   : > { %v3877_v35 = vpop.f32.mrb[32].mxu1  ;;  %v3990_v3 = vpop.f32.mrb[160].mxu0 }
 0x89c   : > { %v3878_v32 = vadd.f32 %v3877_v35, %v11579_v50  ;;  %v3991_v56 = vadd.f32 %v3990_v3, %v11582_v42  ;;  %v3879_v12 = vpop.f32.mrb[33].mxu1  ;;  %v3992_v30 = vpop.f32.mrb[161].mxu0  ;;  %v9152_v3 = vld [vmem:[%s9928_s12 + $0x28] sm:$0xff] }
 0x89d   : > { %v11593_v36 = vadd.f32 %v3879_v12, %v11585_v53  ;;  %v11596_v9 = vadd.f32 %v3992_v30, %v11588_v55  ;;  %v3881_v29 = vpop.f32.mrb[34].mxu1  ;;  %v3994_v19 = vpop.f32.mrb[162].mxu0  ;;  %v11615_v12 = vrot.slane %v9152_v3, %v3173_v43 }
 0x89e   : > { %v4423_v63 = vmul.f32 0.044715, %v3878_v32  ;;  %v4425_v1 = vmul.f32 0.044715, %v3991_v56  ;;  %v3882_v0 = vadd.f32 %v3881_v29, %v11579_v50  ;;  %v3995_v51 = vadd.f32 %v3994_v19, %v11582_v42  ;;  %v3883_v60 = vpop.f32.mrb[35].mxu1  ;;  %v3996_v47 = vpop.f32.mrb[163].mxu0 }
 0x89f   : > { %14622 = vst [vmem:[#allocation65_spill] sm:$0xff] %v11596_v9  ;;  %v4424_v40 = vmul.f32 0.044715, %v11593_v36  ;;  %v11602_v61 = vadd.f32 %v3883_v60, %v11585_v53  ;;  %v4426_v23 = vmul.f32 0.044715, %v11596_v9  ;;  %v11612_v13 = vadd.f32 %v3996_v47, %v11588_v55  ;;  %14625 = vst [vmem:[#allocation68_spill] sm:$0xff] %v11615_v12 }
 0x8a0   : > { %v4551_v18 = vmul.f32 %v4423_v63, %v3878_v32  ;;  %v4553_v44 = vmul.f32 %v4425_v1, %v3991_v56  ;;  %v4431_v6 = vmul.f32 0.044715, %v3882_v0  ;;  %v4433_v48 = vmul.f32 0.044715, %v3995_v51 }
 0x8a1   : > { %v4432_v49 = vmul.f32 0.044715, %v11602_v61  ;;  %14624 = vst [vmem:[#allocation67_spill] sm:$0xff] %v11612_v13  ;;  %v4552_v30 = vmul.f32 %v4424_v40, %v11593_v36  ;;  %v11618_v1 = vrot.slane %v641_v24, %v3173_v43  ;;  %v11620_v60 = vrot.slane %v642_v14, %v3173_v43 }
 0x8a2   : > { %v4679_v31 = vmul.f32 %v4551_v18, %v3878_v32  ;;  %v4681_v11 = vmul.f32 %v4553_v44, %v3991_v56  ;;  %v4559_v22 = vmul.f32 %v4431_v6, %v3882_v0  ;;  %v4561_v29 = vmul.f32 %v4433_v48, %v3995_v51 }
 0x8a3   : > { %14626 = vst [vmem:[#allocation69_spill] sm:$0xff] %v11618_v1  ;;  %14627 = vst [vmem:[#allocation70_spill] sm:$0xff] %v11620_v60  ;;  %v4554_v18 = vmul.f32 %v4426_v23, %v11596_v9  ;;  %v11629_v57 = vmul.f32 0.5, %v3878_v32  ;;  %v11631_v43 = vmul.f32 0.5, %v3991_v56  ;;  %v11633_v14 = vmul.f32 0.5, %v3882_v0 }
 0x8a4   : > { %v3887_v54 = vpop.f32.mrb[36].mxu1  ;;  %v4000_v35 = vpop.f32.mrb[164].mxu0  ;;  %v4687_v44 = vmul.f32 %v4559_v22, %v3882_v0  ;;  %v4807_v40 = vadd.f32 %v4679_v31, %v3878_v32  ;;  %v4809_v48 = vadd.f32 %v4681_v11, %v3991_v56  ;;  %v4689_v7 = vmul.f32 %v4561_v29, %v3995_v51 }
 0x8a5   : > { %v3889_v19 = vpop.f32.mrb[37].mxu1  ;;  %v4002_v63 = vpop.f32.mrb[165].mxu0  ;;  %v11624_v47 = vadd.f32 %v3887_v54, %v11579_v50  ;;  %v11627_v6 = vadd.f32 %v4000_v35, %v11582_v42  ;;  %14629 = vst [vmem:[#allocation72_spill] sm:$0xff] %v11631_v43  ;;  %v4560_v23 = vmul.f32 %v4432_v49, %v11602_v61  ;;  %v4434_v22 = vmul.f32 0.044715, %v11612_v13 }
 0x8a6   : > { %v3891_v38 = vpop.f32.mrb[38].mxu1  ;;  %v4004_v3 = vpop.f32.mrb[166].mxu0  ;;  %v4815_v54 = vadd.f32 %v4687_v44, %v3882_v0  ;;  %v11640_v45 = vadd.f32 %v3889_v19, %v11585_v53  ;;  %v11643_v32 = vmul.f32 %v4552_v30, %v11593_v36  ;;  %v11646_v56 = vmul.f32 %v4554_v18, %v11596_v9 }
 0x8a7   : > { %14628 = vst [vmem:[#allocation71_spill] sm:$0xff] %v11627_v6  ;;  %v3893_v24 = vpop.f32.mrb[39].mxu1  ;;  %v4006_v39 = vpop.f32.mrb[167].mxu0  ;;  %v4439_v35 = vmul.f32 0.044715, %v11624_v47  ;;  %v11648_v31 = vmul.f32 0.5, %v3995_v51  ;;  %v4817_v11 = vadd.f32 %v4689_v7, %v3995_v51  ;;  %v11651_v0 = vadd.f32 %v4002_v63, %v11588_v55 }
 0x8a8   : > { %v4441_v16 = vmul.f32 0.044715, %v11627_v6  ;;  %14630 = vst [vmem:[#allocation73_spill] sm:$0xff] %v11646_v56  ;;  %v4935_v49 = vmul.f32 0.7978846, %v4807_v40  ;;  %v11654_v44 = vadd.f32 %v3891_v38, %v11579_v50  ;;  %v11657_v19 = vmul.f32 %v4560_v23, %v11602_v61 }
 0x8a9   : > { %14631 = vst [vmem:[#allocation74_spill] sm:$0xff] %v11648_v31  ;;  %v4937_v29 = vmul.f32 0.7978846, %v4809_v48  ;;  %14632 = vst [vmem:[#allocation75_spill] sm:$0xff] %v11651_v0  ;;  %v4562_v30 = vmul.f32 %v4434_v22, %v11612_v13  ;;  %v4440_v10 = vmul.f32 0.044715, %v11640_v45  ;;  %v11662_v18 = vadd.f32 %v4004_v3, %v11582_v42 }
 0x8aa   : > { %v4943_v51 = vmul.f32 0.7978846, %v4815_v54  ;;  %v4567_v40 = vmul.f32 %v4439_v35, %v11624_v47  ;;  %v4569_v63 = vmul.f32 %v4441_v16, %v11627_v6  ;;  %v4442_v38 = vmul.f32 0.044715, %v11651_v0 }
 0x8ab   : > { %14633 = vst [vmem:[#allocation76_spill] sm:$0xff] %v11662_v18  ;;  %v4945_v23 = vmul.f32 0.7978846, %v4817_v11  ;;  %v11668_v46 = vadd.f32 %v3893_v24, %v11585_v53  ;;  %v11671_v22 = vadd.f32 %v4006_v39, %v11588_v55  ;;  %8825 = vtanh.f32 %v4935_v49 }
 0x8ac   : > { %v3897_v37 = vpop.f32.mrb[40].mxu1  ;;  %v4010_v7 = vpop.f32.mrb[168].mxu0  ;;  %v4447_v35 = vmul.f32 0.044715, %v11654_v44  ;;  %v4449_v16 = vmul.f32 0.044715, %v11662_v18  ;;  %8827 = vtanh.f32 %v4937_v29  ;;  %v11682_v24 = vmul.f32 %v4562_v30, %v11612_v13 }
 0x8ad   : > { %v3899_v48 = vpop.f32.mrb[41].mxu1  ;;  %v4012_v58 = vpop.f32.mrb[169].mxu0  ;;  %14634 = vst [vmem:[#allocation77_spill] sm:$0xff] %v11671_v22  ;;  %v11674_v3 = vadd.f32 %v3897_v37, %v11579_v50  ;;  %v11679_v34 = vadd.f32 %v4010_v7, %v11582_v42  ;;  %v4568_v39 = vmul.f32 %v4440_v10, %v11640_v45  ;;  %v4448_v37 = vmul.f32 0.044715, %v11668_v46 }
 0x8ae   : > { %v3901_v4 = vpop.f32.mrb[42].mxu1  ;;  %v4014_v54 = vpop.f32.mrb[170].mxu0  ;;  %14636 = vst [vmem:[#allocation79_spill] sm:$0xff] %v11682_v24  ;;  %v4570_v15 = vmul.f32 %v4442_v38, %v11651_v0  ;;  %v4450_v49 = vmul.f32 0.044715, %v11671_v22  ;;  %v11690_v28 = vadd.f32 %v3899_v48, %v11585_v53  ;;  %8829 = vtanh.f32 %v4943_v51 }
 0x8af   : > { %14635 = vst [vmem:[#allocation78_spill] sm:$0xff] %v11679_v34  ;;  %v3903_v11 = vpop.f32.mrb[43].mxu1  ;;  %v4016_v62 = vpop.f32.mrb[171].mxu0  ;;  %v4455_v52 = vmul.f32 0.044715, %v11674_v3  ;;  %v11693_v7 = vmul.f32 %v4567_v40, %v11624_v47  ;;  %v11696_v29 = vmul.f32 %v4569_v63, %v11627_v6  ;;  %8831 = vtanh.f32 %v4945_v23 }
 0x8b0   : > { %v4457_v10 = vmul.f32 0.044715, %v11679_v34  ;;  %v4575_v30 = vmul.f32 %v4447_v35, %v11654_v44  ;;  %v4577_v38 = vmul.f32 %v4449_v16, %v11662_v18  ;;  %v11702_v17 = vadd.f32 %v4012_v58, %v11588_v55 }
 0x8b1   : > { %14637 = vst [vmem:[#allocation80_spill] sm:$0xff] %v11696_v29  ;;  %v4576_v48 = vmul.f32 %v4448_v37, %v11668_v46  ;;  %v4456_v51 = vmul.f32 0.044715, %v11690_v28  ;;  %v11707_v40 = vadd.f32 %v3901_v4, %v11579_v50  ;;  %v11710_v63 = vadd.f32 %v4014_v54, %v11582_v42 }
 0x8b2   : > { %14638 = vst [vmem:[#allocation81_spill] sm:$0xff] %v11702_v17  ;;  %v11713_v23 = vmul.f32 %v4568_v39, %v11640_v45  ;;  %v11716_v35 = vmul.f32 %v4570_v15, %v11651_v0  ;;  %v4578_v58 = vmul.f32 %v4450_v49, %v11671_v22  ;;  %v4583_v16 = vmul.f32 %v4455_v52, %v11674_v3 }
 0x8b3   : > { %14639 = vst [vmem:[#allocation82_spill] sm:$0xff] %v11710_v63  ;;  %v4585_v4 = vmul.f32 %v4457_v10, %v11679_v34  ;;  %v11722_v41 = vadd.f32 %v3903_v11, %v11585_v53  ;;  %v11725_v54 = vadd.f32 %v4016_v62, %v11588_v55  ;;  %v11731_v5 = vmul.f32 %v4575_v30, %v11654_v44 }
 0x8b4   : > { %v3907_v25 = vpop.f32.mrb[44].mxu1  ;;  %v4020_v26 = vpop.f32.mrb[172].mxu0  ;;  %14640 = vst [vmem:[#allocation83_spill] sm:$0xff] %v11716_v35  ;;  %v11734_v52 = vmul.f32 %v4577_v38, %v11662_v18  ;;  %v4458_v49 = vmul.f32 0.044715, %v11702_v17  ;;  %v11741_v62 = vmul.f32 %v4576_v48, %v11668_v46  ;;  %v11749_v38 = vmul.f32 %v4578_v58, %v11671_v22 }
 0x8b5   : > { %v3909_v37 = vpop.f32.mrb[45].mxu1  ;;  %v4022_v59 = vpop.f32.mrb[173].mxu0  ;;  %14641 = vst [vmem:[#allocation84_spill] sm:$0xff] %v11725_v54  ;;  %v11728_v39 = vadd.f32 %v3907_v25, %v11579_v50  ;;  %v11738_v10 = vadd.f32 %v4020_v26, %v11582_v42  ;;  %v4584_v25 = vmul.f32 %v4456_v51, %v11690_v28  ;;  %v4463_v33 = vmul.f32 0.044715, %v11707_v40 }
 0x8b6   : > { %v3911_v2 = vpop.f32.mrb[46].mxu1  ;;  %v4024_v15 = vpop.f32.mrb[174].mxu0  ;;  %14643 = vst [vmem:[#allocation86_spill] sm:$0xff] %v11734_v52  ;;  %v4465_v30 = vmul.f32 0.044715, %v11710_v63  ;;  %14645 = vst [vmem:[#allocation88_spill] sm:$0xff] %v11749_v38  ;;  %v11754_v52 = vadd.f32 %v3909_v37, %v11585_v53  ;;  %v11759_v51 = vmul.f32 %v4583_v16, %v11674_v3  ;;  %v11762_v18 = vmul.f32 %v4585_v4, %v11679_v34 }
 0x8b7   : > { %14642 = vst [vmem:[#allocation85_spill] sm:$0xff] %v11728_v39  ;;  %14644 = vst [vmem:[#allocation87_spill] sm:$0xff] %v11738_v10  ;;  %v3913_v11 = vpop.f32.mrb[47].mxu1  ;;  %v4026_v27 = vpop.f32.mrb[175].mxu0  ;;  %v4464_v8 = vmul.f32 0.044715, %v11722_v41  ;;  %v4586_v6 = vmul.f32 %v4458_v49, %v11702_v17  ;;  %v11769_v22 = vadd.f32 %v4022_v59, %v11588_v55  ;;  %v11772_v37 = vadd.f32 %v3911_v2, %v11579_v50 }
 0x8b8   : > { %v11746_v21 = vpop.eup %8825  ;;  %v4466_v26 = vmul.f32 0.044715, %v11725_v54  ;;  %14647 = vst [vmem:[#allocation90_spill] sm:$0xff] %v11762_v18  ;;  %v4471_v29 = vmul.f32 0.044715, %v11728_v39  ;;  %v11775_v16 = vmul.f32 %v4584_v25, %v11690_v28  ;;  %v4591_v4 = vmul.f32 %v4463_v33, %v11707_v40 }
 0x8b9   : > { %v11756_v48 = vpop.eup %8827  ;;  %v4473_v58 = vmul.f32 0.044715, %v11738_v10  ;;  %v4472_v38 = vmul.f32 0.044715, %v11754_v52  ;;  %14648 = vst [vmem:[#allocation91_spill] sm:$0xff] %v11769_v22  ;;  %14649 = vst [vmem:[#allocation92_spill] sm:$0xff] %v11772_v37  ;;  %v4593_v18 = vmul.f32 %v4465_v30, %v11710_v63  ;;  %v11780_v34 = vadd.f32 %v4024_v15, %v11582_v42 }
 0x8ba   : > { %14646 = vst [vmem:[#allocation89_spill] sm:$0xff] %v11756_v48  ;;  %v8830_v35 = vpop.eup %8829  ;;  %v4592_v59 = vmul.f32 %v4464_v8, %v11722_v41  ;;  %v4594_v2 = vmul.f32 %v4466_v26, %v11725_v54  ;;  %v4474_v43 = vmul.f32 0.044715, %v11769_v22  ;;  %v4479_v25 = vmul.f32 0.044715, %v11772_v37 }
 0x8bb   : > { %14650 = vst [vmem:[#allocation93_spill] sm:$0xff] %v11780_v34  ;;  %v11782_v31 = vpop.eup %8831  ;;  %v4599_v33 = vmul.f32 %v4471_v29, %v11728_v39  ;;  %v4601_v30 = vmul.f32 %v4473_v58, %v11738_v10  ;;  %v4481_v15 = vmul.f32 0.044715, %v11780_v34  ;;  %v11792_v13 = vadd.f32 %v3913_v11, %v11585_v53 }
 0x8bc   : > { %v3917_v49 = vpop.f32.mrb[48].mxu1  ;;  %v4030_v0 = vpop.f32.mrb[176].mxu0  ;;  %14651 = vst [vmem:[#allocation94_spill] sm:$0xff] %v11782_v31  ;;  %v11795_v8 = vmul.f32 %v4586_v6, %v11702_v17  ;;  %v4600_v26 = vmul.f32 %v4472_v38, %v11754_v52  ;;  %v11799_v9 = vadd.f32 %v4026_v27, %v11588_v55  ;;  %v4602_v12 = vmul.f32 %v4474_v43, %v11769_v22 }
 0x8bd   : > { %v3919_v48 = vpop.f32.mrb[49].mxu1  ;;  %v4032_v24 = vpop.f32.mrb[177].mxu0  ;;  %14652 = vst [vmem:[#allocation95_spill] sm:$0xff] %v11792_v13  ;;  %v11802_v60 = vadd.f32 %v3917_v49, %v11579_v50  ;;  %v4607_v11 = vmul.f32 %v4479_v25, %v11772_v37  ;;  %v4609_v1 = vmul.f32 %v4481_v15, %v11780_v34  ;;  %v11808_v20 = vadd.f32 %v4030_v0, %v11582_v42 }
 0x8be   : > { %v3921_v31 = vpop.f32.mrb[50].mxu1  ;;  %v4034_v56 = vpop.f32.mrb[178].mxu0  ;;  %14653 = vst [vmem:[#allocation96_spill] sm:$0xff] %v11795_v8  ;;  %14654 = vst [vmem:[#allocation97_spill] sm:$0xff] %v11799_v9  ;;  %v11811_v6 = vmul.f32 %v4591_v4, %v11707_v40  ;;  %v11814_v27 = vmul.f32 %v4593_v18, %v11710_v63  ;;  %v4480_v38 = vmul.f32 0.044715, %v11792_v13  ;;  %v11818_v49 = vadd.f32 %v3919_v48, %v11585_v53 }
 0x8bf   : > { %14655 = vst [vmem:[#allocation98_spill] sm:$0xff] %v11802_v60  ;;  %v3923_v29 = vpop.f32.mrb[51].mxu1  ;;  %v4036_v58 = vpop.f32.mrb[179].mxu0  ;;  %14656 = vst [vmem:[#allocation99_spill] sm:$0xff] %v11808_v20  ;;  %v11821_v43 = vmul.f32 %v4592_v59, %v11722_v41  ;;  %v11824_v25 = vmul.f32 %v4594_v2, %v11725_v54  ;;  %v11827_v0 = vmul.f32 %v4599_v33, %v11728_v39  ;;  %v4482_v15 = vmul.f32 0.044715, %v11799_v9 }
 0x8c0   : > { %14657 = vst [vmem:[#allocation100_spill] sm:$0xff] %v11814_v27  ;;  %14658 = vst [vmem:[#allocation101_spill] sm:$0xff] %v11818_v49  ;;  %v11830_v4 = vmul.f32 %v4601_v30, %v11738_v10  ;;  %v11833_v18 = vmul.f32 %v4600_v26, %v11754_v52  ;;  %v4487_v48 = vmul.f32 0.044715, %v11802_v60  ;;  %v11838_v27 = vadd.f32 %v4032_v24, %v11588_v55 }
 0x8c1   : > { %14659 = vst [vmem:[#allocation102_spill] sm:$0xff] %v11824_v25  ;;  %14660 = vst [vmem:[#allocation103_spill] sm:$0xff] %v11827_v0  ;;  %v11841_v59 = vmul.f32 %v4602_v12, %v11769_v22  ;;  %v11844_v2 = vmul.f32 %v4607_v11, %v11772_v37  ;;  %v11847_v33 = vmul.f32 %v4609_v1, %v11780_v34  ;;  %v4489_v30 = vmul.f32 0.044715, %v11808_v20 }
 0x8c2   : > { %14661 = vst [vmem:[#allocation104_spill] sm:$0xff] %v11830_v4  ;;  %14662 = vst [vmem:[#allocation105_spill] sm:$0xff] %v11838_v27  ;;  %v4608_v10 = vmul.f32 %v4480_v38, %v11792_v13  ;;  %v4488_v63 = vmul.f32 0.044715, %v11818_v49  ;;  %v4490_v24 = vmul.f32 0.044715, %v11838_v27  ;;  %v4808_v12 = vadd.f32 %v11643_v32, %v11593_v36 }
 0x8c3   : > { %14663 = vst [vmem:[#allocation106_spill] sm:$0xff] %v11841_v59  ;;  %14664 = vst [vmem:[#allocation107_spill] sm:$0xff] %v11844_v2  ;;  %v4816_v11 = vadd.f32 %v11657_v19, %v11602_v61  ;;  %v11858_v1 = vadd.f32 %v3921_v31, %v11579_v50  ;;  %v5191_v38 = vadd.f32 1.0, %v11746_v21  ;;  %v4610_v54 = vmul.f32 %v4482_v15, %v11799_v9 }
 0x8c4   : > { %14665 = vst [vmem:[#allocation108_spill] sm:$0xff] %v11847_v33  ;;  %v3927_v26 = vpop.f32.mrb[52].mxu1  ;;  %v4040_v4 = vpop.f32.mrb[180].mxu0  ;;  %v11861_v33 = vadd.f32 %v4034_v56, %v11582_v42  ;;  %v4615_v8 = vmul.f32 %v4487_v48, %v11802_v60  ;;  %v4936_v32 = vmul.f32 0.7978846, %v4808_v12  ;;  %v5199_v17 = vadd.f32 1.0, %v8830_v35 }
 0x8c5   : > { %v3929_v59 = vpop.f32.mrb[53].mxu1  ;;  %v4042_v22 = vpop.f32.mrb[181].mxu0  ;;  %14666 = vst [vmem:[#allocation109_spill] sm:$0xff] %v11858_v1  ;;  %v4617_v31 = vmul.f32 %v4489_v30, %v11808_v20  ;;  %v4944_v19 = vmul.f32 0.7978846, %v4816_v11  ;;  %v11874_v21 = vmul.f32 %v5191_v38, %v11629_v57  ;;  %v11880_v35 = vadd.f32 %v3923_v29, %v11585_v53 }
 0x8c6   : > { %14667 = vst [vmem:[#allocation110_spill] sm:$0xff] %v11861_v33  ;;  %v3931_v34 = vpop.f32.mrb[54].mxu1  ;;  %v4044_v25 = vpop.f32.mrb[182].mxu0  ;;  %v4495_v56 = vmul.f32 0.044715, %v11858_v1  ;;  %8833 = vtanh.f32 %v4936_v32  ;;  %v11877_v15 = vmul.f32 %v5199_v17, %v11633_v14  ;;  %v4616_v48 = vmul.f32 %v4488_v63, %v11818_v49 }
 0x8c7   : > { %v11866_v2 = vpop.f32.mrb[55].mxu1  ;;  %v11868_v37 = vpop.f32.mrb[183].mxu0  ;;  %v4497_v0 = vmul.f32 0.044715, %v11861_v33  ;;  %14668 = vst [vmem:[#allocation111_spill] sm:$0xff] %v11880_v35  ;;  %v4618_v12 = vmul.f32 %v4490_v24, %v11838_v27  ;;  %8835 = vtanh.f32 %v4944_v19  ;;  %v11885_v30 = vadd.f32 %v4036_v58, %v11588_v55 }
 0x8c8   : > { %v4496_v57 = vmul.f32 0.044715, %v11880_v35  ;;  %v11891_v38 = vadd.f32 %v3927_v26, %v11579_v50  ;;  %v11894_v17 = vadd.f32 %v4040_v4, %v11582_v42  ;;  %v11897_v14 = vmul.f32 %v4608_v10, %v11792_v13 }
 0x8c9   : > { %14669 = vst [vmem:[#allocation112_spill] sm:$0xff] %v11885_v30  ;;  %v4296_v63 = vmul.f32 0.5, %v11593_v36  ;;  %v4623_v29 = vmul.f32 %v4495_v56, %v11858_v1  ;;  %v4625_v58 = vmul.f32 %v4497_v0, %v11861_v33  ;;  %v11907_v19 = vmul.f32 %v4610_v54, %v11799_v9 }
 0x8ca   : > { %14670 = vst [vmem:[#allocation113_spill] sm:$0xff] %v11891_v38  ;;  %14671 = vst [vmem:[#allocation114_spill] sm:$0xff] %v11894_v17  ;;  %v11910_v26 = vmul.f32 %v4615_v8, %v11802_v60  ;;  %v4498_v4 = vmul.f32 0.044715, %v11885_v30  ;;  %v11914_v10 = vadd.f32 %v3929_v59, %v11585_v53  ;;  %v11921_v0 = vmul.f32 %v4617_v31, %v11808_v20 }
 0x8cb   : > { %14672 = vst [vmem:[#allocation115_spill] sm:$0xff] %v11897_v14  ;;  %14673 = vst [vmem:[#allocation116_spill] sm:$0xff] %v11907_v19  ;;  %v11924_v11 = vmul.f32 %v4616_v48, %v11818_v49  ;;  %v4304_v54 = vmul.f32 0.5, %v11602_v61  ;;  %v11928_v8 = vadd.f32 %v4042_v22, %v11588_v55  ;;  %v11935_v59 = vmul.f32 %v4618_v12, %v11838_v27 }
 0x8cc   : > { %v11902_v24 = vpop.f32.mrb[56].mxu1  ;;  %v11904_v32 = vpop.f32.mrb[184].mxu0  ;;  %14674 = vst [vmem:[#allocation117_spill] sm:$0xff] %v11910_v26  ;;  %14675 = vst [vmem:[#allocation118_spill] sm:$0xff] %v11921_v0  ;;  %v4624_v26 = vmul.f32 %v4496_v57, %v11880_v35  ;;  %v4503_v31 = vmul.f32 0.044715, %v11891_v38  ;;  %v11945_v61 = vmul.f32 %v4623_v29, %v11858_v1  ;;  %v11948_v22 = vmul.f32 %v4625_v58, %v11861_v33 }
 0x8cd   : > { %v11916_v36 = vpop.f32.mrb[57].mxu1  ;;  %v11918_v56 = vpop.f32.mrb[185].mxu0  ;;  %14676 = vst [vmem:[#allocation119_spill] sm:$0xff] %v11924_v11  ;;  %14677 = vst [vmem:[#allocation120_spill] sm:$0xff] %v11928_v8  ;;  %v4505_v0 = vmul.f32 0.044715, %v11894_v17  ;;  %v4824_v12 = vadd.f32 %v11713_v23, %v11640_v45  ;;  %v4832_v57 = vadd.f32 %v11741_v62, %v11668_v46  ;;  %v11960_v11 = vadd.f32 %v3931_v34, %v11579_v50 }
 0x8ce   : > { %v11930_v19 = vpop.f32.mrb[58].mxu1  ;;  %v11932_v9 = vpop.f32.mrb[186].mxu0  ;;  %14678 = vst [vmem:[#allocation121_spill] sm:$0xff] %v11935_v59  ;;  %14679 = vst [vmem:[#allocation122_spill] sm:$0xff] %v11945_v61  ;;  %v4626_v59 = vmul.f32 %v4498_v4, %v11885_v30  ;;  %v4504_v27 = vmul.f32 0.044715, %v11914_v10  ;;  %v11964_v33 = vadd.f32 %v4044_v25, %v11582_v42  ;;  %v11967_v62 = vmul.f32 %v4624_v26, %v11880_v35 }
 0x8cf   : > { %v11940_v48 = vpop.f32.mrb[59].mxu1  ;;  %v11942_v20 = vpop.f32.mrb[187].mxu0  ;;  %14680 = vst [vmem:[#allocation123_spill] sm:$0xff] %v11948_v22  ;;  %v11957_v60 = vmul.f32 0.5, %v11640_v45  ;;  %14681 = vst [vmem:[#allocation124_spill] sm:$0xff] %v11960_v11  ;;  %v4631_v4 = vmul.f32 %v4503_v31, %v11891_v38  ;;  %v4633_v61 = vmul.f32 %v4505_v0, %v11894_v17  ;;  %v11972_v45 = vmul.f32 0.5, %v11668_v46 }
 0x8d0   : > { %v4506_v29 = vmul.f32 0.044715, %v11928_v8  ;;  %v4952_v58 = vmul.f32 0.7978846, %v4824_v12  ;;  %v4960_v22 = vmul.f32 0.7978846, %v4832_v57  ;;  %v8834_v23 = vpop.eup %8833  ;;  %v4823_v25 = vadd.f32 %v11693_v7, %v11624_v47 }
 0x8d1   : > { %14682 = vst [vmem:[#allocation125_spill] sm:$0xff] %v11964_v33  ;;  %14683 = vst [vmem:[#allocation126_spill] sm:$0xff] %v11967_v62  ;;  %v8836_v34 = vpop.eup %8835  ;;  %v5192_v1 = vadd.f32 1.0, %v8834_v23  ;;  %v4511_v12 = vmul.f32 0.044715, %v11960_v11  ;;  %v4632_v31 = vmul.f32 %v4504_v27, %v11914_v10  ;;  %v4831_v46 = vadd.f32 %v11731_v5, %v11654_v44 }
 0x8d2   : > { %8837 = vtanh.f32 %v4952_v58  ;;  %v5200_v26 = vadd.f32 1.0, %v8836_v34  ;;  %v4634_v58 = vmul.f32 %v4506_v29, %v11928_v8  ;;  %v4513_v62 = vmul.f32 0.044715, %v11964_v33 }
 0x8d3   : > { %8839 = vtanh.f32 %v4960_v22  ;;  %v4951_v7 = vmul.f32 0.7978846, %v4823_v25  ;;  %v11992_v35 = vadd.f32 %v11866_v2, %v11585_v53  ;;  %v5320_v5 = vmul.f32 %v5192_v1, %v4296_v63  ;;  %v8521_v63 = vld [vmem:[%s9926_s14 + $0x100] ss:$8 sps:$4 sm:$0xff]  }
 0x8d4   : > { %v11977_v57 = vpop.f32.mrb[60].mxu1  ;;  %v11979_v49 = vpop.f32.mrb[188].mxu0  ;;  %v5328_v22 = vmul.f32 %v5200_v26, %v4304_v54  ;;  %v4959_v39 = vmul.f32 0.7978846, %v4831_v46  ;;  %v12000_v14 = vadd.f32 %v11868_v37, %v11588_v55  ;;  %v4639_v25 = vmul.f32 %v4511_v12, %v11960_v11  ;;  %v8526_v26 = vld [vmem:[%s9926_s14 + $0x114] ss:$8 sps:$4 sm:$0xff]  }
 0x8d5   : > { %v11984_v0 = vpop.f32.mrb[61].mxu1  ;;  %v11986_v23 = vpop.f32.mrb[189].mxu0  ;;  %14684 = vst [vmem:[#allocation127_spill] sm:$0xff] %v11992_v35  ;;  %8841 = vtanh.f32 %v4951_v7  ;;  %v4512_v2 = vmul.f32 0.044715, %v11992_v35  ;;  %v12014_v54 = vmul.f32 %v4626_v59, %v11885_v30  ;;  %v12018_v37 = vadd.f32 %v11904_v32, %v11582_v42 }
 0x8d6   : > { %v11994_v34 = vpop.f32.mrb[62].mxu1  ;;  %v11996_v27 = vpop.f32.mrb[190].mxu0  ;;  %14686 = vst [vmem:[#allocation129_spill] sm:$0xff] %v12000_v14  ;;  %v5448_v1 = vpack.c.bf16 %v5328_v22, %v5320_v5  ;;  %8843 = vtanh.f32 %v4959_v39  ;;  %v12022_v12 = vmul.f32 %v4631_v4, %v11891_v38  ;;  %v12025_v46 = vmul.f32 %v4633_v61, %v11894_v17 }
 0x8d7   : > { %14685 = vst [vmem:[#allocation128_spill] sm:$0xff] %v11996_v27  ;;  %v12002_v29 = vpop.f32.mrb[63].mxu1  ;;  %v12004_v13 = vpop.f32.mrb[191].mxu0  ;;  %v12010_v27 = vadd.f32 %v11902_v24, %v11579_v50  ;;  %14688 = vst [vmem:[#allocation131_spill] sm:$0xff] %v12014_v54  ;;  %v4641_v24 = vmul.f32 %v4513_v62, %v11964_v33  ;;  %v12030_v7 = vadd.f32 %v11916_v36, %v11585_v53  ;;  %v12039_v59 = vmul.f32 0.5, %v11624_v47 }
 0x8d8   : > { %14689 = vst [vmem:[#allocation132_spill] sm:$0xff] %v12018_v37  ;;  %14690 = vst [vmem:[#allocation133_spill] sm:$0xff] %v12022_v12  ;;  %6319 = vmatprep.mubr.bf16.mxu1 %v5448_v1  ;;  %v12033_v39 = vmul.f32 %v4632_v31, %v11914_v10  ;;  %v12036_v32 = vmul.f32 %v4634_v58, %v11928_v8  ;;  %v4514_v61 = vmul.f32 0.044715, %v12000_v14  ;;  %v8524_v62 = vld [vmem:[%s9926_s14 + $0x110] ss:$8 sps:$4 sm:$0xff]  }
 0x8d9   : > { %14687 = vst [vmem:[#allocation130_spill] sm:$0xff] %v12010_v27  ;;  %14691 = vst [vmem:[#allocation134_spill] sm:$0xff] %v12025_v46  ;;  %v14694_v4 = vpack.c.bf16 %v11877_v15, %v11874_v21  ;;  %v12047_v36 = vmul.f32 %v4639_v25, %v11960_v11  ;;  %v12050_v5 = vmul.f32 0.5, %v11654_v44  ;;  %v4640_v31 = vmul.f32 %v4512_v2, %v11992_v35  ;;  %v8529_v47 = vld [vmem:[%s9926_s14 + $0x124] ss:$8 sps:$4 sm:$0xff]  }
 0x8da   : > { %14692 = vst [vmem:[#allocation135_spill] sm:$0xff] %v12033_v39  ;;  %14693 = vst [vmem:[#allocation136_spill] sm:$0xff] %v12036_v32  ;;  %v4519_v58 = vmul.f32 0.044715, %v12010_v27  ;;  %v4521_v1 = vmul.f32 0.044715, %v12018_v37  ;;  %v12060_v21 = vadd.f32 %v11918_v56, %v11588_v55  ;;  %v4840_v15 = vadd.f32 %v11775_v16, %v11690_v28 }
 0x8db   : > { %6320 = vmatmul.mubr.bf16.vlgmr.msra.gmra.mrb[96].mxu1 %v14694_v4  ;;  %14695 = vst [vmem:[#allocation137_spill] sm:$0xff] %v12047_v36  ;;  %v4848_v44 = vadd.f32 %v11821_v43, %v11722_v41  ;;  %v4520_v46 = vmul.f32 0.044715, %v12030_v7  ;;  %v12075_v56 = vmul.f32 0.5, %v11690_v28  ;;  %v12079_v16 = vadd.f32 %v11930_v19, %v11579_v50 }
 0x8dc   : > { %v12054_v22 = vpop.f32.mrb[64].mxu1  ;;  %6401 = vmatpush1.bf16.msra.mxu1 %v8521_v63  ;;  %14696 = vst [vmem:[#allocation138_spill] sm:$0xff] %v12060_v21  ;;  %v8838_v4 = vpop.eup %8837  ;;  %v12071_v63 = vmul.f32 %v4641_v24, %v11964_v33  ;;  %v4968_v24 = vmul.f32 0.7978846, %v4840_v15  ;;  %v12089_v28 = vmul.f32 %v4640_v31, %v11992_v35  ;;  %v4647_v19 = vmul.f32 %v4519_v58, %v12010_v27 }
 0x8dd   : > { %v12066_v25 = vpop.f32.mrb[192].mxu0  ;;  %v12068_v2 = vpop.f32.mrb[65].mxu1  ;;  %6402 = vmatprep.subr.bf16.mxu1 %v8526_v26  ;;  %14698 = vst [vmem:[#allocation140_spill] sm:$0xff] %v12079_v16  ;;  %v5208_v8 = vadd.f32 1.0, %v8838_v4  ;;  %v4642_v26 = vmul.f32 %v4514_v61, %v12000_v14  ;;  %v12093_v30 = vmul.f32 0.5, %v11722_v41  ;;  %v12104_v31 = vadd.f32 %v11932_v9, %v11582_v42 }
 0x8de   : > { %14697 = vst [vmem:[#allocation139_spill] sm:$0xff] %v12071_v63  ;;  %v12081_v43 = vpop.f32.mrb[193].mxu0  ;;  %v12083_v17 = vpop.f32.mrb[66].mxu1  ;;  %v4976_v63 = vmul.f32 0.7978846, %v4848_v44  ;;  %14699 = vst [vmem:[#allocation141_spill] sm:$0xff] %v12089_v28  ;;  %8845 = vtanh.f32 %v4968_v24  ;;  %v4648_v24 = vmul.f32 %v4520_v46, %v12030_v7  ;;  %v4839_v28 = vadd.f32 %v11759_v51, %v11674_v3 }
 0x8df   : > { %v8840_v32 = vpop.eup %8839  ;;  %v12086_v33 = vpop.f32.mrb[194].mxu0  ;;  %v8527_v61 = vld [vmem:[%s9926_s14 + $0x120] ss:$8 sps:$4 sm:$0xff]   ;;  %v4522_v15 = vmul.f32 0.044715, %v12060_v21  ;;  %14700 = vst [vmem:[#allocation142_spill] sm:$0xff] %v12104_v31  ;;  %v5336_v41 = vmul.f32 %v5208_v8, %v11957_v60  ;;  %v4847_v9 = vadd.f32 %v11811_v6, %v11707_v40 }
 0x8e0   : > { %v5216_v54 = vadd.f32 1.0, %v8840_v32  ;;  %v12095_v36 = vpop.f32.mrb[67].mxu1  ;;  %v12097_v11 = vpop.f32.mrb[195].mxu0  ;;  %6403 = vmatpush1.bf16.msra.mxu1 %v8524_v62  ;;  %v4527_v32 = vmul.f32 0.044715, %v12079_v16  ;;  %v4649_v62 = vmul.f32 %v4521_v1, %v12018_v37  ;;  %8847 = vtanh.f32 %v4976_v63 }
 0x8e1   : > { %v8842_v58 = vpop.eup %8841  ;;  %6404 = vmatprep.subr.bf16.mxu1 %v8529_v47  ;;  %v8532_v4 = vld [vmem:[%s9926_s14 + $0x134] ss:$8 sps:$4 sm:$0xff]   ;;  %v8530_v60 = vld [vmem:[%s9926_s14 + $0x130] ss:$8 sps:$4 sm:$0xff]   ;;  %v4529_v8 = vmul.f32 0.044715, %v12104_v31  ;;  %v4650_v46 = vmul.f32 %v4522_v15, %v12060_v21 }
 0x8e2   : > { %v5344_v44 = vmul.f32 %v5216_v54, %v11972_v45  ;;  %v8844_v12 = vpop.eup %8843  ;;  %v5207_v38 = vadd.f32 1.0, %v8842_v58  ;;  %v12119_v45 = vadd.f32 %v11940_v48, %v11585_v53  ;;  %v4655_v51 = vmul.f32 %v4527_v32, %v12079_v16  ;;  %v8535_v48 = vld [vmem:[%s9926_s14 + $0x144] ss:$8 sps:$4 sm:$0xff]  }
 0x8e3   : > { %v5215_v39 = vadd.f32 1.0, %v8844_v12  ;;  %v4967_v47 = vmul.f32 0.7978846, %v4839_v28  ;;  %v4975_v1 = vmul.f32 0.7978846, %v4847_v9  ;;  %v12158_v32 = vmul.f32 %v4642_v26, %v12000_v14 }
 0x8e4   : > { %v5456_v35 = vpack.c.bf16 %v5344_v44, %v5336_v41  ;;  %v12121_v54 = vpop.f32.mrb[68].mxu1  ;;  %6405 = vmatpush1.bf16.msra.mxu1 %v8527_v61  ;;  %v5335_v63 = vmul.f32 %v5207_v38, %v12039_v59  ;;  %v4528_v41 = vmul.f32 0.044715, %v12119_v45  ;;  %v12135_v61 = vadd.f32 %v11942_v20, %v11588_v55  ;;  %v8533_v9 = vld [vmem:[%s9926_s14 + $0x140] ss:$8 sps:$4 sm:$0xff]  }
 0x8e5   : > { %v12125_v6 = vpop.f32.mrb[196].mxu0  ;;  %v12127_v12 = vpop.f32.mrb[69].mxu1  ;;  %v5343_v58 = vmul.f32 %v5215_v39, %v12050_v5  ;;  %6406 = vmatprep.subr.bf16.mxu1 %v8532_v4  ;;  %8849 = vtanh.f32 %v4967_v47  ;;  %v12147_v38 = vadd.f32 %v11979_v49, %v11582_v42  ;;  %v12151_v39 = vadd.f32 %v11984_v0, %v11585_v53  ;;  %14704 = vst [vmem:[#allocation146_spill] sm:$0xff] %v12158_v32 }
 0x8e6   : > { %6329 = vmatprep.mubr.bf16.mxu1 %v5456_v35  ;;  %14701 = vst [vmem:[#allocation143_spill] sm:$0xff] %v12135_v61  ;;  %v12137_v15 = vpop.f32.mrb[197].mxu0  ;;  %v12139_v28 = vpop.f32.mrb[70].mxu1  ;;  %v12143_v35 = vadd.f32 %v11977_v57, %v11579_v50  ;;  %v12161_v57 = vmul.f32 %v4647_v19, %v12010_v27  ;;  %8851 = vtanh.f32 %v4975_v1  ;;  %v12166_v49 = vmul.f32 %v4649_v62, %v12018_v37  ;;  %v14711_v37 = vld [vmem:[#allocation115_spill] sm:$0xff] }
 0x8e7   : > { %14703 = vst [vmem:[#allocation145_spill] sm:$0xff] %v12147_v38  ;;  %v12153_v20 = vpop.f32.mrb[198].mxu0  ;;  %v12155_v59 = vpop.f32.mrb[71].mxu1  ;;  %v5455_v5 = vpack.c.bf16 %v5343_v58, %v5335_v63  ;;  %v12169_v0 = vmul.f32 %v4648_v24, %v12030_v7  ;;  %v12172_v4 = vmul.f32 %v4650_v46, %v12060_v21  ;;  %v4657_v26 = vmul.f32 %v4529_v8, %v12104_v31 }
 0x8e8   : > { %14702 = vst [vmem:[#allocation144_spill] sm:$0xff] %v12143_v35  ;;  %14705 = vst [vmem:[#allocation147_spill] sm:$0xff] %v12161_v57  ;;  %v12163_v44 = vpop.f32.mrb[199].mxu0  ;;  %6407 = vmatpush1.bf16.msra.mxu1 %v8530_v60  ;;  %v12177_v19 = vmul.f32 0.5, %v11674_v3  ;;  %v12180_v47 = vmul.f32 0.5, %v11707_v40  ;;  %v4656_v62 = vmul.f32 %v4528_v41, %v12119_v45  ;;  %v8846_v46 = vpop.eup %8845  ;;  %v12186_v1 = vmul.f32 %v4655_v51, %v12079_v16 }
 0x8e9   : > { %14706 = vst [vmem:[#allocation148_spill] sm:$0xff] %v12166_v49  ;;  %14707 = vst [vmem:[#allocation149_spill] sm:$0xff] %v12172_v4  ;;  %6330 = vmatmul.mubr.bf16.gmra.mrb[100].mxu1 %v5455_v5  ;;  %6408 = vmatprep.subr.bf16.mxu1 %v8535_v48  ;;  %v4530_v24 = vmul.f32 0.044715, %v12135_v61  ;;  %v8538_v60 = vld [vmem:[%s9926_s14 + $0x154] ss:$8 sps:$4 sm:$0xff]   ;;  %v12194_v48 = vadd.f32 %v11986_v23, %v11588_v55  ;;  %v4856_v41 = vadd.f32 %v11833_v18, %v11754_v52 }
 0x8ea   : > { %14708 = vst [vmem:[#allocation150_spill] sm:$0xff] %v12186_v1  ;;  %v4535_v8 = vmul.f32 0.044715, %v12143_v35  ;;  %v4537_v63 = vmul.f32 0.044715, %v12147_v38  ;;  %v8848_v58 = vpop.eup %8847  ;;  %v5224_v40 = vadd.f32 1.0, %v8846_v46  ;;  %v12204_v14 = vmul.f32 %v4657_v26, %v12104_v31 }
 0x8eb   : > { %v4536_v3 = vmul.f32 0.044715, %v12151_v39  ;;  %v8536_v5 = vld [vmem:[%s9926_s14 + $0x150] ss:$8 sps:$4 sm:$0xff]   ;;  %14709 = vst [vmem:[#allocation151_spill] sm:$0xff] %v12194_v48  ;;  %v5232_v32 = vadd.f32 1.0, %v8848_v58  ;;  %v4658_v16 = vmul.f32 %v4530_v24, %v12135_v61  ;;  %v12228_v31 = vadd.f32 %v11994_v34, %v11579_v50 }
 0x8ec   : > { %v14710_v49 = vld [vmem:[#allocation95_spill] sm:$0xff]  ;;  %v8541_v4 = vld [vmem:[%s9926_s14 + $0x164] ss:$8 sps:$4 sm:$0xff]   ;;  %v12201_v21 = vpop.f32.mrb[72].mxu1  ;;  %6409 = vmatpush1.bf16.msra.mxu1 %v8533_v9  ;;  %v12207_v46 = vmul.f32 0.5, %v11754_v52  ;;  %v5352_v52 = vmul.f32 %v5224_v40, %v12075_v56 }
 0x8ed   : > { %v4864_v51 = vadd.f32 %v14711_v37, %v14710_v49  ;;  %14712 = vst [vmem:[#allocation95_spill] sm:$0xff] %v12204_v14  ;;  %v12210_v23 = vmul.f32 0.5, %v14710_v49  ;;  %v12212_v1 = vpop.f32.mrb[200].mxu0  ;;  %v12214_v18 = vpop.f32.mrb[73].mxu1  ;;  %v12217_v37 = vmul.f32 %v4656_v62, %v12119_v45  ;;  %6410 = vmatprep.subr.bf16.mxu1 %v8538_v60  ;;  %v4984_v58 = vmul.f32 0.7978846, %v4856_v41 }
 0x8ee   : > { %v12220_v14 = vpop.f32.mrb[201].mxu0  ;;  %v12222_v9 = vpop.f32.mrb[74].mxu1  ;;  %v5360_v49 = vmul.f32 %v5232_v32, %v12093_v30  ;;  %14715 = vst [vmem:[#allocation153_spill] sm:$0xff] %v12228_v31  ;;  %v14716_v62 = vld [vmem:[#allocation128_spill] sm:$0xff]  ;;  %v4663_v41 = vmul.f32 %v4535_v8, %v12143_v35  ;;  %v14720_v56 = vld [vmem:[#allocation85_spill] sm:$0xff]  ;;  %v14721_v30 = vld [vmem:[#allocation103_spill] sm:$0xff] }
 0x8ef   : > { %14713 = vst [vmem:[#allocation115_spill] sm:$0xff] %v12217_v37  ;;  %v4992_v26 = vmul.f32 0.7978846, %v4864_v51  ;;  %14714 = vst [vmem:[#allocation152_spill] sm:$0xff] %v12222_v9  ;;  %v12232_v57 = vadd.f32 %v14716_v62, %v11582_v42  ;;  %v12234_v24 = vpop.f32.mrb[202].mxu0  ;;  %v12236_v60 = vpop.f32.mrb[75].mxu1  ;;  %8853 = vtanh.f32 %v4984_v58  ;;  %v4855_v32 = vadd.f32 %v14721_v30, %v14720_v56 }
 0x8f0   : > { %14718 = vst [vmem:[#allocation154_spill] sm:$0xff] %v12234_v24  ;;  %14719 = vst [vmem:[#allocation155_spill] sm:$0xff] %v12236_v60  ;;  %v4538_v51 = vmul.f32 0.044715, %v12194_v48  ;;  %v12242_v40 = vpop.f32.mrb[203].mxu0  ;;  %v8850_v50 = vpop.eup %8849  ;;  %v5464_v34 = vpack.c.bf16 %v5360_v49, %v5352_v52  ;;  %6411 = vmatpush1.bf16.msra.mxu1 %v8536_v5  ;;  %v4665_v42 = vmul.f32 %v4537_v63, %v12147_v38  ;;  %v14723_v24 = vld [vmem:[#allocation92_spill] sm:$0xff] }
 0x8f1   : > { %14717 = vst [vmem:[#allocation128_spill] sm:$0xff] %v12232_v57  ;;  %14722 = vst [vmem:[#allocation85_spill] sm:$0xff] %v12242_v40  ;;  %8855 = vtanh.f32 %v4992_v26  ;;  %v4543_v62 = vmul.f32 0.044715, %v12228_v31  ;;  %v8539_v60 = vld [vmem:[%s9926_s14 + $0x160] ss:$8 sps:$4 sm:$0xff]   ;;  %v8852_v27 = vpop.eup %8851  ;;  %6412 = vmatprep.subr.bf16.mxu1 %v8541_v4  ;;  %v12251_v30 = vadd.f32 %v12002_v29, %v11585_v53  ;;  %v4664_v63 = vmul.f32 %v4536_v3, %v12151_v39 }
 0x8f2   : > { %v5223_v8 = vadd.f32 1.0, %v8850_v50  ;;  %v14724_v9 = vld [vmem:[#allocation107_spill] sm:$0xff]  ;;  %v4983_v37 = vmul.f32 0.7978846, %v4855_v32  ;;  %6339 = vmatprep.mubr.bf16.mxu1 %v5464_v34  ;;  %v5231_v5 = vadd.f32 1.0, %v8852_v27  ;;  %v12258_v52 = vadd.f32 %v12004_v13, %v11588_v55 }
 0x8f3   : > { %v4863_v58 = vadd.f32 %v14724_v9, %v14723_v24  ;;  %v8544_v40 = vld [vmem:[%s9926_s14 + $0x174] ss:$8 sps:$4 sm:$0xff]   ;;  %v4545_v26 = vmul.f32 0.044715, %v12232_v57  ;;  %v12261_v9 = vmul.f32 %v4658_v16, %v12135_v61  ;;  %v4666_v4 = vmul.f32 %v4538_v51, %v12194_v48 }
 0x8f4   : > { %14725 = vst [vmem:[#allocation103_spill] sm:$0xff] %v12258_v52  ;;  %8857 = vtanh.f32 %v4983_v37  ;;  %v12264_v53 = vpop.f32.mrb[76].mxu1  ;;  %v5351_v27 = vmul.f32 %v5223_v8, %v12177_v19  ;;  %v5359_v29 = vmul.f32 %v5231_v5, %v12180_v47  ;;  %v12269_v3 = vmul.f32 %v4663_v41, %v12143_v35  ;;  %6413 = vmatpush1.bf16.msra.mxu1 %v8539_v60  ;;  %v8542_v37 = vld [vmem:[%s9926_s14 + $0x170] ss:$8 sps:$4 sm:$0xff]   ;;  %v14729_v47 = vld [vmem:[#allocation69_spill] sm:$0xff] }
 0x8f5   : > { %14726 = vst [vmem:[#allocation92_spill] sm:$0xff] %v12261_v9  ;;  %v4991_v49 = vmul.f32 0.7978846, %v4863_v58  ;;  %v4544_v32 = vmul.f32 0.044715, %v12251_v30  ;;  %v12272_v55 = vpop.f32.mrb[204].mxu0  ;;  %v4671_v16 = vmul.f32 %v4543_v62, %v12228_v31  ;;  %6414 = vmatprep.subr.bf16.mxu1 %v8544_v40  ;;  %v12284_v41 = vadd.f32 %v12066_v25, %v14729_v47 }
 0x8f6   : > { %14727 = vst [vmem:[#allocation107_spill] sm:$0xff] %v12269_v3  ;;  %v12274_v13 = vpop.f32.mrb[77].mxu1  ;;  %v14728_v51 = vld [vmem:[#allocation66_spill] sm:$0xff]  ;;  %v12286_v50 = vpop.f32.mrb[205].mxu0  ;;  %v5463_v34 = vpack.c.bf16 %v5359_v29, %v5351_v27  ;;  %v12291_v8 = vmul.f32 %v4665_v42, %v12147_v38  ;;  %v4673_v62 = vmul.f32 %v4545_v26, %v12232_v57  ;;  %v4546_v40 = vmul.f32 0.044715, %v12258_v52 }
 0x8f7   : > { %8859 = vtanh.f32 %v4991_v49  ;;  %v12280_v19 = vadd.f32 %v12054_v22, %v14728_v51  ;;  %v12288_v60 = vpop.f32.mrb[78].mxu1  ;;  %v8547_v58 = vld [vmem:[%s9926_s14 + $0x184] ss:$8 sps:$4 sm:$0xff]   ;;  %v12296_v5 = vpop.f32.mrb[206].mxu0  ;;  %v12301_v25 = vmul.f32 %v4664_v63, %v12151_v39  ;;  %v12304_v49 = vmul.f32 %v4666_v4, %v12194_v48  ;;  %v14738_v9 = vld [vmem:[#allocation70_spill] sm:$0xff]  ;;  %v14742_v61 = vld [vmem:[#allocation119_spill] sm:$0xff] }
 0x8f8   : > { %14730 = vst [vmem:[#allocation66_spill] sm:$0xff] %v12288_v60  ;;  %14731 = vst [vmem:[#allocation69_spill] sm:$0xff] %v12291_v8  ;;  %v12298_v22 = vpop.f32.mrb[79].mxu1  ;;  %v12307_v27 = vmul.f32 0.5, %v14720_v56  ;;  %v12310_v26 = vpop.f32.mrb[207].mxu0  ;;  %6340 = vmatmul.mubr.bf16.gmra.mrb[104].mxu1 %v5463_v34  ;;  %v4672_v29 = vmul.f32 %v4544_v32, %v12251_v30  ;;  %v14736_v38 = vld [vmem:[#allocation68_spill] sm:$0xff]  ;;  %v12320_v4 = vadd.f32 %v12081_v43, %v14738_v9 }
 0x8f9   : > { %14732 = vst [vmem:[#allocation156_spill] sm:$0xff] %v12296_v5  ;;  %14733 = vst [vmem:[#allocation157_spill] sm:$0xff] %v12298_v22  ;;  %v4427_v42 = vmul.f32 0.044715, %v12280_v19  ;;  %v4429_v8 = vmul.f32 0.044715, %v12284_v41  ;;  %v12316_v63 = vadd.f32 %v12068_v2, %v14736_v38  ;;  %v8854_v56 = vpop.eup %8853  ;;  %6415 = vmatpush1.bf16.msra.mxu1 %v8542_v37  ;;  %v12331_v35 = vmul.f32 %v4673_v62, %v12232_v57 }
 0x8fa   : > { %14734 = vst [vmem:[#allocation158_spill] sm:$0xff] %v12304_v49  ;;  %14735 = vst [vmem:[#allocation159_spill] sm:$0xff] %v12310_v26  ;;  %v12323_v49 = vmul.f32 %v4671_v16, %v12228_v31  ;;  %v4351_v48 = vmul.f32 0.5, %v14723_v24  ;;  %v14741_v34 = vld [vmem:[#allocation101_spill] sm:$0xff]  ;;  %v5240_v2 = vadd.f32 1.0, %v8854_v56  ;;  %v12334_v43 = vmul.f32 %v4546_v40, %v12258_v52  ;;  %6416 = vmatprep.subr.bf16.mxu1 %v8547_v58  ;;  %v14745_v31 = vld [vmem:[#allocation126_spill] sm:$0xff] }
 0x8fb   : > { %14737 = vst [vmem:[#allocation68_spill] sm:$0xff] %v12316_v63  ;;  %14739 = vst [vmem:[#allocation70_spill] sm:$0xff] %v12320_v4  ;;  %v4555_v32 = vmul.f32 %v4427_v42, %v12280_v19  ;;  %v4872_v26 = vadd.f32 %v14742_v61, %v14741_v34  ;;  %v8545_v22 = vld [vmem:[%s9926_s14 + $0x180] ss:$8 sps:$4 sm:$0xff]   ;;  %v8856_v3 = vpop.eup %8855  ;;  %v4557_v16 = vmul.f32 %v4429_v8, %v12284_v41  ;;  %v14744_v42 = vld [vmem:[#allocation111_spill] sm:$0xff] }
 0x8fc   : > { %14740 = vst [vmem:[#allocation160_spill] sm:$0xff] %v12323_v49  ;;  %14743 = vst [vmem:[#allocation101_spill] sm:$0xff] %v12331_v35  ;;  %v8550_v49 = vld [vmem:[%s9926_s14 + $0x194] ss:$8 sps:$4 sm:$0xff]   ;;  %v5248_v24 = vadd.f32 1.0, %v8856_v3  ;;  %v4880_v61 = vadd.f32 %v14745_v31, %v14744_v42  ;;  %v12341_v60 = vpop.f32.mrb[80].mxu1  ;;  %v5368_v62 = vmul.f32 %v5240_v2, %v12207_v46  ;;  %v12345_v56 = vmul.f32 %v4672_v29, %v12251_v30 }
 0x8fd   : > { %v4683_v37 = vmul.f32 %v4555_v32, %v12280_v19  ;;  %v5000_v5 = vmul.f32 0.7978846, %v4872_v26  ;;  %14746 = vst [vmem:[#allocation119_spill] sm:$0xff] %v12341_v60  ;;  %v4428_v40 = vmul.f32 0.044715, %v12316_v63  ;;  %v12349_v58 = vpop.f32.mrb[208].mxu0  ;;  %v4685_v26 = vmul.f32 %v4557_v16, %v12284_v41  ;;  %6417 = vmatpush1.bf16.msra.mxu1 %v8545_v22 }
 0x8fe   : > { %v4430_v8 = vmul.f32 0.044715, %v12320_v4  ;;  %14747 = vst [vmem:[#allocation111_spill] sm:$0xff] %v12349_v58  ;;  %v12351_v3 = vpop.f32.mrb[81].mxu1  ;;  %v8858_v32 = vpop.eup %8857  ;;  %v5376_v31 = vmul.f32 %v5248_v24, %v12210_v23  ;;  %v5008_v35 = vmul.f32 0.7978846, %v4880_v61  ;;  %v12363_v58 = vadd.f32 %v12083_v17, %v14728_v51  ;;  %6418 = vmatprep.subr.bf16.mxu1 %v8550_v49 }
 0x8ff   : > { %8861 = vtanh.f32 %v5000_v5  ;;  %v8548_v46 = vld [vmem:[%s9926_s14 + $0x190] ss:$8 sps:$4 sm:$0xff]   ;;  %v12356_v29 = vpop.f32.mrb[209].mxu0  ;;  %v12358_v2 = vpop.f32.mrb[82].mxu1  ;;  %v5239_v57 = vadd.f32 1.0, %v8858_v32  ;;  %v4811_v60 = vadd.f32 %v4683_v37, %v12280_v19  ;;  %v12367_v23 = vadd.f32 %v12086_v33, %v14729_v47 }
 0x900   : > { %14748 = vst [vmem:[#allocation126_spill] sm:$0xff] %v12356_v29  ;;  %14749 = vst [vmem:[#allocation161_spill] sm:$0xff] %v12358_v2  ;;  %v8553_v16 = vld [vmem:[%s9926_s14 + $0x1a4] ss:$8 sps:$4 sm:$0xff]   ;;  %v12370_v5 = vpop.f32.mrb[210].mxu0  ;;  %v12372_v22 = vpop.f32.mrb[83].mxu1  ;;  %v5472_v61 = vpack.c.bf16 %v5376_v31, %v5368_v62  ;;  %8863 = vtanh.f32 %v5008_v35  ;;  %v4556_v49 = vmul.f32 %v4428_v40, %v12316_v63  ;;  %v4558_v62 = vmul.f32 %v4430_v8, %v12320_v4 }
 0x901   : > { %14750 = vst [vmem:[#allocation162_spill] sm:$0xff] %v12370_v5  ;;  %14751 = vst [vmem:[#allocation163_spill] sm:$0xff] %v12372_v22  ;;  %v8860_v24 = vpop.eup %8859  ;;  %v12375_v32 = vmul.f32 0.5, %v12280_v19  ;;  %v12378_v37 = vmul.f32 0.5, %v12284_v41  ;;  %v12380_v17 = vpop.f32.mrb[211].mxu0  ;;  %v12384_v5 = vmul.f32 0.5, %v14741_v34  ;;  %v4813_v19 = vadd.f32 %v4685_v26, %v12284_v41  ;;  %6419 = vmatpush1.bf16.msra.mxu1 %v8548_v46 }
 0x902   : > { %14754 = vst [vmem:[#allocation166_spill] sm:$0xff] %v12380_v17  ;;  %v5247_v33 = vadd.f32 1.0, %v8860_v24  ;;  %v12387_v22 = vmul.f32 0.5, %v14744_v42  ;;  %6349 = vmatprep.mubr.bf16.mxu1 %v5472_v61  ;;  %v4435_v35 = vmul.f32 0.044715, %v12363_v58  ;;  %v5367_v40 = vmul.f32 %v5239_v57, %v12307_v27  ;;  %v14756_v42 = vld [vmem:[#allocation117_spill] sm:$0xff]  ;;  %6420 = vmatprep.subr.bf16.mxu1 %v8553_v16 }
 0x903   : > { %14752 = vst [vmem:[#allocation164_spill] sm:$0xff] %v12375_v32  ;;  %14753 = vst [vmem:[#allocation165_spill] sm:$0xff] %v12378_v37  ;;  %v4437_v31 = vmul.f32 0.044715, %v12367_v23  ;;  %v8551_v24 = vld [vmem:[%s9926_s14 + $0x1a0] ss:$8 sps:$4 sm:$0xff]   ;;  %v12404_v46 = vadd.f32 %v12095_v36, %v14736_v38  ;;  %v12411_v16 = vadd.f32 %v12097_v11, %v14738_v9 }
 0x904   : > { %v5375_v34 = vmul.f32 %v5247_v33, %v4351_v48  ;;  %v4939_v37 = vmul.f32 0.7978846, %v4811_v60  ;;  %v14755_v32 = vld [vmem:[#allocation98_spill] sm:$0xff]  ;;  %v4563_v41 = vmul.f32 %v4435_v35, %v12363_v58  ;;  %v14757_v26 = vld [vmem:[#allocation109_spill] sm:$0xff]  ;;  %v12407_v27 = vpop.f32.mrb[84].mxu1  ;;  %v12415_v33 = vadd.f32 %v12121_v54, %v14728_v51 }
 0x905   : > { %v4871_v17 = vadd.f32 %v14756_v42, %v14755_v32  ;;  %v8556_v61 = vld [vmem:[%s9926_s14 + $0x1b4] ss:$8 sps:$4 sm:$0xff]   ;;  %v4565_v8 = vmul.f32 %v4437_v31, %v12367_v23  ;;  %14759 = vst [vmem:[#allocation98_spill] sm:$0xff] %v12404_v46  ;;  %v8554_v57 = vld [vmem:[%s9926_s14 + $0x1b0] ss:$8 sps:$4 sm:$0xff]   ;;  %14760 = vst [vmem:[#allocation117_spill] sm:$0xff] %v12407_v27  ;;  %6421 = vmatpush1.bf16.msra.mxu1 %v8551_v24  ;;  %v12431_v54 = vmul.f32 %v12334_v43, %v12258_v52 }
 0x906   : > { %v14758_v2 = vld [vmem:[#allocation122_spill] sm:$0xff]  ;;  %v5471_v48 = vpack.c.bf16 %v5375_v34, %v5367_v40  ;;  %14761 = vst [vmem:[#allocation109_spill] sm:$0xff] %v12411_v16  ;;  %v8559_v35 = vld [vmem:[%s9926_s14 + $0x1c4] ss:$8 sps:$4 sm:$0xff]   ;;  %v12418_v31 = vpop.f32.mrb[212].mxu0  ;;  %v4691_v36 = vmul.f32 %v4563_v41, %v12363_v58  ;;  %6422 = vmatprep.subr.bf16.mxu1 %v8556_v61  ;;  %v12439_v24 = vmul.f32 %v4556_v49, %v12316_v63  ;;  %v12450_v52 = vmul.f32 0.5, %v14755_v32 }
 0x907   : > { %v4879_v29 = vadd.f32 %v14758_v2, %v14757_v26  ;;  %v4999_v60 = vmul.f32 0.7978846, %v4871_v17  ;;  %14762 = vst [vmem:[#allocation122_spill] sm:$0xff] %v12415_v33  ;;  %v12420_v2 = vpop.f32.mrb[85].mxu1  ;;  %v4693_v42 = vmul.f32 %v4565_v8, %v12367_v23  ;;  %v4436_v17 = vmul.f32 0.044715, %v12404_v46 }
 0x908   : > { %14763 = vst [vmem:[#allocation167_spill] sm:$0xff] %v12420_v2  ;;  %v12425_v40 = vpop.f32.mrb[213].mxu0  ;;  %v12427_v11 = vpop.f32.mrb[86].mxu1  ;;  %6350 = vmatmul.mubr.bf16.gmra.mrb[108].mxu1 %v5471_v48  ;;  %14764 = vst [vmem:[#allocation168_spill] sm:$0xff] %v12431_v54  ;;  %v4941_v34 = vmul.f32 0.7978846, %v4813_v19  ;;  %v4819_v48 = vadd.f32 %v4691_v36, %v12363_v58  ;;  %v12446_v19 = vmul.f32 %v4558_v62, %v12320_v4 }
 0x909   : > { %v5007_v27 = vmul.f32 0.7978846, %v4879_v29  ;;  %8865 = vtanh.f32 %v4999_v60  ;;  %v4438_v2 = vmul.f32 0.044715, %v12411_v16  ;;  %v12434_v41 = vpop.f32.mrb[214].mxu0  ;;  %v12436_v29 = vpop.f32.mrb[87].mxu1  ;;  %v4821_v60 = vadd.f32 %v4693_v42, %v12367_v23  ;;  %6423 = vmatpush1.bf16.msra.mxu1 %v8554_v57 }
 0x90a   : > { %14765 = vst [vmem:[#allocation169_spill] sm:$0xff] %v12436_v29  ;;  %v8862_v8 = vpop.eup %8861  ;;  %14766 = vst [vmem:[#allocation170_spill] sm:$0xff] %v12439_v24  ;;  %v4443_v43 = vmul.f32 0.044715, %v12415_v33  ;;  %v12443_v54 = vpop.f32.mrb[215].mxu0  ;;  %v4564_v49 = vmul.f32 %v4436_v17, %v12404_v46  ;;  %v12456_v36 = vadd.f32 %v12125_v6, %v14729_v47  ;;  %v12463_v32 = vmul.f32 0.5, %v12367_v23  ;;  %6424 = vmatprep.subr.bf16.mxu1 %v8559_v35 }
 0x90b   : > { %8867 = vtanh.f32 %v5007_v27  ;;  %14767 = vst [vmem:[#allocation171_spill] sm:$0xff] %v12446_v19  ;;  %v5256_v61 = vadd.f32 1.0, %v8862_v8  ;;  %v8864_v29 = vpop.eup %8863  ;;  %v4566_v27 = vmul.f32 %v4438_v2, %v12411_v16  ;;  %v8557_v62 = vld [vmem:[%s9926_s14 + $0x1c0] ss:$8 sps:$4 sm:$0xff]   ;;  %v12460_v8 = vmul.f32 0.5, %v12363_v58 }
 0x90c   : > { %8869 = vtanh.f32 %v4939_v37  ;;  %14768 = vst [vmem:[#allocation172_spill] sm:$0xff] %v12456_v36  ;;  %v5264_v19 = vadd.f32 1.0, %v8864_v29  ;;  %14770 = vst [vmem:[#allocation174_spill] sm:$0xff] %v12463_v32  ;;  %v8562_v37 = vld [vmem:[%s9926_s14 + $0x1d4] ss:$8 sps:$4 sm:$0xff]   ;;  %v4367_v2 = vmul.f32 0.5, %v14757_v26  ;;  %v4571_v17 = vmul.f32 %v4443_v43, %v12415_v33 }
 0x90d   : > { %8871 = vtanh.f32 %v4941_v34  ;;  %14769 = vst [vmem:[#allocation173_spill] sm:$0xff] %v12460_v8  ;;  %v4947_v42 = vmul.f32 0.7978846, %v4819_v48  ;;  %v12470_v6 = vadd.f32 %v12127_v12, %v14736_v38  ;;  %v12472_v57 = vpop.f32.mrb[88].mxu1  ;;  %v5384_v58 = vmul.f32 %v5256_v61, %v12384_v5  ;;  %v12480_v29 = vpop.f32.mrb[216].mxu0  ;;  %6425 = vmatpush1.bf16.msra.mxu1 %v8557_v62  ;;  %v14776_v32 = vld [vmem:[#allocation127_spill] sm:$0xff] }
 0x90e   : > { %v5392_v34 = vmul.f32 %v5264_v19, %v12387_v22  ;;  %v4949_v23 = vmul.f32 0.7978846, %v4821_v60  ;;  %v12478_v35 = vadd.f32 %v12137_v15, %v14738_v9  ;;  %v12482_v26 = vpop.f32.mrb[89].mxu1  ;;  %v12485_v48 = vmul.f32 %v4564_v49, %v12404_v46  ;;  %v14775_v22 = vld [vmem:[#allocation135_spill] sm:$0xff]  ;;  %v12494_v15 = vpop.f32.mrb[217].mxu0  ;;  %v14777_v4 = vld [vmem:[#allocation141_spill] sm:$0xff]  ;;  %6426 = vmatprep.subr.bf16.mxu1 %v8562_v37 }
 0x90f   : > { %14771 = vst [vmem:[#allocation175_spill] sm:$0xff] %v12470_v6  ;;  %v12488_v12 = vmul.f32 %v4566_v27, %v12411_v16  ;;  %v4445_v5 = vmul.f32 0.044715, %v12456_v36  ;;  %v4888_v43 = vadd.f32 %v14775_v22, %v11914_v10  ;;  %v8560_v19 = vld [vmem:[%s9926_s14 + $0x1d0] ss:$8 sps:$4 sm:$0xff]   ;;  %v12496_v61 = vpop.f32.mrb[90].mxu1  ;;  %v4896_v8 = vadd.f32 %v14777_v4, %v14776_v32 }
 0x910   : > { %14772 = vst [vmem:[#allocation176_spill] sm:$0xff] %v12478_v35  ;;  %14773 = vst [vmem:[#allocation177_spill] sm:$0xff] %v12485_v48  ;;  %v5480_v60 = vpack.c.bf16 %v5392_v34, %v5384_v58  ;;  %v12502_v49 = vadd.f32 %v12139_v28, %v14728_v51  ;;  %v12506_v27 = vadd.f32 %v12153_v20, %v14729_v47  ;;  %v8565_v22 = vld [vmem:[%s9926_s14 + $0x1e4] ss:$8 sps:$4 sm:$0xff]   ;;  %v12509_v62 = vpop.f32.mrb[218].mxu0  ;;  %8873 = vtanh.f32 %v4947_v42 }
 0x911   : > { %14774 = vst [vmem:[#allocation178_spill] sm:$0xff] %v12488_v12  ;;  %14780 = vst [vmem:[#allocation141_spill] sm:$0xff] %v12509_v62  ;;  %v12511_v12 = vpop.f32.mrb[91].mxu1  ;;  %v12514_v58 = vmul.f32 %v4571_v17, %v12415_v33  ;;  %v4444_v4 = vmul.f32 0.044715, %v12470_v6  ;;  %v12517_v34 = vpop.f32.mrb[219].mxu0  ;;  %8875 = vtanh.f32 %v4949_v23  ;;  %v4573_v17 = vmul.f32 %v4445_v5, %v12456_v36  ;;  %6427 = vmatpush1.bf16.msra.mxu1 %v8560_v19 }
 0x912   : > { %14778 = vst [vmem:[#allocation135_spill] sm:$0xff] %v12502_v49  ;;  %14779 = vst [vmem:[#allocation127_spill] sm:$0xff] %v12506_v27  ;;  %v5016_v28 = vmul.f32 0.7978846, %v4888_v43  ;;  %6359 = vmatprep.mubr.bf16.mxu1 %v5480_v60  ;;  %v4446_v20 = vmul.f32 0.044715, %v12478_v35  ;;  %6428 = vmatprep.subr.bf16.mxu1 %v8565_v22  ;;  %v12537_v19 = vadd.f32 %v12155_v59, %v14736_v38 }
 0x913   : > { %14781 = vst [vmem:[#allocation179_spill] sm:$0xff] %v12511_v12  ;;  %14782 = vst [vmem:[#allocation180_spill] sm:$0xff] %v12514_v58  ;;  %v8866_v16 = vpop.eup %8865  ;;  %v5024_v37 = vmul.f32 0.7978846, %v4896_v8  ;;  %v14784_v48 = vld [vmem:[#allocation113_spill] sm:$0xff]  ;;  %v12524_v58 = vmul.f32 0.5, %v11914_v10 }
 0x914   : > { %14783 = vst [vmem:[#allocation181_spill] sm:$0xff] %v12517_v34  ;;  %v14785_v46 = vld [vmem:[#allocation133_spill] sm:$0xff]  ;;  %v5255_v63 = vadd.f32 1.0, %v8866_v16  ;;  %8877 = vtanh.f32 %v5016_v28  ;;  %v8568_v33 = vld [vmem:[%s9926_s14 + $0x1f4] ss:$8 sps:$4 sm:$0xff]   ;;  %v4572_v16 = vmul.f32 %v4444_v4, %v12470_v6  ;;  %v14787_v5 = vld [vmem:[#allocation124_spill] sm:$0xff]  ;;  %v4574_v22 = vmul.f32 %v4446_v20, %v12478_v35 }
 0x915   : > { %v4887_v24 = vadd.f32 %v14785_v46, %v14784_v48  ;;  %v8868_v42 = vpop.eup %8867  ;;  %v8563_v43 = vld [vmem:[%s9926_s14 + $0x1e0] ss:$8 sps:$4 sm:$0xff]   ;;  %8879 = vtanh.f32 %v5024_v37  ;;  %v4451_v23 = vmul.f32 0.044715, %v12502_v49  ;;  %v4453_v8 = vmul.f32 0.044715, %v12506_v27 }
 0x916   : > { %v5263_v34 = vadd.f32 1.0, %v8868_v42  ;;  %v12530_v46 = vpop.eup %8869  ;;  %v14788_v60 = vld [vmem:[#allocation137_spill] sm:$0xff]  ;;  %14789 = vst [vmem:[#allocation133_spill] sm:$0xff] %v12537_v19  ;;  %v12539_v28 = vpop.f32.mrb[92].mxu1  ;;  %v5383_v42 = vmul.f32 %v5255_v63, %v12450_v52  ;;  %v12547_v4 = vadd.f32 %v12163_v44, %v14738_v9  ;;  %v12557_v52 = vadd.f32 %v12201_v21, %v14728_v51  ;;  %6429 = vmatpush1.bf16.msra.mxu1 %v8563_v43 }
 0x917   : > { %14786 = vst [vmem:[#allocation113_spill] sm:$0xff] %v12530_v46  ;;  %v4895_v10 = vadd.f32 %v14788_v60, %v14787_v5  ;;  %v5015_v12 = vmul.f32 0.7978846, %v4887_v24  ;;  %14790 = vst [vmem:[#allocation124_spill] sm:$0xff] %v12539_v28  ;;  %v12541_v37 = vpop.eup %8871  ;;  %v8566_v60 = vld [vmem:[%s9926_s14 + $0x1f0] ss:$8 sps:$4 sm:$0xff]   ;;  %v4581_v20 = vmul.f32 %v4453_v8, %v12506_v27  ;;  %6430 = vmatprep.subr.bf16.mxu1 %v8568_v33 }
 0x918   : > { %14791 = vst [vmem:[#allocation137_spill] sm:$0xff] %v12541_v37  ;;  %v5391_v62 = vmul.f32 %v5263_v34, %v4367_v2  ;;  %14792 = vst [vmem:[#allocation182_spill] sm:$0xff] %v12547_v4  ;;  %v12550_v24 = vpop.f32.mrb[220].mxu0  ;;  %v12552_v46 = vpop.f32.mrb[93].mxu1  ;;  %v4452_v28 = vmul.f32 0.044715, %v12537_v19  ;;  %v4579_v34 = vmul.f32 %v4451_v23, %v12502_v49  ;;  %v12574_v43 = vadd.f32 %v12212_v1, %v14729_v47 }
 0x919   : > { %14793 = vst [vmem:[#allocation183_spill] sm:$0xff] %v12552_v46  ;;  %v5023_v59 = vmul.f32 0.7978846, %v4895_v10  ;;  %8881 = vtanh.f32 %v5015_v12  ;;  %v12559_v63 = vpop.f32.mrb[221].mxu0  ;;  %v12561_v2 = vpop.f32.mrb[94].mxu1  ;;  %v4384_v21 = vmul.f32 0.5, %v14776_v32  ;;  %v12583_v33 = vmul.f32 %v4573_v17, %v12456_v36 }
 0x91a   : > { %v5479_v44 = vpack.c.bf16 %v5391_v62, %v5383_v42  ;;  %v4454_v37 = vmul.f32 0.044715, %v12547_v4  ;;  %v8571_v12 = vld [vmem:[%s9926_s14 + $0x204] ss:$8 sps:$4 sm:$0xff]   ;;  %v12567_v10 = vpop.f32.mrb[222].mxu0  ;;  %v12569_v46 = vpop.f32.mrb[95].mxu1  ;;  %v12578_v62 = vadd.f32 %v12214_v18, %v14736_v38  ;;  %v12586_v8 = vmul.f32 %v4572_v16, %v12470_v6  ;;  %6431 = vmatpush1.bf16.msra.mxu1 %v8566_v60 }
 0x91b   : > { %14794 = vst [vmem:[#allocation184_spill] sm:$0xff] %v12567_v10  ;;  %14795 = vst [vmem:[#allocation185_spill] sm:$0xff] %v12569_v46  ;;  %8883 = vtanh.f32 %v5023_v59  ;;  %v12580_v23 = vpop.f32.mrb[223].mxu0  ;;  %v4375_v32 = vmul.f32 0.5, %v14784_v48  ;;  %v4580_v42 = vmul.f32 %v4452_v28, %v12537_v19  ;;  %v12590_v59 = vpop.eup %8873  ;;  %v12593_v1 = vmul.f32 %v4574_v22, %v12478_v35  ;;  %6513 = vmatprep.subr.bf16.mxu1 %v8571_v12  ;;  %v14806_v60 = vld [vmem:[#allocation115_spill] sm:$0xff] }
 0x91c   : > { %14796 = vst [vmem:[#allocation186_spill] sm:$0xff] %v12574_v43  ;;  %14797 = vst [vmem:[#allocation187_spill] sm:$0xff] %v12580_v23  ;;  %6360 = vmatmul.mubr.bf16.gmra.mrb[112].mxu1 %v5479_v44  ;;  %v4383_v18 = vmul.f32 0.5, %v14787_v5  ;;  %v4459_v23 = vmul.f32 0.044715, %v12557_v52  ;;  %v12599_v17 = vadd.f32 %v12220_v14, %v14738_v9  ;;  %v12601_v16 = vpop.eup %8875  ;;  %v12604_v48 = vmul.f32 %v4579_v34, %v12502_v49  ;;  %v14807_v34 = vld [vmem:[#allocation152_spill] sm:$0xff] }
 0x91d   : > { %14798 = vst [vmem:[#allocation188_spill] sm:$0xff] %v12583_v33  ;;  %14799 = vst [vmem:[#allocation189_spill] sm:$0xff] %v12586_v8  ;;  %v12607_v28 = vmul.f32 %v4581_v20, %v12506_v27  ;;  %v4582_v22 = vmul.f32 %v4454_v37, %v12547_v4  ;;  %v4904_v5 = vadd.f32 %v12169_v0, %v12030_v7  ;;  %v4461_v33 = vmul.f32 0.044715, %v12574_v43  ;;  %v14814_v8 = vld [vmem:[#allocation150_spill] sm:$0xff]  ;;  %v14815_v10 = vld [vmem:[#allocation155_spill] sm:$0xff] }
 0x91e   : > { %14800 = vst [vmem:[#allocation190_spill] sm:$0xff] %v12590_v59  ;;  %14801 = vst [vmem:[#allocation191_spill] sm:$0xff] %v12593_v1  ;;  %v8878_v44 = vpop.eup %8877  ;;  %v4460_v14 = vmul.f32 0.044715, %v12578_v62  ;;  %v4912_v36 = vadd.f32 %v14806_v60, %v12119_v45  ;;  %v12618_v1 = vadd.f32 %v14807_v34, %v14728_v51  ;;  %v12621_v37 = vmul.f32 %v4580_v42, %v12537_v19 }
 0x91f   : > { %14802 = vst [vmem:[#allocation192_spill] sm:$0xff] %v12599_v17  ;;  %14803 = vst [vmem:[#allocation193_spill] sm:$0xff] %v12601_v16  ;;  %v8880_v20 = vpop.eup %8879  ;;  %v12624_v0 = vmul.f32 0.5, %v12030_v7  ;;  %v5032_v12 = vmul.f32 0.7978846, %v4904_v5  ;;  %v4587_v35 = vmul.f32 %v4459_v23, %v12557_v52  ;;  %v12629_v60 = vmul.f32 0.5, %v12119_v45 }
 0x920   : > { %14804 = vst [vmem:[#allocation194_spill] sm:$0xff] %v12604_v48  ;;  %14805 = vst [vmem:[#allocation195_spill] sm:$0xff] %v12607_v28  ;;  %v5272_v28 = vadd.f32 1.0, %v8878_v44  ;;  %v5280_v27 = vadd.f32 1.0, %v8880_v20  ;;  %v4462_v16 = vmul.f32 0.044715, %v12599_v17  ;;  %v4589_v20 = vmul.f32 %v4461_v33, %v12574_v43 }
 0x921   : > { %14808 = vst [vmem:[#allocation115_spill] sm:$0xff] %v12621_v37  ;;  %v5040_v48 = vmul.f32 0.7978846, %v4912_v36  ;;  %8885 = vtanh.f32 %v5032_v12  ;;  %v4467_v34 = vmul.f32 0.044715, %v12618_v1  ;;  %v14809_v44 = vld [vmem:[#allocation154_spill] sm:$0xff]  ;;  %v4588_v36 = vmul.f32 %v4460_v14, %v12578_v62 }
 0x922   : > { %v12634_v42 = vadd.f32 %v14809_v44, %v14729_v47  ;;  %v5400_v7 = vmul.f32 %v5272_v28, %v12524_v58  ;;  %v5408_v5 = vmul.f32 %v5280_v27, %v4384_v21  ;;  %v14811_v37 = vld [vmem:[#allocation130_spill] sm:$0xff]  ;;  %v14812_v45 = vld [vmem:[#allocation147_spill] sm:$0xff]  ;;  %v14813_v12 = vld [vmem:[#allocation140_spill] sm:$0xff]  ;;  %v4590_v44 = vmul.f32 %v4462_v16, %v12599_v17 }
 0x923   : > { %v8882_v49 = vpop.eup %8881  ;;  %8887 = vtanh.f32 %v5040_v48  ;;  %v4903_v19 = vadd.f32 %v14812_v45, %v14811_v37  ;;  %v4911_v6 = vadd.f32 %v14814_v8, %v14813_v12  ;;  %v12646_v58 = vadd.f32 %v14815_v10, %v14736_v38  ;;  %v14816_v27 = vld [vmem:[#allocation85_spill] sm:$0xff] }
 0x924   : > { %14810 = vst [vmem:[#allocation152_spill] sm:$0xff] %v12634_v42  ;;  %v5271_v23 = vadd.f32 1.0, %v8882_v49  ;;  %v5488_v46 = vpack.c.bf16 %v5408_v5, %v5400_v7  ;;  %v12650_v21 = vadd.f32 %v14816_v27, %v14738_v9  ;;  %v4595_v33 = vmul.f32 %v4467_v34, %v12618_v1 }
 0x925   : > { %v8884_v59 = vpop.eup %8883  ;;  %v4469_v48 = vmul.f32 0.044715, %v12634_v42  ;;  %v5031_v28 = vmul.f32 0.7978846, %v4903_v19  ;;  %v5039_v14 = vmul.f32 0.7978846, %v4911_v6  ;;  %v12658_v10 = vadd.f32 %v12264_v53, %v14728_v51 }
 0x926   : > { %14817 = vst [vmem:[#allocation154_spill] sm:$0xff] %v12650_v21  ;;  %v5279_v49 = vadd.f32 1.0, %v8884_v59  ;;  %6369 = vmatprep.mubr.bf16.mxu1 %v5488_v46  ;;  %v5399_v8 = vmul.f32 %v5271_v23, %v4375_v32  ;;  %v4468_v7 = vmul.f32 0.044715, %v12646_v58  ;;  %v4470_v16 = vmul.f32 0.044715, %v12650_v21 }
 0x927   : > { %8889 = vtanh.f32 %v5031_v28  ;;  %14818 = vst [vmem:[#allocation130_spill] sm:$0xff] %v12658_v10  ;;  %v12662_v59 = vadd.f32 %v12272_v55, %v14729_v47  ;;  %v12665_v34 = vmul.f32 %v4582_v22, %v12547_v4  ;;  %v12668_v46 = vmul.f32 %v4587_v35, %v12557_v52 }
 0x928   : > { %v5407_v5 = vmul.f32 %v5279_v49, %v4383_v18  ;;  %v12671_v6 = vmul.f32 %v4589_v20, %v12574_v43  ;;  %8891 = vtanh.f32 %v5039_v14  ;;  %v4597_v32 = vmul.f32 %v4469_v48, %v12634_v42 }
 0x929   : > { %14819 = vst [vmem:[#allocation147_spill] sm:$0xff] %v12662_v59  ;;  %14820 = vst [vmem:[#allocation140_spill] sm:$0xff] %v12665_v34  ;;  %v4596_v53 = vmul.f32 %v4468_v7, %v12646_v58  ;;  %v12677_v18 = vadd.f32 %v12274_v13, %v14736_v38  ;;  %v12680_v55 = vmul.f32 %v4588_v36, %v12578_v62  ;;  %v4391_v35 = vmul.f32 0.5, %v14811_v37  ;;  %v14857_v34 = vld [vmem:[#allocation94_spill] sm:$0xff] }
 0x92a   : > { %14821 = vst [vmem:[#allocation150_spill] sm:$0xff] %v12671_v6  ;;  %v5487_v19 = vpack.c.bf16 %v5407_v5, %v5399_v8  ;;  %v12683_v22 = vmul.f32 %v4590_v44, %v12599_v17  ;;  %v4598_v20 = vmul.f32 %v4470_v16, %v12650_v21  ;;  %v12688_v45 = vmul.f32 %v4595_v33, %v12618_v1  ;;  %v14826_v5 = vld [vmem:[#allocation66_spill] sm:$0xff]  ;;  %v14856_v17 = vld [vmem:[#allocation89_spill] sm:$0xff] }
 0x92b   : > { %v8886_v23 = vpop.eup %8885  ;;  %v4399_v27 = vmul.f32 0.5, %v14813_v12  ;;  %v4475_v13 = vmul.f32 0.044715, %v12658_v10  ;;  %v4477_v49 = vmul.f32 0.044715, %v12662_v59  ;;  %v12695_v44 = vadd.f32 %v12286_v50, %v14738_v9 }
 0x92c   : > { %14822 = vst [vmem:[#allocation155_spill] sm:$0xff] %v12683_v22  ;;  %6370 = vmatmul.mubr.bf16.gmra.mrb[116].mxu1 %v5487_v19  ;;  %v5288_v48 = vadd.f32 1.0, %v8886_v23  ;;  %v4920_v37 = vadd.f32 %v12301_v25, %v12151_v39  ;;  %v4928_v28 = vadd.f32 %v12345_v56, %v12251_v30  ;;  %v12702_v8 = vmul.f32 %v4597_v32, %v12634_v42  ;;  %v14833_v42 = vld [vmem:[#allocation160_spill] sm:$0xff]  ;;  %v14840_v22 = vld [vmem:[#allocation73_spill] sm:$0xff] }
 0x92d   : > { %v8888_v36 = vpop.eup %8887  ;;  %14823 = vst [vmem:[#allocation85_spill] sm:$0xff] %v12695_v44  ;;  %v12705_v12 = vmul.f32 %v4596_v53, %v12646_v58  ;;  %v4476_v14 = vmul.f32 0.044715, %v12677_v18  ;;  %v12709_v7 = vmul.f32 %v4598_v20, %v12650_v21  ;;  %v12713_v25 = vadd.f32 %v14826_v5, %v14728_v51 }
 0x92e   : > { %v5296_v33 = vadd.f32 1.0, %v8888_v36  ;;  %14824 = vst [vmem:[#allocation196_spill] sm:$0xff] %v12702_v8  ;;  %v5048_v50 = vmul.f32 0.7978846, %v4920_v37  ;;  %v5056_v16 = vmul.f32 0.7978846, %v4928_v28  ;;  %v5416_v56 = vmul.f32 %v5288_v48, %v12624_v0 }
 0x92f   : > { %14825 = vst [vmem:[#allocation197_spill] sm:$0xff] %v12709_v7  ;;  %14827 = vst [vmem:[#allocation66_spill] sm:$0xff] %v12713_v25  ;;  %v4603_v32 = vmul.f32 %v4475_v13, %v12658_v10  ;;  %v12719_v53 = vmul.f32 0.5, %v12151_v39  ;;  %v4605_v23 = vmul.f32 %v4477_v49, %v12662_v59  ;;  %v4478_v20 = vmul.f32 0.044715, %v12695_v44  ;;  %v14828_v36 = vld [vmem:[#allocation156_spill] sm:$0xff] }
 0x930   : > { %v5424_v19 = vmul.f32 %v5296_v33, %v12629_v60  ;;  %8893 = vtanh.f32 %v5048_v50  ;;  %v12725_v37 = vadd.f32 %v14828_v36, %v14729_v47  ;;  %v4604_v0 = vmul.f32 %v4476_v14, %v12677_v18  ;;  %v14830_v60 = vld [vmem:[#allocation144_spill] sm:$0xff]  ;;  %v14831_v48 = vld [vmem:[#allocation107_spill] sm:$0xff]  ;;  %v14832_v49 = vld [vmem:[#allocation153_spill] sm:$0xff] }
 0x931   : > { %v8890_v28 = vpop.eup %8889  ;;  %8895 = vtanh.f32 %v5056_v16  ;;  %v4919_v13 = vadd.f32 %v14831_v48, %v14830_v60  ;;  %v4483_v8 = vmul.f32 0.044715, %v12713_v25  ;;  %v4927_v6 = vadd.f32 %v14833_v42, %v14832_v49  ;;  %v14834_v50 = vld [vmem:[#allocation157_spill] sm:$0xff]  ;;  %v14835_v16 = vld [vmem:[#allocation159_spill] sm:$0xff] }
 0x932   : > { %14829 = vst [vmem:[#allocation156_spill] sm:$0xff] %v12725_v37  ;;  %v5496_v5 = vpack.c.bf16 %v5424_v19, %v5416_v56  ;;  %v8892_v33 = vpop.eup %8891  ;;  %v5287_v39 = vadd.f32 1.0, %v8890_v28  ;;  %v12735_v43 = vadd.f32 %v14834_v50, %v14736_v38  ;;  %v4416_v56 = vmul.f32 0.5, %v12251_v30 }
 0x933   : > { %v5295_v36 = vadd.f32 1.0, %v8892_v33  ;;  %v5047_v14 = vmul.f32 0.7978846, %v4919_v13  ;;  %v12740_v19 = vadd.f32 %v14835_v16, %v14738_v9  ;;  %v12743_v28 = vmul.f32 %v4603_v32, %v12658_v10  ;;  %v14839_v16 = vld [vmem:[#allocation65_spill] sm:$0xff] }
 0x934   : > { %6379 = vmatprep.mubr.bf16.mxu1 %v5496_v5  ;;  %v4606_v48 = vmul.f32 %v4478_v20, %v12695_v44  ;;  %v4485_v42 = vmul.f32 0.044715, %v12725_v37  ;;  %v5055_v7 = vmul.f32 0.7978846, %v4927_v6  ;;  %v5415_v21 = vmul.f32 %v5287_v39, %v4391_v35  ;;  %v14841_v35 = vld [vmem:[#allocation67_spill] sm:$0xff] }
 0x935   : > { %14836 = vst [vmem:[#allocation144_spill] sm:$0xff] %v12740_v19  ;;  %14837 = vst [vmem:[#allocation107_spill] sm:$0xff] %v12743_v28  ;;  %v5423_v50 = vmul.f32 %v5295_v36, %v4399_v27  ;;  %v12748_v5 = vmul.f32 %v4605_v23, %v12662_v59  ;;  %8897 = vtanh.f32 %v5047_v14  ;;  %v12751_v30 = vmul.f32 %v4604_v0, %v12677_v18  ;;  %v14842_v27 = vld [vmem:[#allocation79_spill] sm:$0xff] }
 0x936   : > { %v4611_v13 = vmul.f32 %v4483_v8, %v12713_v25  ;;  %8899 = vtanh.f32 %v5055_v7  ;;  %v4484_v32 = vmul.f32 0.044715, %v12735_v43  ;;  %v4486_v20 = vmul.f32 0.044715, %v12740_v19  ;;  %v14844_v36 = vld [vmem:[#allocation119_spill] sm:$0xff] }
 0x937   : > { %14838 = vst [vmem:[#allocation153_spill] sm:$0xff] %v12748_v5  ;;  %v5495_v33 = vpack.c.bf16 %v5423_v50, %v5415_v21  ;;  %v4810_v6 = vadd.f32 %v14840_v22, %v14839_v16  ;;  %v4818_v39 = vadd.f32 %v14842_v27, %v14841_v35  ;;  %v12761_v23 = vmul.f32 %v4606_v48, %v12695_v44  ;;  %v14845_v7 = vld [vmem:[#allocation111_spill] sm:$0xff]  ;;  %v14847_v48 = vld [vmem:[#allocation126_spill] sm:$0xff] }
 0x938   : > { %v4613_v0 = vmul.f32 %v4485_v42, %v12725_v37  ;;  %v12766_v8 = vadd.f32 %v14844_v36, %v14728_v51  ;;  %v12770_v21 = vadd.f32 %v14845_v7, %v14729_v47  ;;  %v12774_v22 = vadd.f32 %v12351_v3, %v14736_v38  ;;  %v14865_v28 = vld [vmem:[#allocation83_spill] sm:$0xff] }
 0x939   : > { %14843 = vst [vmem:[#allocation160_spill] sm:$0xff] %v12761_v23  ;;  %6380 = vmatmul.mubr.bf16.gmra.mrb[120].mxu1 %v5495_v33  ;;  %v4938_v14 = vmul.f32 0.7978846, %v4810_v6  ;;  %v4946_v50 = vmul.f32 0.7978846, %v4818_v39  ;;  %v12778_v27 = vadd.f32 %v14847_v48, %v14738_v9  ;;  %v12781_v5 = vmul.f32 %v4611_v13, %v12713_v25  ;;  %v14864_v25 = vld [vmem:[#allocation75_spill] sm:$0xff] }
 0x93a   : > { %14846 = vst [vmem:[#allocation157_spill] sm:$0xff] %v12770_v21  ;;  %v8894_v42 = vpop.eup %8893  ;;  %v4407_v36 = vmul.f32 0.5, %v14830_v60  ;;  %v4415_v7 = vmul.f32 0.5, %v14832_v49  ;;  %v4612_v33 = vmul.f32 %v4484_v32, %v12735_v43  ;;  %v4614_v59 = vmul.f32 %v4486_v20, %v12740_v19 }
 0x93b   : > { %14848 = vst [vmem:[#allocation159_spill] sm:$0xff] %v12778_v27  ;;  %14849 = vst [vmem:[#allocation65_spill] sm:$0xff] %v12781_v5  ;;  %v8896_v6 = vpop.eup %8895  ;;  %v5304_v39 = vadd.f32 1.0, %v8894_v42  ;;  %8901 = vtanh.f32 %v4938_v14  ;;  %v4491_v3 = vmul.f32 0.044715, %v12766_v8  ;;  %v12789_v48 = vmul.f32 %v4613_v0, %v12725_v37  ;;  %v14852_v0 = vld [vmem:[#allocation161_spill] sm:$0xff] }
 0x93c   : > { %v5312_v23 = vadd.f32 1.0, %v8896_v6  ;;  %8903 = vtanh.f32 %v4946_v50  ;;  %v4493_v13 = vmul.f32 0.044715, %v12770_v21  ;;  %v4298_v60 = vmul.f32 0.5, %v14839_v16 }
 0x93d   : > { %14850 = vst [vmem:[#allocation73_spill] sm:$0xff] %v12789_v48  ;;  %v4306_v49 = vmul.f32 0.5, %v14841_v35  ;;  %v4492_v32 = vmul.f32 0.044715, %v12774_v22  ;;  %v4494_v42 = vmul.f32 0.044715, %v12778_v27  ;;  %v5432_v20 = vmul.f32 %v5304_v39, %v12719_v53 }
 0x93e   : > { %v5440_v14 = vmul.f32 %v5312_v23, %v4416_v56  ;;  %v12798_v44 = vmul.f32 %v4612_v33, %v12735_v43  ;;  %v12802_v6 = vadd.f32 %v14852_v0, %v14728_v51  ;;  %v12805_v48 = vmul.f32 %v4614_v59, %v12740_v19  ;;  %v14854_v35 = vld [vmem:[#allocation162_spill] sm:$0xff] }
 0x93f   : > { %v8898_v50 = vpop.eup %8897  ;;  %v4619_v16 = vmul.f32 %v4491_v3, %v12766_v8  ;;  %v12810_v37 = vadd.f32 %v14854_v35, %v14729_v47  ;;  %v5193_v53 = vadd.f32 1.0, %v14856_v17  ;;  %v4621_v39 = vmul.f32 %v4493_v13, %v12770_v21  ;;  %v14858_v3 = vld [vmem:[#allocation163_spill] sm:$0xff]  ;;  %v14859_v17 = vld [vmem:[#allocation72_spill] sm:$0xff]  ;;  %v14861_v13 = vld [vmem:[#allocation166_spill] sm:$0xff] }
 0x940   : > { %14851 = vst [vmem:[#allocation67_spill] sm:$0xff] %v12798_v44  ;;  %14853 = vst [vmem:[#allocation79_spill] sm:$0xff] %v12805_v48  ;;  %v8900_v56 = vpop.eup %8899  ;;  %v5504_v23 = vpack.c.bf16 %v5440_v14, %v5432_v20  ;;  %v5303_v33 = vadd.f32 1.0, %v8898_v50  ;;  %v5201_v0 = vadd.f32 1.0, %v14857_v34  ;;  %v4620_v5 = vmul.f32 %v4492_v32, %v12774_v22  ;;  %v14860_v20 = vld [vmem:[#allocation74_spill] sm:$0xff] }
 0x941   : > { %14855 = vst [vmem:[#allocation119_spill] sm:$0xff] %v12810_v37  ;;  %v5311_v4 = vadd.f32 1.0, %v8900_v56  ;;  %v4622_v59 = vmul.f32 %v4494_v42, %v12778_v27  ;;  %v12819_v48 = vadd.f32 %v14858_v3, %v14736_v38  ;;  %v4499_v35 = vmul.f32 0.044715, %v12802_v6 }
 0x942   : > { %6389 = vmatprep.mubr.bf16.mxu1 %v5504_v23  ;;  %v5321_v19 = vmul.f32 %v5193_v53, %v14859_v17  ;;  %v5329_v14 = vmul.f32 %v5201_v0, %v14860_v20  ;;  %v12826_v50 = vadd.f32 %v14861_v13, %v14738_v9  ;;  %v5431_v34 = vmul.f32 %v5303_v33, %v4407_v36  ;;  %v14866_v53 = vld [vmem:[#allocation77_spill] sm:$0xff]  ;;  %v14867_v17 = vld [vmem:[#allocation88_spill] sm:$0xff] }
 0x943   : > { %v5439_v56 = vmul.f32 %v5311_v4, %v4415_v7  ;;  %v12829_v32 = vmul.f32 %v4619_v16, %v12766_v8  ;;  %v4501_v42 = vmul.f32 0.044715, %v12810_v37  ;;  %v4500_v23 = vmul.f32 0.044715, %v12819_v48  ;;  %v14868_v4 = vld [vmem:[#allocation117_spill] sm:$0xff] }
 0x944   : > { %14862 = vst [vmem:[#allocation111_spill] sm:$0xff] %v12826_v50  ;;  %v5449_v3 = vpack.c.bf16 %v5329_v14, %v5321_v19  ;;  %v4826_v10 = vadd.f32 %v14865_v28, %v14864_v25  ;;  %v4834_v0 = vadd.f32 %v14867_v17, %v14866_v53  ;;  %v4502_v13 = vmul.f32 0.044715, %v12826_v50 }
 0x945   : > { %14863 = vst [vmem:[#allocation126_spill] sm:$0xff] %v12829_v32  ;;  %v8902_v20 = vpop.eup %8901  ;;  %v5503_v44 = vpack.c.bf16 %v5439_v56, %v5431_v34  ;;  %v12840_v36 = vadd.f32 %v14868_v4, %v14728_v51  ;;  %v12844_v7 = vadd.f32 %v12418_v31, %v14729_v47  ;;  %v12847_v33 = vmul.f32 %v4621_v39, %v12770_v21  ;;  %v14872_v39 = vld [vmem:[#allocation167_spill] sm:$0xff]  ;;  %v14889_v21 = vld [vmem:[#allocation84_spill] sm:$0xff] }
 0x946   : > { %v8904_v19 = vpop.eup %8903  ;;  %v5194_v16 = vadd.f32 1.0, %v8902_v20  ;;  %v4954_v28 = vmul.f32 0.7978846, %v4826_v10  ;;  %v4962_v14 = vmul.f32 0.7978846, %v4834_v0  ;;  %v4627_v34 = vmul.f32 %v4499_v35, %v12802_v6 }
 0x947   : > { %14869 = vst [vmem:[#allocation161_spill] sm:$0xff] %v12840_v36  ;;  %14870 = vst [vmem:[#allocation162_spill] sm:$0xff] %v12844_v7  ;;  %6390 = vmatmul.mubr.bf16.gmra.mrb[124].mxu1 %v5503_v44  ;;  %v5202_v17 = vadd.f32 1.0, %v8904_v19  ;;  %v4629_v56 = vmul.f32 %v4501_v42, %v12810_v37  ;;  %v4507_v4 = vmul.f32 0.044715, %v12840_v36  ;;  %v12853_v32 = vmul.f32 %v4620_v5, %v12774_v22 }
 0x948   : > { %14871 = vst [vmem:[#allocation89_spill] sm:$0xff] %v12847_v33  ;;  %8905 = vtanh.f32 %v4954_v28  ;;  %v4509_v31 = vmul.f32 0.044715, %v12844_v7  ;;  %v12858_v20 = vadd.f32 %v14872_v39, %v14736_v38  ;;  %v5322_v10 = vmul.f32 %v5194_v16, %v4298_v60 }
 0x949   : > { %v5330_v44 = vmul.f32 %v5202_v17, %v4306_v49  ;;  %v12861_v0 = vmul.f32 %v4622_v59, %v12778_v27  ;;  %8907 = vtanh.f32 %v4962_v14  ;;  %v4628_v35 = vmul.f32 %v4500_v23, %v12819_v48  ;;  %v8569_v59 = vld [vmem:[%s9926_s14 + $0x200] ss:$8 sps:$4 sm:$0xff]   ;;  %v8574_v14 = vld [vmem:[%s9926_s14 + $0x214] ss:$8 sps:$4 sm:$0xff]  }
 0x94a   : > { %v4630_v5 = vmul.f32 %v4502_v13, %v12826_v50  ;;  %v4635_v42 = vmul.f32 %v4507_v4, %v12840_v36  ;;  %v12868_v19 = vadd.f32 %v12425_v40, %v14738_v9  ;;  %v12871_v39 = vmul.f32 %v4627_v34, %v12802_v6  ;;  %v14878_v34 = vld [vmem:[#allocation71_spill] sm:$0xff]  ;;  %v14880_v4 = vld [vmem:[#allocation76_spill] sm:$0xff] }
 0x94b   : > { %14873 = vst [vmem:[#allocation94_spill] sm:$0xff] %v12861_v0  ;;  %v5450_v28 = vpack.c.bf16 %v5330_v44, %v5322_v10  ;;  %v12874_v60 = vmul.f32 %v4629_v56, %v12810_v37  ;;  %v12878_v49 = vadd.f32 %v12427_v11, %v14728_v51  ;;  %v4314_v23 = vmul.f32 0.5, %v14864_v25  ;;  %v14879_v56 = vld [vmem:[#allocation80_spill] sm:$0xff]  ;;  %v14881_v10 = vld [vmem:[#allocation86_spill] sm:$0xff]  ;;  %v14882_v25 = vld [vmem:[#allocation169_spill] sm:$0xff] }
 0x94c   : > { %14874 = vst [vmem:[#allocation163_spill] sm:$0xff] %v12868_v19  ;;  %14875 = vst [vmem:[#allocation72_spill] sm:$0xff] %v12871_v39  ;;  %v4637_v13 = vmul.f32 %v4509_v31, %v12844_v7  ;;  %v4508_v16 = vmul.f32 0.044715, %v12858_v20  ;;  %v12886_v40 = vadd.f32 %v12434_v41, %v14729_v47  ;;  %v4510_v17 = vmul.f32 0.044715, %v12868_v19 }
 0x94d   : > { %14876 = vst [vmem:[#allocation74_spill] sm:$0xff] %v12874_v60  ;;  %6432 = vmatprep.mubr.bf16.mxu1 %v5450_v28  ;;  %v4825_v11 = vadd.f32 %v14879_v56, %v14878_v34  ;;  %v4833_v44 = vadd.f32 %v14881_v10, %v14880_v4  ;;  %v12896_v31 = vadd.f32 %v14882_v25, %v14736_v38  ;;  %v4322_v28 = vmul.f32 0.5, %v14866_v53 }
 0x94e   : > { %14877 = vst [vmem:[#allocation166_spill] sm:$0xff] %v12886_v40  ;;  %v12899_v60 = vmul.f32 %v4628_v35, %v12819_v48  ;;  %v12902_v41 = vmul.f32 %v4630_v5, %v12826_v50  ;;  %v12906_v37 = vmul.f32 %v4635_v42, %v12840_v36  ;;  %v4515_v56 = vmul.f32 0.044715, %v12878_v49  ;;  %v8572_v35 = vld [vmem:[%s9926_s14 + $0x210] ss:$8 sps:$4 sm:$0xff]  }
 0x94f   : > { %6433 = vmatmul.mubr.bf16.vlgmr.msra.gmra.mrb[96].mxu1 %v5449_v3  ;;  %v4953_v10 = vmul.f32 0.7978846, %v4825_v11  ;;  %v4961_v33 = vmul.f32 0.7978846, %v4833_v44  ;;  %v12911_v25 = vadd.f32 %v12443_v54, %v14738_v9  ;;  %v12915_v5 = vmul.f32 %v4637_v13, %v12844_v7  ;;  %v8577_v54 = vld [vmem:[%s9926_s14 + $0x224] ss:$8 sps:$4 sm:$0xff]  }
 0x950   : > { %14883 = vst [vmem:[#allocation75_spill] sm:$0xff] %v12902_v41  ;;  %14884 = vst [vmem:[#allocation83_spill] sm:$0xff] %v12906_v37  ;;  %6514 = vmatpush1.bf16.msra.mxu1 %v8569_v59  ;;  %v4636_v53 = vmul.f32 %v4508_v16, %v12858_v20  ;;  %v4517_v42 = vmul.f32 0.044715, %v12886_v40  ;;  %v12920_v3 = vmul.f32 0.5, %v14878_v34  ;;  %v4638_v11 = vmul.f32 %v4510_v17, %v12868_v19  ;;  %v14888_v16 = vld [vmem:[#allocation96_spill] sm:$0xff] }
 0x951   : > { %14885 = vst [vmem:[#allocation77_spill] sm:$0xff] %v12911_v25  ;;  %14886 = vst [vmem:[#allocation88_spill] sm:$0xff] %v12915_v5  ;;  %6515 = vmatprep.subr.bf16.mxu1 %v8574_v14  ;;  %v12924_v44 = vmul.f32 0.5, %v14880_v4  ;;  %8909 = vtanh.f32 %v4953_v10  ;;  %v4516_v59 = vmul.f32 0.044715, %v12896_v31  ;;  %v14887_v5 = vld [vmem:[#allocation81_spill] sm:$0xff]  ;;  %v12934_v14 = vadd.f32 %v12472_v57, %v14728_v51 }
 0x952   : > { %v8906_v13 = vpop.eup %8905  ;;  %8911 = vtanh.f32 %v4961_v33  ;;  %v4842_v7 = vadd.f32 %v14888_v16, %v14887_v5  ;;  %v14890_v41 = vld [vmem:[#allocation102_spill] sm:$0xff]  ;;  %v4643_v4 = vmul.f32 %v4515_v56, %v12878_v49  ;;  %v8575_v10 = vld [vmem:[%s9926_s14 + $0x220] ss:$8 sps:$4 sm:$0xff]   ;;  %v4518_v0 = vmul.f32 0.044715, %v12911_v25 }
 0x953   : > { %v4850_v50 = vadd.f32 %v14890_v41, %v14889_v21  ;;  %14891 = vst [vmem:[#allocation117_spill] sm:$0xff] %v12934_v14  ;;  %v8908_v17 = vpop.eup %8907  ;;  %v5210_v34 = vadd.f32 1.0, %v8906_v13  ;;  %v12941_v33 = vadd.f32 %v12480_v29, %v14729_v47  ;;  %v12945_v37 = vadd.f32 %v12482_v26, %v14736_v38  ;;  %v8580_v13 = vld [vmem:[%s9926_s14 + $0x234] ss:$8 sps:$4 sm:$0xff]  }
 0x954   : > { %v5218_v16 = vadd.f32 1.0, %v8908_v17  ;;  %6516 = vmatpush1.bf16.msra.mxu1 %v8572_v35  ;;  %v4970_v27 = vmul.f32 0.7978846, %v4842_v7  ;;  %v4645_v57 = vmul.f32 %v4517_v42, %v12886_v40  ;;  %v4644_v56 = vmul.f32 %v4516_v59, %v12896_v31 }
 0x955   : > { %14892 = vst [vmem:[#allocation167_spill] sm:$0xff] %v12941_v33  ;;  %v4978_v41 = vmul.f32 0.7978846, %v4850_v50  ;;  %14893 = vst [vmem:[#allocation71_spill] sm:$0xff] %v12945_v37  ;;  %6517 = vmatprep.subr.bf16.mxu1 %v8577_v54  ;;  %v4523_v36 = vmul.f32 0.044715, %v12934_v14  ;;  %v5338_v39 = vmul.f32 %v5210_v34, %v4314_v23  ;;  %v12954_v26 = vmul.f32 %v4636_v53, %v12858_v20 }
 0x956   : > { %v4525_v29 = vmul.f32 0.044715, %v12941_v33  ;;  %v5346_v17 = vmul.f32 %v5218_v16, %v4322_v28  ;;  %8913 = vtanh.f32 %v4970_v27  ;;  %v4524_v50 = vmul.f32 0.044715, %v12945_v37  ;;  %v8578_v23 = vld [vmem:[%s9926_s14 + $0x230] ss:$8 sps:$4 sm:$0xff]  }
 0x957   : > { %v4646_v7 = vmul.f32 %v4518_v0, %v12911_v25  ;;  %8915 = vtanh.f32 %v4978_v41  ;;  %v12959_v35 = vadd.f32 %v12494_v15, %v14738_v9  ;;  %v12962_v54 = vmul.f32 %v4638_v11, %v12868_v19  ;;  %v8583_v11 = vld [vmem:[%s9926_s14 + $0x244] ss:$8 sps:$4 sm:$0xff]   ;;  %v14901_v41 = vld [vmem:[#allocation78_spill] sm:$0xff] }
 0x958   : > { %v5458_v42 = vpack.c.bf16 %v5346_v17, %v5338_v39  ;;  %6518 = vmatpush1.bf16.msra.mxu1 %v8575_v10  ;;  %v4651_v27 = vmul.f32 %v4523_v36, %v12934_v14  ;;  %v12968_v28 = vadd.f32 %v12496_v61, %v14728_v51  ;;  %v12971_v53 = vmul.f32 %v4643_v4, %v12878_v49  ;;  %v14898_v34 = vld [vmem:[#allocation141_spill] sm:$0xff] }
 0x959   : > { %14894 = vst [vmem:[#allocation80_spill] sm:$0xff] %v12959_v35  ;;  %14895 = vst [vmem:[#allocation76_spill] sm:$0xff] %v12962_v54  ;;  %v12974_v0 = vmul.f32 %v4645_v57, %v12886_v40  ;;  %v4330_v15 = vmul.f32 0.5, %v14887_v5  ;;  %6519 = vmatprep.subr.bf16.mxu1 %v8580_v13  ;;  %v4653_v39 = vmul.f32 %v4525_v29, %v12941_v33  ;;  %v4338_v61 = vmul.f32 0.5, %v14889_v21  ;;  %v14902_v57 = vld [vmem:[#allocation90_spill] sm:$0xff]  ;;  %v14904_v29 = vld [vmem:[#allocation100_spill] sm:$0xff] }
 0x95a   : > { %14896 = vst [vmem:[#allocation86_spill] sm:$0xff] %v12968_v28  ;;  %6442 = vmatprep.mubr.bf16.mxu1 %v5458_v42  ;;  %v12980_v36 = vmul.f32 %v4644_v56, %v12896_v31  ;;  %v4652_v59 = vmul.f32 %v4524_v50, %v12945_v37  ;;  %v12986_v4 = vadd.f32 %v14898_v34, %v14729_v47  ;;  %v4526_v16 = vmul.f32 0.044715, %v12959_v35  ;;  %v14903_v56 = vld [vmem:[#allocation82_spill] sm:$0xff]  ;;  %v8581_v42 = vld [vmem:[%s9926_s14 + $0x240] ss:$8 sps:$4 sm:$0xff]  }
 0x95b   : > { %14897 = vst [vmem:[#allocation169_spill] sm:$0xff] %v12974_v0  ;;  %v8910_v10 = vpop.eup %8909  ;;  %v12989_v5 = vmul.f32 %v4646_v7, %v12911_v25  ;;  %v4841_v13 = vadd.f32 %v14902_v57, %v14901_v41  ;;  %v4849_v17 = vadd.f32 %v14904_v29, %v14903_v56  ;;  %v12998_v50 = vmul.f32 %v4651_v27, %v12934_v14  ;;  %v14906_v7 = vld [vmem:[#allocation179_spill] sm:$0xff] }
 0x95c   : > { %14899 = vst [vmem:[#allocation81_spill] sm:$0xff] %v12986_v4  ;;  %v8912_v21 = vpop.eup %8911  ;;  %v5209_v0 = vadd.f32 1.0, %v8910_v10  ;;  %6520 = vmatpush1.bf16.msra.mxu1 %v8578_v23  ;;  %v4531_v34 = vmul.f32 0.044715, %v12968_v28  ;;  %v13003_v40 = vadd.f32 %v14906_v7, %v14736_v38  ;;  %v13007_v57 = vmul.f32 %v4653_v39, %v12941_v33  ;;  %v14910_v7 = vld [vmem:[#allocation181_spill] sm:$0xff] }
 0x95d   : > { %14900 = vst [vmem:[#allocation96_spill] sm:$0xff] %v12989_v5  ;;  %14905 = vst [vmem:[#allocation84_spill] sm:$0xff] %v12998_v50  ;;  %v8586_v5 = vld [vmem:[%s9926_s14 + $0x254] ss:$8 sps:$4 sm:$0xff]   ;;  %v5217_v25 = vadd.f32 1.0, %v8912_v21  ;;  %6521 = vmatprep.subr.bf16.mxu1 %v8583_v11  ;;  %v13010_v23 = vmul.f32 %v4652_v59, %v12945_v37  ;;  %v13014_v10 = vmul.f32 0.5, %v14901_v41  ;;  %v13018_v19 = vadd.f32 %v14910_v7, %v14738_v9 }
 0x95e   : > { %14907 = vst [vmem:[#allocation102_spill] sm:$0xff] %v13003_v40  ;;  %14908 = vst [vmem:[#allocation141_spill] sm:$0xff] %v13007_v57  ;;  %v4969_v54 = vmul.f32 0.7978846, %v4841_v13  ;;  %v4977_v29 = vmul.f32 0.7978846, %v4849_v17  ;;  %v5337_v21 = vmul.f32 %v5209_v0, %v12920_v3  ;;  %v4654_v13 = vmul.f32 %v4526_v16, %v12959_v35 }
 0x95f   : > { %14909 = vst [vmem:[#allocation78_spill] sm:$0xff] %v13010_v23  ;;  %v4533_v27 = vmul.f32 0.044715, %v12986_v4  ;;  %14911 = vst [vmem:[#allocation90_spill] sm:$0xff] %v13018_v19  ;;  %v5345_v39 = vmul.f32 %v5217_v25, %v12924_v44  ;;  %v4659_v59 = vmul.f32 %v4531_v34, %v12968_v28  ;;  %v4532_v17 = vmul.f32 0.044715, %v13003_v40 }
 0x960   : > { %8917 = vtanh.f32 %v4969_v54  ;;  %v8914_v11 = vpop.eup %8913  ;;  %v14912_v41 = vld [vmem:[#allocation91_spill] sm:$0xff]  ;;  %v14913_v57 = vld [vmem:[#allocation106_spill] sm:$0xff]  ;;  %6522 = vmatpush1.bf16.msra.mxu1 %v8581_v42  ;;  %v14914_v0 = vld [vmem:[#allocation97_spill] sm:$0xff] }
 0x961   : > { %8919 = vtanh.f32 %v4977_v29  ;;  %v4858_v33 = vadd.f32 %v14913_v57, %v14912_v41  ;;  %v8584_v7 = vld [vmem:[%s9926_s14 + $0x250] ss:$8 sps:$4 sm:$0xff]   ;;  %v8916_v50 = vpop.eup %8915  ;;  %v5457_v14 = vpack.c.bf16 %v5345_v39, %v5337_v21  ;;  %v5226_v3 = vadd.f32 1.0, %v8914_v11  ;;  %v14915_v25 = vld [vmem:[#allocation116_spill] sm:$0xff]  ;;  %6523 = vmatprep.subr.bf16.mxu1 %v8586_v5 }
 0x962   : > { %v4866_v44 = vadd.f32 %v14915_v25, %v14914_v0  ;;  %v14916_v54 = vld [vmem:[#allocation124_spill] sm:$0xff]  ;;  %v5234_v29 = vadd.f32 1.0, %v8916_v50  ;;  %v4661_v23 = vmul.f32 %v4533_v27, %v12986_v4  ;;  %v4534_v57 = vmul.f32 0.044715, %v13018_v19  ;;  %v14919_v50 = vld [vmem:[#allocation183_spill] sm:$0xff] }
 0x963   : > { %v13032_v16 = vadd.f32 %v14916_v54, %v14728_v51  ;;  %v8589_v34 = vld [vmem:[%s9926_s14 + $0x264] ss:$8 sps:$4 sm:$0xff]   ;;  %v4986_v42 = vmul.f32 0.7978846, %v4858_v33  ;;  %6443 = vmatmul.mubr.bf16.gmra.mrb[100].mxu1 %v5457_v14  ;;  %v5354_v21 = vmul.f32 %v5226_v3, %v4330_v15  ;;  %v13040_v5 = vadd.f32 %v12550_v24, %v14729_v47  ;;  %v8587_v14 = vld [vmem:[%s9926_s14 + $0x260] ss:$8 sps:$4 sm:$0xff]  }
 0x964   : > { %v4994_v39 = vmul.f32 0.7978846, %v4866_v44  ;;  %v5362_v25 = vmul.f32 %v5234_v29, %v4338_v61  ;;  %6524 = vmatpush1.bf16.msra.mxu1 %v8584_v7  ;;  %v13044_v54 = vadd.f32 %v14919_v50, %v14736_v38  ;;  %v13048_v33 = vadd.f32 %v12559_v63, %v14738_v9  ;;  %v8592_v61 = vld [vmem:[%s9926_s14 + $0x274] ss:$8 sps:$4 sm:$0xff]   ;;  %v14923_v63 = vld [vmem:[#allocation184_spill] sm:$0xff]  ;;  %v14931_v50 = vld [vmem:[#allocation93_spill] sm:$0xff] }
 0x965   : > { %14917 = vst [vmem:[#allocation82_spill] sm:$0xff] %v13032_v16  ;;  %v4539_v11 = vmul.f32 0.044715, %v13032_v16  ;;  %14918 = vst [vmem:[#allocation100_spill] sm:$0xff] %v13040_v5  ;;  %8921 = vtanh.f32 %v4986_v42  ;;  %v4337_v15 = vmul.f32 0.5, %v14903_v56  ;;  %v4660_v27 = vmul.f32 %v4532_v17, %v13003_v40  ;;  %6525 = vmatprep.subr.bf16.mxu1 %v8589_v34 }
 0x966   : > { %14920 = vst [vmem:[#allocation179_spill] sm:$0xff] %v13044_v54  ;;  %14921 = vst [vmem:[#allocation181_spill] sm:$0xff] %v13048_v33  ;;  %8923 = vtanh.f32 %v4994_v39  ;;  %v13055_v24 = vadd.f32 %v12561_v2, %v14728_v51  ;;  %v5466_v7 = vpack.c.bf16 %v5362_v25, %v5354_v21  ;;  %v4662_v3 = vmul.f32 %v4534_v57, %v13018_v19  ;;  %v8590_v34 = vld [vmem:[%s9926_s14 + $0x270] ss:$8 sps:$4 sm:$0xff]   ;;  %v14930_v25 = vld [vmem:[#allocation104_spill] sm:$0xff] }
 0x967   : > { %v4541_v44 = vmul.f32 0.044715, %v13040_v5  ;;  %v13062_v29 = vadd.f32 %v14923_v63, %v14729_v47  ;;  %v13065_v56 = vmul.f32 %v4654_v13, %v12959_v35  ;;  %v13068_v17 = vmul.f32 %v4659_v59, %v12968_v28  ;;  %v14929_v39 = vld [vmem:[#allocation87_spill] sm:$0xff] }
 0x968   : > { %14922 = vst [vmem:[#allocation91_spill] sm:$0xff] %v13055_v24  ;;  %v13071_v51 = vmul.f32 %v4661_v23, %v12986_v4  ;;  %v4667_v2 = vmul.f32 %v4539_v11, %v13032_v16  ;;  %6452 = vmatprep.mubr.bf16.mxu1 %v5466_v7  ;;  %v4346_v57 = vmul.f32 0.5, %v14912_v41  ;;  %v4354_v42 = vmul.f32 0.5, %v14914_v0  ;;  %6526 = vmatpush1.bf16.msra.mxu1 %v8587_v14  ;;  %v14932_v7 = vld [vmem:[#allocation108_spill] sm:$0xff]  ;;  %v14970_v28 = vld [vmem:[#allocation103_spill] sm:$0xff] }
 0x969   : > { %14924 = vst [vmem:[#allocation106_spill] sm:$0xff] %v13062_v29  ;;  %14925 = vst [vmem:[#allocation97_spill] sm:$0xff] %v13065_v56  ;;  %v4540_v47 = vmul.f32 0.044715, %v13044_v54  ;;  %v4542_v13 = vmul.f32 0.044715, %v13048_v33  ;;  %v13080_v59 = vmul.f32 %v4660_v27, %v13003_v40  ;;  %v4857_v11 = vadd.f32 %v14930_v25, %v14929_v39  ;;  %6527 = vmatprep.subr.bf16.mxu1 %v8592_v61 }
 0x96a   : > { %14926 = vst [vmem:[#allocation116_spill] sm:$0xff] %v13068_v17  ;;  %14927 = vst [vmem:[#allocation124_spill] sm:$0xff] %v13071_v51  ;;  %v8918_v21 = vpop.eup %8917  ;;  %v4547_v23 = vmul.f32 0.044715, %v13055_v24  ;;  %v4865_v63 = vadd.f32 %v14932_v7, %v14931_v50  ;;  %v8595_v41 = vld [vmem:[%s9926_s14 + $0x284] ss:$8 sps:$4 sm:$0xff]   ;;  %v13089_v4 = vmul.f32 %v4662_v3, %v13018_v19  ;;  %v4669_v14 = vmul.f32 %v4541_v44, %v13040_v5 }
 0x96b   : > { %14928 = vst [vmem:[#allocation183_spill] sm:$0xff] %v13080_v59  ;;  %v8920_v0 = vpop.eup %8919  ;;  %v5225_v51 = vadd.f32 1.0, %v8918_v21  ;;  %v4549_v27 = vmul.f32 0.044715, %v13062_v29  ;;  %v13094_v35 = vmul.f32 %v4667_v2, %v13032_v16  ;;  %v4985_v25 = vmul.f32 0.7978846, %v4857_v11 }
 0x96c   : > { %14933 = vst [vmem:[#allocation184_spill] sm:$0xff] %v13089_v4  ;;  %v5233_v56 = vadd.f32 1.0, %v8920_v0  ;;  %v4993_v17 = vmul.f32 0.7978846, %v4865_v63  ;;  %v4668_v61 = vmul.f32 %v4540_v47, %v13044_v54  ;;  %v4670_v7 = vmul.f32 %v4542_v13, %v13048_v33  ;;  %6528 = vmatpush1.bf16.msra.mxu1 %v8590_v34  ;;  %v8593_v44 = vld [vmem:[%s9926_s14 + $0x280] ss:$8 sps:$4 sm:$0xff]  }
 0x96d   : > { %14934 = vst [vmem:[#allocation87_spill] sm:$0xff] %v13094_v35  ;;  %v13099_v21 = vmul.f32 0.5, %v14929_v39  ;;  %v13102_v3 = vmul.f32 0.5, %v14931_v50  ;;  %v5353_v4 = vmul.f32 %v5225_v51, %v13014_v10  ;;  %v4675_v2 = vmul.f32 %v4547_v23, %v13055_v24  ;;  %6529 = vmatprep.subr.bf16.mxu1 %v8595_v41  ;;  %v8598_v11 = vld [vmem:[%s9926_s14 + $0x294] ss:$8 sps:$4 sm:$0xff]   ;;  %v14936_v50 = vld [vmem:[#allocation105_spill] sm:$0xff] }
 0x96e   : > { %v5361_v0 = vmul.f32 %v5233_v56, %v4337_v15  ;;  %8925 = vtanh.f32 %v4985_v25  ;;  %v13109_v13 = vmul.f32 %v4669_v14, %v13040_v5  ;;  %v4677_v39 = vmul.f32 %v4549_v27, %v13062_v29  ;;  %v14937_v63 = vld [vmem:[#allocation121_spill] sm:$0xff]  ;;  %v14940_v51 = vld [vmem:[#allocation112_spill] sm:$0xff]  ;;  %v14941_v23 = vld [vmem:[#allocation131_spill] sm:$0xff] }
 0x96f   : > { %v8922_v47 = vpop.eup %8921  ;;  %8927 = vtanh.f32 %v4993_v17  ;;  %v4874_v34 = vadd.f32 %v14937_v63, %v14936_v50  ;;  %v14938_v15 = vld [vmem:[#allocation185_spill] sm:$0xff]  ;;  %v4882_v41 = vadd.f32 %v14941_v23, %v14940_v51  ;;  %v13121_v14 = vmul.f32 %v4668_v61, %v13044_v54  ;;  %v8596_v63 = vld [vmem:[%s9926_s14 + $0x290] ss:$8 sps:$4 sm:$0xff]   ;;  %v14951_v5 = vld [vmem:[#allocation120_spill] sm:$0xff] }
 0x970   : > { %14935 = vst [vmem:[#allocation104_spill] sm:$0xff] %v13109_v13  ;;  %v8924_v19 = vpop.eup %8923  ;;  %v5465_v35 = vpack.c.bf16 %v5361_v0, %v5353_v4  ;;  %v5242_v10 = vadd.f32 1.0, %v8922_v47  ;;  %v13116_v56 = vadd.f32 %v14938_v15, %v14736_v38  ;;  %v13124_v17 = vmul.f32 %v4670_v7, %v13048_v33  ;;  %6530 = vmatpush1.bf16.msra.mxu1 %v8593_v44  ;;  %v14945_v38 = vld [vmem:[#allocation187_spill] sm:$0xff]  ;;  %v8601_v61 = vld [vmem:[%s9926_s14 + $0x2a4] ss:$8 sps:$4 sm:$0xff]  }
 0x971   : > { %v5250_v25 = vadd.f32 1.0, %v8924_v19  ;;  %14942 = vst [vmem:[#allocation108_spill] sm:$0xff] %v13121_v14  ;;  %v5002_v27 = vmul.f32 0.7978846, %v4874_v34  ;;  %v13128_v4 = vmul.f32 %v4675_v2, %v13055_v24  ;;  %v13132_v0 = vadd.f32 %v14945_v38, %v14738_v9  ;;  %v14946_v15 = vld [vmem:[#allocation99_spill] sm:$0xff]  ;;  %v14947_v19 = vld [vmem:[#allocation118_spill] sm:$0xff]  ;;  %6531 = vmatprep.subr.bf16.mxu1 %v8598_v11 }
 0x972   : > { %14939 = vst [vmem:[#allocation93_spill] sm:$0xff] %v13116_v56  ;;  %14943 = vst [vmem:[#allocation105_spill] sm:$0xff] %v13124_v17  ;;  %6453 = vmatmul.mubr.bf16.gmra.mrb[104].mxu1 %v5465_v35  ;;  %v5010_v47 = vmul.f32 0.7978846, %v4882_v41  ;;  %v4873_v23 = vadd.f32 %v14947_v19, %v14946_v15  ;;  %v5370_v7 = vmul.f32 %v5242_v10, %v4346_v57  ;;  %v4548_v35 = vmul.f32 0.044715, %v13116_v56 }
 0x973   : > { %14944 = vst [vmem:[#allocation121_spill] sm:$0xff] %v13128_v4  ;;  %v5378_v34 = vmul.f32 %v5250_v25, %v4354_v42  ;;  %v13138_v44 = vmul.f32 %v4677_v39, %v13062_v29  ;;  %8929 = vtanh.f32 %v5002_v27  ;;  %v14949_v2 = vld [vmem:[#allocation110_spill] sm:$0xff]  ;;  %v14950_v9 = vld [vmem:[#allocation123_spill] sm:$0xff]  ;;  %v4362_v19 = vmul.f32 0.5, %v14936_v50  ;;  %v14952_v11 = vld [vmem:[#allocation136_spill] sm:$0xff] }
 0x974   : > { %8931 = vtanh.f32 %v5010_v47  ;;  %v4881_v38 = vadd.f32 %v14950_v9, %v14949_v2  ;;  %v5001_v41 = vmul.f32 0.7978846, %v4873_v23  ;;  %v4890_v17 = vadd.f32 %v14952_v11, %v14951_v5  ;;  %v14953_v33 = vld [vmem:[#allocation129_spill] sm:$0xff]  ;;  %v14954_v57 = vld [vmem:[#allocation146_spill] sm:$0xff]  ;;  %6532 = vmatpush1.bf16.msra.mxu1 %v8596_v63  ;;  %v14962_v24 = vld [vmem:[#allocation143_spill] sm:$0xff] }
 0x975   : > { %14948 = vst [vmem:[#allocation185_spill] sm:$0xff] %v13138_v44  ;;  %v5474_v13 = vpack.c.bf16 %v5378_v34, %v5370_v7  ;;  %v4898_v42 = vadd.f32 %v14954_v57, %v14953_v33  ;;  %v8599_v39 = vld [vmem:[%s9926_s14 + $0x2a0] ss:$8 sps:$4 sm:$0xff]   ;;  %v8604_v10 = vld [vmem:[%s9926_s14 + $0x2b4] ss:$8 sps:$4 sm:$0xff]   ;;  %v4370_v27 = vmul.f32 0.5, %v14940_v51  ;;  %6533 = vmatprep.subr.bf16.mxu1 %v8601_v61  ;;  %v13159_v29 = vmul.f32 %v4548_v35, %v13116_v56 }
 0x976   : > { %v13151_v25 = vmul.f32 0.044715, %v13132_v0  ;;  %v5009_v47 = vmul.f32 0.7978846, %v4881_v38  ;;  %8933 = vtanh.f32 %v5001_v41  ;;  %v5018_v50 = vmul.f32 0.7978846, %v4890_v17 }
 0x977   : > { %6462 = vmatprep.mubr.bf16.mxu1 %v5474_v13  ;;  %v5026_v23 = vmul.f32 0.7978846, %v4898_v42  ;;  %v14955_v7 = vld [vmem:[#allocation114_spill] sm:$0xff]  ;;  %v14957_v11 = vld [vmem:[#allocation125_spill] sm:$0xff]  ;;  %v14958_v57 = vld [vmem:[#allocation139_spill] sm:$0xff]  ;;  %14959 = vst [vmem:[#allocation112_spill] sm:$0xff] %v13159_v29 }
 0x978   : > { %v14956_v34 = vld [vmem:[#allocation134_spill] sm:$0xff]  ;;  %v4897_v63 = vadd.f32 %v14958_v57, %v14957_v11  ;;  %v8926_v44 = vpop.eup %8925  ;;  %v13162_v4 = vmul.f32 0.5, %v14946_v15  ;;  %8935 = vtanh.f32 %v5009_v47  ;;  %v14961_v61 = vld [vmem:[#allocation149_spill] sm:$0xff]  ;;  %6534 = vmatpush1.bf16.msra.mxu1 %v8599_v39  ;;  %v14963_v35 = vld [vmem:[#allocation92_spill] sm:$0xff]  ;;  %v4378_v54 = vmul.f32 0.5, %v14951_v5 }
 0x979   : > { %v4889_v9 = vadd.f32 %v14956_v34, %v14955_v7  ;;  %v14960_v51 = vld [vmem:[#allocation138_spill] sm:$0xff]  ;;  %v8928_v38 = vpop.eup %8927  ;;  %v5241_v41 = vadd.f32 1.0, %v8926_v44  ;;  %8937 = vtanh.f32 %v5018_v50  ;;  %v4914_v16 = vadd.f32 %v14963_v35, %v14962_v24  ;;  %6535 = vmatprep.subr.bf16.mxu1 %v8604_v10  ;;  %v8607_v15 = vld [vmem:[%s9926_s14 + $0x2c4] ss:$8 sps:$4 sm:$0xff]   ;;  %v8611_v56 = vld [vmem:[%s9926_s14 + $0x2e0] ss:$8 sps:$4 sm:$0xff]  }
 0x97a   : > { %v4906_v13 = vadd.f32 %v14961_v61, %v14960_v51  ;;  %v8602_v17 = vld [vmem:[%s9926_s14 + $0x2b0] ss:$8 sps:$4 sm:$0xff]   ;;  %v5025_v34 = vmul.f32 0.7978846, %v4897_v63  ;;  %v5249_v57 = vadd.f32 1.0, %v8928_v38  ;;  %8939 = vtanh.f32 %v5026_v23  ;;  %v14964_v50 = vld [vmem:[#allocation132_spill] sm:$0xff] }
 0x97b   : > { %v5017_v42 = vmul.f32 0.7978846, %v4889_v9  ;;  %v5369_v47 = vmul.f32 %v5241_v41, %v13099_v21  ;;  %v4369_v61 = vmul.f32 0.5, %v14949_v2  ;;  %v5042_v39 = vmul.f32 0.7978846, %v4914_v16  ;;  %v14965_v23 = vld [vmem:[#allocation148_spill] sm:$0xff] }
 0x97c   : > { %v5034_v14 = vmul.f32 0.7978846, %v4906_v13  ;;  %v5377_v44 = vmul.f32 %v5249_v57, %v13102_v3  ;;  %v4905_v9 = vadd.f32 %v14965_v23, %v14964_v50  ;;  %v4386_v10 = vmul.f32 0.5, %v14953_v33  ;;  %6536 = vmatpush1.bf16.msra.mxu1 %v8602_v17  ;;  %v14966_v21 = vld [vmem:[#allocation142_spill] sm:$0xff]  ;;  %v14967_v2 = vld [vmem:[#allocation95_spill] sm:$0xff]  ;;  %v14975_v40 = vld [vmem:[#allocation101_spill] sm:$0xff] }
 0x97d   : > { %8941 = vtanh.f32 %v5017_v42  ;;  %v8930_v63 = vpop.eup %8929  ;;  %v13178_v13 = vmul.f32 0.5, %v14955_v7  ;;  %v4913_v5 = vadd.f32 %v14967_v2, %v14966_v21  ;;  %v8605_v38 = vld [vmem:[%s9926_s14 + $0x2c0] ss:$8 sps:$4 sm:$0xff]   ;;  %6537 = vmatprep.subr.bf16.mxu1 %v8607_v15  ;;  %v14968_v33 = vld [vmem:[#allocation151_spill] sm:$0xff]  ;;  %v14969_v23 = vld [vmem:[#allocation158_spill] sm:$0xff] }
 0x97e   : > { %8943 = vtanh.f32 %v5025_v34  ;;  %v8932_v41 = vpop.eup %8931  ;;  %v5473_v3 = vpack.c.bf16 %v5377_v44, %v5369_v47  ;;  %v5258_v42 = vadd.f32 1.0, %v8930_v63  ;;  %v5033_v16 = vmul.f32 0.7978846, %v4905_v9  ;;  %v8610_v34 = vld [vmem:[%s9926_s14 + $0x2d4] ss:$8 sps:$4 sm:$0xff]  }
 0x97f   : > { %8945 = vtanh.f32 %v5034_v14  ;;  %v5266_v57 = vadd.f32 1.0, %v8932_v41  ;;  %v5041_v35 = vmul.f32 0.7978846, %v4913_v5  ;;  %v4922_v7 = vadd.f32 %v14969_v23, %v14968_v33  ;;  %v14971_v14 = vld [vmem:[#allocation168_spill] sm:$0xff]  ;;  %v8608_v63 = vld [vmem:[%s9926_s14 + $0x2d0] ss:$8 sps:$4 sm:$0xff]  }
 0x980   : > { %8947 = vtanh.f32 %v5042_v39  ;;  %v4930_v17 = vadd.f32 %v14971_v14, %v14970_v28  ;;  %v8934_v59 = vpop.eup %8933  ;;  %6463 = vmatmul.mubr.bf16.gmra.mrb[108].mxu1 %v5473_v3  ;;  %v5386_v2 = vmul.f32 %v5258_v42, %v4362_v19  ;;  %v4385_v47 = vmul.f32 0.5, %v14957_v11  ;;  %v14972_v14 = vld [vmem:[#allocation145_spill] sm:$0xff]  ;;  %v14974_v42 = vld [vmem:[#allocation128_spill] sm:$0xff] }
 0x981   : > { %v4394_v44 = vmul.f32 0.5, %v14960_v51  ;;  %8949 = vtanh.f32 %v5033_v16  ;;  %v5394_v15 = vmul.f32 %v5266_v57, %v4370_v27  ;;  %v5257_v39 = vadd.f32 1.0, %v8934_v59  ;;  %6538 = vmatpush1.bf16.msra.mxu1 %v8605_v38  ;;  %v14973_v3 = vld [vmem:[#allocation69_spill] sm:$0xff] }
 0x982   : > { %8951 = vtanh.f32 %v5041_v35  ;;  %v5050_v9 = vmul.f32 0.7978846, %v4922_v7  ;;  %v8936_v5 = vpop.eup %8935  ;;  %v4402_v41 = vmul.f32 0.5, %v14962_v24  ;;  %v5058_v23 = vmul.f32 0.7978846, %v4930_v17  ;;  %6539 = vmatprep.subr.bf16.mxu1 %v8610_v34 }
 0x983   : > { %v4921_v19 = vadd.f32 %v14973_v3, %v14972_v14  ;;  %v4929_v11 = vadd.f32 %v14975_v40, %v14974_v42  ;;  %v8613_v29 = vld [vmem:[%s9926_s14 + $0x2e4] ss:$8 sps:$4 sm:$0xff]   ;;  %v8938_v51 = vpop.eup %8937  ;;  %v5482_v16 = vpack.c.bf16 %v5394_v15, %v5386_v2  ;;  %v5265_v27 = vadd.f32 1.0, %v8936_v5  ;;  %v14977_v2 = vld [vmem:[#allocation170_spill] sm:$0xff] }
 0x984   : > { %v4393_v59 = vmul.f32 0.5, %v14964_v50  ;;  %8953 = vtanh.f32 %v5050_v9  ;;  %v8940_v38 = vpop.eup %8939  ;;  %v5274_v57 = vadd.f32 1.0, %v8938_v51  ;;  %v5385_v7 = vmul.f32 %v5257_v39, %v13162_v4  ;;  %v14976_v3 = vld [vmem:[#allocation68_spill] sm:$0xff] }
 0x985   : > { %8955 = vtanh.f32 %v5058_v23  ;;  %v5049_v24 = vmul.f32 0.7978846, %v4921_v19  ;;  %v5057_v35 = vmul.f32 0.7978846, %v4929_v11  ;;  %6472 = vmatprep.mubr.bf16.mxu1 %v5482_v16  ;;  %v5393_v17 = vmul.f32 %v5265_v27, %v4369_v61  ;;  %6540 = vmatpush1.bf16.msra.mxu1 %v8608_v63  ;;  %v14978_v23 = vld [vmem:[#allocation98_spill] sm:$0xff]  ;;  %v14979_v19 = vld [vmem:[#allocation177_spill] sm:$0xff] }
 0x986   : > { %v5282_v40 = vadd.f32 1.0, %v8940_v38  ;;  %v4812_v15 = vadd.f32 %v14977_v2, %v14976_v3  ;;  %v5402_v50 = vmul.f32 %v5274_v57, %v4378_v54  ;;  %6541 = vmatprep.subr.bf16.mxu1 %v8613_v29  ;;  %v4820_v11 = vadd.f32 %v14979_v19, %v14978_v23  ;;  %v8616_v61 = vld [vmem:[%s9926_s14 + $0x2f4] ss:$8 sps:$4 sm:$0xff]  }
 0x987   : > { %v8942_v34 = vpop.eup %8941  ;;  %8957 = vtanh.f32 %v5049_v24  ;;  %v5481_v16 = vpack.c.bf16 %v5393_v17, %v5385_v7  ;;  %v14981_v17 = vld [vmem:[#allocation190_spill] sm:$0xff] }
 0x988   : > { %v8944_v5 = vpop.eup %8943  ;;  %v5273_v9 = vadd.f32 1.0, %v8942_v34  ;;  %v5410_v37 = vmul.f32 %v5282_v40, %v4386_v10  ;;  %8959 = vtanh.f32 %v5057_v35  ;;  %v4940_v38 = vmul.f32 0.7978846, %v4812_v15  ;;  %v14980_v34 = vld [vmem:[#allocation113_spill] sm:$0xff]  ;;  %v8614_v35 = vld [vmem:[%s9926_s14 + $0x2f0] ss:$8 sps:$4 sm:$0xff]  }
 0x989   : > { %v8946_v51 = vpop.eup %8945  ;;  %v5281_v4 = vadd.f32 1.0, %v8944_v5  ;;  %v4948_v54 = vmul.f32 0.7978846, %v4820_v11  ;;  %6473 = vmatmul.mubr.bf16.gmra.mrb[112].mxu1 %v5481_v16  ;;  %v5195_v2 = vadd.f32 1.0, %v14980_v34  ;;  %v4401_v10 = vmul.f32 0.5, %v14966_v21  ;;  %v14982_v11 = vld [vmem:[#allocation164_spill] sm:$0xff] }
 0x98a   : > { %v8948_v39 = vpop.eup %8947  ;;  %v5401_v63 = vmul.f32 %v5273_v9, %v13178_v13  ;;  %v5290_v27 = vadd.f32 1.0, %v8946_v51  ;;  %v5490_v57 = vpack.c.bf16 %v5410_v37, %v5402_v50  ;;  %6542 = vmatpush1.bf16.msra.mxu1 %v8611_v56  ;;  %8961 = vtanh.f32 %v4940_v38  ;;  %v8619_v37 = vld [vmem:[%s9926_s14 + $0x304] ss:$8 sps:$4 sm:$0xff]   ;;  %v14987_v38 = vld [vmem:[#allocation115_spill] sm:$0xff] }
 0x98b   : > { %v5409_v24 = vmul.f32 %v5281_v4, %v4385_v47  ;;  %v5298_v29 = vadd.f32 1.0, %v8948_v39  ;;  %v8950_v19 = vpop.eup %8949  ;;  %v5203_v40 = vadd.f32 1.0, %v14981_v17  ;;  %8963 = vtanh.f32 %v4948_v54  ;;  %6543 = vmatprep.subr.bf16.mxu1 %v8616_v61  ;;  %v14983_v21 = vld [vmem:[#allocation173_spill] sm:$0xff]  ;;  %v14984_v39 = vld [vmem:[#allocation175_spill] sm:$0xff] }
 0x98c   : > { %v5418_v7 = vmul.f32 %v5290_v27, %v4394_v44  ;;  %v8952_v13 = vpop.eup %8951  ;;  %6482 = vmatprep.mubr.bf16.mxu1 %v5490_v57  ;;  %v5289_v9 = vadd.f32 1.0, %v8950_v19  ;;  %v4410_v50 = vmul.f32 0.5, %v14968_v33  ;;  %v13213_v44 = vmul.f32 %v5195_v2, %v14982_v11  ;;  %v14986_v27 = vld [vmem:[#allocation133_spill] sm:$0xff] }
 0x98d   : > { %v5489_v15 = vpack.c.bf16 %v5409_v24, %v5401_v63  ;;  %v5426_v5 = vmul.f32 %v5298_v29, %v4402_v41  ;;  %v5297_v47 = vadd.f32 1.0, %v8952_v13  ;;  %v13216_v56 = vmul.f32 %v5203_v40, %v14983_v21  ;;  %v14985_v63 = vld [vmem:[#allocation189_spill] sm:$0xff]  ;;  %v14988_v13 = vld [vmem:[#allocation122_spill] sm:$0xff] }
 0x98e   : > { %v8954_v51 = vpop.eup %8953  ;;  %v4418_v4 = vmul.f32 0.5, %v14970_v28  ;;  %v4828_v41 = vadd.f32 %v14985_v63, %v14984_v39  ;;  %v4836_v61 = vadd.f32 %v14987_v38, %v14986_v27  ;;  %v5417_v57 = vmul.f32 %v5289_v9, %v4393_v59  ;;  %6544 = vmatpush1.bf16.msra.mxu1 %v8614_v35  ;;  %v14990_v59 = vld [vmem:[#allocation135_spill] sm:$0xff] }
 0x98f   : > { %v5498_v16 = vpack.c.bf16 %v5426_v5, %v5418_v7  ;;  %v8956_v54 = vpop.eup %8955  ;;  %v5425_v24 = vmul.f32 %v5297_v47, %v4401_v10  ;;  %v5306_v33 = vadd.f32 1.0, %v8954_v51  ;;  %v5451_v29 = vpack.c.bf16 %v13216_v56, %v13213_v44  ;;  %6626 = vmatprep.subr.bf16.mxu1 %v8619_v37  ;;  %v14989_v5 = vld [vmem:[#allocation180_spill] sm:$0xff]  ;;  %v14991_v10 = vld [vmem:[#allocation194_spill] sm:$0xff] }
 0x990   : > { %v5314_v34 = vadd.f32 1.0, %v8956_v54  ;;  %v4409_v2 = vmul.f32 0.5, %v14972_v14  ;;  %v4956_v19 = vmul.f32 0.7978846, %v4828_v41  ;;  %v4964_v28 = vmul.f32 0.7978846, %v4836_v61 }
 0x991   : > { %v8958_v7 = vpop.eup %8957  ;;  %v5497_v17 = vpack.c.bf16 %v5425_v24, %v5417_v57  ;;  %v4417_v40 = vmul.f32 0.5, %v14974_v42  ;;  %v4827_v11 = vadd.f32 %v14989_v5, %v14988_v13  ;;  %v4835_v9 = vadd.f32 %v14991_v10, %v14990_v59  ;;  %6483 = vmatmul.mubr.bf16.gmra.mrb[116].mxu1 %v5489_v15 }
 0x992   : > { %v8960_v35 = vpop.eup %8959  ;;  %v5434_v47 = vmul.f32 %v5306_v33, %v4410_v50  ;;  %v5442_v21 = vmul.f32 %v5314_v34, %v4418_v4  ;;  %v5305_v51 = vadd.f32 1.0, %v8958_v7  ;;  %8965 = vtanh.f32 %v4956_v19  ;;  %6492 = vmatprep.mubr.bf16.mxu1 %v5498_v16 }
 0x993   : > { %v5313_v14 = vadd.f32 1.0, %v8960_v35  ;;  %8967 = vtanh.f32 %v4964_v28  ;;  %v4955_v37 = vmul.f32 0.7978846, %v4827_v11  ;;  %v4963_v63 = vmul.f32 0.7978846, %v4835_v9  ;;  %v14994_v9 = vld [vmem:[#allocation107_spill] sm:$0xff] }
 0x994   : > { %v13233_v42 = vmul.f32 %v13151_v25, %v13132_v0  ;;  %v5506_v41 = vpack.c.bf16 %v5442_v21, %v5434_v47  ;;  %v4300_v38 = vmul.f32 0.5, %v14976_v3  ;;  %v4844_v61 = vadd.f32 %v12680_v55, %v12578_v62  ;;  %v8962_v15 = vpop.eup %8961 }
 0x995   : > { %v5433_v50 = vmul.f32 %v5305_v51, %v4409_v2  ;;  %v5441_v4 = vmul.f32 %v5313_v14, %v4417_v40  ;;  %8969 = vtanh.f32 %v4955_v37  ;;  %v4852_v16 = vadd.f32 %v12705_v12, %v12646_v58  ;;  %v8964_v54 = vpop.eup %8963  ;;  %v14996_v51 = vld [vmem:[#allocation65_spill] sm:$0xff] }
 0x996   : > { %v4308_v57 = vmul.f32 0.5, %v14978_v23  ;;  %v5196_v24 = vadd.f32 1.0, %v8962_v15  ;;  %8971 = vtanh.f32 %v4963_v63  ;;  %v4972_v25 = vmul.f32 0.7978846, %v4844_v61 }
 0x997   : > { %v5505_v33 = vpack.c.bf16 %v5441_v4, %v5433_v50  ;;  %v5204_v34 = vadd.f32 1.0, %v8964_v54  ;;  %v4980_v19 = vmul.f32 0.7978846, %v4852_v16  ;;  %v4843_v3 = vadd.f32 %v12668_v46, %v12557_v52  ;;  %v14992_v46 = vld [vmem:[#allocation67_spill] sm:$0xff] }
 0x998   : > { %v4316_v55 = vmul.f32 0.5, %v14984_v39  ;;  %v4324_v2 = vmul.f32 0.5, %v14986_v27  ;;  %8973 = vtanh.f32 %v4972_v25  ;;  %v4851_v12 = vadd.f32 %v12688_v45, %v12618_v1  ;;  %v14993_v45 = vld [vmem:[#allocation130_spill] sm:$0xff] }
 0x999   : > { %v5324_v28 = vmul.f32 %v5196_v24, %v4300_v38  ;;  %v5332_v7 = vmul.f32 %v5204_v34, %v4308_v57  ;;  %8975 = vtanh.f32 %v4980_v19  ;;  %v4971_v23 = vmul.f32 0.7978846, %v4843_v3  ;;  %6493 = vmatmul.mubr.bf16.gmra.mrb[120].mxu1 %v5497_v17 }
 0x99a   : > { %v4315_v40 = vmul.f32 0.5, %v14988_v13  ;;  %v4979_v5 = vmul.f32 0.7978846, %v4851_v12  ;;  %v4860_v11 = vadd.f32 %v12751_v30, %v12677_v18  ;;  %v4868_v39 = vadd.f32 %v14992_v46, %v12735_v43  ;;  %6502 = vmatprep.mubr.bf16.mxu1 %v5506_v41  ;;  %v14995_v13 = vld [vmem:[#allocation66_spill] sm:$0xff] }
 0x99b   : > { %v5452_v27 = vpack.c.bf16 %v5332_v7, %v5324_v28  ;;  %v4323_v10 = vmul.f32 0.5, %v14990_v59  ;;  %8977 = vtanh.f32 %v4971_v23  ;;  %v4859_v35 = vadd.f32 %v14994_v9, %v14993_v45  ;;  %v14998_v7 = vld [vmem:[#allocation72_spill] sm:$0xff] }
 0x99c   : > { %v8966_v47 = vpop.eup %8965  ;;  %8979 = vtanh.f32 %v4979_v5  ;;  %v4988_v17 = vmul.f32 0.7978846, %v4860_v11  ;;  %v4996_v21 = vmul.f32 0.7978846, %v4868_v39  ;;  %v4867_v14 = vadd.f32 %v14996_v51, %v14995_v13 }
 0x99d   : > { %v8968_v37 = vpop.eup %8967  ;;  %v5212_v30 = vadd.f32 1.0, %v8966_v47  ;;  %v4332_v63 = vmul.f32 0.5, %v12578_v62  ;;  %v4340_v41 = vmul.f32 0.5, %v12646_v58  ;;  %v4987_v38 = vmul.f32 0.7978846, %v4859_v35 }
 0x99e   : > { %v5220_v61 = vadd.f32 1.0, %v8968_v37  ;;  %8981 = vtanh.f32 %v4988_v17  ;;  %v4995_v59 = vmul.f32 0.7978846, %v4867_v14  ;;  %v4876_v15 = vadd.f32 %v12853_v32, %v12774_v22  ;;  %v8622_v37 = vld [vmem:[%s9926_s14 + $0x314] ss:$8 sps:$4 sm:$0xff]  }
 0x99f   : > { %v8970_v50 = vpop.eup %8969  ;;  %v5340_v4 = vmul.f32 %v5212_v30, %v4316_v55  ;;  %v4331_v16 = vmul.f32 0.5, %v12557_v52  ;;  %8983 = vtanh.f32 %v4996_v21  ;;  %v4884_v54 = vadd.f32 %v12899_v60, %v12819_v48  ;;  %v14997_v52 = vld [vmem:[#allocation126_spill] sm:$0xff] }
 0x9a0   : > { %v8972_v57 = vpop.eup %8971  ;;  %v5348_v24 = vmul.f32 %v5220_v61, %v4324_v2  ;;  %v5211_v62 = vadd.f32 1.0, %v8970_v50  ;;  %8985 = vtanh.f32 %v4987_v38  ;;  %v5004_v58 = vmul.f32 0.7978846, %v4876_v15 }
 0x9a1   : > { %v5219_v25 = vadd.f32 1.0, %v8972_v57  ;;  %v4339_v34 = vmul.f32 0.5, %v12618_v1  ;;  %8987 = vtanh.f32 %v4995_v59  ;;  %v5012_v19 = vmul.f32 0.7978846, %v4884_v54  ;;  %6503 = vmatmul.mubr.bf16.gmra.mrb[124].mxu1 %v5505_v33  ;;  %v14999_v59 = vld [vmem:[#allocation161_spill] sm:$0xff] }
 0x9a2   : > { %v8974_v3 = vpop.eup %8973  ;;  %v5460_v32 = vpack.c.bf16 %v5348_v24, %v5340_v4  ;;  %v13265_v55 = vmul.f32 %v5211_v62, %v4315_v40  ;;  %8989 = vtanh.f32 %v5004_v58  ;;  %v4875_v12 = vadd.f32 %v14997_v52, %v12766_v8  ;;  %6545 = vmatprep.mubr.bf16.mxu1 %v5452_v27  ;;  %v8620_v57 = vld [vmem:[%s9926_s14 + $0x310] ss:$8 sps:$4 sm:$0xff]  }
 0x9a3   : > { %v8976_v60 = vpop.eup %8975  ;;  %v13269_v2 = vmul.f32 %v5219_v25, %v4323_v10  ;;  %v5228_v28 = vadd.f32 1.0, %v8974_v3  ;;  %8991 = vtanh.f32 %v5012_v19  ;;  %v4883_v1 = vadd.f32 %v14998_v7, %v12802_v6  ;;  %v15001_v52 = vld [vmem:[#allocation71_spill] sm:$0xff] }
 0x9a4   : > { %v5236_v23 = vadd.f32 1.0, %v8976_v60  ;;  %v4348_v33 = vmul.f32 0.5, %v12677_v18  ;;  %v4356_v40 = vmul.f32 0.5, %v12735_v43  ;;  %v5003_v5 = vmul.f32 0.7978846, %v4875_v12  ;;  %v15002_v12 = vld [vmem:[#allocation78_spill] sm:$0xff] }
 0x9a5   : > { %v8978_v11 = vpop.eup %8977  ;;  %v5459_v46 = vpack.c.bf16 %v13269_v2, %v13265_v55  ;;  %v13277_v39 = vmul.f32 %v5228_v28, %v4332_v63  ;;  %v5011_v27 = vmul.f32 0.7978846, %v4883_v1  ;;  %v4892_v10 = vadd.f32 %v12954_v26, %v12858_v20  ;;  %v8617_v18 = vld [vmem:[%s9926_s14 + $0x300] ss:$8 sps:$4 sm:$0xff]   ;;  %v8631_v2 = vld [vmem:[%s9926_s14 + $0x344] ss:$8 sps:$4 sm:$0xff]  }
 0x9a6   : > { %v8980_v9 = vpop.eup %8979  ;;  %v13281_v35 = vmul.f32 %v5236_v23, %v4340_v41  ;;  %v5227_v47 = vadd.f32 1.0, %v8978_v11  ;;  %8993 = vtanh.f32 %v5003_v5  ;;  %v4900_v43 = vadd.f32 %v12980_v36, %v12896_v31  ;;  %v15003_v1 = vld [vmem:[#allocation93_spill] sm:$0xff]  ;;  %v15004_v23 = vld [vmem:[#allocation112_spill] sm:$0xff]  ;;  %v15005_v11 = vld [vmem:[#allocation102_spill] sm:$0xff] }
 0x9a7   : > { %v5235_v17 = vadd.f32 1.0, %v8980_v9  ;;  %v4347_v21 = vmul.f32 0.5, %v14993_v45  ;;  %8995 = vtanh.f32 %v5011_v27  ;;  %v5020_v51 = vmul.f32 0.7978846, %v4892_v10  ;;  %v15000_v45 = vld [vmem:[#allocation83_spill] sm:$0xff] }
 0x9a8   : > { %v8982_v14 = vpop.eup %8981  ;;  %v5468_v30 = vpack.c.bf16 %v13281_v35, %v13277_v39  ;;  %v13290_v26 = vmul.f32 %v5227_v47, %v4331_v16  ;;  %v4355_v63 = vmul.f32 0.5, %v14995_v13  ;;  %v5028_v41 = vmul.f32 0.7978846, %v4900_v43  ;;  %v15006_v39 = vld [vmem:[#allocation183_spill] sm:$0xff] }
 0x9a9   : > { %v8984_v38 = vpop.eup %8983  ;;  %v13293_v61 = vmul.f32 %v5235_v17, %v4339_v34  ;;  %v5244_v36 = vadd.f32 1.0, %v8982_v14  ;;  %8997 = vtanh.f32 %v5020_v51  ;;  %v4891_v15 = vadd.f32 %v15000_v45, %v14999_v59  ;;  %6546 = vmatmul.mubr.bf16.vlgmr.msra.gmra.mrb[96].mxu1 %v5451_v29  ;;  %v8625_v29 = vld [vmem:[%s9926_s14 + $0x324] ss:$8 sps:$4 sm:$0xff]   ;;  %v8628_v35 = vld [vmem:[%s9926_s14 + $0x334] ss:$8 sps:$4 sm:$0xff]  }
 0x9aa   : > { %v8986_v50 = vpop.eup %8985  ;;  %v5252_v4 = vadd.f32 1.0, %v8984_v38  ;;  %v4364_v16 = vmul.f32 0.5, %v12774_v22  ;;  %8999 = vtanh.f32 %v5028_v41  ;;  %v4899_v13 = vadd.f32 %v12971_v53, %v12878_v49  ;;  %6555 = vmatprep.mubr.bf16.mxu1 %v5460_v32  ;;  %6627 = vmatpush1.bf16.msra.mxu1 %v8617_v18  ;;  %v15007_v17 = vld [vmem:[#allocation117_spill] sm:$0xff]  ;;  %v15010_v41 = vld [vmem:[#allocation116_spill] sm:$0xff] }
 0x9ab   : > { %v8988_v54 = vpop.eup %8987  ;;  %v5467_v24 = vpack.c.bf16 %v13293_v61, %v13290_v26  ;;  %v5243_v62 = vadd.f32 1.0, %v8986_v50  ;;  %v4372_v58 = vmul.f32 0.5, %v12819_v48  ;;  %v5019_v44 = vmul.f32 0.7978846, %v4891_v15  ;;  %6628 = vmatprep.subr.bf16.mxu1 %v8622_v37  ;;  %v15021_v26 = vld [vmem:[#allocation137_spill] sm:$0xff] }
 0x9ac   : > { %v8990_v56 = vpop.eup %8989  ;;  %v13308_v22 = vmul.f32 %v5244_v36, %v4348_v33  ;;  %v13310_v25 = vmul.f32 %v5252_v4, %v4356_v40  ;;  %v5251_v53 = vadd.f32 1.0, %v8988_v54  ;;  %v5027_v34 = vmul.f32 0.7978846, %v4899_v13  ;;  %v8623_v40 = vld [vmem:[%s9926_s14 + $0x320] ss:$8 sps:$4 sm:$0xff]  }
 0x9ad   : > { %v8992_v19 = vpop.eup %8991  ;;  %v13312_v3 = vmul.f32 %v5243_v62, %v4347_v21  ;;  %v5260_v32 = vadd.f32 1.0, %v8990_v56  ;;  %9001 = vtanh.f32 %v5019_v44  ;;  %v4908_v48 = vadd.f32 %v15002_v12, %v15001_v52  ;;  %v15008_v21 = vld [vmem:[#allocation84_spill] sm:$0xff] }
 0x9ae   : > { %v5476_v60 = vpack.c.bf16 %v13310_v25, %v13308_v22  ;;  %v13318_v28 = vmul.f32 %v5251_v53, %v4355_v63  ;;  %v5268_v7 = vadd.f32 1.0, %v8992_v19  ;;  %9003 = vtanh.f32 %v5027_v34  ;;  %6629 = vmatpush1.bf16.msra.mxu1 %v8620_v57  ;;  %v15009_v63 = vld [vmem:[#allocation86_spill] sm:$0xff]  ;;  %v8629_v12 = vld [vmem:[%s9926_s14 + $0x340] ss:$8 sps:$4 sm:$0xff]  }
 0x9af   : > { %v4804_v33 = vmul.f32 %v15004_v23, %v15003_v1  ;;  %v4363_v5 = vmul.f32 0.5, %v12766_v8  ;;  %v4916_v27 = vadd.f32 %v15006_v39, %v15005_v11  ;;  %v5036_v10 = vmul.f32 0.7978846, %v4908_v48  ;;  %6630 = vmatprep.subr.bf16.mxu1 %v8625_v29  ;;  %v15014_v23 = vld [vmem:[#allocation87_spill] sm:$0xff]  ;;  %v15016_v39 = vld [vmem:[#allocation121_spill] sm:$0xff] }
 0x9b0   : > { %v8994_v9 = vpop.eup %8993  ;;  %v5475_v47 = vpack.c.bf16 %v13318_v28, %v13312_v3  ;;  %v13329_v43 = vmul.f32 %v5260_v32, %v4364_v16  ;;  %v13331_v18 = vmul.f32 %v5268_v7, %v4372_v58  ;;  %v4907_v51 = vadd.f32 %v15008_v21, %v15007_v17  ;;  %v8626_v16 = vld [vmem:[%s9926_s14 + $0x330] ss:$8 sps:$4 sm:$0xff]   ;;  %v15012_v58 = vld [vmem:[#allocation108_spill] sm:$0xff] }
 0x9b1   : > { %v8996_v14 = vpop.eup %8995  ;;  %v5259_v8 = vadd.f32 1.0, %v8994_v9  ;;  %v5044_v37 = vmul.f32 0.7978846, %v4916_v27  ;;  %9005 = vtanh.f32 %v5036_v10  ;;  %v4915_v38 = vadd.f32 %v15010_v41, %v15009_v63  ;;  %6556 = vmatmul.mubr.bf16.gmra.mrb[100].mxu1 %v5459_v46  ;;  %v8634_v10 = vld [vmem:[%s9926_s14 + $0x354] ss:$8 sps:$4 sm:$0xff]  }
 0x9b2   : > { %v5484_v36 = vpack.c.bf16 %v13331_v18, %v13329_v43  ;;  %v4371_v45 = vmul.f32 0.5, %v12802_v6  ;;  %v5267_v15 = vadd.f32 1.0, %v8996_v14  ;;  %v5035_v50 = vmul.f32 0.7978846, %v4907_v51  ;;  %6565 = vmatprep.mubr.bf16.mxu1 %v5468_v30  ;;  %6631 = vmatpush1.bf16.msra.mxu1 %v8623_v40  ;;  %v15011_v6 = vld [vmem:[#allocation179_spill] sm:$0xff] }
 0x9b3   : > { %v8998_v4 = vpop.eup %8997  ;;  %v13344_v13 = vmul.f32 %v5259_v8, %v4363_v5  ;;  %v4380_v54 = vmul.f32 0.5, %v12858_v20  ;;  %9007 = vtanh.f32 %v5044_v37  ;;  %v5043_v57 = vmul.f32 0.7978846, %v4915_v38  ;;  %6632 = vmatprep.subr.bf16.mxu1 %v8628_v35  ;;  %v15015_v5 = vld [vmem:[#allocation91_spill] sm:$0xff] }
 0x9b4   : > { %v9000_v55 = vpop.eup %8999  ;;  %v13348_v46 = vmul.f32 %v5267_v15, %v4371_v45  ;;  %v5276_v62 = vadd.f32 1.0, %v8998_v4  ;;  %9009 = vtanh.f32 %v5035_v50  ;;  %v4924_v44 = vadd.f32 %v15012_v58, %v15011_v6  ;;  %v15018_v41 = vld [vmem:[#allocation171_spill] sm:$0xff]  ;;  %v15019_v45 = vld [vmem:[#allocation109_spill] sm:$0xff]  ;;  %v15020_v15 = vld [vmem:[#allocation178_spill] sm:$0xff] }
 0x9b5   : > { %v4388_v30 = vmul.f32 0.5, %v12896_v31  ;;  %v5284_v56 = vadd.f32 1.0, %v9000_v55  ;;  %9011 = vtanh.f32 %v5043_v57  ;;  %v4932_v20 = vadd.f32 %v4804_v33, %v15003_v1  ;;  %v15013_v31 = vld [vmem:[#allocation82_spill] sm:$0xff]  ;;  %v15034_v18 = vld [vmem:[#allocation155_spill] sm:$0xff] }
 0x9b6   : > { %v5483_v29 = vpack.c.bf16 %v13348_v46, %v13344_v13  ;;  %v13356_v53 = vmul.f32 %v5276_v62, %v4380_v54  ;;  %v4379_v34 = vmul.f32 0.5, %v14999_v59  ;;  %v5052_v19 = vmul.f32 0.7978846, %v4924_v44  ;;  %6633 = vmatpush1.bf16.msra.mxu1 %v8626_v16  ;;  %v8632_v4 = vld [vmem:[%s9926_s14 + $0x350] ss:$8 sps:$4 sm:$0xff]  }
 0x9b7   : > { %v9002_v32 = vpop.eup %9001  ;;  %v13360_v48 = vmul.f32 %v5284_v56, %v4388_v30  ;;  %v5060_v7 = vmul.f32 0.7978846, %v4932_v20  ;;  %v4923_v40 = vadd.f32 %v15014_v23, %v15013_v31  ;;  %v4931_v33 = vadd.f32 %v15016_v39, %v15015_v5  ;;  %6634 = vmatprep.subr.bf16.mxu1 %v8631_v2  ;;  %v8637_v16 = vld [vmem:[%s9926_s14 + $0x364] ss:$8 sps:$4 sm:$0xff]   ;;  %v15024_v30 = vld [vmem:[#allocation174_spill] sm:$0xff]  ;;  %v15026_v39 = vld [vmem:[#allocation191_spill] sm:$0xff] }
 0x9b8   : > { %v9004_v27 = vpop.eup %9003  ;;  %v4387_v9 = vmul.f32 0.5, %v12878_v49  ;;  %v5275_v59 = vadd.f32 1.0, %v9002_v32  ;;  %v4396_v35 = vmul.f32 0.5, %v15001_v52  ;;  %9013 = vtanh.f32 %v5052_v19  ;;  %v15017_v49 = vld [vmem:[#allocation70_spill] sm:$0xff] }
 0x9b9   : > { %v5492_v21 = vpack.c.bf16 %v13360_v48, %v13356_v53  ;;  %v5283_v51 = vadd.f32 1.0, %v9004_v27  ;;  %9015 = vtanh.f32 %v5060_v7  ;;  %v5051_v14 = vmul.f32 0.7978846, %v4923_v40  ;;  %6566 = vmatmul.mubr.bf16.gmra.mrb[104].mxu1 %v5467_v24  ;;  %v15022_v24 = vld [vmem:[#allocation193_spill] sm:$0xff]  ;;  %v15025_v40 = vld [vmem:[#allocation176_spill] sm:$0xff]  ;;  %v15044_v53 = vld [vmem:[#allocation79_spill] sm:$0xff] }
 0x9ba   : > { %v13374_v8 = vmul.f32 %v5275_v59, %v4379_v34  ;;  %v5059_v37 = vmul.f32 0.7978846, %v4931_v33  ;;  %v4814_v38 = vadd.f32 %v15018_v41, %v15017_v49  ;;  %v4822_v52 = vadd.f32 %v15020_v15, %v15019_v45  ;;  %6575 = vmatprep.mubr.bf16.mxu1 %v5476_v60  ;;  %6635 = vmatpush1.bf16.msra.mxu1 %v8629_v12  ;;  %v15023_v60 = vld [vmem:[#allocation165_spill] sm:$0xff]  ;;  %v8640_v27 = vld [vmem:[%s9926_s14 + $0x374] ss:$8 sps:$4 sm:$0xff]   ;;  %v15028_v59 = vld [vmem:[#allocation140_spill] sm:$0xff] }
 0x9bb   : > { %v9006_v50 = vpop.eup %9005  ;;  %v13385_v54 = vmul.f32 %v5283_v51, %v4387_v9  ;;  %9017 = vtanh.f32 %v5051_v14  ;;  %v5197_v61 = vadd.f32 1.0, %v15021_v26  ;;  %v5205_v57 = vadd.f32 1.0, %v15022_v24  ;;  %6636 = vmatprep.subr.bf16.mxu1 %v8634_v10  ;;  %v8635_v7 = vld [vmem:[%s9926_s14 + $0x360] ss:$8 sps:$4 sm:$0xff]   ;;  %v15031_v26 = vld [vmem:[#allocation127_spill] sm:$0xff] }
 0x9bc   : > { %v5292_v55 = vadd.f32 1.0, %v9006_v50  ;;  %9019 = vtanh.f32 %v5059_v37  ;;  %v4942_v2 = vmul.f32 0.7978846, %v4814_v38  ;;  %v4950_v62 = vmul.f32 0.7978846, %v4822_v52  ;;  %v15029_v38 = vld [vmem:[#allocation172_spill] sm:$0xff] }
 0x9bd   : > { %v9008_v58 = vpop.eup %9007  ;;  %v5491_v22 = vpack.c.bf16 %v13385_v54, %v13374_v8  ;;  %v4404_v25 = vmul.f32 0.5, %v15005_v11  ;;  %v13393_v44 = vmul.f32 %v5197_v61, %v15023_v60  ;;  %v13396_v56 = vmul.f32 %v5205_v57, %v15024_v30  ;;  %v15030_v15 = vld [vmem:[#allocation188_spill] sm:$0xff]  ;;  %v15032_v61 = vld [vmem:[#allocation195_spill] sm:$0xff] }
 0x9be   : > { %v9010_v20 = vpop.eup %9009  ;;  %v5300_v34 = vadd.f32 1.0, %v9008_v58  ;;  %v4395_v19 = vmul.f32 0.5, %v15007_v17  ;;  %v4403_v32 = vmul.f32 0.5, %v15009_v63  ;;  %9021 = vtanh.f32 %v4942_v2  ;;  %6637 = vmatpush1.bf16.msra.mxu1 %v8632_v4  ;;  %v15027_v63 = vld [vmem:[#allocation182_spill] sm:$0xff] }
 0x9bf   : > { %v9012_v12 = vpop.eup %9011  ;;  %v5291_v23 = vadd.f32 1.0, %v9010_v20  ;;  %9023 = vtanh.f32 %v4950_v62  ;;  %v5453_v11 = vpack.c.bf16 %v13396_v56, %v13393_v44  ;;  %v4830_v33 = vadd.f32 %v15026_v39, %v15025_v40  ;;  %6638 = vmatprep.subr.bf16.mxu1 %v8637_v16  ;;  %v8638_v57 = vld [vmem:[%s9926_s14 + $0x370] ss:$8 sps:$4 sm:$0xff]   ;;  %v8641_v20 = vld [vmem:[%s9926_s14 + $0x380] ss:$8 sps:$4 sm:$0xff]  }
 0x9c0   : > { %v13406_v10 = vmul.f32 %v5292_v55, %v4396_v35  ;;  %v13408_v9 = vmul.f32 %v5300_v34, %v4404_v25  ;;  %v5299_v17 = vadd.f32 1.0, %v9012_v12  ;;  %v4838_v51 = vadd.f32 %v15028_v59, %v15027_v63  ;;  %v15036_v12 = vld [vmem:[#allocation197_spill] sm:$0xff] }
 0x9c1   : > { %v13412_v14 = vmul.f32 %v5291_v23, %v4395_v19  ;;  %v4412_v37 = vmul.f32 0.5, %v15011_v6  ;;  %v4958_v41 = vmul.f32 0.7978846, %v4830_v33  ;;  %v4829_v52 = vadd.f32 %v15030_v15, %v15029_v38  ;;  %6576 = vmatmul.mubr.bf16.gmra.mrb[108].mxu1 %v5475_v47  ;;  %v8643_v47 = vld [vmem:[%s9926_s14 + $0x384] ss:$8 sps:$4 sm:$0xff]   ;;  %v15038_v15 = vld [vmem:[#allocation150_spill] sm:$0xff] }
 0x9c2   : > { %v9014_v50 = vpop.eup %9013  ;;  %v5500_v35 = vpack.c.bf16 %v13408_v9, %v13406_v10  ;;  %v13422_v4 = vmul.f32 %v5299_v17, %v4403_v32  ;;  %v4966_v16 = vmul.f32 0.7978846, %v4838_v51  ;;  %v4837_v24 = vadd.f32 %v15032_v61, %v15031_v26  ;;  %6585 = vmatprep.mubr.bf16.mxu1 %v5484_v36  ;;  %6639 = vmatpush1.bf16.msra.mxu1 %v8635_v7  ;;  %v15035_v32 = vld [vmem:[#allocation154_spill] sm:$0xff]  ;;  %v15040_v61 = vld [vmem:[#allocation196_spill] sm:$0xff] }
 0x9c3   : > { %v9016_v6 = vpop.eup %9015  ;;  %v4420_v55 = vmul.f32 0.5, %v15003_v1  ;;  %v5308_v3 = vadd.f32 1.0, %v9014_v50  ;;  %9025 = vtanh.f32 %v4958_v41  ;;  %v4957_v28 = vmul.f32 0.7978846, %v4829_v52  ;;  %6640 = vmatprep.subr.bf16.mxu1 %v8640_v27  ;;  %v15033_v1 = vld [vmem:[#allocation192_spill] sm:$0xff]  ;;  %v15037_v41 = vld [vmem:[#allocation186_spill] sm:$0xff] }
 0x9c4   : > { %v5499_v2 = vpack.c.bf16 %v13422_v4, %v13412_v14  ;;  %v5316_v62 = vadd.f32 1.0, %v9016_v6  ;;  %9027 = vtanh.f32 %v4966_v16  ;;  %v4965_v58 = vmul.f32 0.7978846, %v4837_v24  ;;  %v8646_v17 = vld [vmem:[%s9926_s14 + $0x394] ss:$8 sps:$4 sm:$0xff]  }
 0x9c5   : > { %v9018_v25 = vpop.eup %9017  ;;  %v13434_v60 = vmul.f32 %v5308_v3, %v4412_v37  ;;  %v4411_v43 = vmul.f32 0.5, %v15013_v31  ;;  %9029 = vtanh.f32 %v4957_v28  ;;  %v4846_v36 = vadd.f32 %v15034_v18, %v15033_v1  ;;  %v8644_v28 = vld [vmem:[%s9926_s14 + $0x390] ss:$8 sps:$4 sm:$0xff]  }
 0x9c6   : > { %v9020_v30 = vpop.eup %9019  ;;  %v13440_v34 = vmul.f32 %v5316_v62, %v4420_v55  ;;  %v5307_v19 = vadd.f32 1.0, %v9018_v25  ;;  %9031 = vtanh.f32 %v4965_v58  ;;  %v4854_v7 = vadd.f32 %v15036_v12, %v15035_v32  ;;  %6641 = vmatpush1.bf16.msra.mxu1 %v8638_v57  ;;  %v15042_v62 = vld [vmem:[#allocation160_spill] sm:$0xff]  ;;  %v15063_v4 = vld [vmem:[#allocation166_spill] sm:$0xff] }
 0x9c7   : > { %v4419_v23 = vmul.f32 0.5, %v15015_v5  ;;  %v5315_v39 = vadd.f32 1.0, %v9020_v30  ;;  %v4302_v31 = vmul.f32 0.5, %v15017_v49  ;;  %v4974_v33 = vmul.f32 0.7978846, %v4846_v36  ;;  %6642 = vmatprep.subr.bf16.mxu1 %v8643_v47  ;;  %v15039_v49 = vld [vmem:[#allocation152_spill] sm:$0xff] }
 0x9c8   : > { %v9022_v27 = vpop.eup %9021  ;;  %v5508_v59 = vpack.c.bf16 %v13440_v34, %v13434_v60  ;;  %v13449_v51 = vmul.f32 %v5307_v19, %v4411_v43  ;;  %v4982_v37 = vmul.f32 0.7978846, %v4854_v7  ;;  %v4845_v52 = vadd.f32 %v15038_v15, %v15037_v41  ;;  %v15043_v25 = vld [vmem:[#allocation144_spill] sm:$0xff]  ;;  %v15045_v36 = vld [vmem:[#allocation147_spill] sm:$0xff]  ;;  %v15046_v30 = vld [vmem:[#allocation153_spill] sm:$0xff] }
 0x9c9   : > { %v9024_v50 = vpop.eup %9023  ;;  %v13453_v16 = vmul.f32 %v5315_v39, %v4419_v23  ;;  %v5198_v5 = vadd.f32 1.0, %v9022_v27  ;;  %9033 = vtanh.f32 %v4974_v33  ;;  %v4853_v24 = vadd.f32 %v15040_v61, %v15039_v49  ;;  %6586 = vmatmul.mubr.bf16.gmra.mrb[112].mxu1 %v5483_v29  ;;  %v8649_v29 = vld [vmem:[%s9926_s14 + $0x3a4] ss:$8 sps:$4 sm:$0xff]   ;;  %v8647_v33 = vld [vmem:[%s9926_s14 + $0x3a0] ss:$8 sps:$4 sm:$0xff]  }
 0x9ca   : > { %v4310_v6 = vmul.f32 0.5, %v15019_v45  ;;  %v5206_v57 = vadd.f32 1.0, %v9024_v50  ;;  %9035 = vtanh.f32 %v4982_v37  ;;  %v4973_v55 = vmul.f32 0.7978846, %v4845_v52  ;;  %6595 = vmatprep.mubr.bf16.mxu1 %v5492_v21  ;;  %6643 = vmatpush1.bf16.msra.mxu1 %v8641_v20  ;;  %v8652_v50 = vld [vmem:[%s9926_s14 + $0x3b4] ss:$8 sps:$4 sm:$0xff]  }
 0x9cb   : > { %v13463_v3 = vmul.f32 %v13233_v42, %v13132_v0  ;;  %v5507_v47 = vpack.c.bf16 %v13453_v16, %v13449_v51  ;;  %v13471_v13 = vmul.f32 %v5198_v5, %v4302_v31  ;;  %v4981_v46 = vmul.f32 0.7978846, %v4853_v24  ;;  %6644 = vmatprep.subr.bf16.mxu1 %v8646_v17  ;;  %v15041_v42 = vld [vmem:[#allocation85_spill] sm:$0xff]  ;;  %v15047_v17 = vld [vmem:[#allocation156_spill] sm:$0xff] }
 0x9cc   : > { %v13474_v45 = vmul.f32 %v5206_v57, %v4310_v6  ;;  %9037 = vtanh.f32 %v4973_v55  ;;  %v4862_v58 = vadd.f32 %v15042_v62, %v15041_v42  ;;  %v4870_v48 = vadd.f32 %v15044_v53, %v15043_v25  ;;  %v15051_v62 = vld [vmem:[#allocation111_spill] sm:$0xff] }
 0x9cd   : > { %v9026_v21 = vpop.eup %9025  ;;  %v4318_v43 = vmul.f32 0.5, %v15025_v40  ;;  %v4326_v18 = vmul.f32 0.5, %v15027_v63  ;;  %9039 = vtanh.f32 %v4981_v46  ;;  %v4861_v20 = vadd.f32 %v15046_v30, %v15045_v36  ;;  %v15048_v63 = vld [vmem:[#allocation73_spill] sm:$0xff]  ;;  %v15050_v46 = vld [vmem:[#allocation94_spill] sm:$0xff] }
 0x9ce   : > { %v9028_v19 = vpop.eup %9027  ;;  %v5454_v12 = vpack.c.bf16 %v13474_v45, %v13471_v13  ;;  %v5214_v7 = vadd.f32 1.0, %v9026_v21  ;;  %v4990_v23 = vmul.f32 0.7978846, %v4862_v58  ;;  %v4998_v39 = vmul.f32 0.7978846, %v4870_v48  ;;  %6645 = vmatpush1.bf16.msra.mxu1 %v8644_v28  ;;  %v15049_v28 = vld [vmem:[#allocation159_spill] sm:$0xff] }
 0x9cf   : > { %v9030_v31 = vpop.eup %9029  ;;  %v5222_v27 = vadd.f32 1.0, %v9028_v19  ;;  %v4317_v40 = vmul.f32 0.5, %v15029_v38  ;;  %v4869_v37 = vadd.f32 %v15048_v63, %v15047_v17  ;;  %v4989_v15 = vmul.f32 0.7978846, %v4861_v20  ;;  %6646 = vmatprep.subr.bf16.mxu1 %v8649_v29  ;;  %v8650_v48 = vld [vmem:[%s9926_s14 + $0x3b0] ss:$8 sps:$4 sm:$0xff]  }
 0x9d0   : > { %v9032_v52 = vpop.eup %9031  ;;  %v13491_v5 = vmul.f32 %v5214_v7, %v4318_v43  ;;  %v4325_v61 = vmul.f32 0.5, %v15031_v26  ;;  %v5213_v24 = vadd.f32 1.0, %v9030_v31  ;;  %9041 = vtanh.f32 %v4990_v23  ;;  %v15052_v26 = vld [vmem:[#allocation75_spill] sm:$0xff]  ;;  %v8655_v21 = vld [vmem:[%s9926_s14 + $0x3c4] ss:$8 sps:$4 sm:$0xff]  }
 0x9d1   : > { %v13494_v6 = vmul.f32 %v5222_v27, %v4326_v18  ;;  %v5221_v57 = vadd.f32 1.0, %v9032_v52  ;;  %9043 = vtanh.f32 %v4998_v39  ;;  %v4997_v38 = vmul.f32 0.7978846, %v4869_v37  ;;  %6596 = vmatmul.mubr.bf16.gmra.mrb[116].mxu1 %v5491_v22  ;;  %v15053_v20 = vld [vmem:[#allocation157_spill] sm:$0xff]  ;;  %v15055_v23 = vld [vmem:[#allocation119_spill] sm:$0xff]  ;;  %v15056_v39 = vld [vmem:[#allocation74_spill] sm:$0xff] }
 0x9d2   : > { %v4334_v55 = vmul.f32 0.5, %v15033_v1  ;;  %9045 = vtanh.f32 %v4989_v15  ;;  %v4878_v29 = vadd.f32 %v15050_v46, %v15049_v28  ;;  %v4886_v58 = vadd.f32 %v15052_v26, %v15051_v62  ;;  %6605 = vmatprep.mubr.bf16.mxu1 %v5500_v35  ;;  %6647 = vmatpush1.bf16.msra.mxu1 %v8647_v33  ;;  %v15054_v19 = vld [vmem:[#allocation89_spill] sm:$0xff] }
 0x9d3   : > { %v9034_v53 = vpop.eup %9033  ;;  %v5462_v8 = vpack.c.bf16 %v13494_v6, %v13491_v5  ;;  %v13511_v54 = vmul.f32 %v5213_v24, %v4317_v40  ;;  %v13513_v22 = vmul.f32 %v5221_v57, %v4325_v61  ;;  %9047 = vtanh.f32 %v4997_v38  ;;  %6648 = vmatprep.subr.bf16.mxu1 %v8652_v50  ;;  %v8653_v37 = vld [vmem:[%s9926_s14 + $0x3c0] ss:$8 sps:$4 sm:$0xff]   ;;  %v8658_v61 = vld [vmem:[%s9926_s14 + $0x3d4] ss:$8 sps:$4 sm:$0xff]  }
 0x9d4   : > { %v9036_v1 = vpop.eup %9035  ;;  %v4342_v43 = vmul.f32 0.5, %v15035_v32  ;;  %v5230_v18 = vadd.f32 1.0, %v9034_v53  ;;  %v5006_v30 = vmul.f32 0.7978846, %v4878_v29  ;;  %v5014_v10 = vmul.f32 0.7978846, %v4886_v58 }
 0x9d5   : > { %v5461_v9 = vpack.c.bf16 %v13513_v22, %v13511_v54  ;;  %v5238_v35 = vadd.f32 1.0, %v9036_v1  ;;  %v4877_v7 = vadd.f32 %v15054_v19, %v15053_v20  ;;  %v4885_v31 = vadd.f32 %v15056_v39, %v15055_v23  ;;  %v15057_v38 = vld [vmem:[#allocation163_spill] sm:$0xff]  ;;  %v15060_v29 = vld [vmem:[#allocation96_spill] sm:$0xff]  ;;  %v15074_v13 = vld [vmem:[#allocation105_spill] sm:$0xff] }
 0x9d6   : > { %v9038_v33 = vpop.eup %9037  ;;  %v13522_v27 = vmul.f32 %v5230_v18, %v4334_v55  ;;  %v4333_v40 = vmul.f32 0.5, %v15037_v41  ;;  %v4341_v32 = vmul.f32 0.5, %v15039_v49  ;;  %9049 = vtanh.f32 %v5006_v30  ;;  %6649 = vmatpush1.bf16.msra.mxu1 %v8650_v48  ;;  %v15058_v55 = vld [vmem:[#allocation76_spill] sm:$0xff]  ;;  %v15059_v41 = vld [vmem:[#allocation77_spill] sm:$0xff]  ;;  %v8656_v30 = vld [vmem:[%s9926_s14 + $0x3d0] ss:$8 sps:$4 sm:$0xff]  }
 0x9d7   : > { %v9040_v63 = vpop.eup %9039  ;;  %v13527_v15 = vmul.f32 %v5238_v35, %v4342_v43  ;;  %v5229_v52 = vadd.f32 1.0, %v9038_v33  ;;  %9051 = vtanh.f32 %v5014_v10  ;;  %v5005_v50 = vmul.f32 0.7978846, %v4877_v7  ;;  %6650 = vmatprep.subr.bf16.mxu1 %v8655_v21  ;;  %v15061_v35 = vld [vmem:[#allocation162_spill] sm:$0xff]  ;;  %v15062_v19 = vld [vmem:[#allocation88_spill] sm:$0xff] }
 0x9d8   : > { %v5237_v24 = vadd.f32 1.0, %v9040_v63  ;;  %v5013_v57 = vmul.f32 0.7978846, %v4885_v31  ;;  %v4894_v46 = vadd.f32 %v15058_v55, %v15057_v38  ;;  %v4902_v49 = vadd.f32 %v15060_v29, %v15059_v41  ;;  %v8661_v31 = vld [vmem:[%s9926_s14 + $0x3e4] ss:$8 sps:$4 sm:$0xff]  }
 0x9d9   : > { %v5470_v26 = vpack.c.bf16 %v13527_v15, %v13522_v27  ;;  %v13536_v58 = vmul.f32 %v5229_v52, %v4333_v40  ;;  %v4350_v53 = vmul.f32 0.5, %v15041_v42  ;;  %9053 = vtanh.f32 %v5005_v50  ;;  %6606 = vmatmul.mubr.bf16.gmra.mrb[120].mxu1 %v5499_v2  ;;  %v15064_v2 = vld [vmem:[#allocation169_spill] sm:$0xff] }
 0x9da   : > { %v9042_v48 = vpop.eup %9041  ;;  %v13542_v21 = vmul.f32 %v5237_v24, %v4341_v32  ;;  %9055 = vtanh.f32 %v5013_v57  ;;  %v5022_v1 = vmul.f32 0.7978846, %v4894_v46  ;;  %v5030_v43 = vmul.f32 0.7978846, %v4902_v49  ;;  %6615 = vmatprep.mubr.bf16.mxu1 %v5508_v59  ;;  %6651 = vmatpush1.bf16.msra.mxu1 %v8653_v37  ;;  %v15066_v57 = vld [vmem:[#allocation97_spill] sm:$0xff]  ;;  %v15067_v46 = vld [vmem:[#allocation90_spill] sm:$0xff] }
 0x9db   : > { %v9044_v18 = vpop.eup %9043  ;;  %v4358_v42 = vmul.f32 0.5, %v15043_v25  ;;  %v5246_v10 = vadd.f32 1.0, %v9042_v48  ;;  %v4893_v14 = vadd.f32 %v15062_v19, %v15061_v35  ;;  %v4901_v7 = vadd.f32 %v15064_v2, %v15063_v4  ;;  %6652 = vmatprep.subr.bf16.mxu1 %v8658_v61  ;;  %v8659_v61 = vld [vmem:[%s9926_s14 + $0x3e0] ss:$8 sps:$4 sm:$0xff]   ;;  %v8664_v48 = vld [vmem:[%s9926_s14 + $0x3f4] ss:$8 sps:$4 sm:$0xff]  }
 0x9dc   : > { %v9046_v39 = vpop.eup %9045  ;;  %v5469_v33 = vpack.c.bf16 %v13542_v21, %v13536_v58  ;;  %v5254_v60 = vadd.f32 1.0, %v9044_v18  ;;  %v4349_v34 = vmul.f32 0.5, %v15045_v36  ;;  %9057 = vtanh.f32 %v5022_v1  ;;  %v15065_v36 = vld [vmem:[#allocation80_spill] sm:$0xff]  ;;  %v15069_v2 = vld [vmem:[#allocation167_spill] sm:$0xff] }
 0x9dd   : > { %v9048_v59 = vpop.eup %9047  ;;  %v4357_v25 = vmul.f32 0.5, %v15047_v17  ;;  %v5245_v40 = vadd.f32 1.0, %v9046_v39  ;;  %9059 = vtanh.f32 %v5030_v43  ;;  %v5021_v32 = vmul.f32 0.7978846, %v4893_v14  ;;  %v15068_v17 = vld [vmem:[#allocation184_spill] sm:$0xff] }
 0x9de   : > { %v13558_v63 = vmul.f32 %v5246_v10, %v4350_v53  ;;  %v13560_v37 = vmul.f32 %v5254_v60, %v4358_v42  ;;  %v5253_v52 = vadd.f32 1.0, %v9048_v59  ;;  %v5029_v50 = vmul.f32 0.7978846, %v4901_v7  ;;  %6653 = vmatpush1.bf16.msra.mxu1 %v8656_v30  ;;  %v15070_v7 = vld [vmem:[#allocation141_spill] sm:$0xff]  ;;  %v15072_v60 = vld [vmem:[#allocation124_spill] sm:$0xff] }
 0x9df   : > { %v4366_v24 = vmul.f32 0.5, %v15049_v28  ;;  %9061 = vtanh.f32 %v5021_v32  ;;  %v4910_v55 = vadd.f32 %v15066_v57, %v15065_v36  ;;  %v4918_v29 = vadd.f32 %v15068_v17, %v15067_v46  ;;  %6654 = vmatprep.subr.bf16.mxu1 %v8661_v31  ;;  %v15071_v31 = vld [vmem:[#allocation81_spill] sm:$0xff]  ;;  %v15079_v58 = vld [vmem:[#allocation32_spill] sm:$0xff] }
 0x9e0   : > { %v9050_v49 = vpop.eup %9049  ;;  %v5478_v53 = vpack.c.bf16 %v13560_v37, %v13558_v63  ;;  %v13571_v1 = vmul.f32 %v5245_v40, %v4349_v34  ;;  %v13573_v43 = vmul.f32 %v5253_v52, %v4357_v25  ;;  %9063 = vtanh.f32 %v5029_v50  ;;  %v15073_v57 = vld [vmem:[#allocation181_spill] sm:$0xff] }
 0x9e1   : > { %v9052_v28 = vpop.eup %9051  ;;  %v4374_v18 = vmul.f32 0.5, %v15051_v62  ;;  %v5262_v30 = vadd.f32 1.0, %v9050_v49  ;;  %v5038_v42 = vmul.f32 0.7978846, %v4910_v55  ;;  %v5046_v10 = vmul.f32 0.7978846, %v4918_v29  ;;  %6616 = vmatmul.mubr.bf16.gmra.mrb[124].mxu1 %v5507_v47 }
 0x9e2   : > { %v5477_v19 = vpack.c.bf16 %v13573_v43, %v13571_v1  ;;  %v5270_v14 = vadd.f32 1.0, %v9052_v28  ;;  %v4909_v39 = vadd.f32 %v15070_v7, %v15069_v2  ;;  %v4917_v34 = vadd.f32 %v15072_v60, %v15071_v31  ;;  %6655 = vmatpush1.bf16.msra.mxu1 %v8659_v61  ;;  %6658 = vmatprep.mubr.bf16.mxu1 %v5454_v12  ;;  %v8662_v62 = vld [vmem:[%s9926_s14 + $0x3f0] ss:$8 sps:$4 sm:$0xff]   ;;  %v15078_v60 = vld [vmem:[#allocation185_spill] sm:$0xff] }
 0x9e3   : > { %v9054_v59 = vpop.eup %9053  ;;  %v13589_v25 = vmul.f32 %v5262_v30, %v4366_v24  ;;  %v4365_v51 = vmul.f32 0.5, %v15053_v20  ;;  %v4373_v16 = vmul.f32 0.5, %v15055_v23  ;;  %9065 = vtanh.f32 %v5038_v42  ;;  %6656 = vmatprep.subr.bf16.mxu1 %v8664_v48  ;;  %v15075_v30 = vld [vmem:[#allocation100_spill] sm:$0xff]  ;;  %v13658_v37 = vld [vmem:[%s9928_s12 + $0x8] sm:$0xff] }
 0x9e4   : > { %v9056_v47 = vpop.eup %9055  ;;  %v13593_v40 = vmul.f32 %v5270_v14, %v4374_v18  ;;  %v5261_v32 = vadd.f32 1.0, %v9054_v59  ;;  %9067 = vtanh.f32 %v5046_v10  ;;  %v5037_v52 = vmul.f32 0.7978846, %v4909_v39  ;;  %v15076_v42 = vld [vmem:[#allocation104_spill] sm:$0xff]  ;;  %v15077_v39 = vld [vmem:[#allocation106_spill] sm:$0xff] }
 0x9e5   : > { %v5269_v50 = vadd.f32 1.0, %v9056_v47  ;;  %v5045_v61 = vmul.f32 0.7978846, %v4917_v34  ;;  %v4926_v45 = vadd.f32 %v15074_v13, %v15073_v57  ;;  %v4934_v12 = vadd.f32 %v13463_v3, %v13132_v0 }
 0x9e6   : > { %v9058_v24 = vpop.eup %9057  ;;  %v5486_v20 = vpack.c.bf16 %v13593_v40, %v13589_v25  ;;  %v13601_v23 = vmul.f32 %v5261_v32, %v4365_v51  ;;  %v4382_v55 = vmul.f32 0.5, %v15057_v38  ;;  %9069 = vtanh.f32 %v5037_v52  ;;  %6657 = vmatpush1.bf16.msra.mxu1 %v8662_v62 }
 0x9e7   : > { %v9060_v17 = vpop.eup %9059  ;;  %v13604_v29 = vmul.f32 %v5269_v50, %v4373_v16  ;;  %v5278_v49 = vadd.f32 1.0, %v9058_v24  ;;  %9071 = vtanh.f32 %v5045_v61  ;;  %v5054_v48 = vmul.f32 0.7978846, %v4926_v45 }
 0x9e8   : > { %v4390_v28 = vmul.f32 0.5, %v15059_v41  ;;  %v5286_v18 = vadd.f32 1.0, %v9060_v17  ;;  %v5062_v3 = vmul.f32 0.7978846, %v4934_v12  ;;  %v4925_v10 = vadd.f32 %v15076_v42, %v15075_v30 }
 0x9e9   : > { %v9062_v14 = vpop.eup %9061  ;;  %v5485_v7 = vpack.c.bf16 %v13604_v29, %v13601_v23  ;;  %v13611_v38 = vmul.f32 %v5278_v49, %v4382_v55  ;;  %9073 = vtanh.f32 %v5054_v48  ;;  %v4933_v34 = vadd.f32 %v15078_v60, %v15077_v39  ;;  %6659 = vmatmul.mubr.bf16.vlgmr.msra.gmra.mrb[96].mxu1 %v5453_v11 }
 0x9ea   : > { %v9064_v59 = vpop.eup %9063  ;;  %v5414_v41 = vmul.f32 %v5286_v18, %v4390_v28  ;;  %v5277_v62 = vadd.f32 1.0, %v9062_v14  ;;  %9075 = vtanh.f32 %v5062_v3  ;;  %v5053_v51 = vmul.f32 0.7978846, %v4925_v10  ;;  %6668 = vmatprep.mubr.bf16.mxu1 %v5462_v8 }
 0x9eb   : > { %v4381_v16 = vmul.f32 0.5, %v15061_v35  ;;  %v4389_v47 = vmul.f32 0.5, %v15063_v4  ;;  %v5285_v32 = vadd.f32 1.0, %v9064_v59  ;;  %v5061_v52 = vmul.f32 0.7978846, %v4933_v34  ;;  %v15081_v34 = vld [vmem:[#allocation33_spill] sm:$0xff] }
 0x9ec   : > { %v5494_v50 = vpack.c.bf16 %v5414_v41, %v13611_v38  ;;  %9077 = vtanh.f32 %v5053_v51  ;;  %v4398_v12 = vmul.f32 0.5, %v15065_v36  ;;  %v4406_v5 = vmul.f32 0.5, %v15067_v46 }
 0x9ed   : > { %v9066_v61 = vpop.eup %9065  ;;  %v5405_v44 = vmul.f32 %v5277_v62, %v4381_v16  ;;  %v5413_v56 = vmul.f32 %v5285_v32, %v4389_v47  ;;  %9079 = vtanh.f32 %v5061_v52  ;;  %v4397_v55 = vmul.f32 0.5, %v15069_v2  ;;  %v15082_v62 = vld [vmem:[#allocation36_spill] sm:$0xff]  ;;  %v15083_v16 = vld [vmem:[#allocation34_spill] sm:$0xff] }
 0x9ee   : > { %v9068_v11 = vpop.eup %9067  ;;  %v5294_v13 = vadd.f32 1.0, %v9066_v61  ;;  %v4405_v17 = vmul.f32 0.5, %v15071_v31  ;;  %v4414_v3 = vmul.f32 0.5, %v15073_v57  ;;  %v4422_v54 = vmul.f32 0.5, %v13132_v0 }
 0x9ef   : > { %v5493_v45 = vpack.c.bf16 %v5413_v56, %v5405_v44  ;;  %v5302_v6 = vadd.f32 1.0, %v9068_v11  ;;  %v4413_v38 = vmul.f32 0.5, %v15075_v30  ;;  %v4421_v27 = vmul.f32 0.5, %v15077_v39 }
 0x9f0   : > { %v9070_v8 = vpop.eup %9069  ;;  %v5422_v4 = vmul.f32 %v5294_v13, %v4398_v12  ;;  %v5641_v21 = vsub.s32 3, %v15079_v58  ;;  %v15084_v13 = vld [vmem:[#allocation40_spill] sm:$0xff] }
 0x9f1   : > { %v9072_v35 = vpop.eup %9071  ;;  %v5430_v24 = vmul.f32 %v5302_v6, %v4406_v5  ;;  %v5293_v23 = vadd.f32 1.0, %v9070_v8  ;;  %6669 = vmatmul.mubr.bf16.gmra.mrb[100].mxu1 %v5461_v9  ;;  %v15085_v6 = vld [vmem:[#allocation37_spill] sm:$0xff] }
 0x9f2   : > { %v5301_v29 = vadd.f32 1.0, %v9072_v35  ;;  %6678 = vmatprep.mubr.bf16.mxu1 %v5470_v26 }
 0x9f3   : > { %v9074_v49 = vpop.eup %9073  ;;  %v5502_v36 = vpack.c.bf16 %v5430_v24, %v5422_v4  ;;  %v5421_v48 = vmul.f32 %v5293_v23, %v4397_v55  ;;  %v15086_v4 = vld [vmem:[#allocation39_spill] sm:$0xff]  ;;  %v15087_v23 = vld [vmem:[#allocation38_spill] sm:$0xff] }
 0x9f4   : > { %v9076_v46 = vpop.eup %9075  ;;  %v5429_v28 = vmul.f32 %v5301_v29, %v4405_v17  ;;  %v5310_v18 = vadd.f32 1.0, %v9074_v49 }
 0x9f5   : > { %v5318_v22 = vadd.f32 1.0, %v9076_v46 }
 0x9f6   : > { %v9078_v9 = vpop.eup %9077  ;;  %v5501_v2 = vpack.c.bf16 %v5429_v28, %v5421_v48  ;;  %v5438_v31 = vmul.f32 %v5310_v18, %v4414_v3  ;;  %v15088_v18 = vld [vmem:[#allocation44_spill] sm:$0xff] }
 0x9f7   : > { %v9080_v42 = vpop.eup %9079  ;;  %v5446_v10 = vmul.f32 %v5318_v22, %v4422_v54  ;;  %v5309_v14 = vadd.f32 1.0, %v9078_v9  ;;  %v15089_v9 = vld [vmem:[#allocation41_spill] sm:$0xff] }
 0x9f8   : > { %v5317_v15 = vadd.f32 1.0, %v9080_v42 }
 0x9f9   : > { %v5510_v26 = vpack.c.bf16 %v5446_v10, %v5438_v31  ;;  %6679 = vmatmul.mubr.bf16.gmra.mrb[104].mxu1 %v5469_v33  ;;  %v5437_v57 = vmul.f32 %v5309_v14, %v4413_v38  ;;  %v13652_v33 = vld [vmem:[%s9928_s12] sm:$0xff]  ;;  %v15090_v31 = vld [vmem:[#allocation43_spill] sm:$0xff]  ;;  %v15091_v14 = vld [vmem:[#allocation42_spill] sm:$0xff] }
 0x9fa   : > { %v5445_v0 = vmul.f32 %v5317_v15, %v4421_v27  ;;  %6688 = vmatprep.mubr.bf16.mxu1 %v5478_v53  ;;  %v13655_v63 = vrot.slane %v13652_v33, %v5641_v21  ;;  %v13661_v53 = vrot.slane %v13658_v37, %v5641_v21 }
 0x9fc   : > { %v5509_v60 = vpack.c.bf16 %v5445_v0, %v5437_v57 }
 0xa01   : > { %6689 = vmatmul.mubr.bf16.gmra.mrb[108].mxu1 %v5477_v19 }
 0xa02   : > { %6698 = vmatprep.mubr.bf16.mxu1 %v5486_v20  ;;  %v15080_v20 = vld [vmem:[#allocation35_spill] sm:$0xff] }
 0xa09   : > { %6699 = vmatmul.mubr.bf16.gmra.mrb[112].mxu1 %v5485_v7 }
 0xa0a   : > { %6708 = vmatprep.mubr.bf16.mxu1 %v5494_v50 }
 0xa11   : > { %6709 = vmatmul.mubr.bf16.gmra.mrb[116].mxu1 %v5493_v45 }
 0xa12   : > { %6718 = vmatprep.mubr.bf16.mxu1 %v5502_v36 }
 0xa19   : > { %6719 = vmatmul.mubr.bf16.gmra.mrb[120].mxu1 %v5501_v2 }
 0xa1a   : > { %6728 = vmatprep.mubr.bf16.mxu1 %v5510_v26 }
 0xa21   : > { %6729 = vmatmul.mubr.bf16.gmra.mrb[124].mxu1 %v5509_v60 }
 0xabc   : > { %v6660_v1 = vpop.f32.mrb[96].mxu1 }
 0xabd   : > { %v8013_v43 = vadd.f32 %v6660_v1, %v13655_v63  ;;  %v6662_v19 = vpop.f32.mrb[97].mxu1  ;;  %v15092_v1 = vld [vmem:[#allocation48_spill] sm:$0xff] }
 0xabe   : > { %v8014_v25 = vadd.f32 %v6662_v19, %v13661_v53  ;;  %v6664_v40 = vpop.f32.mrb[98].mxu1 }
 0xabf   : > { %v13666_v30 = vadd.f32 %v8013_v43, %v15080_v20  ;;  %v8015_v7 = vadd.f32 %v6664_v40, %v13655_v63  ;;  %v6666_v39 = vpop.f32.mrb[99].mxu1  ;;  %v15093_v40 = vld [vmem:[#allocation45_spill] sm:$0xff] }
 0xac0   : > { %v13670_v59 = vadd.f32 %v8014_v25, %v15081_v34  ;;  %v8016_v41 = vadd.f32 %v6666_v39, %v13661_v53  ;;  %v15094_v39 = vld [vmem:[#allocation47_spill] sm:$0xff] }
 0xac1   : > { %v13674_v51 = vadd.f32 %v8015_v7, %v15082_v62 }
 0xac2   : > { %v13677_v47 = vadd.f32 %v8016_v41, %v15083_v16  ;;  %v6771_v32 = vadd.f32 %v13670_v59, %v13666_v30  ;;  %v15095_v41 = vld [vmem:[#allocation46_spill] sm:$0xff] }
 0xac4   : > { %v6670_v52 = vpop.f32.mrb[100].mxu1  ;;  %6772 = vadd.xlane.f32.xlu0 %v6771_v32  ;;  %v6774_v50 = vadd.f32 %v13677_v47, %v13674_v51 }
 0xac5   : > { %v8017_v61 = vadd.f32 %v6670_v52, %v13655_v63  ;;  %v6672_v44 = vpop.f32.mrb[101].mxu1 }
 0xac6   : > { %v8018_v56 = vadd.f32 %v6672_v44, %v13661_v53  ;;  %v6674_v11 = vpop.f32.mrb[102].mxu1  ;;  %6775 = vadd.xlane.f32.xlu1 %v6774_v50 }
 0xac7   : > { %v13686_v45 = vadd.f32 %v8017_v61, %v15084_v13  ;;  %v8019_v12 = vadd.f32 %v6674_v11, %v13655_v63  ;;  %v6676_v5 = vpop.f32.mrb[103].mxu1  ;;  %v15096_v11 = vld [vmem:[#allocation52_spill] sm:$0xff] }
 0xac8   : > { %v13690_v8 = vadd.f32 %v8018_v56, %v15085_v6  ;;  %v8020_v35 = vadd.f32 %v6676_v5, %v13661_v53  ;;  %v15097_v6 = vld [vmem:[#allocation49_spill] sm:$0xff] }
 0xac9   : > { %v13694_v24 = vadd.f32 %v8019_v12, %v15086_v4 }
 0xaca   : > { %v13697_v55 = vadd.f32 %v8020_v35, %v15087_v23  ;;  %v6777_v17 = vadd.f32 %v13690_v8, %v13686_v45  ;;  %v15098_v23 = vld [vmem:[#allocation51_spill] sm:$0xff] }
 0xacc   : > { %v6680_v29 = vpop.f32.mrb[104].mxu1  ;;  %6778 = vadd.xlane.f32.xlu0 %v6777_v17  ;;  %v6780_v49 = vadd.f32 %v13697_v55, %v13694_v24 }
 0xacd   : > { %v8021_v36 = vadd.f32 %v6680_v29, %v13655_v63  ;;  %v6682_v46 = vpop.f32.mrb[105].mxu1  ;;  %v15099_v29 = vld [vmem:[#allocation50_spill] sm:$0xff] }
 0xace   : > { %v8022_v48 = vadd.f32 %v6682_v46, %v13661_v53  ;;  %v6684_v28 = vpop.f32.mrb[106].mxu1  ;;  %6781 = vadd.xlane.f32.xlu1 %v6780_v49 }
 0xacf   : > { %v13706_v3 = vadd.f32 %v8021_v36, %v15088_v18  ;;  %v8023_v54 = vadd.f32 %v6684_v28, %v13655_v63  ;;  %v6686_v22 = vpop.f32.mrb[107].mxu1 }
 0xad0   : > { %v13710_v2 = vadd.f32 %v8022_v48, %v15089_v9  ;;  %v8024_v42 = vadd.f32 %v6686_v22, %v13661_v53  ;;  %v15100_v9 = vld [vmem:[#allocation56_spill] sm:$0xff] }
 0xad1   : > { %v13714_v10 = vadd.f32 %v8023_v54, %v15090_v31 }
 0xad2   : > { %v13717_v38 = vadd.f32 %v8024_v42, %v15091_v14  ;;  %v6783_v27 = vadd.f32 %v13710_v2, %v13706_v3 }
 0xad4   : > { %v6690_v15 = vpop.f32.mrb[108].mxu1  ;;  %6784 = vadd.xlane.f32.xlu0 %v6783_v27  ;;  %v6786_v26 = vadd.f32 %v13717_v38, %v13714_v10  ;;  %v15101_v27 = vld [vmem:[#allocation53_spill] sm:$0xff] }
 0xad5   : > { %v8025_v57 = vadd.f32 %v6690_v15, %v13655_v63  ;;  %v6692_v0 = vpop.f32.mrb[109].mxu1 }
 0xad6   : > { %v8026_v60 = vadd.f32 %v6692_v0, %v13661_v53  ;;  %v6694_v21 = vpop.f32.mrb[110].mxu1  ;;  %6787 = vadd.xlane.f32.xlu1 %v6786_v26 }
 0xad7   : > { %v13726_v43 = vadd.f32 %v8025_v57, %v15092_v1  ;;  %v8027_v19 = vadd.f32 %v6694_v21, %v13655_v63  ;;  %v6696_v25 = vpop.f32.mrb[111].mxu1  ;;  %v15102_v57 = vld [vmem:[#allocation55_spill] sm:$0xff] }
 0xad8   : > { %v13730_v20 = vadd.f32 %v8026_v60, %v15093_v40  ;;  %v8028_v7 = vadd.f32 %v6696_v25, %v13661_v53  ;;  %v15103_v60 = vld [vmem:[#allocation54_spill] sm:$0xff] }
 0xad9   : > { %v13734_v34 = vadd.f32 %v8027_v19, %v15094_v39 }
 0xada   : > { %v13737_v62 = vadd.f32 %v8028_v7, %v15095_v41  ;;  %v6789_v16 = vadd.f32 %v13730_v20, %v13726_v43 }
 0xadc   : > { %v6700_v32 = vpop.f32.mrb[112].mxu1  ;;  %6790 = vadd.xlane.f32.xlu0 %v6789_v16  ;;  %v6792_v52 = vadd.f32 %v13737_v62, %v13734_v34  ;;  %v15104_v16 = vld [vmem:[#allocation60_spill] sm:$0xff] }
 0xadd   : > { %v8029_v50 = vadd.f32 %v6700_v32, %v13655_v63  ;;  %v6702_v61 = vpop.f32.mrb[113].mxu1 }
 0xade   : > { %v8030_v44 = vadd.f32 %v6702_v61, %v13661_v53  ;;  %v6704_v56 = vpop.f32.mrb[114].mxu1  ;;  %6793 = vadd.xlane.f32.xlu1 %v6792_v52  ;;  %v15105_v61 = vld [vmem:[#allocation57_spill] sm:$0xff] }
 0xadf   : > { %v13746_v13 = vadd.f32 %v8029_v50, %v15096_v11  ;;  %v8031_v12 = vadd.f32 %v6704_v56, %v13655_v63  ;;  %v6706_v5 = vpop.f32.mrb[115].mxu1  ;;  %v15106_v11 = vld [vmem:[#allocation59_spill] sm:$0xff] }
 0xae0   : > { %v13750_v35 = vadd.f32 %v8030_v44, %v15097_v6  ;;  %v8032_v4 = vadd.f32 %v6706_v5, %v13661_v53  ;;  %v15107_v5 = vld [vmem:[#allocation58_spill] sm:$0xff] }
 0xae1   : > { %v13754_v17 = vadd.f32 %v8031_v12, %v15098_v23 }
 0xae2   : > { %v13757_v49 = vadd.f32 %v8032_v4, %v15099_v29  ;;  %v6795_v36 = vadd.f32 %v13750_v35, %v13746_v13 }
 0xae4   : > { %v6710_v46 = vpop.f32.mrb[116].mxu1  ;;  %6796 = vadd.xlane.f32.xlu0 %v6795_v36  ;;  %v6798_v48 = vadd.f32 %v13757_v49, %v13754_v17 }
 0xae5   : > { %v8033_v28 = vadd.f32 %v6710_v46, %v13655_v63  ;;  %v6712_v18 = vpop.f32.mrb[117].mxu1 }
 0xae6   : > { %v8034_v54 = vadd.f32 %v6712_v18, %v13661_v53  ;;  %v6714_v22 = vpop.f32.mrb[118].mxu1  ;;  %6799 = vadd.xlane.f32.xlu1 %v6798_v48  ;;  %v15108_v18 = vld [vmem:[#allocation63_spill] sm:$0xff] }
 0xae7   : > { %v13766_v42 = vadd.f32 %v8033_v28, %v15100_v9  ;;  %v8035_v31 = vadd.f32 %v6714_v22, %v13655_v63  ;;  %v6716_v14 = vpop.f32.mrb[119].mxu1 }
 0xae8   : > { %v13770_v15 = vadd.f32 %v8034_v54, %v15101_v27  ;;  %v8036_v26 = vadd.f32 %v6716_v14, %v13661_v53 }
 0xae9   : > { %v13774_v0 = vadd.f32 %v8035_v31, %v15102_v57  ;;  %v15109_v31 = vld [vmem:[#allocation61_spill] sm:$0xff] }
 0xaea   : > { %v13777_v21 = vadd.f32 %v8036_v26, %v15103_v60  ;;  %v6801_v1 = vadd.f32 %v13770_v15, %v13766_v42  ;;  %v15110_v26 = vld [vmem:[#allocation64_spill] sm:$0xff]  ;;  %v15111_v60 = vld [vmem:[#allocation62_spill] sm:$0xff] }
 0xaec   : > { %v6720_v19 = vpop.f32.mrb[120].mxu1  ;;  %6802 = vadd.xlane.f32.xlu0 %v6801_v1  ;;  %v6804_v25 = vadd.f32 %v13777_v21, %v13774_v0 }
 0xaed   : > { %v8037_v40 = vadd.f32 %v6720_v19, %v13655_v63  ;;  %v6722_v7 = vpop.f32.mrb[121].mxu1 }
 0xaee   : > { %v8038_v39 = vadd.f32 %v6722_v7, %v13661_v53  ;;  %v6724_v41 = vpop.f32.mrb[122].mxu1  ;;  %6805 = vadd.xlane.f32.xlu1 %v6804_v25 }
 0xaef   : > { %v13786_v32 = vadd.f32 %v8037_v40, %v15104_v16  ;;  %v8039_v52 = vadd.f32 %v6724_v41, %v13655_v63  ;;  %v6726_v50 = vpop.f32.mrb[123].mxu1 }
 0xaf0   : > { %v13790_v44 = vadd.f32 %v8038_v39, %v15105_v61  ;;  %v8040_v56 = vadd.f32 %v6726_v50, %v13661_v53 }
 0xaf1   : > { %v13794_v12 = vadd.f32 %v8039_v52, %v15106_v11 }
 0xaf2   : > { %v13797_v6 = vadd.f32 %v8040_v56, %v15107_v5  ;;  %v6807_v4 = vadd.f32 %v13790_v44, %v13786_v32 }
 0xaf4   : > { %v6730_v23 = vpop.f32.mrb[124].mxu1  ;;  %6808 = vadd.xlane.f32.xlu0 %v6807_v4  ;;  %v6810_v29 = vadd.f32 %v13797_v6, %v13794_v12 }
 0xaf5   : > { %v8041_v36 = vadd.f32 %v6730_v23, %v13655_v63  ;;  %v6732_v46 = vpop.f32.mrb[125].mxu1 }
 0xaf6   : > { %v8042_v48 = vadd.f32 %v6732_v46, %v13661_v53  ;;  %v6734_v28 = vpop.f32.mrb[126].mxu1  ;;  %6811 = vadd.xlane.f32.xlu1 %v6810_v29 }
 0xaf7   : > { %v13806_v54 = vadd.f32 %v8041_v36, %v15108_v18  ;;  %v8043_v22 = vadd.f32 %v6734_v28, %v13655_v63  ;;  %v6736_v9 = vpop.f32.mrb[127].mxu1 }
 0xaf8   : > { %v13810_v14 = vadd.f32 %v8042_v48, %v15109_v31  ;;  %v8044_v27 = vadd.f32 %v6736_v9, %v13661_v53 }
 0xaf9   : > { %v13814_v57 = vadd.f32 %v8043_v22, %v15110_v26 }
 0xafa   : > { %v13817_v1 = vadd.f32 %v8044_v27, %v15111_v60  ;;  %v6813_v19 = vadd.f32 %v13810_v14, %v13806_v54 }
 0xafc   : > { %6814 = vadd.xlane.f32.xlu0 %v6813_v19  ;;  %v6816_v25 = vadd.f32 %v13817_v1, %v13814_v57 }
 0xafe   : > { %6817 = vadd.xlane.f32.xlu1 %v6816_v25 }
 0xb51   : > { %v6773_v63 = vpop.xlane.xlu0 %6772 }
 0xb52   : > { %v6819_v40 = vmul.f32 0.00390625, %v6773_v63 }
 0xb53   : > { %v6776_v7 = vpop.xlane.xlu1 %6775 }
 0xb54   : > { %v13824_v39 = vsub.f32 %v13666_v30, %v6819_v40  ;;  %v13827_v53 = vsub.f32 %v13670_v59, %v6819_v40  ;;  %v6820_v41 = vmul.f32 0.00390625, %v6776_v7 }
 0xb56   : > { %v6867_v16 = vmul.f32 %v13824_v39, %v13824_v39  ;;  %v6868_v52 = vmul.f32 %v13827_v53, %v13827_v53  ;;  %v13834_v50 = vsub.f32 %v13674_v51, %v6820_v41  ;;  %v13837_v61 = vsub.f32 %v13677_v47, %v6820_v41 }
 0xb58   : > { %v6869_v30 = vmul.f32 %v13834_v50, %v13834_v50  ;;  %v6870_v59 = vmul.f32 %v13837_v61, %v13837_v61  ;;  %v6899_v56 = vadd.f32 %v6868_v52, %v6867_v16 }
 0xb59   : > { %v6779_v11 = vpop.xlane.xlu0 %6778 }
 0xb5a   : > { %v6821_v5 = vmul.f32 0.00390625, %v6779_v11  ;;  %6900 = vadd.xlane.f32.xlu0 %v6899_v56  ;;  %v6902_v4 = vadd.f32 %v6870_v59, %v6869_v30 }
 0xb5b   : > { %v6782_v23 = vpop.xlane.xlu1 %6781 }
 0xb5c   : > { %v13844_v29 = vsub.f32 %v13686_v45, %v6821_v5  ;;  %v13847_v51 = vsub.f32 %v13690_v8, %v6821_v5  ;;  %v6822_v47 = vmul.f32 0.00390625, %v6782_v23  ;;  %6903 = vadd.xlane.f32.xlu1 %v6902_v4 }
 0xb5e   : > { %v6871_v36 = vmul.f32 %v13844_v29, %v13844_v29  ;;  %v6872_v46 = vmul.f32 %v13847_v51, %v13847_v51  ;;  %v13854_v48 = vsub.f32 %v13694_v24, %v6822_v47  ;;  %v13857_v28 = vsub.f32 %v13697_v55, %v6822_v47 }
 0xb60   : > { %v6873_v45 = vmul.f32 %v13854_v48, %v13854_v48  ;;  %v6874_v8 = vmul.f32 %v13857_v28, %v13857_v28  ;;  %v6905_v18 = vadd.f32 %v6872_v46, %v6871_v36 }
 0xb61   : > { %v6785_v22 = vpop.xlane.xlu0 %6784 }
 0xb62   : > { %v6823_v9 = vmul.f32 0.00390625, %v6785_v22  ;;  %6906 = vadd.xlane.f32.xlu0 %v6905_v18  ;;  %v6908_v31 = vadd.f32 %v6874_v8, %v6873_v45 }
 0xb63   : > { %v6788_v27 = vpop.xlane.xlu1 %6787 }
 0xb64   : > { %v13864_v26 = vsub.f32 %v13706_v3, %v6823_v9  ;;  %v13867_v24 = vsub.f32 %v13710_v2, %v6823_v9  ;;  %v6824_v55 = vmul.f32 0.00390625, %v6788_v27  ;;  %6909 = vadd.xlane.f32.xlu1 %v6908_v31 }
 0xb66   : > { %v6875_v60 = vmul.f32 %v13864_v26, %v13864_v26  ;;  %v6876_v19 = vmul.f32 %v13867_v24, %v13867_v24  ;;  %v13874_v25 = vsub.f32 %v13714_v10, %v6824_v55  ;;  %v13877_v63 = vsub.f32 %v13717_v38, %v6824_v55 }
 0xb68   : > { %v6877_v3 = vmul.f32 %v13874_v25, %v13874_v25  ;;  %v6878_v2 = vmul.f32 %v13877_v63, %v13877_v63  ;;  %v6911_v40 = vadd.f32 %v6876_v19, %v6875_v60 }
 0xb69   : > { %v6791_v7 = vpop.xlane.xlu0 %6790 }
 0xb6a   : > { %v6825_v41 = vmul.f32 0.00390625, %v6791_v7  ;;  %6912 = vadd.xlane.f32.xlu0 %v6911_v40  ;;  %v6914_v16 = vadd.f32 %v6878_v2, %v6877_v3 }
 0xb6b   : > { %v6794_v52 = vpop.xlane.xlu1 %6793 }
 0xb6c   : > { %v13884_v30 = vsub.f32 %v13726_v43, %v6825_v41  ;;  %v13887_v10 = vsub.f32 %v13730_v20, %v6825_v41  ;;  %v6826_v38 = vmul.f32 0.00390625, %v6794_v52  ;;  %6915 = vadd.xlane.f32.xlu1 %v6914_v16 }
 0xb6e   : > { %v6879_v59 = vmul.f32 %v13884_v30, %v13884_v30  ;;  %v6880_v56 = vmul.f32 %v13887_v10, %v13887_v10  ;;  %v13894_v11 = vsub.f32 %v13734_v34, %v6826_v38  ;;  %v13897_v5 = vsub.f32 %v13737_v62, %v6826_v38 }
 0xb70   : > { %v6881_v43 = vmul.f32 %v13894_v11, %v13894_v11  ;;  %v6882_v20 = vmul.f32 %v13897_v5, %v13897_v5  ;;  %v6917_v4 = vadd.f32 %v6880_v56, %v6879_v59 }
 0xb71   : > { %v6797_v23 = vpop.xlane.xlu0 %6796 }
 0xb72   : > { %v6827_v47 = vmul.f32 0.00390625, %v6797_v23  ;;  %6918 = vadd.xlane.f32.xlu0 %v6917_v4  ;;  %v6920_v36 = vadd.f32 %v6882_v20, %v6881_v43 }
 0xb73   : > { %v6800_v46 = vpop.xlane.xlu1 %6799 }
 0xb74   : > { %v13904_v45 = vsub.f32 %v13746_v13, %v6827_v47  ;;  %v13907_v34 = vsub.f32 %v13750_v35, %v6827_v47  ;;  %v6828_v62 = vmul.f32 0.00390625, %v6800_v46  ;;  %6921 = vadd.xlane.f32.xlu1 %v6920_v36 }
 0xb76   : > { %v6883_v8 = vmul.f32 %v13904_v45, %v13904_v45  ;;  %v6884_v18 = vmul.f32 %v13907_v34, %v13907_v34  ;;  %v13914_v22 = vsub.f32 %v13754_v17, %v6828_v62  ;;  %v13917_v9 = vsub.f32 %v13757_v49, %v6828_v62 }
 0xb78   : > { %v6885_v13 = vmul.f32 %v13914_v22, %v13914_v22  ;;  %v6886_v35 = vmul.f32 %v13917_v9, %v13917_v9  ;;  %v6923_v31 = vadd.f32 %v6884_v18, %v6883_v8 }
 0xb79   : > { %v6803_v27 = vpop.xlane.xlu0 %6802 }
 0xb7a   : > { %v6829_v55 = vmul.f32 0.00390625, %v6803_v27  ;;  %6924 = vadd.xlane.f32.xlu0 %v6923_v31  ;;  %v6926_v60 = vadd.f32 %v6886_v35, %v6885_v13 }
 0xb7b   : > { %v6806_v19 = vpop.xlane.xlu1 %6805 }
 0xb7c   : > { %v13924_v3 = vsub.f32 %v13766_v42, %v6829_v55  ;;  %v13927_v17 = vsub.f32 %v13770_v15, %v6829_v55  ;;  %v6830_v49 = vmul.f32 0.00390625, %v6806_v19  ;;  %6927 = vadd.xlane.f32.xlu1 %v6926_v60 }
 0xb7e   : > { %v6887_v2 = vmul.f32 %v13924_v3, %v13924_v3  ;;  %v6888_v40 = vmul.f32 %v13927_v17, %v13927_v17  ;;  %v13934_v7 = vsub.f32 %v13774_v0, %v6830_v49  ;;  %v13937_v41 = vsub.f32 %v13777_v21, %v6830_v49 }
 0xb80   : > { %v6889_v42 = vmul.f32 %v13934_v7, %v13934_v7  ;;  %v6890_v15 = vmul.f32 %v13937_v41, %v13937_v41  ;;  %v6929_v16 = vadd.f32 %v6888_v40, %v6887_v2 }
 0xb81   : > { %v6809_v52 = vpop.xlane.xlu0 %6808 }
 0xb82   : > { %v6831_v38 = vmul.f32 0.00390625, %v6809_v52  ;;  %6930 = vadd.xlane.f32.xlu0 %v6929_v16  ;;  %v6932_v59 = vadd.f32 %v6890_v15, %v6889_v42  ;;  %v7029_v52 = vsub.s32 6, %v15079_v58 }
 0xb83   : > { %v6812_v56 = vpop.xlane.xlu1 %6811 }
 0xb84   : > { %v13944_v43 = vsub.f32 %v13786_v32, %v6831_v38  ;;  %v13947_v0 = vsub.f32 %v13790_v44, %v6831_v38  ;;  %v6832_v21 = vmul.f32 0.00390625, %v6812_v56  ;;  %6933 = vadd.xlane.f32.xlu1 %v6932_v59 }
 0xb86   : > { %v6891_v20 = vmul.f32 %v13944_v43, %v13944_v43  ;;  %v6892_v4 = vmul.f32 %v13947_v0, %v13947_v0  ;;  %v13954_v23 = vsub.f32 %v13794_v12, %v6832_v21  ;;  %v13957_v47 = vsub.f32 %v13797_v6, %v6832_v21 }
 0xb87   : > { %v7069_v21 = vsub.s32 7, %v15079_v58 }
 0xb88   : > { %v6893_v32 = vmul.f32 %v13954_v23, %v13954_v23  ;;  %v6894_v44 = vmul.f32 %v13957_v47, %v13957_v47  ;;  %v6935_v36 = vadd.f32 %v6892_v4, %v6891_v20  ;;  %v13986_v4 = vrot.slane %v13652_v33, %v7029_v52 }
 0xb89   : > { %v6815_v46 = vpop.xlane.xlu0 %6814 }
 0xb8a   : > { %v6833_v62 = vmul.f32 0.00390625, %v6815_v46  ;;  %6936 = vadd.xlane.f32.xlu0 %v6935_v36  ;;  %v6938_v8 = vadd.f32 %v6894_v44, %v6893_v32  ;;  %v13989_v32 = vrot.slane %v13658_v37, %v7029_v52  ;;  %v13992_v36 = vrot.slane %v13652_v33, %v7069_v21 }
 0xb8b   : > { %v6818_v18 = vpop.xlane.xlu1 %6817  ;;  %v13995_v46 = vrot.slane %v13658_v37, %v7069_v21 }
 0xb8c   : > { %v13964_v13 = vsub.f32 %v13806_v54, %v6833_v62  ;;  %v13967_v12 = vsub.f32 %v13810_v14, %v6833_v62  ;;  %v6834_v6 = vmul.f32 0.00390625, %v6818_v18  ;;  %6939 = vadd.xlane.f32.xlu1 %v6938_v8 }
 0xb8e   : > { %v6895_v35 = vmul.f32 %v13964_v13, %v13964_v13  ;;  %v6896_v31 = vmul.f32 %v13967_v12, %v13967_v12  ;;  %v13974_v27 = vsub.f32 %v13814_v57, %v6834_v6  ;;  %v13977_v55 = vsub.f32 %v13817_v1, %v6834_v6 }
 0xb90   : > { %v6897_v54 = vmul.f32 %v13974_v27, %v13974_v27  ;;  %v6898_v14 = vmul.f32 %v13977_v55, %v13977_v55  ;;  %v6941_v60 = vadd.f32 %v6896_v31, %v6895_v35 }
 0xb92   : > { %6942 = vadd.xlane.f32.xlu0 %v6941_v60  ;;  %v6944_v19 = vadd.f32 %v6898_v14, %v6897_v54 }
 0xb94   : > { %6945 = vadd.xlane.f32.xlu1 %v6944_v19 }
 0xbe7   : > { %v6901_v49 = vpop.xlane.xlu0 %6900 }
 0xbe8   : > { %v6947_v2 = vmul.f32 0.00390625, %v6901_v49 }
 0xbe9   : > { %v6904_v40 = vpop.xlane.xlu1 %6903 }
 0xbea   : > { %v6963_v42 = vadd.f32 1e-12, %v6947_v2  ;;  %v6948_v15 = vmul.f32 0.00390625, %v6904_v40 }
 0xbec   : > { %9081 = vrsqrt.f32 %v6963_v42  ;;  %v6964_v57 = vadd.f32 1e-12, %v6948_v15 }
 0xbee   : > { %9083 = vrsqrt.f32 %v6964_v57 }
 0xbef   : > { %v6907_v1 = vpop.xlane.xlu0 %6906 }
 0xbf0   : > { %v6949_v16 = vmul.f32 0.00390625, %v6907_v1 }
 0xbf1   : > { %v6910_v38 = vpop.xlane.xlu1 %6909 }
 0xbf2   : > { %v6965_v59 = vadd.f32 1e-12, %v6949_v16  ;;  %v6950_v56 = vmul.f32 0.00390625, %v6910_v38 }
 0xbf4   : > { %9085 = vrsqrt.f32 %v6965_v59  ;;  %v6966_v20 = vadd.f32 1e-12, %v6950_v56 }
 0xbf6   : > { %v9082_v44 = vpop.eup %9081  ;;  %9087 = vrsqrt.f32 %v6966_v20 }
 0xbf7   : > { %v6995_v62 = vmul.f32 %v9082_v44, %v13824_v39  ;;  %v6996_v58 = vmul.f32 %v9082_v44, %v13827_v53  ;;  %v6913_v8 = vpop.xlane.xlu0 %6912 }
 0xbf8   : > { %v9084_v18 = vpop.eup %9083  ;;  %v6951_v6 = vmul.f32 0.00390625, %v6913_v8 }
 0xbf9   : > { %v7035_v35 = vmul.f32 %v13986_v4, %v6995_v62  ;;  %v7036_v31 = vmul.f32 %v13989_v32, %v6996_v58  ;;  %v6997_v54 = vmul.f32 %v9084_v18, %v13834_v50  ;;  %v6998_v14 = vmul.f32 %v9084_v18, %v13837_v61  ;;  %v6916_v33 = vpop.xlane.xlu1 %6915 }
 0xbfa   : > { %v6967_v60 = vadd.f32 1e-12, %v6951_v6  ;;  %v6952_v19 = vmul.f32 0.00390625, %v6916_v33 }
 0xbfb   : > { %v14004_v37 = vadd.f32 %v13992_v36, %v7035_v35  ;;  %v14007_v39 = vadd.f32 %v13995_v46, %v7036_v31  ;;  %v7037_v53 = vmul.f32 %v13986_v4, %v6997_v54  ;;  %v7038_v49 = vmul.f32 %v13989_v32, %v6998_v14 }
 0xbfc   : > { %9089 = vrsqrt.f32 %v6967_v60  ;;  %v6968_v2 = vadd.f32 1e-12, %v6952_v19 }
 0xbfd   : > { %7107 = vst [vmem:[#allocation2] sm:$0xff] %v14004_v37  ;;  %7108 = vst [vmem:[#allocation2 + $0x8] sm:$0xff] %v14007_v39  ;;  %v14014_v50 = vadd.f32 %v13992_v36, %v7037_v53  ;;  %v14017_v61 = vadd.f32 %v13995_v46, %v7038_v49 }
 0xbfe   : > { %v9086_v40 = vpop.eup %9085  ;;  %9091 = vrsqrt.f32 %v6968_v2  ;;  %7143 = vst [vmem:[%s9942_s17] sm:$0xff] (!%p7806_p9), %v14004_v37  ;;  %7144 = vst [vmem:[%s9942_s17 + $0x8] sm:$0xff] (!%p7806_p9), %v14007_v39 }
 0xbff   : > { %7109 = vst [vmem:[#allocation2 + $0x10] sm:$0xff] %v14014_v50  ;;  %7110 = vst [vmem:[#allocation2 + $0x18] sm:$0xff] %v14017_v61  ;;  %v6999_v42 = vmul.f32 %v9086_v40, %v13844_v29  ;;  %v7000_v15 = vmul.f32 %v9086_v40, %v13847_v51  ;;  %v6919_v57 = vpop.xlane.xlu0 %6918 }
 0xc00   : > { %v9088_v1 = vpop.eup %9087  ;;  %v6953_v16 = vmul.f32 0.00390625, %v6919_v57  ;;  %7145 = vst [vmem:[%s9942_s17 + $0x10] sm:$0xff] (!%p7806_p9), %v14014_v50  ;;  %7146 = vst [vmem:[%s9942_s17 + $0x18] sm:$0xff] (!%p7806_p9), %v14017_v61 }
 0xc01   : > { %v7039_v52 = vmul.f32 %v13986_v4, %v6999_v42  ;;  %v7040_v38 = vmul.f32 %v13989_v32, %v7000_v15  ;;  %v7001_v59 = vmul.f32 %v9088_v1, %v13854_v48  ;;  %v7002_v56 = vmul.f32 %v9088_v1, %v13857_v28  ;;  %v6922_v21 = vpop.xlane.xlu1 %6921 }
 0xc02   : > { %v6969_v20 = vadd.f32 1e-12, %v6953_v16  ;;  %v6954_v44 = vmul.f32 0.00390625, %v6922_v21 }
 0xc03   : > { %v14028_v62 = vadd.f32 %v13992_v36, %v7039_v52  ;;  %v14031_v29 = vadd.f32 %v13995_v46, %v7040_v38  ;;  %v7041_v51 = vmul.f32 %v13986_v4, %v7001_v59  ;;  %v7042_v58 = vmul.f32 %v13989_v32, %v7002_v56 }
 0xc04   : > { %9093 = vrsqrt.f32 %v6969_v20  ;;  %v6970_v8 = vadd.f32 1e-12, %v6954_v44 }
 0xc05   : > { %7111 = vst [vmem:[#allocation2 + $0x20] sm:$0xff] %v14028_v62  ;;  %7112 = vst [vmem:[#allocation2 + $0x28] sm:$0xff] %v14031_v29  ;;  %v14038_v48 = vadd.f32 %v13992_v36, %v7041_v51  ;;  %v14041_v28 = vadd.f32 %v13995_v46, %v7042_v58 }
 0xc06   : > { %v9090_v18 = vpop.eup %9089  ;;  %9095 = vrsqrt.f32 %v6970_v8  ;;  %7147 = vst [vmem:[%s9942_s17 + $0x20] sm:$0xff] (!%p7806_p9), %v14028_v62  ;;  %7148 = vst [vmem:[%s9942_s17 + $0x28] sm:$0xff] (!%p7806_p9), %v14031_v29 }
 0xc07   : > { %7113 = vst [vmem:[#allocation2 + $0x30] sm:$0xff] %v14038_v48  ;;  %7114 = vst [vmem:[#allocation2 + $0x38] sm:$0xff] %v14041_v28  ;;  %v7003_v6 = vmul.f32 %v9090_v18, %v13864_v26  ;;  %v7004_v35 = vmul.f32 %v9090_v18, %v13867_v24  ;;  %v6925_v31 = vpop.xlane.xlu0 %6924 }
 0xc08   : > { %v9092_v54 = vpop.eup %9091  ;;  %v6955_v14 = vmul.f32 0.00390625, %v6925_v31  ;;  %7149 = vst [vmem:[%s9942_s17 + $0x30] sm:$0xff] (!%p7806_p9), %v14038_v48  ;;  %7150 = vst [vmem:[%s9942_s17 + $0x38] sm:$0xff] (!%p7806_p9), %v14041_v28 }
 0xc09   : > { %v7043_v33 = vmul.f32 %v13986_v4, %v7003_v6  ;;  %v7044_v60 = vmul.f32 %v13989_v32, %v7004_v35  ;;  %v7005_v19 = vmul.f32 %v9092_v54, %v13874_v25  ;;  %v7006_v53 = vmul.f32 %v9092_v54, %v13877_v63  ;;  %v6928_v49 = vpop.xlane.xlu1 %6927 }
 0xc0a   : > { %v6971_v2 = vadd.f32 1e-12, %v6955_v14  ;;  %v6956_v40 = vmul.f32 0.00390625, %v6928_v49 }
 0xc0b   : > { %v14052_v42 = vadd.f32 %v13992_v36, %v7043_v33  ;;  %v14055_v26 = vadd.f32 %v13995_v46, %v7044_v60  ;;  %v7045_v24 = vmul.f32 %v13986_v4, %v7005_v19  ;;  %v7046_v15 = vmul.f32 %v13989_v32, %v7006_v53 }
 0xc0c   : > { %9097 = vrsqrt.f32 %v6971_v2  ;;  %v6972_v57 = vadd.f32 1e-12, %v6956_v40 }
 0xc0d   : > { %7115 = vst [vmem:[#allocation2 + $0x40] sm:$0xff] %v14052_v42  ;;  %7116 = vst [vmem:[#allocation2 + $0x48] sm:$0xff] %v14055_v26  ;;  %v14062_v25 = vadd.f32 %v13992_v36, %v7045_v24  ;;  %v14065_v63 = vadd.f32 %v13995_v46, %v7046_v15 }
 0xc0e   : > { %v9094_v1 = vpop.eup %9093  ;;  %9099 = vrsqrt.f32 %v6972_v57  ;;  %7151 = vst [vmem:[%s9942_s17 + $0x40] sm:$0xff] (!%p7806_p9), %v14052_v42  ;;  %7152 = vst [vmem:[%s9942_s17 + $0x48] sm:$0xff] (!%p7806_p9), %v14055_v26 }
 0xc0f   : > { %7117 = vst [vmem:[#allocation2 + $0x50] sm:$0xff] %v14062_v25  ;;  %7118 = vst [vmem:[#allocation2 + $0x58] sm:$0xff] %v14065_v63  ;;  %v7007_v16 = vmul.f32 %v9094_v1, %v13884_v30  ;;  %v7008_v52 = vmul.f32 %v9094_v1, %v13887_v10  ;;  %v6931_v38 = vpop.xlane.xlu0 %6930 }
 0xc10   : > { %v9096_v59 = vpop.eup %9095  ;;  %v6957_v56 = vmul.f32 0.00390625, %v6931_v38  ;;  %7153 = vst [vmem:[%s9942_s17 + $0x50] sm:$0xff] (!%p7806_p9), %v14062_v25  ;;  %7154 = vst [vmem:[%s9942_s17 + $0x58] sm:$0xff] (!%p7806_p9), %v14065_v63 }
 0xc11   : > { %v7047_v21 = vmul.f32 %v13986_v4, %v7007_v16  ;;  %v7048_v20 = vmul.f32 %v13989_v32, %v7008_v52  ;;  %v7009_v44 = vmul.f32 %v9096_v59, %v13894_v11  ;;  %v7010_v51 = vmul.f32 %v9096_v59, %v13897_v5  ;;  %v6934_v58 = vpop.xlane.xlu1 %6933 }
 0xc12   : > { %v6973_v8 = vadd.f32 1e-12, %v6957_v56  ;;  %v6958_v18 = vmul.f32 0.00390625, %v6934_v58 }
 0xc13   : > { %v14076_v6 = vadd.f32 %v13992_v36, %v7047_v21  ;;  %v14079_v30 = vadd.f32 %v13995_v46, %v7048_v20  ;;  %v7049_v10 = vmul.f32 %v13986_v4, %v7009_v44  ;;  %v7050_v35 = vmul.f32 %v13989_v32, %v7010_v51 }
 0xc14   : > { %9101 = vrsqrt.f32 %v6973_v8  ;;  %v6974_v31 = vadd.f32 1e-12, %v6958_v18 }
 0xc15   : > { %7119 = vst [vmem:[#allocation2 + $0x60] sm:$0xff] %v14076_v6  ;;  %7120 = vst [vmem:[#allocation2 + $0x68] sm:$0xff] %v14079_v30  ;;  %v14086_v11 = vadd.f32 %v13992_v36, %v7049_v10  ;;  %v14089_v5 = vadd.f32 %v13995_v46, %v7050_v35 }
 0xc16   : > { %v9098_v54 = vpop.eup %9097  ;;  %9103 = vrsqrt.f32 %v6974_v31  ;;  %7155 = vst [vmem:[%s9942_s17 + $0x60] sm:$0xff] (!%p7806_p9), %v14076_v6  ;;  %7156 = vst [vmem:[%s9942_s17 + $0x68] sm:$0xff] (!%p7806_p9), %v14079_v30 }
 0xc17   : > { %7121 = vst [vmem:[#allocation2 + $0x70] sm:$0xff] %v14086_v11  ;;  %7122 = vst [vmem:[#allocation2 + $0x78] sm:$0xff] %v14089_v5  ;;  %v7011_v14 = vmul.f32 %v9098_v54, %v13904_v45  ;;  %v7012_v33 = vmul.f32 %v9098_v54, %v13907_v34  ;;  %v6937_v60 = vpop.xlane.xlu0 %6936 }
 0xc18   : > { %v9100_v19 = vpop.eup %9099  ;;  %v6959_v53 = vmul.f32 0.00390625, %v6937_v60  ;;  %7157 = vst [vmem:[%s9942_s17 + $0x70] sm:$0xff] (!%p7806_p9), %v14086_v11  ;;  %7158 = vst [vmem:[%s9942_s17 + $0x78] sm:$0xff] (!%p7806_p9), %v14089_v5 }
 0xc19   : > { %v7051_v49 = vmul.f32 %v13986_v4, %v7011_v14  ;;  %v7052_v2 = vmul.f32 %v13989_v32, %v7012_v33  ;;  %v7013_v40 = vmul.f32 %v9100_v19, %v13914_v22  ;;  %v7014_v24 = vmul.f32 %v9100_v19, %v13917_v9  ;;  %v6940_v15 = vpop.xlane.xlu1 %6939 }
 0xc1a   : > { %v6975_v57 = vadd.f32 1e-12, %v6959_v53  ;;  %v6960_v1 = vmul.f32 0.00390625, %v6940_v15 }
 0xc1b   : > { %v14100_v16 = vadd.f32 %v13992_v36, %v7051_v49  ;;  %v14103_v45 = vadd.f32 %v13995_v46, %v7052_v2  ;;  %v7053_v34 = vmul.f32 %v13986_v4, %v7013_v40  ;;  %v7054_v52 = vmul.f32 %v13989_v32, %v7014_v24 }
 0xc1c   : > { %9105 = vrsqrt.f32 %v6975_v57  ;;  %v6976_v38 = vadd.f32 1e-12, %v6960_v1 }
 0xc1d   : > { %7123 = vst [vmem:[#allocation2 + $0x80] sm:$0xff] %v14100_v16  ;;  %7124 = vst [vmem:[#allocation2 + $0x88] sm:$0xff] %v14103_v45  ;;  %v14110_v22 = vadd.f32 %v13992_v36, %v7053_v34  ;;  %v14113_v9 = vadd.f32 %v13995_v46, %v7054_v52 }
 0xc1e   : > { %v9102_v59 = vpop.eup %9101  ;;  %9107 = vrsqrt.f32 %v6976_v38  ;;  %7159 = vst [vmem:[%s9942_s17 + $0x80] sm:$0xff] (!%p7806_p9), %v14100_v16  ;;  %7160 = vst [vmem:[%s9942_s17 + $0x88] sm:$0xff] (!%p7806_p9), %v14103_v45 }
 0xc1f   : > { %7125 = vst [vmem:[#allocation2 + $0x90] sm:$0xff] %v14110_v22  ;;  %7126 = vst [vmem:[#allocation2 + $0x98] sm:$0xff] %v14113_v9  ;;  %v7015_v56 = vmul.f32 %v9102_v59, %v13924_v3  ;;  %v7016_v21 = vmul.f32 %v9102_v59, %v13927_v17  ;;  %v6943_v20 = vpop.xlane.xlu0 %6942 }
 0xc20   : > { %v9104_v44 = vpop.eup %9103  ;;  %v6961_v51 = vmul.f32 0.00390625, %v6943_v20  ;;  %7161 = vst [vmem:[%s9942_s17 + $0x90] sm:$0xff] (!%p7806_p9), %v14110_v22  ;;  %7162 = vst [vmem:[%s9942_s17 + $0x98] sm:$0xff] (!%p7806_p9), %v14113_v9 }
 0xc21   : > { %v7055_v58 = vmul.f32 %v13986_v4, %v7015_v56  ;;  %v7056_v8 = vmul.f32 %v13989_v32, %v7016_v21  ;;  %v7017_v18 = vmul.f32 %v9104_v44, %v13934_v7  ;;  %v7018_v10 = vmul.f32 %v9104_v44, %v13937_v41  ;;  %v6946_v35 = vpop.xlane.xlu1 %6945 }
 0xc22   : > { %v6977_v31 = vadd.f32 1e-12, %v6961_v51  ;;  %v6962_v54 = vmul.f32 0.00390625, %v6946_v35 }
 0xc23   : > { %v14124_v14 = vadd.f32 %v13992_v36, %v7055_v58  ;;  %v14127_v3 = vadd.f32 %v13995_v46, %v7056_v8  ;;  %v7057_v17 = vmul.f32 %v13986_v4, %v7017_v18  ;;  %v7058_v33 = vmul.f32 %v13989_v32, %v7018_v10 }
 0xc24   : > { %9109 = vrsqrt.f32 %v6977_v31  ;;  %v6978_v60 = vadd.f32 1e-12, %v6962_v54 }
 0xc25   : > { %7127 = vst [vmem:[#allocation2 + $0xa0] sm:$0xff] %v14124_v14  ;;  %7128 = vst [vmem:[#allocation2 + $0xa8] sm:$0xff] %v14127_v3  ;;  %v14134_v7 = vadd.f32 %v13992_v36, %v7057_v17  ;;  %v14137_v41 = vadd.f32 %v13995_v46, %v7058_v33 }
 0xc26   : > { %v9106_v19 = vpop.eup %9105  ;;  %9111 = vrsqrt.f32 %v6978_v60  ;;  %7163 = vst [vmem:[%s9942_s17 + $0xa0] sm:$0xff] (!%p7806_p9), %v14124_v14  ;;  %7164 = vst [vmem:[%s9942_s17 + $0xa8] sm:$0xff] (!%p7806_p9), %v14127_v3 }
 0xc27   : > { %7129 = vst [vmem:[#allocation2 + $0xb0] sm:$0xff] %v14134_v7  ;;  %7130 = vst [vmem:[#allocation2 + $0xb8] sm:$0xff] %v14137_v41  ;;  %v7019_v53 = vmul.f32 %v9106_v19, %v13944_v43  ;;  %v7020_v49 = vmul.f32 %v9106_v19, %v13947_v0 }
 0xc28   : > { %v9108_v2 = vpop.eup %9107  ;;  %7165 = vst [vmem:[%s9942_s17 + $0xb0] sm:$0xff] (!%p7806_p9), %v14134_v7  ;;  %7166 = vst [vmem:[%s9942_s17 + $0xb8] sm:$0xff] (!%p7806_p9), %v14137_v41 }
 0xc29   : > { %v7059_v40 = vmul.f32 %v13986_v4, %v7019_v53  ;;  %v7060_v24 = vmul.f32 %v13989_v32, %v7020_v49  ;;  %v7021_v15 = vmul.f32 %v9108_v2, %v13954_v23  ;;  %v7022_v57 = vmul.f32 %v9108_v2, %v13957_v47 }
 0xc2b   : > { %v7099_v1 = vadd.f32 %v13992_v36, %v7059_v40  ;;  %v7100_v34 = vadd.f32 %v13995_v46, %v7060_v24  ;;  %v7061_v52 = vmul.f32 %v13986_v4, %v7021_v15  ;;  %v7062_v38 = vmul.f32 %v13989_v32, %v7022_v57 }
 0xc2d   : > { %7131 = vst [vmem:[#allocation2 + $0xc0] sm:$0xff] %v7099_v1  ;;  %7132 = vst [vmem:[#allocation2 + $0xc8] sm:$0xff] %v7100_v34  ;;  %v7101_v43 = vadd.f32 %v13992_v36, %v7061_v52  ;;  %v7102_v0 = vadd.f32 %v13995_v46, %v7062_v38 }
 0xc2e   : > { %v9110_v59 = vpop.eup %9109  ;;  %7167 = vst [vmem:[%s9942_s17 + $0xc0] sm:$0xff] (!%p7806_p9), %v7099_v1  ;;  %7168 = vst [vmem:[%s9942_s17 + $0xc8] sm:$0xff] (!%p7806_p9), %v7100_v34 }
 0xc2f   : > { %7133 = vst [vmem:[#allocation2 + $0xd0] sm:$0xff] %v7101_v43  ;;  %7134 = vst [vmem:[#allocation2 + $0xd8] sm:$0xff] %v7102_v0  ;;  %v7023_v23 = vmul.f32 %v9110_v59, %v13964_v13  ;;  %v7024_v47 = vmul.f32 %v9110_v59, %v13967_v12 }
 0xc30   : > { %v9112_v56 = vpop.eup %9111  ;;  %7169 = vst [vmem:[%s9942_s17 + $0xd0] sm:$0xff] (!%p7806_p9), %v7101_v43  ;;  %7170 = vst [vmem:[%s9942_s17 + $0xd8] sm:$0xff] (!%p7806_p9), %v7102_v0 }
 0xc31   : > { %v7063_v21 = vmul.f32 %v13986_v4, %v7023_v23  ;;  %v7064_v20 = vmul.f32 %v13989_v32, %v7024_v47  ;;  %v7025_v44 = vmul.f32 %v9112_v56, %v13974_v27  ;;  %v7026_v51 = vmul.f32 %v9112_v56, %v13977_v55  ;;  %7142 = sbr.rel (%p7806_p9) target bundleno = 3129 (0xc39), region = 80 }
 0xc33   : > { %v7103_v58 = vadd.f32 %v13992_v36, %v7063_v21  ;;  %v7104_v8 = vadd.f32 %v13995_v46, %v7064_v20  ;;  %v7065_v18 = vmul.f32 %v13986_v4, %v7025_v44  ;;  %v7066_v10 = vmul.f32 %v13989_v32, %v7026_v51 }
 0xc35   : > { %7135 = vst [vmem:[#allocation2 + $0xe0] sm:$0xff] %v7103_v58  ;;  %7136 = vst [vmem:[#allocation2 + $0xe8] sm:$0xff] %v7104_v8  ;;  %v7105_v13 = vadd.f32 %v13992_v36, %v7065_v18  ;;  %v7106_v12 = vadd.f32 %v13995_v46, %v7066_v10 }
 0xc36   : > { %7171 = vst [vmem:[%s9942_s17 + $0xe0] sm:$0xff] (!%p7806_p9), %v7103_v58  ;;  %7172 = vst [vmem:[%s9942_s17 + $0xe8] sm:$0xff] (!%p7806_p9), %v7104_v8 }
 0xc37   : > { %7137 = vst [vmem:[#allocation2 + $0xf0] sm:$0xff] %v7105_v13  ;;  %7138 = vst [vmem:[#allocation2 + $0xf8] sm:$0xff] %v7106_v12 }
 0xc38   : > { %7173 = vst [vmem:[%s9942_s17 + $0xf0] sm:$0xff] %v7105_v13  ;;  %7174 = vst [vmem:[%s9942_s17 + $0xf8] sm:$0xff] %v7106_v12 }
 0xc39 PF: > { %s15113_s0 = sld [smem:[#allocation23_spill]]  ;;  %s15114_s20 = sld [smem:[#allocation203_spill]] }
 0xc3a   : > { %s7190_s8 = sshll.u32 %s9942_s17, 4  ;;  %s7176_s14 = scalar_lea.sflag [#allocation5], %s9900_s21  ;;  %s14229_s8 = int_to_ptr.vmem [resolvable:$true] %s7190_s8 }
 0xc3b   : > { %s9335_s23 = scalar_lea.vmem %s14229_s8, 4096  ;;  %p15115_p12 = scmp.ne.s32.totalorder %s14570_s30, 0 }
 0xc3c   : > { %p9336_p6 = scmp.ne.s32.totalorder %s14229_s8, %s9335_s23  ;;  %s9485_s12 = smov [#allocation14]  }
 0xc3d   : > { %s9339_s19 = sshll.u32 %s9485_s12, 4  ;;  %s9340_s19 = int_to_ptr.vmem [resolvable:$false] %s9339_s19 }
 0xc3e   : > { %p9337_p13 = pnand %p9336_p6, %p15115_p12  ;;  %s9341_s24 = scalar_lea.vmem %s9340_s19, 8192 }
 0xc3f   : > { %s7820_s4 = sshll.u32 %s15113_s0, 12  ;;  %p9342_p2 = scmp.lt.s32.totalorder %s14229_s8, %s9340_s19 }
 0xc40   : > { %s14226_s1 = scalar_lea.hbm %s15114_s20, %s7820_s4  ;;  %p9338_p11 = pneg %p9337_p13 }
 0xc41   : > { %p9343_p4 = scmp.lt.s32.totalorder %s9341_s24, %s9335_s23 }
 0xc43   : > { %p9344_p3 = por %p9343_p4, %p9342_p2 }
 0xc45   : > { %p9345_p8 = pnand %p9344_p3, %p9338_p11 }
 0xc47   : > { %9348 = shalt.err (!%p9345_p8)
}
 0xc48   : > { %s9349_s7 = scalar_lea.hbm %s14226_s1, 4096  ;;  %s9353_s17 = scalar_lea.hbm %s15114_s20, 8192 }
 0xc49   : > { %p9350_p10 = scmp.ne.s32.totalorder %s14226_s1, %s9349_s7  ;;  %p9354_p5 = scmp.lt.u32.totalorder %s14226_s1, %s15114_s20 }
 0xc4a   : > { %p9355_p0 = scmp.lt.u32.totalorder %s9353_s17, %s9349_s7  ;;  %p9357_p6 = scmp.lt.u32.totalorder %s9349_s7, %s14226_s1 }
 0xc4b   : > { %p9351_p7 = pnand %p9350_p10, %p15115_p12 }
 0xc4c   : > { %p9356_p9 = por %p9355_p0, %p9354_p5 }
 0xc4d   : > { %p9352_p1 = pneg %p9351_p7 }
 0xc4e   : > { %p9358_p13 = por %p9357_p6, %p9356_p9 }
 0xc50   : > { %p9359_p11 = pnand %p9358_p13, %p9352_p1 }
 0xc52   : > { %9362 = shalt.err (!%p9359_p11)
}
 0xc53   : > { %s9486_s18 = smov 256   ;;  %s9487_s10 = smov 16  }
 0xc54   : > { %8156 = dma.vmem_to_hbm [thread:$0]  (%p15115_p12), %s14229_s8, 4096, %s14226_s1, %s7176_s14, %s9486_s18, %s9486_s18, %s9487_s10  }
 0xc55 PF: > { %s15116_s26 = sld [smem:[#allocation31_spill]]  ;;  %p8182_p2 = scmp.ge.s32.totalorder %s9469_s11, 2 }
 0xc56   : > { %s7205_s0 = sand.u32 1, %s9441_s27  }
 0xc57   : > { %s7206_s4 = scalar_lea.sflag [#allocation5], %s7205_s0 }
 0xc5b   : > { %p15117_p4 = scmp.ne.s32.totalorder %s15116_s26, 0 }
 0xc5d   : > { %p8178_p3 = pnand %p8182_p2, %p15117_p4 }
 0xc5f   : > { %9424 = dma.done.wait (!%p8178_p3), %s7206_s4, 4096  }
 0xc60   : > { %9426 = vsyncadd (!%p8178_p3), %s7206_s4, 4294963200  ;;  %s32_s11 = sadd.s32 1, %s9469_s11   ;;  %s15118_s22 = sld [smem:[#allocation20_spill]] }
 0xc61   : > { %p29_p8 = scmp.ge.s32.totalorder %s32_s11, 6   ;;  %s15119_s26 = sld [smem:[#allocation29_spill]] }
 0xc62   : > { %s15120_s30 = sld [smem:[#allocation21_spill]]  ;;  %s15121_s29 = sld [smem:[#allocation30_spill]] }
 0xc63   : > { %s15122_s8 = sld [smem:[#allocation24_spill]]  ;;  %s15123_s21 = sld [smem:[#allocation26_spill]] }
 0xc64   : > { %s15124_s10 = sld [smem:[#allocation28_spill]]  ;;  %s15125_s24 = smov %s9433_s25 }
 0xc65   : > { %s15127_s27 = smov %s9445_s28  ;;  %31 = sbr.rel (!%p29_p8) target bundleno = 22 (0x16), region = 165 }
 0xc66   : > { %s15126_s25 = smov %s15118_s22 }
 0xc68   : > { %s15128_s28 = smov %s15120_s30  ;;  %s15129_s30 = smov %s9461_s9 }
 0xc69   : > { %s15130_s9 = smov %s15123_s21 }
 0xc6c   :  { %7211 = vsyncpa [#allocation4], 1 }
 0xc6d   :  { %7213 = vsyncpa [#allocation4 + $0x1], 1 }
 0xc6e   :  { %7214 = vsyncpa [#allocation7], 1 }
 0xc6f   :  { %7216 = vsyncpa [#allocation7 + $0x1], 1 }
 0xc70   :  { %7217 = vsyncpa [#allocation10], 1 }
 0xc71   :  { %7219 = vsyncpa [#allocation10 + $0x1], 1 }
 0xc72   :  { %7220 = vsyncpa [#allocation13], 1 }
 0xc73   :  { %7222 = vsyncpa [#allocation13 + $0x1], 1 }
 0xc74   :  { %7223 = vsyncpa [#allocation5], 1 }
 0xc75   :  { %7225 = vsyncpa [#allocation5 + $0x1], 1 }

</bundles_post_ra>
